<compile_context>
chip_gen: v7x
topology: tpu7x:2x2x1
jax: 0.10.0
libtpu: 0.0.40
codegen_flags: <defaults>
</compile_context>

<pallas_src>
import functools

import jax
import jax.numpy as jnp
from jax import lax
from jax.experimental import pallas as pl
from jax.experimental.pallas import tpu as pltpu

EPS = 1e-5


def _edge_masks(rows, H, W):
    """Boolean (rows, H*W) masks marking first/last column and first/last row
    of the (H, W) image held by each lane-flattened row."""
    HW = H * W
    pos = lax.broadcasted_iota(jnp.int32, (rows, HW), 1)
    if (W & (W - 1)) == 0:                       # power of two: cheap bit ops
        col = pos & (W - 1)
        row = pos >> (W.bit_length() - 1)
    else:
        col = pos % W
        row = pos // W
    return (col == 0, col == W - 1, row == 0, row == H - 1)


def _conv3x3_reflect(src_ref, w_ref, w_off, dst_ref, n_img, C, W, masks):
    """Reflect-pad-1 3x3 conv on channel-major, lane-flattened images.

    src_ref / dst_ref: (C*n_img, H*W) VMEM refs, row r = channel*n_img + image.
    w_ref: flat f32 SMEM ref; entry w_off + ((ky*3+kx)*C + ci)*C + co equals
           torch_weight[co, ci, ky, kx].
    Taps use pltpu.roll (jnp.roll semantics: result[p] = x[p-shift]) plus
    edge-mask selects, so there is no padding buffer and no slice crossing an
    (8,128) tile boundary.  Column selects are applied BEFORE the perpendicular
    row roll, which makes the corners exact.  src_ref may alias dst_ref: every
    read happens before the final per-channel writes.
    """
    is_c0, is_cL, is_r0, is_rL = masks
    HW = src_ref.shape[-1]

    acc = [None] * C
    for ci in range(C):
        xs = src_ref[ci * n_img:(ci + 1) * n_img, :].astype(jnp.float32)
        r_w = pltpu.roll(xs, 1, axis=1)          # p <- x[p-1]  (west, wraps at c==0)
        r_e = pltpu.roll(xs, HW - 1, axis=1)     # p <- x[p+1]  (east, wraps at c==W-1)
        west = jnp.where(is_c0, r_e, r_w)        # x[r, c-1]; reflect c=-1 -> c=1
        east = jnp.where(is_cL, r_w, r_e)        # x[r, c+1]; reflect c=W  -> c=W-2
        for kx, v in enumerate((west, xs, east)):        # kx=0,1,2 <-> dx=-1,0,+1
            v_n = pltpu.roll(v, W, axis=1)               # p <- v[p-W]  (row r-1)
            v_s = pltpu.roll(v, HW - W, axis=1)          # p <- v[p+W]  (row r+1)
            taps = (jnp.where(is_r0, v_s, v_n),          # ky=0: reflect r=-1 -> r=1
                    v,                                   # ky=1
                    jnp.where(is_rL, v_n, v_s))          # ky=2: reflect r=H  -> r=H-2
            for ky, tap in enumerate(taps):
                base = w_off + ((ky * 3 + kx) * C + ci) * C
                for co in range(C):
                    # SMEM scalar * (n_img, HW) slab FMA on the VPU.
                    term = w_ref[base + co] * tap
                    acc[co] = term if acc[co] is None else acc[co] + term
    for co in range(C):
        dst_ref[co * n_img:(co + 1) * n_img, :] = acc[co]


def _instance_norm(y):
    """Per-row InstanceNorm (affine=False): single pass, sum and sum-of-squares
    reduced in parallel, biased variance, eps inside rsqrt, f32 accumulation."""
    inv_hw = 1.0 / y.shape[-1]
    s1 = jnp.sum(y, axis=-1, keepdims=True)
    s2 = jnp.sum(y * y, axis=-1, keepdims=True)
    mean = s1 * inv_hw
    var = jnp.maximum(s2 * inv_hw - mean * mean, 0.0)
    return (y - mean) * lax.rsqrt(var + EPS)


def resnet_block_kernel(w_ref, x_ref, o_ref, y_ref, *, n_img, C, H, W):
    masks = _edge_masks(n_img, H, W)                    # shared by both convs

    # conv3x3 -> InstanceNorm -> ReLU  (conv bias dropped: IN mean-sub removes it)
    _conv3x3_reflect(x_ref, w_ref, 0, y_ref, n_img, C, W, masks)
    y_ref[...] = jnp.maximum(_instance_norm(y_ref[...]), 0.0)

    # conv3x3 -> InstanceNorm
    _conv3x3_reflect(y_ref, w_ref, 9 * C * C, y_ref, n_img, C, W, masks)
    y = _instance_norm(y_ref[...])

    # skip connection fused into the output store (full-width unmasked vst)
    o_ref[...] = (x_ref[...].astype(jnp.float32) + y).astype(o_ref.dtype)


def _prep_weights(w):
    """(Cout, Cin, 3, 3) OIHW -> flat (9*Cin*Cout,) f32 ordered (ky, kx, ci, co)."""
    return jnp.transpose(w.astype(jnp.float32), (2, 3, 1, 0)).reshape(-1)


def _default_images_per_block(N):
    """Single-TC v5e/v6e: fold the whole batch into one grid step (one DMA pair,
    one launch).  Dual-TC v7x: keep >= 2 parallel grid steps so both cores work."""
    try:
        kind = jax.devices()[0].device_kind.lower()
    except Exception:
        kind = ""
    if ("v7" in kind or "7x" in kind) and N % 2 == 0:
        return max(N // 2, 1)
    return N


def resnet_block(x, w1, b1, w2, b2, *, images_per_block=None):
    """x: (N, C, H, W); w*: (C, C, 3, 3) OIHW; b*: (C,).

    Conv biases are accepted for API parity but are mathematically inert: a
    per-channel constant added before an affine=False InstanceNorm is exactly
    removed by the mean subtraction.  bf16 or f32 inputs both work (math is f32).
    """
    del b1, b2
    N, C, H, W = x.shape
    HW = H * W
    G = _default_images_per_block(N) if images_per_block is None else images_per_block
    if N % G != 0:
        raise ValueError(f"images_per_block={G} must divide batch size {N}")

    # Fold G images into the sublane dim, channel-major rows (c*G + image).
    # Layout plumbing only; the last dim H*W stays lane-dense (multiple of 128).
    xf = (x.reshape(N // G, G, C, H, W)
           .transpose(0, 2, 1, 3, 4)
           .reshape(N // G, C * G, HW))
    w_flat = jnp.concatenate([_prep_weights(w1), _prep_weights(w2)])   # (2*9*C*C,)

    kernel = functools.partial(resnet_block_kernel, n_img=G, C=C, H=H, W=W)
    out = pl.pallas_call(
        kernel,
        out_shape=jax.ShapeDtypeStruct((N // G, C * G, HW), x.dtype),
        grid=(N // G,),
        in_specs=[
            pl.BlockSpec(memory_space=pltpu.MemorySpace.SMEM),        # weights
            pl.BlockSpec((None, C * G, HW), lambda i: (i, 0, 0)),     # activations
        ],
        out_specs=pl.BlockSpec((None, C * G, HW), lambda i: (i, 0, 0)),
        scratch_shapes=[pltpu.VMEM((C * G, HW), jnp.float32)],
        compiler_params=pltpu.CompilerParams(
            dimension_semantics=("parallel",)),
    )(w_flat, xf)
    return (out.reshape(N // G, C, G, H, W)
               .transpose(0, 2, 1, 3, 4)
               .reshape(N, C, H, W))


def _reference(x, w1, b1, w2, b2):
    """Pure-JAX reference matching the PyTorch module (including the biases)."""
    def conv(h, w, b):
        hp = jnp.pad(h, ((0, 0), (0, 0), (1, 1), (1, 1)), mode="reflect")
        y = lax.conv_general_dilated(hp, w, (1, 1), "VALID",
                                     dimension_numbers=("NCHW", "OIHW", "NCHW"))
        return y + b[None, :, None, None]

    def inorm(y):
        m = y.mean(axis=(2, 3), keepdims=True)
        v = ((y - m) ** 2).mean(axis=(2, 3), keepdims=True)
        return (y - m) / jnp.sqrt(v + EPS)

    h = jax.nn.relu(inorm(conv(x, w1, b1)))
    h = inorm(conv(h, w2, b2))
    return x + h


if __name__ == "__main__":
    N, C, H, W = 2, 4, 16, 16
    key = jax.random.PRNGKey(0)
    kx, k1, kb1, k2, kb2 = jax.random.split(key, 5)

    x = jax.random.normal(kx, (N, C, H, W), jnp.float32)

    # deterministic Conv2d-style init (uniform in +-1/sqrt(fan_in))
    fan_in = C * 3 * 3
    bound = 1.0 / (fan_in ** 0.5)
    w1 = jax.random.uniform(k1, (C, C, 3, 3), jnp.float32, -bound, bound)
    b1 = jax.random.uniform(kb1, (C,), jnp.float32, -bound, bound)
    w2 = jax.random.uniform(k2, (C, C, 3, 3), jnp.float32, -bound, bound)
    b2 = jax.random.uniform(kb2, (C,), jnp.float32, -bound, bound)

    out = resnet_block(x, w1, b1, w2, b2)
    jax.block_until_ready(out)

    ref = _reference(x, w1, b1, w2, b2)
    assert out.shape == ref.shape and out.dtype == ref.dtype
    err = float(jnp.max(jnp.abs(out - ref)))
    assert jnp.allclose(out, ref, atol=1e-4, rtol=1e-4), err

    print("KERNEL_OK")
</pallas_src>

<mosaic_0001>
module attributes {stable_mosaic.version = 11 : i64} {
  func.func @resnet_block_kernel(%arg0: i32, %arg1: memref<288xf32, #tpu.memory_space<smem>>, %arg2: memref<1x8x256xf32, #tpu.memory_space<vmem>>, %arg3: memref<1x8x256xf32, #tpu.memory_space<vmem>>, %arg4: memref<8x256xf32, #tpu.memory_space<vmem>>) attributes {dimension_semantics = [#tpu.dimension_semantics<parallel>], iteration_bounds = array<i64: 1>, scalar_prefetch = 0 : i64, scratch_operands = 1 : i64, tpu.core_type = #tpu.core_type<tc>, window_params = [{transform_indices = @transform_0, window_bounds = array<i64: 288>}, {transform_indices = @transform_1, window_bounds = array<i64: 1, 8, 256>}, {transform_indices = @transform_2, window_bounds = array<i64: 1, 8, 256>}]} {
    %0 = tpu.iota {dimensions = array<i32: 1>} : vector<2x256xi32>
    %c15_i32 = arith.constant 15 : i32
    %1 = vector.broadcast %c15_i32 : i32 to vector<2x256xi32>
    %2 = arith.andi %0, %1 : vector<2x256xi32>
    %c4_i32 = arith.constant 4 : i32
    %3 = vector.broadcast %c4_i32 : i32 to vector<2x256xi32>
    %4 = arith.shrsi %0, %3 : vector<2x256xi32>
    %c0_i32 = arith.constant 0 : i32
    %5 = vector.broadcast %c0_i32 : i32 to vector<2x256xi32>
    %6 = arith.cmpi eq, %2, %5 : vector<2x256xi32>
    %c15_i32_0 = arith.constant 15 : i32
    %7 = vector.broadcast %c15_i32_0 : i32 to vector<2x256xi32>
    %8 = arith.cmpi eq, %2, %7 : vector<2x256xi32>
    %c0_i32_1 = arith.constant 0 : i32
    %9 = vector.broadcast %c0_i32_1 : i32 to vector<2x256xi32>
    %10 = arith.cmpi eq, %4, %9 : vector<2x256xi32>
    %c15_i32_2 = arith.constant 15 : i32
    %11 = vector.broadcast %c15_i32_2 : i32 to vector<2x256xi32>
    %12 = arith.cmpi eq, %4, %11 : vector<2x256xi32>
    %c0 = arith.constant 0 : index
    %c0_3 = arith.constant 0 : index
    %c0_4 = arith.constant 0 : index
    %13 = vector.load %arg2[%c0, %c0_3, %c0_4] : memref<1x8x256xf32, #tpu.memory_space<vmem>>, vector<1x2x256xf32>
    %14 = vector.shape_cast %13 : vector<1x2x256xf32> to vector<2x256xf32>
    %c1_i32 = arith.constant 1 : i32
    %15 = tpu.dynamic_rotate %14 by %c1_i32 dim 1 : vector<2x256xf32>, i32 -> vector<2x256xf32>
    %c255_i32 = arith.constant 255 : i32
    %16 = tpu.dynamic_rotate %14 by %c255_i32 dim 1 : vector<2x256xf32>, i32 -> vector<2x256xf32>
    %17 = arith.select %6, %16, %15 : vector<2x256xi1>, vector<2x256xf32>
    %18 = arith.select %8, %15, %16 : vector<2x256xi1>, vector<2x256xf32>
    %c16_i32 = arith.constant 16 : i32
    %19 = tpu.dynamic_rotate %17 by %c16_i32 dim 1 : vector<2x256xf32>, i32 -> vector<2x256xf32>
    %c240_i32 = arith.constant 240 : i32
    %20 = tpu.dynamic_rotate %17 by %c240_i32 dim 1 : vector<2x256xf32>, i32 -> vector<2x256xf32>
    %21 = arith.select %10, %20, %19 : vector<2x256xi1>, vector<2x256xf32>
    %22 = arith.select %12, %19, %20 : vector<2x256xi1>, vector<2x256xf32>
    %c0_5 = arith.constant 0 : index
    %23 = memref.load %arg1[%c0_5] : memref<288xf32, #tpu.memory_space<smem>>
    %24 = vector.broadcast %23 : f32 to vector<2x256xf32>
    %25 = arith.mulf %24, %21 : vector<2x256xf32>
    %c1 = arith.constant 1 : index
    %26 = memref.load %arg1[%c1] : memref<288xf32, #tpu.memory_space<smem>>
    %27 = vector.broadcast %26 : f32 to vector<2x256xf32>
    %28 = arith.mulf %27, %21 : vector<2x256xf32>
    %c2 = arith.constant 2 : index
    %29 = memref.load %arg1[%c2] : memref<288xf32, #tpu.memory_space<smem>>
    %30 = vector.broadcast %29 : f32 to vector<2x256xf32>
    %31 = arith.mulf %30, %21 : vector<2x256xf32>
    %c3 = arith.constant 3 : index
    %32 = memref.load %arg1[%c3] : memref<288xf32, #tpu.memory_space<smem>>
    %33 = vector.broadcast %32 : f32 to vector<2x256xf32>
    %34 = arith.mulf %33, %21 : vector<2x256xf32>
    %c48 = arith.constant 48 : index
    %35 = memref.load %arg1[%c48] : memref<288xf32, #tpu.memory_space<smem>>
    %36 = vector.broadcast %35 : f32 to vector<2x256xf32>
    %37 = arith.mulf %36, %17 : vector<2x256xf32>
    %38 = arith.addf %25, %37 : vector<2x256xf32>
    %c49 = arith.constant 49 : index
    %39 = memref.load %arg1[%c49] : memref<288xf32, #tpu.memory_space<smem>>
    %40 = vector.broadcast %39 : f32 to vector<2x256xf32>
    %41 = arith.mulf %40, %17 : vector<2x256xf32>
    %42 = arith.addf %28, %41 : vector<2x256xf32>
    %c50 = arith.constant 50 : index
    %43 = memref.load %arg1[%c50] : memref<288xf32, #tpu.memory_space<smem>>
    %44 = vector.broadcast %43 : f32 to vector<2x256xf32>
    %45 = arith.mulf %44, %17 : vector<2x256xf32>
    %46 = arith.addf %31, %45 : vector<2x256xf32>
    %c51 = arith.constant 51 : index
    %47 = memref.load %arg1[%c51] : memref<288xf32, #tpu.memory_space<smem>>
    %48 = vector.broadcast %47 : f32 to vector<2x256xf32>
    %49 = arith.mulf %48, %17 : vector<2x256xf32>
    %50 = arith.addf %34, %49 : vector<2x256xf32>
    %c96 = arith.constant 96 : index
    %51 = memref.load %arg1[%c96] : memref<288xf32, #tpu.memory_space<smem>>
    %52 = vector.broadcast %51 : f32 to vector<2x256xf32>
    %53 = arith.mulf %52, %22 : vector<2x256xf32>
    %54 = arith.addf %38, %53 : vector<2x256xf32>
    %c97 = arith.constant 97 : index
    %55 = memref.load %arg1[%c97] : memref<288xf32, #tpu.memory_space<smem>>
    %56 = vector.broadcast %55 : f32 to vector<2x256xf32>
    %57 = arith.mulf %56, %22 : vector<2x256xf32>
    %58 = arith.addf %42, %57 : vector<2x256xf32>
    %c98 = arith.constant 98 : index
    %59 = memref.load %arg1[%c98] : memref<288xf32, #tpu.memory_space<smem>>
    %60 = vector.broadcast %59 : f32 to vector<2x256xf32>
    %61 = arith.mulf %60, %22 : vector<2x256xf32>
    %62 = arith.addf %46, %61 : vector<2x256xf32>
    %c99 = arith.constant 99 : index
    %63 = memref.load %arg1[%c99] : memref<288xf32, #tpu.memory_space<smem>>
    %64 = vector.broadcast %63 : f32 to vector<2x256xf32>
    %65 = arith.mulf %64, %22 : vector<2x256xf32>
    %66 = arith.addf %50, %65 : vector<2x256xf32>
    %c16_i32_6 = arith.constant 16 : i32
    %67 = tpu.dynamic_rotate %14 by %c16_i32_6 dim 1 : vector<2x256xf32>, i32 -> vector<2x256xf32>
    %c240_i32_7 = arith.constant 240 : i32
    %68 = tpu.dynamic_rotate %14 by %c240_i32_7 dim 1 : vector<2x256xf32>, i32 -> vector<2x256xf32>
    %69 = arith.select %10, %68, %67 : vector<2x256xi1>, vector<2x256xf32>
    %70 = arith.select %12, %67, %68 : vector<2x256xi1>, vector<2x256xf32>
    %c16 = arith.constant 16 : index
    %71 = memref.load %arg1[%c16] : memref<288xf32, #tpu.memory_space<smem>>
    %72 = vector.broadcast %71 : f32 to vector<2x256xf32>
    %73 = arith.mulf %72, %69 : vector<2x256xf32>
    %74 = arith.addf %54, %73 : vector<2x256xf32>
    %c17 = arith.constant 17 : index
    %75 = memref.load %arg1[%c17] : memref<288xf32, #tpu.memory_space<smem>>
    %76 = vector.broadcast %75 : f32 to vector<2x256xf32>
    %77 = arith.mulf %76, %69 : vector<2x256xf32>
    %78 = arith.addf %58, %77 : vector<2x256xf32>
    %c18 = arith.constant 18 : index
    %79 = memref.load %arg1[%c18] : memref<288xf32, #tpu.memory_space<smem>>
    %80 = vector.broadcast %79 : f32 to vector<2x256xf32>
    %81 = arith.mulf %80, %69 : vector<2x256xf32>
    %82 = arith.addf %62, %81 : vector<2x256xf32>
    %c19 = arith.constant 19 : index
    %83 = memref.load %arg1[%c19] : memref<288xf32, #tpu.memory_space<smem>>
    %84 = vector.broadcast %83 : f32 to vector<2x256xf32>
    %85 = arith.mulf %84, %69 : vector<2x256xf32>
    %86 = arith.addf %66, %85 : vector<2x256xf32>
    %c64 = arith.constant 64 : index
    %87 = memref.load %arg1[%c64] : memref<288xf32, #tpu.memory_space<smem>>
    %88 = vector.broadcast %87 : f32 to vector<2x256xf32>
    %89 = arith.mulf %88, %14 : vector<2x256xf32>
    %90 = arith.addf %74, %89 : vector<2x256xf32>
    %c65 = arith.constant 65 : index
    %91 = memref.load %arg1[%c65] : memref<288xf32, #tpu.memory_space<smem>>
    %92 = vector.broadcast %91 : f32 to vector<2x256xf32>
    %93 = arith.mulf %92, %14 : vector<2x256xf32>
    %94 = arith.addf %78, %93 : vector<2x256xf32>
    %c66 = arith.constant 66 : index
    %95 = memref.load %arg1[%c66] : memref<288xf32, #tpu.memory_space<smem>>
    %96 = vector.broadcast %95 : f32 to vector<2x256xf32>
    %97 = arith.mulf %96, %14 : vector<2x256xf32>
    %98 = arith.addf %82, %97 : vector<2x256xf32>
    %c67 = arith.constant 67 : index
    %99 = memref.load %arg1[%c67] : memref<288xf32, #tpu.memory_space<smem>>
    %100 = vector.broadcast %99 : f32 to vector<2x256xf32>
    %101 = arith.mulf %100, %14 : vector<2x256xf32>
    %102 = arith.addf %86, %101 : vector<2x256xf32>
    %c112 = arith.constant 112 : index
    %103 = memref.load %arg1[%c112] : memref<288xf32, #tpu.memory_space<smem>>
    %104 = vector.broadcast %103 : f32 to vector<2x256xf32>
    %105 = arith.mulf %104, %70 : vector<2x256xf32>
    %106 = arith.addf %90, %105 : vector<2x256xf32>
    %c113 = arith.constant 113 : index
    %107 = memref.load %arg1[%c113] : memref<288xf32, #tpu.memory_space<smem>>
    %108 = vector.broadcast %107 : f32 to vector<2x256xf32>
    %109 = arith.mulf %108, %70 : vector<2x256xf32>
    %110 = arith.addf %94, %109 : vector<2x256xf32>
    %c114 = arith.constant 114 : index
    %111 = memref.load %arg1[%c114] : memref<288xf32, #tpu.memory_space<smem>>
    %112 = vector.broadcast %111 : f32 to vector<2x256xf32>
    %113 = arith.mulf %112, %70 : vector<2x256xf32>
    %114 = arith.addf %98, %113 : vector<2x256xf32>
    %c115 = arith.constant 115 : index
    %115 = memref.load %arg1[%c115] : memref<288xf32, #tpu.memory_space<smem>>
    %116 = vector.broadcast %115 : f32 to vector<2x256xf32>
    %117 = arith.mulf %116, %70 : vector<2x256xf32>
    %118 = arith.addf %102, %117 : vector<2x256xf32>
    %c16_i32_8 = arith.constant 16 : i32
    %119 = tpu.dynamic_rotate %18 by %c16_i32_8 dim 1 : vector<2x256xf32>, i32 -> vector<2x256xf32>
    %c240_i32_9 = arith.constant 240 : i32
    %120 = tpu.dynamic_rotate %18 by %c240_i32_9 dim 1 : vector<2x256xf32>, i32 -> vector<2x256xf32>
    %121 = arith.select %10, %120, %119 : vector<2x256xi1>, vector<2x256xf32>
    %122 = arith.select %12, %119, %120 : vector<2x256xi1>, vector<2x256xf32>
    %c32 = arith.constant 32 : index
    %123 = memref.load %arg1[%c32] : memref<288xf32, #tpu.memory_space<smem>>
    %124 = vector.broadcast %123 : f32 to vector<2x256xf32>
    %125 = arith.mulf %124, %121 : vector<2x256xf32>
    %126 = arith.addf %106, %125 : vector<2x256xf32>
    %c33 = arith.constant 33 : index
    %127 = memref.load %arg1[%c33] : memref<288xf32, #tpu.memory_space<smem>>
    %128 = vector.broadcast %127 : f32 to vector<2x256xf32>
    %129 = arith.mulf %128, %121 : vector<2x256xf32>
    %130 = arith.addf %110, %129 : vector<2x256xf32>
    %c34 = arith.constant 34 : index
    %131 = memref.load %arg1[%c34] : memref<288xf32, #tpu.memory_space<smem>>
    %132 = vector.broadcast %131 : f32 to vector<2x256xf32>
    %133 = arith.mulf %132, %121 : vector<2x256xf32>
    %134 = arith.addf %114, %133 : vector<2x256xf32>
    %c35 = arith.constant 35 : index
    %135 = memref.load %arg1[%c35] : memref<288xf32, #tpu.memory_space<smem>>
    %136 = vector.broadcast %135 : f32 to vector<2x256xf32>
    %137 = arith.mulf %136, %121 : vector<2x256xf32>
    %138 = arith.addf %118, %137 : vector<2x256xf32>
    %c80 = arith.constant 80 : index
    %139 = memref.load %arg1[%c80] : memref<288xf32, #tpu.memory_space<smem>>
    %140 = vector.broadcast %139 : f32 to vector<2x256xf32>
    %141 = arith.mulf %140, %18 : vector<2x256xf32>
    %142 = arith.addf %126, %141 : vector<2x256xf32>
    %c81 = arith.constant 81 : index
    %143 = memref.load %arg1[%c81] : memref<288xf32, #tpu.memory_space<smem>>
    %144 = vector.broadcast %143 : f32 to vector<2x256xf32>
    %145 = arith.mulf %144, %18 : vector<2x256xf32>
    %146 = arith.addf %130, %145 : vector<2x256xf32>
    %c82 = arith.constant 82 : index
    %147 = memref.load %arg1[%c82] : memref<288xf32, #tpu.memory_space<smem>>
    %148 = vector.broadcast %147 : f32 to vector<2x256xf32>
    %149 = arith.mulf %148, %18 : vector<2x256xf32>
    %150 = arith.addf %134, %149 : vector<2x256xf32>
    %c83 = arith.constant 83 : index
    %151 = memref.load %arg1[%c83] : memref<288xf32, #tpu.memory_space<smem>>
    %152 = vector.broadcast %151 : f32 to vector<2x256xf32>
    %153 = arith.mulf %152, %18 : vector<2x256xf32>
    %154 = arith.addf %138, %153 : vector<2x256xf32>
    %c128 = arith.constant 128 : index
    %155 = memref.load %arg1[%c128] : memref<288xf32, #tpu.memory_space<smem>>
    %156 = vector.broadcast %155 : f32 to vector<2x256xf32>
    %157 = arith.mulf %156, %122 : vector<2x256xf32>
    %158 = arith.addf %142, %157 : vector<2x256xf32>
    %c129 = arith.constant 129 : index
    %159 = memref.load %arg1[%c129] : memref<288xf32, #tpu.memory_space<smem>>
    %160 = vector.broadcast %159 : f32 to vector<2x256xf32>
    %161 = arith.mulf %160, %122 : vector<2x256xf32>
    %162 = arith.addf %146, %161 : vector<2x256xf32>
    %c130 = arith.constant 130 : index
    %163 = memref.load %arg1[%c130] : memref<288xf32, #tpu.memory_space<smem>>
    %164 = vector.broadcast %163 : f32 to vector<2x256xf32>
    %165 = arith.mulf %164, %122 : vector<2x256xf32>
    %166 = arith.addf %150, %165 : vector<2x256xf32>
    %c131 = arith.constant 131 : index
    %167 = memref.load %arg1[%c131] : memref<288xf32, #tpu.memory_space<smem>>
    %168 = vector.broadcast %167 : f32 to vector<2x256xf32>
    %169 = arith.mulf %168, %122 : vector<2x256xf32>
    %170 = arith.addf %154, %169 : vector<2x256xf32>
    %c0_10 = arith.constant 0 : index
    %c2_11 = arith.constant 2 : index
    %c0_12 = arith.constant 0 : index
    %171 = vector.load %arg2[%c0_10, %c2_11, %c0_12] : memref<1x8x256xf32, #tpu.memory_space<vmem>>, vector<1x2x256xf32>
    %172 = vector.shape_cast %171 : vector<1x2x256xf32> to vector<2x256xf32>
    %c1_i32_13 = arith.constant 1 : i32
    %173 = tpu.dynamic_rotate %172 by %c1_i32_13 dim 1 : vector<2x256xf32>, i32 -> vector<2x256xf32>
    %c255_i32_14 = arith.constant 255 : i32
    %174 = tpu.dynamic_rotate %172 by %c255_i32_14 dim 1 : vector<2x256xf32>, i32 -> vector<2x256xf32>
    %175 = arith.select %6, %174, %173 : vector<2x256xi1>, vector<2x256xf32>
    %176 = arith.select %8, %173, %174 : vector<2x256xi1>, vector<2x256xf32>
    %c16_i32_15 = arith.constant 16 : i32
    %177 = tpu.dynamic_rotate %175 by %c16_i32_15 dim 1 : vector<2x256xf32>, i32 -> vector<2x256xf32>
    %c240_i32_16 = arith.constant 240 : i32
    %178 = tpu.dynamic_rotate %175 by %c240_i32_16 dim 1 : vector<2x256xf32>, i32 -> vector<2x256xf32>
    %179 = arith.select %10, %178, %177 : vector<2x256xi1>, vector<2x256xf32>
    %180 = arith.select %12, %177, %178 : vector<2x256xi1>, vector<2x256xf32>
    %c4 = arith.constant 4 : index
    %181 = memref.load %arg1[%c4] : memref<288xf32, #tpu.memory_space<smem>>
    %182 = vector.broadcast %181 : f32 to vector<2x256xf32>
    %183 = arith.mulf %182, %179 : vector<2x256xf32>
    %184 = arith.addf %158, %183 : vector<2x256xf32>
    %c5 = arith.constant 5 : index
    %185 = memref.load %arg1[%c5] : memref<288xf32, #tpu.memory_space<smem>>
    %186 = vector.broadcast %185 : f32 to vector<2x256xf32>
    %187 = arith.mulf %186, %179 : vector<2x256xf32>
    %188 = arith.addf %162, %187 : vector<2x256xf32>
    %c6 = arith.constant 6 : index
    %189 = memref.load %arg1[%c6] : memref<288xf32, #tpu.memory_space<smem>>
    %190 = vector.broadcast %189 : f32 to vector<2x256xf32>
    %191 = arith.mulf %190, %179 : vector<2x256xf32>
    %192 = arith.addf %166, %191 : vector<2x256xf32>
    %c7 = arith.constant 7 : index
    %193 = memref.load %arg1[%c7] : memref<288xf32, #tpu.memory_space<smem>>
    %194 = vector.broadcast %193 : f32 to vector<2x256xf32>
    %195 = arith.mulf %194, %179 : vector<2x256xf32>
    %196 = arith.addf %170, %195 : vector<2x256xf32>
    %c52 = arith.constant 52 : index
    %197 = memref.load %arg1[%c52] : memref<288xf32, #tpu.memory_space<smem>>
    %198 = vector.broadcast %197 : f32 to vector<2x256xf32>
    %199 = arith.mulf %198, %175 : vector<2x256xf32>
    %200 = arith.addf %184, %199 : vector<2x256xf32>
    %c53 = arith.constant 53 : index
    %201 = memref.load %arg1[%c53] : memref<288xf32, #tpu.memory_space<smem>>
    %202 = vector.broadcast %201 : f32 to vector<2x256xf32>
    %203 = arith.mulf %202, %175 : vector<2x256xf32>
    %204 = arith.addf %188, %203 : vector<2x256xf32>
    %c54 = arith.constant 54 : index
    %205 = memref.load %arg1[%c54] : memref<288xf32, #tpu.memory_space<smem>>
    %206 = vector.broadcast %205 : f32 to vector<2x256xf32>
    %207 = arith.mulf %206, %175 : vector<2x256xf32>
    %208 = arith.addf %192, %207 : vector<2x256xf32>
    %c55 = arith.constant 55 : index
    %209 = memref.load %arg1[%c55] : memref<288xf32, #tpu.memory_space<smem>>
    %210 = vector.broadcast %209 : f32 to vector<2x256xf32>
    %211 = arith.mulf %210, %175 : vector<2x256xf32>
    %212 = arith.addf %196, %211 : vector<2x256xf32>
    %c100 = arith.constant 100 : index
    %213 = memref.load %arg1[%c100] : memref<288xf32, #tpu.memory_space<smem>>
    %214 = vector.broadcast %213 : f32 to vector<2x256xf32>
    %215 = arith.mulf %214, %180 : vector<2x256xf32>
    %216 = arith.addf %200, %215 : vector<2x256xf32>
    %c101 = arith.constant 101 : index
    %217 = memref.load %arg1[%c101] : memref<288xf32, #tpu.memory_space<smem>>
    %218 = vector.broadcast %217 : f32 to vector<2x256xf32>
    %219 = arith.mulf %218, %180 : vector<2x256xf32>
    %220 = arith.addf %204, %219 : vector<2x256xf32>
    %c102 = arith.constant 102 : index
    %221 = memref.load %arg1[%c102] : memref<288xf32, #tpu.memory_space<smem>>
    %222 = vector.broadcast %221 : f32 to vector<2x256xf32>
    %223 = arith.mulf %222, %180 : vector<2x256xf32>
    %224 = arith.addf %208, %223 : vector<2x256xf32>
    %c103 = arith.constant 103 : index
    %225 = memref.load %arg1[%c103] : memref<288xf32, #tpu.memory_space<smem>>
    %226 = vector.broadcast %225 : f32 to vector<2x256xf32>
    %227 = arith.mulf %226, %180 : vector<2x256xf32>
    %228 = arith.addf %212, %227 : vector<2x256xf32>
    %c16_i32_17 = arith.constant 16 : i32
    %229 = tpu.dynamic_rotate %172 by %c16_i32_17 dim 1 : vector<2x256xf32>, i32 -> vector<2x256xf32>
    %c240_i32_18 = arith.constant 240 : i32
    %230 = tpu.dynamic_rotate %172 by %c240_i32_18 dim 1 : vector<2x256xf32>, i32 -> vector<2x256xf32>
    %231 = arith.select %10, %230, %229 : vector<2x256xi1>, vector<2x256xf32>
    %232 = arith.select %12, %229, %230 : vector<2x256xi1>, vector<2x256xf32>
    %c20 = arith.constant 20 : index
    %233 = memref.load %arg1[%c20] : memref<288xf32, #tpu.memory_space<smem>>
    %234 = vector.broadcast %233 : f32 to vector<2x256xf32>
    %235 = arith.mulf %234, %231 : vector<2x256xf32>
    %236 = arith.addf %216, %235 : vector<2x256xf32>
    %c21 = arith.constant 21 : index
    %237 = memref.load %arg1[%c21] : memref<288xf32, #tpu.memory_space<smem>>
    %238 = vector.broadcast %237 : f32 to vector<2x256xf32>
    %239 = arith.mulf %238, %231 : vector<2x256xf32>
    %240 = arith.addf %220, %239 : vector<2x256xf32>
    %c22 = arith.constant 22 : index
    %241 = memref.load %arg1[%c22] : memref<288xf32, #tpu.memory_space<smem>>
    %242 = vector.broadcast %241 : f32 to vector<2x256xf32>
    %243 = arith.mulf %242, %231 : vector<2x256xf32>
    %244 = arith.addf %224, %243 : vector<2x256xf32>
    %c23 = arith.constant 23 : index
    %245 = memref.load %arg1[%c23] : memref<288xf32, #tpu.memory_space<smem>>
    %246 = vector.broadcast %245 : f32 to vector<2x256xf32>
    %247 = arith.mulf %246, %231 : vector<2x256xf32>
    %248 = arith.addf %228, %247 : vector<2x256xf32>
    %c68 = arith.constant 68 : index
    %249 = memref.load %arg1[%c68] : memref<288xf32, #tpu.memory_space<smem>>
    %250 = vector.broadcast %249 : f32 to vector<2x256xf32>
    %251 = arith.mulf %250, %172 : vector<2x256xf32>
    %252 = arith.addf %236, %251 : vector<2x256xf32>
    %c69 = arith.constant 69 : index
    %253 = memref.load %arg1[%c69] : memref<288xf32, #tpu.memory_space<smem>>
    %254 = vector.broadcast %253 : f32 to vector<2x256xf32>
    %255 = arith.mulf %254, %172 : vector<2x256xf32>
    %256 = arith.addf %240, %255 : vector<2x256xf32>
    %c70 = arith.constant 70 : index
    %257 = memref.load %arg1[%c70] : memref<288xf32, #tpu.memory_space<smem>>
    %258 = vector.broadcast %257 : f32 to vector<2x256xf32>
    %259 = arith.mulf %258, %172 : vector<2x256xf32>
    %260 = arith.addf %244, %259 : vector<2x256xf32>
    %c71 = arith.constant 71 : index
    %261 = memref.load %arg1[%c71] : memref<288xf32, #tpu.memory_space<smem>>
    %262 = vector.broadcast %261 : f32 to vector<2x256xf32>
    %263 = arith.mulf %262, %172 : vector<2x256xf32>
    %264 = arith.addf %248, %263 : vector<2x256xf32>
    %c116 = arith.constant 116 : index
    %265 = memref.load %arg1[%c116] : memref<288xf32, #tpu.memory_space<smem>>
    %266 = vector.broadcast %265 : f32 to vector<2x256xf32>
    %267 = arith.mulf %266, %232 : vector<2x256xf32>
    %268 = arith.addf %252, %267 : vector<2x256xf32>
    %c117 = arith.constant 117 : index
    %269 = memref.load %arg1[%c117] : memref<288xf32, #tpu.memory_space<smem>>
    %270 = vector.broadcast %269 : f32 to vector<2x256xf32>
    %271 = arith.mulf %270, %232 : vector<2x256xf32>
    %272 = arith.addf %256, %271 : vector<2x256xf32>
    %c118 = arith.constant 118 : index
    %273 = memref.load %arg1[%c118] : memref<288xf32, #tpu.memory_space<smem>>
    %274 = vector.broadcast %273 : f32 to vector<2x256xf32>
    %275 = arith.mulf %274, %232 : vector<2x256xf32>
    %276 = arith.addf %260, %275 : vector<2x256xf32>
    %c119 = arith.constant 119 : index
    %277 = memref.load %arg1[%c119] : memref<288xf32, #tpu.memory_space<smem>>
    %278 = vector.broadcast %277 : f32 to vector<2x256xf32>
    %279 = arith.mulf %278, %232 : vector<2x256xf32>
    %280 = arith.addf %264, %279 : vector<2x256xf32>
    %c16_i32_19 = arith.constant 16 : i32
    %281 = tpu.dynamic_rotate %176 by %c16_i32_19 dim 1 : vector<2x256xf32>, i32 -> vector<2x256xf32>
    %c240_i32_20 = arith.constant 240 : i32
    %282 = tpu.dynamic_rotate %176 by %c240_i32_20 dim 1 : vector<2x256xf32>, i32 -> vector<2x256xf32>
    %283 = arith.select %10, %282, %281 : vector<2x256xi1>, vector<2x256xf32>
    %284 = arith.select %12, %281, %282 : vector<2x256xi1>, vector<2x256xf32>
    %c36 = arith.constant 36 : index
    %285 = memref.load %arg1[%c36] : memref<288xf32, #tpu.memory_space<smem>>
    %286 = vector.broadcast %285 : f32 to vector<2x256xf32>
    %287 = arith.mulf %286, %283 : vector<2x256xf32>
    %288 = arith.addf %268, %287 : vector<2x256xf32>
    %c37 = arith.constant 37 : index
    %289 = memref.load %arg1[%c37] : memref<288xf32, #tpu.memory_space<smem>>
    %290 = vector.broadcast %289 : f32 to vector<2x256xf32>
    %291 = arith.mulf %290, %283 : vector<2x256xf32>
    %292 = arith.addf %272, %291 : vector<2x256xf32>
    %c38 = arith.constant 38 : index
    %293 = memref.load %arg1[%c38] : memref<288xf32, #tpu.memory_space<smem>>
    %294 = vector.broadcast %293 : f32 to vector<2x256xf32>
    %295 = arith.mulf %294, %283 : vector<2x256xf32>
    %296 = arith.addf %276, %295 : vector<2x256xf32>
    %c39 = arith.constant 39 : index
    %297 = memref.load %arg1[%c39] : memref<288xf32, #tpu.memory_space<smem>>
    %298 = vector.broadcast %297 : f32 to vector<2x256xf32>
    %299 = arith.mulf %298, %283 : vector<2x256xf32>
    %300 = arith.addf %280, %299 : vector<2x256xf32>
    %c84 = arith.constant 84 : index
    %301 = memref.load %arg1[%c84] : memref<288xf32, #tpu.memory_space<smem>>
    %302 = vector.broadcast %301 : f32 to vector<2x256xf32>
    %303 = arith.mulf %302, %176 : vector<2x256xf32>
    %304 = arith.addf %288, %303 : vector<2x256xf32>
    %c85 = arith.constant 85 : index
    %305 = memref.load %arg1[%c85] : memref<288xf32, #tpu.memory_space<smem>>
    %306 = vector.broadcast %305 : f32 to vector<2x256xf32>
    %307 = arith.mulf %306, %176 : vector<2x256xf32>
    %308 = arith.addf %292, %307 : vector<2x256xf32>
    %c86 = arith.constant 86 : index
    %309 = memref.load %arg1[%c86] : memref<288xf32, #tpu.memory_space<smem>>
    %310 = vector.broadcast %309 : f32 to vector<2x256xf32>
    %311 = arith.mulf %310, %176 : vector<2x256xf32>
    %312 = arith.addf %296, %311 : vector<2x256xf32>
    %c87 = arith.constant 87 : index
    %313 = memref.load %arg1[%c87] : memref<288xf32, #tpu.memory_space<smem>>
    %314 = vector.broadcast %313 : f32 to vector<2x256xf32>
    %315 = arith.mulf %314, %176 : vector<2x256xf32>
    %316 = arith.addf %300, %315 : vector<2x256xf32>
    %c132 = arith.constant 132 : index
    %317 = memref.load %arg1[%c132] : memref<288xf32, #tpu.memory_space<smem>>
    %318 = vector.broadcast %317 : f32 to vector<2x256xf32>
    %319 = arith.mulf %318, %284 : vector<2x256xf32>
    %320 = arith.addf %304, %319 : vector<2x256xf32>
    %c133 = arith.constant 133 : index
    %321 = memref.load %arg1[%c133] : memref<288xf32, #tpu.memory_space<smem>>
    %322 = vector.broadcast %321 : f32 to vector<2x256xf32>
    %323 = arith.mulf %322, %284 : vector<2x256xf32>
    %324 = arith.addf %308, %323 : vector<2x256xf32>
    %c134 = arith.constant 134 : index
    %325 = memref.load %arg1[%c134] : memref<288xf32, #tpu.memory_space<smem>>
    %326 = vector.broadcast %325 : f32 to vector<2x256xf32>
    %327 = arith.mulf %326, %284 : vector<2x256xf32>
    %328 = arith.addf %312, %327 : vector<2x256xf32>
    %c135 = arith.constant 135 : index
    %329 = memref.load %arg1[%c135] : memref<288xf32, #tpu.memory_space<smem>>
    %330 = vector.broadcast %329 : f32 to vector<2x256xf32>
    %331 = arith.mulf %330, %284 : vector<2x256xf32>
    %332 = arith.addf %316, %331 : vector<2x256xf32>
    %c0_21 = arith.constant 0 : index
    %c4_22 = arith.constant 4 : index
    %c0_23 = arith.constant 0 : index
    %333 = vector.load %arg2[%c0_21, %c4_22, %c0_23] : memref<1x8x256xf32, #tpu.memory_space<vmem>>, vector<1x2x256xf32>
    %334 = vector.shape_cast %333 : vector<1x2x256xf32> to vector<2x256xf32>
    %c1_i32_24 = arith.constant 1 : i32
    %335 = tpu.dynamic_rotate %334 by %c1_i32_24 dim 1 : vector<2x256xf32>, i32 -> vector<2x256xf32>
    %c255_i32_25 = arith.constant 255 : i32
    %336 = tpu.dynamic_rotate %334 by %c255_i32_25 dim 1 : vector<2x256xf32>, i32 -> vector<2x256xf32>
    %337 = arith.select %6, %336, %335 : vector<2x256xi1>, vector<2x256xf32>
    %338 = arith.select %8, %335, %336 : vector<2x256xi1>, vector<2x256xf32>
    %c16_i32_26 = arith.constant 16 : i32
    %339 = tpu.dynamic_rotate %337 by %c16_i32_26 dim 1 : vector<2x256xf32>, i32 -> vector<2x256xf32>
    %c240_i32_27 = arith.constant 240 : i32
    %340 = tpu.dynamic_rotate %337 by %c240_i32_27 dim 1 : vector<2x256xf32>, i32 -> vector<2x256xf32>
    %341 = arith.select %10, %340, %339 : vector<2x256xi1>, vector<2x256xf32>
    %342 = arith.select %12, %339, %340 : vector<2x256xi1>, vector<2x256xf32>
    %c8 = arith.constant 8 : index
    %343 = memref.load %arg1[%c8] : memref<288xf32, #tpu.memory_space<smem>>
    %344 = vector.broadcast %343 : f32 to vector<2x256xf32>
    %345 = arith.mulf %344, %341 : vector<2x256xf32>
    %346 = arith.addf %320, %345 : vector<2x256xf32>
    %c9 = arith.constant 9 : index
    %347 = memref.load %arg1[%c9] : memref<288xf32, #tpu.memory_space<smem>>
    %348 = vector.broadcast %347 : f32 to vector<2x256xf32>
    %349 = arith.mulf %348, %341 : vector<2x256xf32>
    %350 = arith.addf %324, %349 : vector<2x256xf32>
    %c10 = arith.constant 10 : index
    %351 = memref.load %arg1[%c10] : memref<288xf32, #tpu.memory_space<smem>>
    %352 = vector.broadcast %351 : f32 to vector<2x256xf32>
    %353 = arith.mulf %352, %341 : vector<2x256xf32>
    %354 = arith.addf %328, %353 : vector<2x256xf32>
    %c11 = arith.constant 11 : index
    %355 = memref.load %arg1[%c11] : memref<288xf32, #tpu.memory_space<smem>>
    %356 = vector.broadcast %355 : f32 to vector<2x256xf32>
    %357 = arith.mulf %356, %341 : vector<2x256xf32>
    %358 = arith.addf %332, %357 : vector<2x256xf32>
    %c56 = arith.constant 56 : index
    %359 = memref.load %arg1[%c56] : memref<288xf32, #tpu.memory_space<smem>>
    %360 = vector.broadcast %359 : f32 to vector<2x256xf32>
    %361 = arith.mulf %360, %337 : vector<2x256xf32>
    %362 = arith.addf %346, %361 : vector<2x256xf32>
    %c57 = arith.constant 57 : index
    %363 = memref.load %arg1[%c57] : memref<288xf32, #tpu.memory_space<smem>>
    %364 = vector.broadcast %363 : f32 to vector<2x256xf32>
    %365 = arith.mulf %364, %337 : vector<2x256xf32>
    %366 = arith.addf %350, %365 : vector<2x256xf32>
    %c58 = arith.constant 58 : index
    %367 = memref.load %arg1[%c58] : memref<288xf32, #tpu.memory_space<smem>>
    %368 = vector.broadcast %367 : f32 to vector<2x256xf32>
    %369 = arith.mulf %368, %337 : vector<2x256xf32>
    %370 = arith.addf %354, %369 : vector<2x256xf32>
    %c59 = arith.constant 59 : index
    %371 = memref.load %arg1[%c59] : memref<288xf32, #tpu.memory_space<smem>>
    %372 = vector.broadcast %371 : f32 to vector<2x256xf32>
    %373 = arith.mulf %372, %337 : vector<2x256xf32>
    %374 = arith.addf %358, %373 : vector<2x256xf32>
    %c104 = arith.constant 104 : index
    %375 = memref.load %arg1[%c104] : memref<288xf32, #tpu.memory_space<smem>>
    %376 = vector.broadcast %375 : f32 to vector<2x256xf32>
    %377 = arith.mulf %376, %342 : vector<2x256xf32>
    %378 = arith.addf %362, %377 : vector<2x256xf32>
    %c105 = arith.constant 105 : index
    %379 = memref.load %arg1[%c105] : memref<288xf32, #tpu.memory_space<smem>>
    %380 = vector.broadcast %379 : f32 to vector<2x256xf32>
    %381 = arith.mulf %380, %342 : vector<2x256xf32>
    %382 = arith.addf %366, %381 : vector<2x256xf32>
    %c106 = arith.constant 106 : index
    %383 = memref.load %arg1[%c106] : memref<288xf32, #tpu.memory_space<smem>>
    %384 = vector.broadcast %383 : f32 to vector<2x256xf32>
    %385 = arith.mulf %384, %342 : vector<2x256xf32>
    %386 = arith.addf %370, %385 : vector<2x256xf32>
    %c107 = arith.constant 107 : index
    %387 = memref.load %arg1[%c107] : memref<288xf32, #tpu.memory_space<smem>>
    %388 = vector.broadcast %387 : f32 to vector<2x256xf32>
    %389 = arith.mulf %388, %342 : vector<2x256xf32>
    %390 = arith.addf %374, %389 : vector<2x256xf32>
    %c16_i32_28 = arith.constant 16 : i32
    %391 = tpu.dynamic_rotate %334 by %c16_i32_28 dim 1 : vector<2x256xf32>, i32 -> vector<2x256xf32>
    %c240_i32_29 = arith.constant 240 : i32
    %392 = tpu.dynamic_rotate %334 by %c240_i32_29 dim 1 : vector<2x256xf32>, i32 -> vector<2x256xf32>
    %393 = arith.select %10, %392, %391 : vector<2x256xi1>, vector<2x256xf32>
    %394 = arith.select %12, %391, %392 : vector<2x256xi1>, vector<2x256xf32>
    %c24 = arith.constant 24 : index
    %395 = memref.load %arg1[%c24] : memref<288xf32, #tpu.memory_space<smem>>
    %396 = vector.broadcast %395 : f32 to vector<2x256xf32>
    %397 = arith.mulf %396, %393 : vector<2x256xf32>
    %398 = arith.addf %378, %397 : vector<2x256xf32>
    %c25 = arith.constant 25 : index
    %399 = memref.load %arg1[%c25] : memref<288xf32, #tpu.memory_space<smem>>
    %400 = vector.broadcast %399 : f32 to vector<2x256xf32>
    %401 = arith.mulf %400, %393 : vector<2x256xf32>
    %402 = arith.addf %382, %401 : vector<2x256xf32>
    %c26 = arith.constant 26 : index
    %403 = memref.load %arg1[%c26] : memref<288xf32, #tpu.memory_space<smem>>
    %404 = vector.broadcast %403 : f32 to vector<2x256xf32>
    %405 = arith.mulf %404, %393 : vector<2x256xf32>
    %406 = arith.addf %386, %405 : vector<2x256xf32>
    %c27 = arith.constant 27 : index
    %407 = memref.load %arg1[%c27] : memref<288xf32, #tpu.memory_space<smem>>
    %408 = vector.broadcast %407 : f32 to vector<2x256xf32>
    %409 = arith.mulf %408, %393 : vector<2x256xf32>
    %410 = arith.addf %390, %409 : vector<2x256xf32>
    %c72 = arith.constant 72 : index
    %411 = memref.load %arg1[%c72] : memref<288xf32, #tpu.memory_space<smem>>
    %412 = vector.broadcast %411 : f32 to vector<2x256xf32>
    %413 = arith.mulf %412, %334 : vector<2x256xf32>
    %414 = arith.addf %398, %413 : vector<2x256xf32>
    %c73 = arith.constant 73 : index
    %415 = memref.load %arg1[%c73] : memref<288xf32, #tpu.memory_space<smem>>
    %416 = vector.broadcast %415 : f32 to vector<2x256xf32>
    %417 = arith.mulf %416, %334 : vector<2x256xf32>
    %418 = arith.addf %402, %417 : vector<2x256xf32>
    %c74 = arith.constant 74 : index
    %419 = memref.load %arg1[%c74] : memref<288xf32, #tpu.memory_space<smem>>
    %420 = vector.broadcast %419 : f32 to vector<2x256xf32>
    %421 = arith.mulf %420, %334 : vector<2x256xf32>
    %422 = arith.addf %406, %421 : vector<2x256xf32>
    %c75 = arith.constant 75 : index
    %423 = memref.load %arg1[%c75] : memref<288xf32, #tpu.memory_space<smem>>
    %424 = vector.broadcast %423 : f32 to vector<2x256xf32>
    %425 = arith.mulf %424, %334 : vector<2x256xf32>
    %426 = arith.addf %410, %425 : vector<2x256xf32>
    %c120 = arith.constant 120 : index
    %427 = memref.load %arg1[%c120] : memref<288xf32, #tpu.memory_space<smem>>
    %428 = vector.broadcast %427 : f32 to vector<2x256xf32>
    %429 = arith.mulf %428, %394 : vector<2x256xf32>
    %430 = arith.addf %414, %429 : vector<2x256xf32>
    %c121 = arith.constant 121 : index
    %431 = memref.load %arg1[%c121] : memref<288xf32, #tpu.memory_space<smem>>
    %432 = vector.broadcast %431 : f32 to vector<2x256xf32>
    %433 = arith.mulf %432, %394 : vector<2x256xf32>
    %434 = arith.addf %418, %433 : vector<2x256xf32>
    %c122 = arith.constant 122 : index
    %435 = memref.load %arg1[%c122] : memref<288xf32, #tpu.memory_space<smem>>
    %436 = vector.broadcast %435 : f32 to vector<2x256xf32>
    %437 = arith.mulf %436, %394 : vector<2x256xf32>
    %438 = arith.addf %422, %437 : vector<2x256xf32>
    %c123 = arith.constant 123 : index
    %439 = memref.load %arg1[%c123] : memref<288xf32, #tpu.memory_space<smem>>
    %440 = vector.broadcast %439 : f32 to vector<2x256xf32>
    %441 = arith.mulf %440, %394 : vector<2x256xf32>
    %442 = arith.addf %426, %441 : vector<2x256xf32>
    %c16_i32_30 = arith.constant 16 : i32
    %443 = tpu.dynamic_rotate %338 by %c16_i32_30 dim 1 : vector<2x256xf32>, i32 -> vector<2x256xf32>
    %c240_i32_31 = arith.constant 240 : i32
    %444 = tpu.dynamic_rotate %338 by %c240_i32_31 dim 1 : vector<2x256xf32>, i32 -> vector<2x256xf32>
    %445 = arith.select %10, %444, %443 : vector<2x256xi1>, vector<2x256xf32>
    %446 = arith.select %12, %443, %444 : vector<2x256xi1>, vector<2x256xf32>
    %c40 = arith.constant 40 : index
    %447 = memref.load %arg1[%c40] : memref<288xf32, #tpu.memory_space<smem>>
    %448 = vector.broadcast %447 : f32 to vector<2x256xf32>
    %449 = arith.mulf %448, %445 : vector<2x256xf32>
    %450 = arith.addf %430, %449 : vector<2x256xf32>
    %c41 = arith.constant 41 : index
    %451 = memref.load %arg1[%c41] : memref<288xf32, #tpu.memory_space<smem>>
    %452 = vector.broadcast %451 : f32 to vector<2x256xf32>
    %453 = arith.mulf %452, %445 : vector<2x256xf32>
    %454 = arith.addf %434, %453 : vector<2x256xf32>
    %c42 = arith.constant 42 : index
    %455 = memref.load %arg1[%c42] : memref<288xf32, #tpu.memory_space<smem>>
    %456 = vector.broadcast %455 : f32 to vector<2x256xf32>
    %457 = arith.mulf %456, %445 : vector<2x256xf32>
    %458 = arith.addf %438, %457 : vector<2x256xf32>
    %c43 = arith.constant 43 : index
    %459 = memref.load %arg1[%c43] : memref<288xf32, #tpu.memory_space<smem>>
    %460 = vector.broadcast %459 : f32 to vector<2x256xf32>
    %461 = arith.mulf %460, %445 : vector<2x256xf32>
    %462 = arith.addf %442, %461 : vector<2x256xf32>
    %c88 = arith.constant 88 : index
    %463 = memref.load %arg1[%c88] : memref<288xf32, #tpu.memory_space<smem>>
    %464 = vector.broadcast %463 : f32 to vector<2x256xf32>
    %465 = arith.mulf %464, %338 : vector<2x256xf32>
    %466 = arith.addf %450, %465 : vector<2x256xf32>
    %c89 = arith.constant 89 : index
    %467 = memref.load %arg1[%c89] : memref<288xf32, #tpu.memory_space<smem>>
    %468 = vector.broadcast %467 : f32 to vector<2x256xf32>
    %469 = arith.mulf %468, %338 : vector<2x256xf32>
    %470 = arith.addf %454, %469 : vector<2x256xf32>
    %c90 = arith.constant 90 : index
    %471 = memref.load %arg1[%c90] : memref<288xf32, #tpu.memory_space<smem>>
    %472 = vector.broadcast %471 : f32 to vector<2x256xf32>
    %473 = arith.mulf %472, %338 : vector<2x256xf32>
    %474 = arith.addf %458, %473 : vector<2x256xf32>
    %c91 = arith.constant 91 : index
    %475 = memref.load %arg1[%c91] : memref<288xf32, #tpu.memory_space<smem>>
    %476 = vector.broadcast %475 : f32 to vector<2x256xf32>
    %477 = arith.mulf %476, %338 : vector<2x256xf32>
    %478 = arith.addf %462, %477 : vector<2x256xf32>
    %c136 = arith.constant 136 : index
    %479 = memref.load %arg1[%c136] : memref<288xf32, #tpu.memory_space<smem>>
    %480 = vector.broadcast %479 : f32 to vector<2x256xf32>
    %481 = arith.mulf %480, %446 : vector<2x256xf32>
    %482 = arith.addf %466, %481 : vector<2x256xf32>
    %c137 = arith.constant 137 : index
    %483 = memref.load %arg1[%c137] : memref<288xf32, #tpu.memory_space<smem>>
    %484 = vector.broadcast %483 : f32 to vector<2x256xf32>
    %485 = arith.mulf %484, %446 : vector<2x256xf32>
    %486 = arith.addf %470, %485 : vector<2x256xf32>
    %c138 = arith.constant 138 : index
    %487 = memref.load %arg1[%c138] : memref<288xf32, #tpu.memory_space<smem>>
    %488 = vector.broadcast %487 : f32 to vector<2x256xf32>
    %489 = arith.mulf %488, %446 : vector<2x256xf32>
    %490 = arith.addf %474, %489 : vector<2x256xf32>
    %c139 = arith.constant 139 : index
    %491 = memref.load %arg1[%c139] : memref<288xf32, #tpu.memory_space<smem>>
    %492 = vector.broadcast %491 : f32 to vector<2x256xf32>
    %493 = arith.mulf %492, %446 : vector<2x256xf32>
    %494 = arith.addf %478, %493 : vector<2x256xf32>
    %c0_32 = arith.constant 0 : index
    %c6_33 = arith.constant 6 : index
    %c0_34 = arith.constant 0 : index
    %495 = vector.load %arg2[%c0_32, %c6_33, %c0_34] : memref<1x8x256xf32, #tpu.memory_space<vmem>>, vector<1x2x256xf32>
    %496 = vector.shape_cast %495 : vector<1x2x256xf32> to vector<2x256xf32>
    %c1_i32_35 = arith.constant 1 : i32
    %497 = tpu.dynamic_rotate %496 by %c1_i32_35 dim 1 : vector<2x256xf32>, i32 -> vector<2x256xf32>
    %c255_i32_36 = arith.constant 255 : i32
    %498 = tpu.dynamic_rotate %496 by %c255_i32_36 dim 1 : vector<2x256xf32>, i32 -> vector<2x256xf32>
    %499 = arith.select %6, %498, %497 : vector<2x256xi1>, vector<2x256xf32>
    %500 = arith.select %8, %497, %498 : vector<2x256xi1>, vector<2x256xf32>
    %c16_i32_37 = arith.constant 16 : i32
    %501 = tpu.dynamic_rotate %499 by %c16_i32_37 dim 1 : vector<2x256xf32>, i32 -> vector<2x256xf32>
    %c240_i32_38 = arith.constant 240 : i32
    %502 = tpu.dynamic_rotate %499 by %c240_i32_38 dim 1 : vector<2x256xf32>, i32 -> vector<2x256xf32>
    %503 = arith.select %10, %502, %501 : vector<2x256xi1>, vector<2x256xf32>
    %504 = arith.select %12, %501, %502 : vector<2x256xi1>, vector<2x256xf32>
    %c12 = arith.constant 12 : index
    %505 = memref.load %arg1[%c12] : memref<288xf32, #tpu.memory_space<smem>>
    %506 = vector.broadcast %505 : f32 to vector<2x256xf32>
    %507 = arith.mulf %506, %503 : vector<2x256xf32>
    %508 = arith.addf %482, %507 : vector<2x256xf32>
    %c13 = arith.constant 13 : index
    %509 = memref.load %arg1[%c13] : memref<288xf32, #tpu.memory_space<smem>>
    %510 = vector.broadcast %509 : f32 to vector<2x256xf32>
    %511 = arith.mulf %510, %503 : vector<2x256xf32>
    %512 = arith.addf %486, %511 : vector<2x256xf32>
    %c14 = arith.constant 14 : index
    %513 = memref.load %arg1[%c14] : memref<288xf32, #tpu.memory_space<smem>>
    %514 = vector.broadcast %513 : f32 to vector<2x256xf32>
    %515 = arith.mulf %514, %503 : vector<2x256xf32>
    %516 = arith.addf %490, %515 : vector<2x256xf32>
    %c15 = arith.constant 15 : index
    %517 = memref.load %arg1[%c15] : memref<288xf32, #tpu.memory_space<smem>>
    %518 = vector.broadcast %517 : f32 to vector<2x256xf32>
    %519 = arith.mulf %518, %503 : vector<2x256xf32>
    %520 = arith.addf %494, %519 : vector<2x256xf32>
    %c60 = arith.constant 60 : index
    %521 = memref.load %arg1[%c60] : memref<288xf32, #tpu.memory_space<smem>>
    %522 = vector.broadcast %521 : f32 to vector<2x256xf32>
    %523 = arith.mulf %522, %499 : vector<2x256xf32>
    %524 = arith.addf %508, %523 : vector<2x256xf32>
    %c61 = arith.constant 61 : index
    %525 = memref.load %arg1[%c61] : memref<288xf32, #tpu.memory_space<smem>>
    %526 = vector.broadcast %525 : f32 to vector<2x256xf32>
    %527 = arith.mulf %526, %499 : vector<2x256xf32>
    %528 = arith.addf %512, %527 : vector<2x256xf32>
    %c62 = arith.constant 62 : index
    %529 = memref.load %arg1[%c62] : memref<288xf32, #tpu.memory_space<smem>>
    %530 = vector.broadcast %529 : f32 to vector<2x256xf32>
    %531 = arith.mulf %530, %499 : vector<2x256xf32>
    %532 = arith.addf %516, %531 : vector<2x256xf32>
    %c63 = arith.constant 63 : index
    %533 = memref.load %arg1[%c63] : memref<288xf32, #tpu.memory_space<smem>>
    %534 = vector.broadcast %533 : f32 to vector<2x256xf32>
    %535 = arith.mulf %534, %499 : vector<2x256xf32>
    %536 = arith.addf %520, %535 : vector<2x256xf32>
    %c108 = arith.constant 108 : index
    %537 = memref.load %arg1[%c108] : memref<288xf32, #tpu.memory_space<smem>>
    %538 = vector.broadcast %537 : f32 to vector<2x256xf32>
    %539 = arith.mulf %538, %504 : vector<2x256xf32>
    %540 = arith.addf %524, %539 : vector<2x256xf32>
    %c109 = arith.constant 109 : index
    %541 = memref.load %arg1[%c109] : memref<288xf32, #tpu.memory_space<smem>>
    %542 = vector.broadcast %541 : f32 to vector<2x256xf32>
    %543 = arith.mulf %542, %504 : vector<2x256xf32>
    %544 = arith.addf %528, %543 : vector<2x256xf32>
    %c110 = arith.constant 110 : index
    %545 = memref.load %arg1[%c110] : memref<288xf32, #tpu.memory_space<smem>>
    %546 = vector.broadcast %545 : f32 to vector<2x256xf32>
    %547 = arith.mulf %546, %504 : vector<2x256xf32>
    %548 = arith.addf %532, %547 : vector<2x256xf32>
    %c111 = arith.constant 111 : index
    %549 = memref.load %arg1[%c111] : memref<288xf32, #tpu.memory_space<smem>>
    %550 = vector.broadcast %549 : f32 to vector<2x256xf32>
    %551 = arith.mulf %550, %504 : vector<2x256xf32>
    %552 = arith.addf %536, %551 : vector<2x256xf32>
    %c16_i32_39 = arith.constant 16 : i32
    %553 = tpu.dynamic_rotate %496 by %c16_i32_39 dim 1 : vector<2x256xf32>, i32 -> vector<2x256xf32>
    %c240_i32_40 = arith.constant 240 : i32
    %554 = tpu.dynamic_rotate %496 by %c240_i32_40 dim 1 : vector<2x256xf32>, i32 -> vector<2x256xf32>
    %555 = arith.select %10, %554, %553 : vector<2x256xi1>, vector<2x256xf32>
    %556 = arith.select %12, %553, %554 : vector<2x256xi1>, vector<2x256xf32>
    %c28 = arith.constant 28 : index
    %557 = memref.load %arg1[%c28] : memref<288xf32, #tpu.memory_space<smem>>
    %558 = vector.broadcast %557 : f32 to vector<2x256xf32>
    %559 = arith.mulf %558, %555 : vector<2x256xf32>
    %560 = arith.addf %540, %559 : vector<2x256xf32>
    %c29 = arith.constant 29 : index
    %561 = memref.load %arg1[%c29] : memref<288xf32, #tpu.memory_space<smem>>
    %562 = vector.broadcast %561 : f32 to vector<2x256xf32>
    %563 = arith.mulf %562, %555 : vector<2x256xf32>
    %564 = arith.addf %544, %563 : vector<2x256xf32>
    %c30 = arith.constant 30 : index
    %565 = memref.load %arg1[%c30] : memref<288xf32, #tpu.memory_space<smem>>
    %566 = vector.broadcast %565 : f32 to vector<2x256xf32>
    %567 = arith.mulf %566, %555 : vector<2x256xf32>
    %568 = arith.addf %548, %567 : vector<2x256xf32>
    %c31 = arith.constant 31 : index
    %569 = memref.load %arg1[%c31] : memref<288xf32, #tpu.memory_space<smem>>
    %570 = vector.broadcast %569 : f32 to vector<2x256xf32>
    %571 = arith.mulf %570, %555 : vector<2x256xf32>
    %572 = arith.addf %552, %571 : vector<2x256xf32>
    %c76 = arith.constant 76 : index
    %573 = memref.load %arg1[%c76] : memref<288xf32, #tpu.memory_space<smem>>
    %574 = vector.broadcast %573 : f32 to vector<2x256xf32>
    %575 = arith.mulf %574, %496 : vector<2x256xf32>
    %576 = arith.addf %560, %575 : vector<2x256xf32>
    %c77 = arith.constant 77 : index
    %577 = memref.load %arg1[%c77] : memref<288xf32, #tpu.memory_space<smem>>
    %578 = vector.broadcast %577 : f32 to vector<2x256xf32>
    %579 = arith.mulf %578, %496 : vector<2x256xf32>
    %580 = arith.addf %564, %579 : vector<2x256xf32>
    %c78 = arith.constant 78 : index
    %581 = memref.load %arg1[%c78] : memref<288xf32, #tpu.memory_space<smem>>
    %582 = vector.broadcast %581 : f32 to vector<2x256xf32>
    %583 = arith.mulf %582, %496 : vector<2x256xf32>
    %584 = arith.addf %568, %583 : vector<2x256xf32>
    %c79 = arith.constant 79 : index
    %585 = memref.load %arg1[%c79] : memref<288xf32, #tpu.memory_space<smem>>
    %586 = vector.broadcast %585 : f32 to vector<2x256xf32>
    %587 = arith.mulf %586, %496 : vector<2x256xf32>
    %588 = arith.addf %572, %587 : vector<2x256xf32>
    %c124 = arith.constant 124 : index
    %589 = memref.load %arg1[%c124] : memref<288xf32, #tpu.memory_space<smem>>
    %590 = vector.broadcast %589 : f32 to vector<2x256xf32>
    %591 = arith.mulf %590, %556 : vector<2x256xf32>
    %592 = arith.addf %576, %591 : vector<2x256xf32>
    %c125 = arith.constant 125 : index
    %593 = memref.load %arg1[%c125] : memref<288xf32, #tpu.memory_space<smem>>
    %594 = vector.broadcast %593 : f32 to vector<2x256xf32>
    %595 = arith.mulf %594, %556 : vector<2x256xf32>
    %596 = arith.addf %580, %595 : vector<2x256xf32>
    %c126 = arith.constant 126 : index
    %597 = memref.load %arg1[%c126] : memref<288xf32, #tpu.memory_space<smem>>
    %598 = vector.broadcast %597 : f32 to vector<2x256xf32>
    %599 = arith.mulf %598, %556 : vector<2x256xf32>
    %600 = arith.addf %584, %599 : vector<2x256xf32>
    %c127 = arith.constant 127 : index
    %601 = memref.load %arg1[%c127] : memref<288xf32, #tpu.memory_space<smem>>
    %602 = vector.broadcast %601 : f32 to vector<2x256xf32>
    %603 = arith.mulf %602, %556 : vector<2x256xf32>
    %604 = arith.addf %588, %603 : vector<2x256xf32>
    %c16_i32_41 = arith.constant 16 : i32
    %605 = tpu.dynamic_rotate %500 by %c16_i32_41 dim 1 : vector<2x256xf32>, i32 -> vector<2x256xf32>
    %c240_i32_42 = arith.constant 240 : i32
    %606 = tpu.dynamic_rotate %500 by %c240_i32_42 dim 1 : vector<2x256xf32>, i32 -> vector<2x256xf32>
    %607 = arith.select %10, %606, %605 : vector<2x256xi1>, vector<2x256xf32>
    %608 = arith.select %12, %605, %606 : vector<2x256xi1>, vector<2x256xf32>
    %c44 = arith.constant 44 : index
    %609 = memref.load %arg1[%c44] : memref<288xf32, #tpu.memory_space<smem>>
    %610 = vector.broadcast %609 : f32 to vector<2x256xf32>
    %611 = arith.mulf %610, %607 : vector<2x256xf32>
    %612 = arith.addf %592, %611 : vector<2x256xf32>
    %c45 = arith.constant 45 : index
    %613 = memref.load %arg1[%c45] : memref<288xf32, #tpu.memory_space<smem>>
    %614 = vector.broadcast %613 : f32 to vector<2x256xf32>
    %615 = arith.mulf %614, %607 : vector<2x256xf32>
    %616 = arith.addf %596, %615 : vector<2x256xf32>
    %c46 = arith.constant 46 : index
    %617 = memref.load %arg1[%c46] : memref<288xf32, #tpu.memory_space<smem>>
    %618 = vector.broadcast %617 : f32 to vector<2x256xf32>
    %619 = arith.mulf %618, %607 : vector<2x256xf32>
    %620 = arith.addf %600, %619 : vector<2x256xf32>
    %c47 = arith.constant 47 : index
    %621 = memref.load %arg1[%c47] : memref<288xf32, #tpu.memory_space<smem>>
    %622 = vector.broadcast %621 : f32 to vector<2x256xf32>
    %623 = arith.mulf %622, %607 : vector<2x256xf32>
    %624 = arith.addf %604, %623 : vector<2x256xf32>
    %c92 = arith.constant 92 : index
    %625 = memref.load %arg1[%c92] : memref<288xf32, #tpu.memory_space<smem>>
    %626 = vector.broadcast %625 : f32 to vector<2x256xf32>
    %627 = arith.mulf %626, %500 : vector<2x256xf32>
    %628 = arith.addf %612, %627 : vector<2x256xf32>
    %c93 = arith.constant 93 : index
    %629 = memref.load %arg1[%c93] : memref<288xf32, #tpu.memory_space<smem>>
    %630 = vector.broadcast %629 : f32 to vector<2x256xf32>
    %631 = arith.mulf %630, %500 : vector<2x256xf32>
    %632 = arith.addf %616, %631 : vector<2x256xf32>
    %c94 = arith.constant 94 : index
    %633 = memref.load %arg1[%c94] : memref<288xf32, #tpu.memory_space<smem>>
    %634 = vector.broadcast %633 : f32 to vector<2x256xf32>
    %635 = arith.mulf %634, %500 : vector<2x256xf32>
    %636 = arith.addf %620, %635 : vector<2x256xf32>
    %c95 = arith.constant 95 : index
    %637 = memref.load %arg1[%c95] : memref<288xf32, #tpu.memory_space<smem>>
    %638 = vector.broadcast %637 : f32 to vector<2x256xf32>
    %639 = arith.mulf %638, %500 : vector<2x256xf32>
    %640 = arith.addf %624, %639 : vector<2x256xf32>
    %c140 = arith.constant 140 : index
    %641 = memref.load %arg1[%c140] : memref<288xf32, #tpu.memory_space<smem>>
    %642 = vector.broadcast %641 : f32 to vector<2x256xf32>
    %643 = arith.mulf %642, %608 : vector<2x256xf32>
    %644 = arith.addf %628, %643 : vector<2x256xf32>
    %c141 = arith.constant 141 : index
    %645 = memref.load %arg1[%c141] : memref<288xf32, #tpu.memory_space<smem>>
    %646 = vector.broadcast %645 : f32 to vector<2x256xf32>
    %647 = arith.mulf %646, %608 : vector<2x256xf32>
    %648 = arith.addf %632, %647 : vector<2x256xf32>
    %c142 = arith.constant 142 : index
    %649 = memref.load %arg1[%c142] : memref<288xf32, #tpu.memory_space<smem>>
    %650 = vector.broadcast %649 : f32 to vector<2x256xf32>
    %651 = arith.mulf %650, %608 : vector<2x256xf32>
    %652 = arith.addf %636, %651 : vector<2x256xf32>
    %c143 = arith.constant 143 : index
    %653 = memref.load %arg1[%c143] : memref<288xf32, #tpu.memory_space<smem>>
    %654 = vector.broadcast %653 : f32 to vector<2x256xf32>
    %655 = arith.mulf %654, %608 : vector<2x256xf32>
    %656 = arith.addf %640, %655 : vector<2x256xf32>
    %c0_43 = arith.constant 0 : index
    %c0_44 = arith.constant 0 : index
    %657 = vector.load %arg4[%c0_43, %c0_44] : memref<8x256xf32, #tpu.memory_space<vmem>>, vector<2x256xf32>
    tpu.vector_store %arg4[%c0_43, %c0_44], %644 {strides = array<i32>} : memref<8x256xf32, #tpu.memory_space<vmem>>, vector<2x256xf32>,
    %c2_45 = arith.constant 2 : index
    %c0_46 = arith.constant 0 : index
    %658 = vector.load %arg4[%c2_45, %c0_46] : memref<8x256xf32, #tpu.memory_space<vmem>>, vector<2x256xf32>
    tpu.vector_store %arg4[%c2_45, %c0_46], %648 {strides = array<i32>} : memref<8x256xf32, #tpu.memory_space<vmem>>, vector<2x256xf32>,
    %c4_47 = arith.constant 4 : index
    %c0_48 = arith.constant 0 : index
    %659 = vector.load %arg4[%c4_47, %c0_48] : memref<8x256xf32, #tpu.memory_space<vmem>>, vector<2x256xf32>
    tpu.vector_store %arg4[%c4_47, %c0_48], %652 {strides = array<i32>} : memref<8x256xf32, #tpu.memory_space<vmem>>, vector<2x256xf32>,
    %c6_49 = arith.constant 6 : index
    %c0_50 = arith.constant 0 : index
    %660 = vector.load %arg4[%c6_49, %c0_50] : memref<8x256xf32, #tpu.memory_space<vmem>>, vector<2x256xf32>
    tpu.vector_store %arg4[%c6_49, %c0_50], %656 {strides = array<i32>} : memref<8x256xf32, #tpu.memory_space<vmem>>, vector<2x256xf32>,
    %c0_51 = arith.constant 0 : index
    %c0_52 = arith.constant 0 : index
    %661 = vector.load %arg4[%c0_51, %c0_52] : memref<8x256xf32, #tpu.memory_space<vmem>>, vector<8x256xf32>
    %cst = arith.constant dense<0.000000e+00> : vector<8xf32>
    %662 = vector.multi_reduction <add>, %661, %cst [1] : vector<8x256xf32> to vector<8xf32>
    %663 = vector.shape_cast %662 : vector<8xf32> to vector<8x1xf32>
    %664 = arith.mulf %661, %661 : vector<8x256xf32>
    %cst_53 = arith.constant dense<0.000000e+00> : vector<8xf32>
    %665 = vector.multi_reduction <add>, %664, %cst_53 [1] : vector<8x256xf32> to vector<8xf32>
    %666 = vector.shape_cast %665 : vector<8xf32> to vector<8x1xf32>
    %cst_54 = arith.constant 3.906250e-03 : f32
    %667 = vector.broadcast %cst_54 : f32 to vector<8x1xf32>
    %668 = arith.mulf %663, %667 : vector<8x1xf32>
    %cst_55 = arith.constant 3.906250e-03 : f32
    %669 = vector.broadcast %cst_55 : f32 to vector<8x1xf32>
    %670 = arith.mulf %666, %669 : vector<8x1xf32>
    %671 = arith.mulf %668, %668 : vector<8x1xf32>
    %672 = arith.subf %670, %671 : vector<8x1xf32>
    %cst_56 = arith.constant 0.000000e+00 : f32
    %673 = vector.broadcast %cst_56 : f32 to vector<8x1xf32>
    %674 = arith.maximumf %672, %673 : vector<8x1xf32>
    %675 = vector.broadcast %668 : vector<8x1xf32> to vector<8x256xf32>
    %676 = arith.subf %661, %675 : vector<8x256xf32>
    %cst_57 = arith.constant 9.99999974E-6 : f32
    %677 = vector.broadcast %cst_57 : f32 to vector<8x1xf32>
    %678 = arith.addf %674, %677 : vector<8x1xf32>
    %679 = math.rsqrt %678 : vector<8x1xf32>
    %680 = vector.broadcast %679 : vector<8x1xf32> to vector<8x256xf32>
    %681 = arith.mulf %676, %680 : vector<8x256xf32>
    %cst_58 = arith.constant 0.000000e+00 : f32
    %682 = vector.broadcast %cst_58 : f32 to vector<8x256xf32>
    %683 = arith.maximumf %681, %682 : vector<8x256xf32>
    %c0_59 = arith.constant 0 : index
    %c0_60 = arith.constant 0 : index
    %684 = vector.load %arg4[%c0_59, %c0_60] : memref<8x256xf32, #tpu.memory_space<vmem>>, vector<8x256xf32>
    tpu.vector_store %arg4[%c0_59, %c0_60], %683 {strides = array<i32>} : memref<8x256xf32, #tpu.memory_space<vmem>>, vector<8x256xf32>,
    %c0_61 = arith.constant 0 : index
    %c0_62 = arith.constant 0 : index
    %685 = vector.load %arg4[%c0_61, %c0_62] : memref<8x256xf32, #tpu.memory_space<vmem>>, vector<2x256xf32>
    %c1_i32_63 = arith.constant 1 : i32
    %686 = tpu.dynamic_rotate %685 by %c1_i32_63 dim 1 : vector<2x256xf32>, i32 -> vector<2x256xf32>
    %c255_i32_64 = arith.constant 255 : i32
    %687 = tpu.dynamic_rotate %685 by %c255_i32_64 dim 1 : vector<2x256xf32>, i32 -> vector<2x256xf32>
    %688 = arith.select %6, %687, %686 : vector<2x256xi1>, vector<2x256xf32>
    %689 = arith.select %8, %686, %687 : vector<2x256xi1>, vector<2x256xf32>
    %c16_i32_65 = arith.constant 16 : i32
    %690 = tpu.dynamic_rotate %688 by %c16_i32_65 dim 1 : vector<2x256xf32>, i32 -> vector<2x256xf32>
    %c240_i32_66 = arith.constant 240 : i32
    %691 = tpu.dynamic_rotate %688 by %c240_i32_66 dim 1 : vector<2x256xf32>, i32 -> vector<2x256xf32>
    %692 = arith.select %10, %691, %690 : vector<2x256xi1>, vector<2x256xf32>
    %693 = arith.select %12, %690, %691 : vector<2x256xi1>, vector<2x256xf32>
    %c144 = arith.constant 144 : index
    %694 = memref.load %arg1[%c144] : memref<288xf32, #tpu.memory_space<smem>>
    %695 = vector.broadcast %694 : f32 to vector<2x256xf32>
    %696 = arith.mulf %695, %692 : vector<2x256xf32>
    %c145 = arith.constant 145 : index
    %697 = memref.load %arg1[%c145] : memref<288xf32, #tpu.memory_space<smem>>
    %698 = vector.broadcast %697 : f32 to vector<2x256xf32>
    %699 = arith.mulf %698, %692 : vector<2x256xf32>
    %c146 = arith.constant 146 : index
    %700 = memref.load %arg1[%c146] : memref<288xf32, #tpu.memory_space<smem>>
    %701 = vector.broadcast %700 : f32 to vector<2x256xf32>
    %702 = arith.mulf %701, %692 : vector<2x256xf32>
    %c147 = arith.constant 147 : index
    %703 = memref.load %arg1[%c147] : memref<288xf32, #tpu.memory_space<smem>>
    %704 = vector.broadcast %703 : f32 to vector<2x256xf32>
    %705 = arith.mulf %704, %692 : vector<2x256xf32>
    %c192 = arith.constant 192 : index
    %706 = memref.load %arg1[%c192] : memref<288xf32, #tpu.memory_space<smem>>
    %707 = vector.broadcast %706 : f32 to vector<2x256xf32>
    %708 = arith.mulf %707, %688 : vector<2x256xf32>
    %709 = arith.addf %696, %708 : vector<2x256xf32>
    %c193 = arith.constant 193 : index
    %710 = memref.load %arg1[%c193] : memref<288xf32, #tpu.memory_space<smem>>
    %711 = vector.broadcast %710 : f32 to vector<2x256xf32>
    %712 = arith.mulf %711, %688 : vector<2x256xf32>
    %713 = arith.addf %699, %712 : vector<2x256xf32>
    %c194 = arith.constant 194 : index
    %714 = memref.load %arg1[%c194] : memref<288xf32, #tpu.memory_space<smem>>
    %715 = vector.broadcast %714 : f32 to vector<2x256xf32>
    %716 = arith.mulf %715, %688 : vector<2x256xf32>
    %717 = arith.addf %702, %716 : vector<2x256xf32>
    %c195 = arith.constant 195 : index
    %718 = memref.load %arg1[%c195] : memref<288xf32, #tpu.memory_space<smem>>
    %719 = vector.broadcast %718 : f32 to vector<2x256xf32>
    %720 = arith.mulf %719, %688 : vector<2x256xf32>
    %721 = arith.addf %705, %720 : vector<2x256xf32>
    %c240 = arith.constant 240 : index
    %722 = memref.load %arg1[%c240] : memref<288xf32, #tpu.memory_space<smem>>
    %723 = vector.broadcast %722 : f32 to vector<2x256xf32>
    %724 = arith.mulf %723, %693 : vector<2x256xf32>
    %725 = arith.addf %709, %724 : vector<2x256xf32>
    %c241 = arith.constant 241 : index
    %726 = memref.load %arg1[%c241] : memref<288xf32, #tpu.memory_space<smem>>
    %727 = vector.broadcast %726 : f32 to vector<2x256xf32>
    %728 = arith.mulf %727, %693 : vector<2x256xf32>
    %729 = arith.addf %713, %728 : vector<2x256xf32>
    %c242 = arith.constant 242 : index
    %730 = memref.load %arg1[%c242] : memref<288xf32, #tpu.memory_space<smem>>
    %731 = vector.broadcast %730 : f32 to vector<2x256xf32>
    %732 = arith.mulf %731, %693 : vector<2x256xf32>
    %733 = arith.addf %717, %732 : vector<2x256xf32>
    %c243 = arith.constant 243 : index
    %734 = memref.load %arg1[%c243] : memref<288xf32, #tpu.memory_space<smem>>
    %735 = vector.broadcast %734 : f32 to vector<2x256xf32>
    %736 = arith.mulf %735, %693 : vector<2x256xf32>
    %737 = arith.addf %721, %736 : vector<2x256xf32>
    %c16_i32_67 = arith.constant 16 : i32
    %738 = tpu.dynamic_rotate %685 by %c16_i32_67 dim 1 : vector<2x256xf32>, i32 -> vector<2x256xf32>
    %c240_i32_68 = arith.constant 240 : i32
    %739 = tpu.dynamic_rotate %685 by %c240_i32_68 dim 1 : vector<2x256xf32>, i32 -> vector<2x256xf32>
    %740 = arith.select %10, %739, %738 : vector<2x256xi1>, vector<2x256xf32>
    %741 = arith.select %12, %738, %739 : vector<2x256xi1>, vector<2x256xf32>
    %c160 = arith.constant 160 : index
    %742 = memref.load %arg1[%c160] : memref<288xf32, #tpu.memory_space<smem>>
    %743 = vector.broadcast %742 : f32 to vector<2x256xf32>
    %744 = arith.mulf %743, %740 : vector<2x256xf32>
    %745 = arith.addf %725, %744 : vector<2x256xf32>
    %c161 = arith.constant 161 : index
    %746 = memref.load %arg1[%c161] : memref<288xf32, #tpu.memory_space<smem>>
    %747 = vector.broadcast %746 : f32 to vector<2x256xf32>
    %748 = arith.mulf %747, %740 : vector<2x256xf32>
    %749 = arith.addf %729, %748 : vector<2x256xf32>
    %c162 = arith.constant 162 : index
    %750 = memref.load %arg1[%c162] : memref<288xf32, #tpu.memory_space<smem>>
    %751 = vector.broadcast %750 : f32 to vector<2x256xf32>
    %752 = arith.mulf %751, %740 : vector<2x256xf32>
    %753 = arith.addf %733, %752 : vector<2x256xf32>
    %c163 = arith.constant 163 : index
    %754 = memref.load %arg1[%c163] : memref<288xf32, #tpu.memory_space<smem>>
    %755 = vector.broadcast %754 : f32 to vector<2x256xf32>
    %756 = arith.mulf %755, %740 : vector<2x256xf32>
    %757 = arith.addf %737, %756 : vector<2x256xf32>
    %c208 = arith.constant 208 : index
    %758 = memref.load %arg1[%c208] : memref<288xf32, #tpu.memory_space<smem>>
    %759 = vector.broadcast %758 : f32 to vector<2x256xf32>
    %760 = arith.mulf %759, %685 : vector<2x256xf32>
    %761 = arith.addf %745, %760 : vector<2x256xf32>
    %c209 = arith.constant 209 : index
    %762 = memref.load %arg1[%c209] : memref<288xf32, #tpu.memory_space<smem>>
    %763 = vector.broadcast %762 : f32 to vector<2x256xf32>
    %764 = arith.mulf %763, %685 : vector<2x256xf32>
    %765 = arith.addf %749, %764 : vector<2x256xf32>
    %c210 = arith.constant 210 : index
    %766 = memref.load %arg1[%c210] : memref<288xf32, #tpu.memory_space<smem>>
    %767 = vector.broadcast %766 : f32 to vector<2x256xf32>
    %768 = arith.mulf %767, %685 : vector<2x256xf32>
    %769 = arith.addf %753, %768 : vector<2x256xf32>
    %c211 = arith.constant 211 : index
    %770 = memref.load %arg1[%c211] : memref<288xf32, #tpu.memory_space<smem>>
    %771 = vector.broadcast %770 : f32 to vector<2x256xf32>
    %772 = arith.mulf %771, %685 : vector<2x256xf32>
    %773 = arith.addf %757, %772 : vector<2x256xf32>
    %c256 = arith.constant 256 : index
    %774 = memref.load %arg1[%c256] : memref<288xf32, #tpu.memory_space<smem>>
    %775 = vector.broadcast %774 : f32 to vector<2x256xf32>
    %776 = arith.mulf %775, %741 : vector<2x256xf32>
    %777 = arith.addf %761, %776 : vector<2x256xf32>
    %c257 = arith.constant 257 : index
    %778 = memref.load %arg1[%c257] : memref<288xf32, #tpu.memory_space<smem>>
    %779 = vector.broadcast %778 : f32 to vector<2x256xf32>
    %780 = arith.mulf %779, %741 : vector<2x256xf32>
    %781 = arith.addf %765, %780 : vector<2x256xf32>
    %c258 = arith.constant 258 : index
    %782 = memref.load %arg1[%c258] : memref<288xf32, #tpu.memory_space<smem>>
    %783 = vector.broadcast %782 : f32 to vector<2x256xf32>
    %784 = arith.mulf %783, %741 : vector<2x256xf32>
    %785 = arith.addf %769, %784 : vector<2x256xf32>
    %c259 = arith.constant 259 : index
    %786 = memref.load %arg1[%c259] : memref<288xf32, #tpu.memory_space<smem>>
    %787 = vector.broadcast %786 : f32 to vector<2x256xf32>
    %788 = arith.mulf %787, %741 : vector<2x256xf32>
    %789 = arith.addf %773, %788 : vector<2x256xf32>
    %c16_i32_69 = arith.constant 16 : i32
    %790 = tpu.dynamic_rotate %689 by %c16_i32_69 dim 1 : vector<2x256xf32>, i32 -> vector<2x256xf32>
    %c240_i32_70 = arith.constant 240 : i32
    %791 = tpu.dynamic_rotate %689 by %c240_i32_70 dim 1 : vector<2x256xf32>, i32 -> vector<2x256xf32>
    %792 = arith.select %10, %791, %790 : vector<2x256xi1>, vector<2x256xf32>
    %793 = arith.select %12, %790, %791 : vector<2x256xi1>, vector<2x256xf32>
    %c176 = arith.constant 176 : index
    %794 = memref.load %arg1[%c176] : memref<288xf32, #tpu.memory_space<smem>>
    %795 = vector.broadcast %794 : f32 to vector<2x256xf32>
    %796 = arith.mulf %795, %792 : vector<2x256xf32>
    %797 = arith.addf %777, %796 : vector<2x256xf32>
    %c177 = arith.constant 177 : index
    %798 = memref.load %arg1[%c177] : memref<288xf32, #tpu.memory_space<smem>>
    %799 = vector.broadcast %798 : f32 to vector<2x256xf32>
    %800 = arith.mulf %799, %792 : vector<2x256xf32>
    %801 = arith.addf %781, %800 : vector<2x256xf32>
    %c178 = arith.constant 178 : index
    %802 = memref.load %arg1[%c178] : memref<288xf32, #tpu.memory_space<smem>>
    %803 = vector.broadcast %802 : f32 to vector<2x256xf32>
    %804 = arith.mulf %803, %792 : vector<2x256xf32>
    %805 = arith.addf %785, %804 : vector<2x256xf32>
    %c179 = arith.constant 179 : index
    %806 = memref.load %arg1[%c179] : memref<288xf32, #tpu.memory_space<smem>>
    %807 = vector.broadcast %806 : f32 to vector<2x256xf32>
    %808 = arith.mulf %807, %792 : vector<2x256xf32>
    %809 = arith.addf %789, %808 : vector<2x256xf32>
    %c224 = arith.constant 224 : index
    %810 = memref.load %arg1[%c224] : memref<288xf32, #tpu.memory_space<smem>>
    %811 = vector.broadcast %810 : f32 to vector<2x256xf32>
    %812 = arith.mulf %811, %689 : vector<2x256xf32>
    %813 = arith.addf %797, %812 : vector<2x256xf32>
    %c225 = arith.constant 225 : index
    %814 = memref.load %arg1[%c225] : memref<288xf32, #tpu.memory_space<smem>>
    %815 = vector.broadcast %814 : f32 to vector<2x256xf32>
    %816 = arith.mulf %815, %689 : vector<2x256xf32>
    %817 = arith.addf %801, %816 : vector<2x256xf32>
    %c226 = arith.constant 226 : index
    %818 = memref.load %arg1[%c226] : memref<288xf32, #tpu.memory_space<smem>>
    %819 = vector.broadcast %818 : f32 to vector<2x256xf32>
    %820 = arith.mulf %819, %689 : vector<2x256xf32>
    %821 = arith.addf %805, %820 : vector<2x256xf32>
    %c227 = arith.constant 227 : index
    %822 = memref.load %arg1[%c227] : memref<288xf32, #tpu.memory_space<smem>>
    %823 = vector.broadcast %822 : f32 to vector<2x256xf32>
    %824 = arith.mulf %823, %689 : vector<2x256xf32>
    %825 = arith.addf %809, %824 : vector<2x256xf32>
    %c272 = arith.constant 272 : index
    %826 = memref.load %arg1[%c272] : memref<288xf32, #tpu.memory_space<smem>>
    %827 = vector.broadcast %826 : f32 to vector<2x256xf32>
    %828 = arith.mulf %827, %793 : vector<2x256xf32>
    %829 = arith.addf %813, %828 : vector<2x256xf32>
    %c273 = arith.constant 273 : index
    %830 = memref.load %arg1[%c273] : memref<288xf32, #tpu.memory_space<smem>>
    %831 = vector.broadcast %830 : f32 to vector<2x256xf32>
    %832 = arith.mulf %831, %793 : vector<2x256xf32>
    %833 = arith.addf %817, %832 : vector<2x256xf32>
    %c274 = arith.constant 274 : index
    %834 = memref.load %arg1[%c274] : memref<288xf32, #tpu.memory_space<smem>>
    %835 = vector.broadcast %834 : f32 to vector<2x256xf32>
    %836 = arith.mulf %835, %793 : vector<2x256xf32>
    %837 = arith.addf %821, %836 : vector<2x256xf32>
    %c275 = arith.constant 275 : index
    %838 = memref.load %arg1[%c275] : memref<288xf32, #tpu.memory_space<smem>>
    %839 = vector.broadcast %838 : f32 to vector<2x256xf32>
    %840 = arith.mulf %839, %793 : vector<2x256xf32>
    %841 = arith.addf %825, %840 : vector<2x256xf32>
    %c2_71 = arith.constant 2 : index
    %c0_72 = arith.constant 0 : index
    %842 = vector.load %arg4[%c2_71, %c0_72] : memref<8x256xf32, #tpu.memory_space<vmem>>, vector<2x256xf32>
    %c1_i32_73 = arith.constant 1 : i32
    %843 = tpu.dynamic_rotate %842 by %c1_i32_73 dim 1 : vector<2x256xf32>, i32 -> vector<2x256xf32>
    %c255_i32_74 = arith.constant 255 : i32
    %844 = tpu.dynamic_rotate %842 by %c255_i32_74 dim 1 : vector<2x256xf32>, i32 -> vector<2x256xf32>
    %845 = arith.select %6, %844, %843 : vector<2x256xi1>, vector<2x256xf32>
    %846 = arith.select %8, %843, %844 : vector<2x256xi1>, vector<2x256xf32>
    %c16_i32_75 = arith.constant 16 : i32
    %847 = tpu.dynamic_rotate %845 by %c16_i32_75 dim 1 : vector<2x256xf32>, i32 -> vector<2x256xf32>
    %c240_i32_76 = arith.constant 240 : i32
    %848 = tpu.dynamic_rotate %845 by %c240_i32_76 dim 1 : vector<2x256xf32>, i32 -> vector<2x256xf32>
    %849 = arith.select %10, %848, %847 : vector<2x256xi1>, vector<2x256xf32>
    %850 = arith.select %12, %847, %848 : vector<2x256xi1>, vector<2x256xf32>
    %c148 = arith.constant 148 : index
    %851 = memref.load %arg1[%c148] : memref<288xf32, #tpu.memory_space<smem>>
    %852 = vector.broadcast %851 : f32 to vector<2x256xf32>
    %853 = arith.mulf %852, %849 : vector<2x256xf32>
    %854 = arith.addf %829, %853 : vector<2x256xf32>
    %c149 = arith.constant 149 : index
    %855 = memref.load %arg1[%c149] : memref<288xf32, #tpu.memory_space<smem>>
    %856 = vector.broadcast %855 : f32 to vector<2x256xf32>
    %857 = arith.mulf %856, %849 : vector<2x256xf32>
    %858 = arith.addf %833, %857 : vector<2x256xf32>
    %c150 = arith.constant 150 : index
    %859 = memref.load %arg1[%c150] : memref<288xf32, #tpu.memory_space<smem>>
    %860 = vector.broadcast %859 : f32 to vector<2x256xf32>
    %861 = arith.mulf %860, %849 : vector<2x256xf32>
    %862 = arith.addf %837, %861 : vector<2x256xf32>
    %c151 = arith.constant 151 : index
    %863 = memref.load %arg1[%c151] : memref<288xf32, #tpu.memory_space<smem>>
    %864 = vector.broadcast %863 : f32 to vector<2x256xf32>
    %865 = arith.mulf %864, %849 : vector<2x256xf32>
    %866 = arith.addf %841, %865 : vector<2x256xf32>
    %c196 = arith.constant 196 : index
    %867 = memref.load %arg1[%c196] : memref<288xf32, #tpu.memory_space<smem>>
    %868 = vector.broadcast %867 : f32 to vector<2x256xf32>
    %869 = arith.mulf %868, %845 : vector<2x256xf32>
    %870 = arith.addf %854, %869 : vector<2x256xf32>
    %c197 = arith.constant 197 : index
    %871 = memref.load %arg1[%c197] : memref<288xf32, #tpu.memory_space<smem>>
    %872 = vector.broadcast %871 : f32 to vector<2x256xf32>
    %873 = arith.mulf %872, %845 : vector<2x256xf32>
    %874 = arith.addf %858, %873 : vector<2x256xf32>
    %c198 = arith.constant 198 : index
    %875 = memref.load %arg1[%c198] : memref<288xf32, #tpu.memory_space<smem>>
    %876 = vector.broadcast %875 : f32 to vector<2x256xf32>
    %877 = arith.mulf %876, %845 : vector<2x256xf32>
    %878 = arith.addf %862, %877 : vector<2x256xf32>
    %c199 = arith.constant 199 : index
    %879 = memref.load %arg1[%c199] : memref<288xf32, #tpu.memory_space<smem>>
    %880 = vector.broadcast %879 : f32 to vector<2x256xf32>
    %881 = arith.mulf %880, %845 : vector<2x256xf32>
    %882 = arith.addf %866, %881 : vector<2x256xf32>
    %c244 = arith.constant 244 : index
    %883 = memref.load %arg1[%c244] : memref<288xf32, #tpu.memory_space<smem>>
    %884 = vector.broadcast %883 : f32 to vector<2x256xf32>
    %885 = arith.mulf %884, %850 : vector<2x256xf32>
    %886 = arith.addf %870, %885 : vector<2x256xf32>
    %c245 = arith.constant 245 : index
    %887 = memref.load %arg1[%c245] : memref<288xf32, #tpu.memory_space<smem>>
    %888 = vector.broadcast %887 : f32 to vector<2x256xf32>
    %889 = arith.mulf %888, %850 : vector<2x256xf32>
    %890 = arith.addf %874, %889 : vector<2x256xf32>
    %c246 = arith.constant 246 : index
    %891 = memref.load %arg1[%c246] : memref<288xf32, #tpu.memory_space<smem>>
    %892 = vector.broadcast %891 : f32 to vector<2x256xf32>
    %893 = arith.mulf %892, %850 : vector<2x256xf32>
    %894 = arith.addf %878, %893 : vector<2x256xf32>
    %c247 = arith.constant 247 : index
    %895 = memref.load %arg1[%c247] : memref<288xf32, #tpu.memory_space<smem>>
    %896 = vector.broadcast %895 : f32 to vector<2x256xf32>
    %897 = arith.mulf %896, %850 : vector<2x256xf32>
    %898 = arith.addf %882, %897 : vector<2x256xf32>
    %c16_i32_77 = arith.constant 16 : i32
    %899 = tpu.dynamic_rotate %842 by %c16_i32_77 dim 1 : vector<2x256xf32>, i32 -> vector<2x256xf32>
    %c240_i32_78 = arith.constant 240 : i32
    %900 = tpu.dynamic_rotate %842 by %c240_i32_78 dim 1 : vector<2x256xf32>, i32 -> vector<2x256xf32>
    %901 = arith.select %10, %900, %899 : vector<2x256xi1>, vector<2x256xf32>
    %902 = arith.select %12, %899, %900 : vector<2x256xi1>, vector<2x256xf32>
    %c164 = arith.constant 164 : index
    %903 = memref.load %arg1[%c164] : memref<288xf32, #tpu.memory_space<smem>>
    %904 = vector.broadcast %903 : f32 to vector<2x256xf32>
    %905 = arith.mulf %904, %901 : vector<2x256xf32>
    %906 = arith.addf %886, %905 : vector<2x256xf32>
    %c165 = arith.constant 165 : index
    %907 = memref.load %arg1[%c165] : memref<288xf32, #tpu.memory_space<smem>>
    %908 = vector.broadcast %907 : f32 to vector<2x256xf32>
    %909 = arith.mulf %908, %901 : vector<2x256xf32>
    %910 = arith.addf %890, %909 : vector<2x256xf32>
    %c166 = arith.constant 166 : index
    %911 = memref.load %arg1[%c166] : memref<288xf32, #tpu.memory_space<smem>>
    %912 = vector.broadcast %911 : f32 to vector<2x256xf32>
    %913 = arith.mulf %912, %901 : vector<2x256xf32>
    %914 = arith.addf %894, %913 : vector<2x256xf32>
    %c167 = arith.constant 167 : index
    %915 = memref.load %arg1[%c167] : memref<288xf32, #tpu.memory_space<smem>>
    %916 = vector.broadcast %915 : f32 to vector<2x256xf32>
    %917 = arith.mulf %916, %901 : vector<2x256xf32>
    %918 = arith.addf %898, %917 : vector<2x256xf32>
    %c212 = arith.constant 212 : index
    %919 = memref.load %arg1[%c212] : memref<288xf32, #tpu.memory_space<smem>>
    %920 = vector.broadcast %919 : f32 to vector<2x256xf32>
    %921 = arith.mulf %920, %842 : vector<2x256xf32>
    %922 = arith.addf %906, %921 : vector<2x256xf32>
    %c213 = arith.constant 213 : index
    %923 = memref.load %arg1[%c213] : memref<288xf32, #tpu.memory_space<smem>>
    %924 = vector.broadcast %923 : f32 to vector<2x256xf32>
    %925 = arith.mulf %924, %842 : vector<2x256xf32>
    %926 = arith.addf %910, %925 : vector<2x256xf32>
    %c214 = arith.constant 214 : index
    %927 = memref.load %arg1[%c214] : memref<288xf32, #tpu.memory_space<smem>>
    %928 = vector.broadcast %927 : f32 to vector<2x256xf32>
    %929 = arith.mulf %928, %842 : vector<2x256xf32>
    %930 = arith.addf %914, %929 : vector<2x256xf32>
    %c215 = arith.constant 215 : index
    %931 = memref.load %arg1[%c215] : memref<288xf32, #tpu.memory_space<smem>>
    %932 = vector.broadcast %931 : f32 to vector<2x256xf32>
    %933 = arith.mulf %932, %842 : vector<2x256xf32>
    %934 = arith.addf %918, %933 : vector<2x256xf32>
    %c260 = arith.constant 260 : index
    %935 = memref.load %arg1[%c260] : memref<288xf32, #tpu.memory_space<smem>>
    %936 = vector.broadcast %935 : f32 to vector<2x256xf32>
    %937 = arith.mulf %936, %902 : vector<2x256xf32>
    %938 = arith.addf %922, %937 : vector<2x256xf32>
    %c261 = arith.constant 261 : index
    %939 = memref.load %arg1[%c261] : memref<288xf32, #tpu.memory_space<smem>>
    %940 = vector.broadcast %939 : f32 to vector<2x256xf32>
    %941 = arith.mulf %940, %902 : vector<2x256xf32>
    %942 = arith.addf %926, %941 : vector<2x256xf32>
    %c262 = arith.constant 262 : index
    %943 = memref.load %arg1[%c262] : memref<288xf32, #tpu.memory_space<smem>>
    %944 = vector.broadcast %943 : f32 to vector<2x256xf32>
    %945 = arith.mulf %944, %902 : vector<2x256xf32>
    %946 = arith.addf %930, %945 : vector<2x256xf32>
    %c263 = arith.constant 263 : index
    %947 = memref.load %arg1[%c263] : memref<288xf32, #tpu.memory_space<smem>>
    %948 = vector.broadcast %947 : f32 to vector<2x256xf32>
    %949 = arith.mulf %948, %902 : vector<2x256xf32>
    %950 = arith.addf %934, %949 : vector<2x256xf32>
    %c16_i32_79 = arith.constant 16 : i32
    %951 = tpu.dynamic_rotate %846 by %c16_i32_79 dim 1 : vector<2x256xf32>, i32 -> vector<2x256xf32>
    %c240_i32_80 = arith.constant 240 : i32
    %952 = tpu.dynamic_rotate %846 by %c240_i32_80 dim 1 : vector<2x256xf32>, i32 -> vector<2x256xf32>
    %953 = arith.select %10, %952, %951 : vector<2x256xi1>, vector<2x256xf32>
    %954 = arith.select %12, %951, %952 : vector<2x256xi1>, vector<2x256xf32>
    %c180 = arith.constant 180 : index
    %955 = memref.load %arg1[%c180] : memref<288xf32, #tpu.memory_space<smem>>
    %956 = vector.broadcast %955 : f32 to vector<2x256xf32>
    %957 = arith.mulf %956, %953 : vector<2x256xf32>
    %958 = arith.addf %938, %957 : vector<2x256xf32>
    %c181 = arith.constant 181 : index
    %959 = memref.load %arg1[%c181] : memref<288xf32, #tpu.memory_space<smem>>
    %960 = vector.broadcast %959 : f32 to vector<2x256xf32>
    %961 = arith.mulf %960, %953 : vector<2x256xf32>
    %962 = arith.addf %942, %961 : vector<2x256xf32>
    %c182 = arith.constant 182 : index
    %963 = memref.load %arg1[%c182] : memref<288xf32, #tpu.memory_space<smem>>
    %964 = vector.broadcast %963 : f32 to vector<2x256xf32>
    %965 = arith.mulf %964, %953 : vector<2x256xf32>
    %966 = arith.addf %946, %965 : vector<2x256xf32>
    %c183 = arith.constant 183 : index
    %967 = memref.load %arg1[%c183] : memref<288xf32, #tpu.memory_space<smem>>
    %968 = vector.broadcast %967 : f32 to vector<2x256xf32>
    %969 = arith.mulf %968, %953 : vector<2x256xf32>
    %970 = arith.addf %950, %969 : vector<2x256xf32>
    %c228 = arith.constant 228 : index
    %971 = memref.load %arg1[%c228] : memref<288xf32, #tpu.memory_space<smem>>
    %972 = vector.broadcast %971 : f32 to vector<2x256xf32>
    %973 = arith.mulf %972, %846 : vector<2x256xf32>
    %974 = arith.addf %958, %973 : vector<2x256xf32>
    %c229 = arith.constant 229 : index
    %975 = memref.load %arg1[%c229] : memref<288xf32, #tpu.memory_space<smem>>
    %976 = vector.broadcast %975 : f32 to vector<2x256xf32>
    %977 = arith.mulf %976, %846 : vector<2x256xf32>
    %978 = arith.addf %962, %977 : vector<2x256xf32>
    %c230 = arith.constant 230 : index
    %979 = memref.load %arg1[%c230] : memref<288xf32, #tpu.memory_space<smem>>
    %980 = vector.broadcast %979 : f32 to vector<2x256xf32>
    %981 = arith.mulf %980, %846 : vector<2x256xf32>
    %982 = arith.addf %966, %981 : vector<2x256xf32>
    %c231 = arith.constant 231 : index
    %983 = memref.load %arg1[%c231] : memref<288xf32, #tpu.memory_space<smem>>
    %984 = vector.broadcast %983 : f32 to vector<2x256xf32>
    %985 = arith.mulf %984, %846 : vector<2x256xf32>
    %986 = arith.addf %970, %985 : vector<2x256xf32>
    %c276 = arith.constant 276 : index
    %987 = memref.load %arg1[%c276] : memref<288xf32, #tpu.memory_space<smem>>
    %988 = vector.broadcast %987 : f32 to vector<2x256xf32>
    %989 = arith.mulf %988, %954 : vector<2x256xf32>
    %990 = arith.addf %974, %989 : vector<2x256xf32>
    %c277 = arith.constant 277 : index
    %991 = memref.load %arg1[%c277] : memref<288xf32, #tpu.memory_space<smem>>
    %992 = vector.broadcast %991 : f32 to vector<2x256xf32>
    %993 = arith.mulf %992, %954 : vector<2x256xf32>
    %994 = arith.addf %978, %993 : vector<2x256xf32>
    %c278 = arith.constant 278 : index
    %995 = memref.load %arg1[%c278] : memref<288xf32, #tpu.memory_space<smem>>
    %996 = vector.broadcast %995 : f32 to vector<2x256xf32>
    %997 = arith.mulf %996, %954 : vector<2x256xf32>
    %998 = arith.addf %982, %997 : vector<2x256xf32>
    %c279 = arith.constant 279 : index
    %999 = memref.load %arg1[%c279] : memref<288xf32, #tpu.memory_space<smem>>
    %1000 = vector.broadcast %999 : f32 to vector<2x256xf32>
    %1001 = arith.mulf %1000, %954 : vector<2x256xf32>
    %1002 = arith.addf %986, %1001 : vector<2x256xf32>
    %c4_81 = arith.constant 4 : index
    %c0_82 = arith.constant 0 : index
    %1003 = vector.load %arg4[%c4_81, %c0_82] : memref<8x256xf32, #tpu.memory_space<vmem>>, vector<2x256xf32>
    %c1_i32_83 = arith.constant 1 : i32
    %1004 = tpu.dynamic_rotate %1003 by %c1_i32_83 dim 1 : vector<2x256xf32>, i32 -> vector<2x256xf32>
    %c255_i32_84 = arith.constant 255 : i32
    %1005 = tpu.dynamic_rotate %1003 by %c255_i32_84 dim 1 : vector<2x256xf32>, i32 -> vector<2x256xf32>
    %1006 = arith.select %6, %1005, %1004 : vector<2x256xi1>, vector<2x256xf32>
    %1007 = arith.select %8, %1004, %1005 : vector<2x256xi1>, vector<2x256xf32>
    %c16_i32_85 = arith.constant 16 : i32
    %1008 = tpu.dynamic_rotate %1006 by %c16_i32_85 dim 1 : vector<2x256xf32>, i32 -> vector<2x256xf32>
    %c240_i32_86 = arith.constant 240 : i32
    %1009 = tpu.dynamic_rotate %1006 by %c240_i32_86 dim 1 : vector<2x256xf32>, i32 -> vector<2x256xf32>
    %1010 = arith.select %10, %1009, %1008 : vector<2x256xi1>, vector<2x256xf32>
    %1011 = arith.select %12, %1008, %1009 : vector<2x256xi1>, vector<2x256xf32>
    %c152 = arith.constant 152 : index
    %1012 = memref.load %arg1[%c152] : memref<288xf32, #tpu.memory_space<smem>>
    %1013 = vector.broadcast %1012 : f32 to vector<2x256xf32>
    %1014 = arith.mulf %1013, %1010 : vector<2x256xf32>
    %1015 = arith.addf %990, %1014 : vector<2x256xf32>
    %c153 = arith.constant 153 : index
    %1016 = memref.load %arg1[%c153] : memref<288xf32, #tpu.memory_space<smem>>
    %1017 = vector.broadcast %1016 : f32 to vector<2x256xf32>
    %1018 = arith.mulf %1017, %1010 : vector<2x256xf32>
    %1019 = arith.addf %994, %1018 : vector<2x256xf32>
    %c154 = arith.constant 154 : index
    %1020 = memref.load %arg1[%c154] : memref<288xf32, #tpu.memory_space<smem>>
    %1021 = vector.broadcast %1020 : f32 to vector<2x256xf32>
    %1022 = arith.mulf %1021, %1010 : vector<2x256xf32>
    %1023 = arith.addf %998, %1022 : vector<2x256xf32>
    %c155 = arith.constant 155 : index
    %1024 = memref.load %arg1[%c155] : memref<288xf32, #tpu.memory_space<smem>>
    %1025 = vector.broadcast %1024 : f32 to vector<2x256xf32>
    %1026 = arith.mulf %1025, %1010 : vector<2x256xf32>
    %1027 = arith.addf %1002, %1026 : vector<2x256xf32>
    %c200 = arith.constant 200 : index
    %1028 = memref.load %arg1[%c200] : memref<288xf32, #tpu.memory_space<smem>>
    %1029 = vector.broadcast %1028 : f32 to vector<2x256xf32>
    %1030 = arith.mulf %1029, %1006 : vector<2x256xf32>
    %1031 = arith.addf %1015, %1030 : vector<2x256xf32>
    %c201 = arith.constant 201 : index
    %1032 = memref.load %arg1[%c201] : memref<288xf32, #tpu.memory_space<smem>>
    %1033 = vector.broadcast %1032 : f32 to vector<2x256xf32>
    %1034 = arith.mulf %1033, %1006 : vector<2x256xf32>
    %1035 = arith.addf %1019, %1034 : vector<2x256xf32>
    %c202 = arith.constant 202 : index
    %1036 = memref.load %arg1[%c202] : memref<288xf32, #tpu.memory_space<smem>>
    %1037 = vector.broadcast %1036 : f32 to vector<2x256xf32>
    %1038 = arith.mulf %1037, %1006 : vector<2x256xf32>
    %1039 = arith.addf %1023, %1038 : vector<2x256xf32>
    %c203 = arith.constant 203 : index
    %1040 = memref.load %arg1[%c203] : memref<288xf32, #tpu.memory_space<smem>>
    %1041 = vector.broadcast %1040 : f32 to vector<2x256xf32>
    %1042 = arith.mulf %1041, %1006 : vector<2x256xf32>
    %1043 = arith.addf %1027, %1042 : vector<2x256xf32>
    %c248 = arith.constant 248 : index
    %1044 = memref.load %arg1[%c248] : memref<288xf32, #tpu.memory_space<smem>>
    %1045 = vector.broadcast %1044 : f32 to vector<2x256xf32>
    %1046 = arith.mulf %1045, %1011 : vector<2x256xf32>
    %1047 = arith.addf %1031, %1046 : vector<2x256xf32>
    %c249 = arith.constant 249 : index
    %1048 = memref.load %arg1[%c249] : memref<288xf32, #tpu.memory_space<smem>>
    %1049 = vector.broadcast %1048 : f32 to vector<2x256xf32>
    %1050 = arith.mulf %1049, %1011 : vector<2x256xf32>
    %1051 = arith.addf %1035, %1050 : vector<2x256xf32>
    %c250 = arith.constant 250 : index
    %1052 = memref.load %arg1[%c250] : memref<288xf32, #tpu.memory_space<smem>>
    %1053 = vector.broadcast %1052 : f32 to vector<2x256xf32>
    %1054 = arith.mulf %1053, %1011 : vector<2x256xf32>
    %1055 = arith.addf %1039, %1054 : vector<2x256xf32>
    %c251 = arith.constant 251 : index
    %1056 = memref.load %arg1[%c251] : memref<288xf32, #tpu.memory_space<smem>>
    %1057 = vector.broadcast %1056 : f32 to vector<2x256xf32>
    %1058 = arith.mulf %1057, %1011 : vector<2x256xf32>
    %1059 = arith.addf %1043, %1058 : vector<2x256xf32>
    %c16_i32_87 = arith.constant 16 : i32
    %1060 = tpu.dynamic_rotate %1003 by %c16_i32_87 dim 1 : vector<2x256xf32>, i32 -> vector<2x256xf32>
    %c240_i32_88 = arith.constant 240 : i32
    %1061 = tpu.dynamic_rotate %1003 by %c240_i32_88 dim 1 : vector<2x256xf32>, i32 -> vector<2x256xf32>
    %1062 = arith.select %10, %1061, %1060 : vector<2x256xi1>, vector<2x256xf32>
    %1063 = arith.select %12, %1060, %1061 : vector<2x256xi1>, vector<2x256xf32>
    %c168 = arith.constant 168 : index
    %1064 = memref.load %arg1[%c168] : memref<288xf32, #tpu.memory_space<smem>>
    %1065 = vector.broadcast %1064 : f32 to vector<2x256xf32>
    %1066 = arith.mulf %1065, %1062 : vector<2x256xf32>
    %1067 = arith.addf %1047, %1066 : vector<2x256xf32>
    %c169 = arith.constant 169 : index
    %1068 = memref.load %arg1[%c169] : memref<288xf32, #tpu.memory_space<smem>>
    %1069 = vector.broadcast %1068 : f32 to vector<2x256xf32>
    %1070 = arith.mulf %1069, %1062 : vector<2x256xf32>
    %1071 = arith.addf %1051, %1070 : vector<2x256xf32>
    %c170 = arith.constant 170 : index
    %1072 = memref.load %arg1[%c170] : memref<288xf32, #tpu.memory_space<smem>>
    %1073 = vector.broadcast %1072 : f32 to vector<2x256xf32>
    %1074 = arith.mulf %1073, %1062 : vector<2x256xf32>
    %1075 = arith.addf %1055, %1074 : vector<2x256xf32>
    %c171 = arith.constant 171 : index
    %1076 = memref.load %arg1[%c171] : memref<288xf32, #tpu.memory_space<smem>>
    %1077 = vector.broadcast %1076 : f32 to vector<2x256xf32>
    %1078 = arith.mulf %1077, %1062 : vector<2x256xf32>
    %1079 = arith.addf %1059, %1078 : vector<2x256xf32>
    %c216 = arith.constant 216 : index
    %1080 = memref.load %arg1[%c216] : memref<288xf32, #tpu.memory_space<smem>>
    %1081 = vector.broadcast %1080 : f32 to vector<2x256xf32>
    %1082 = arith.mulf %1081, %1003 : vector<2x256xf32>
    %1083 = arith.addf %1067, %1082 : vector<2x256xf32>
    %c217 = arith.constant 217 : index
    %1084 = memref.load %arg1[%c217] : memref<288xf32, #tpu.memory_space<smem>>
    %1085 = vector.broadcast %1084 : f32 to vector<2x256xf32>
    %1086 = arith.mulf %1085, %1003 : vector<2x256xf32>
    %1087 = arith.addf %1071, %1086 : vector<2x256xf32>
    %c218 = arith.constant 218 : index
    %1088 = memref.load %arg1[%c218] : memref<288xf32, #tpu.memory_space<smem>>
    %1089 = vector.broadcast %1088 : f32 to vector<2x256xf32>
    %1090 = arith.mulf %1089, %1003 : vector<2x256xf32>
    %1091 = arith.addf %1075, %1090 : vector<2x256xf32>
    %c219 = arith.constant 219 : index
    %1092 = memref.load %arg1[%c219] : memref<288xf32, #tpu.memory_space<smem>>
    %1093 = vector.broadcast %1092 : f32 to vector<2x256xf32>
    %1094 = arith.mulf %1093, %1003 : vector<2x256xf32>
    %1095 = arith.addf %1079, %1094 : vector<2x256xf32>
    %c264 = arith.constant 264 : index
    %1096 = memref.load %arg1[%c264] : memref<288xf32, #tpu.memory_space<smem>>
    %1097 = vector.broadcast %1096 : f32 to vector<2x256xf32>
    %1098 = arith.mulf %1097, %1063 : vector<2x256xf32>
    %1099 = arith.addf %1083, %1098 : vector<2x256xf32>
    %c265 = arith.constant 265 : index
    %1100 = memref.load %arg1[%c265] : memref<288xf32, #tpu.memory_space<smem>>
    %1101 = vector.broadcast %1100 : f32 to vector<2x256xf32>
    %1102 = arith.mulf %1101, %1063 : vector<2x256xf32>
    %1103 = arith.addf %1087, %1102 : vector<2x256xf32>
    %c266 = arith.constant 266 : index
    %1104 = memref.load %arg1[%c266] : memref<288xf32, #tpu.memory_space<smem>>
    %1105 = vector.broadcast %1104 : f32 to vector<2x256xf32>
    %1106 = arith.mulf %1105, %1063 : vector<2x256xf32>
    %1107 = arith.addf %1091, %1106 : vector<2x256xf32>
    %c267 = arith.constant 267 : index
    %1108 = memref.load %arg1[%c267] : memref<288xf32, #tpu.memory_space<smem>>
    %1109 = vector.broadcast %1108 : f32 to vector<2x256xf32>
    %1110 = arith.mulf %1109, %1063 : vector<2x256xf32>
    %1111 = arith.addf %1095, %1110 : vector<2x256xf32>
    %c16_i32_89 = arith.constant 16 : i32
    %1112 = tpu.dynamic_rotate %1007 by %c16_i32_89 dim 1 : vector<2x256xf32>, i32 -> vector<2x256xf32>
    %c240_i32_90 = arith.constant 240 : i32
    %1113 = tpu.dynamic_rotate %1007 by %c240_i32_90 dim 1 : vector<2x256xf32>, i32 -> vector<2x256xf32>
    %1114 = arith.select %10, %1113, %1112 : vector<2x256xi1>, vector<2x256xf32>
    %1115 = arith.select %12, %1112, %1113 : vector<2x256xi1>, vector<2x256xf32>
    %c184 = arith.constant 184 : index
    %1116 = memref.load %arg1[%c184] : memref<288xf32, #tpu.memory_space<smem>>
    %1117 = vector.broadcast %1116 : f32 to vector<2x256xf32>
    %1118 = arith.mulf %1117, %1114 : vector<2x256xf32>
    %1119 = arith.addf %1099, %1118 : vector<2x256xf32>
    %c185 = arith.constant 185 : index
    %1120 = memref.load %arg1[%c185] : memref<288xf32, #tpu.memory_space<smem>>
    %1121 = vector.broadcast %1120 : f32 to vector<2x256xf32>
    %1122 = arith.mulf %1121, %1114 : vector<2x256xf32>
    %1123 = arith.addf %1103, %1122 : vector<2x256xf32>
    %c186 = arith.constant 186 : index
    %1124 = memref.load %arg1[%c186] : memref<288xf32, #tpu.memory_space<smem>>
    %1125 = vector.broadcast %1124 : f32 to vector<2x256xf32>
    %1126 = arith.mulf %1125, %1114 : vector<2x256xf32>
    %1127 = arith.addf %1107, %1126 : vector<2x256xf32>
    %c187 = arith.constant 187 : index
    %1128 = memref.load %arg1[%c187] : memref<288xf32, #tpu.memory_space<smem>>
    %1129 = vector.broadcast %1128 : f32 to vector<2x256xf32>
    %1130 = arith.mulf %1129, %1114 : vector<2x256xf32>
    %1131 = arith.addf %1111, %1130 : vector<2x256xf32>
    %c232 = arith.constant 232 : index
    %1132 = memref.load %arg1[%c232] : memref<288xf32, #tpu.memory_space<smem>>
    %1133 = vector.broadcast %1132 : f32 to vector<2x256xf32>
    %1134 = arith.mulf %1133, %1007 : vector<2x256xf32>
    %1135 = arith.addf %1119, %1134 : vector<2x256xf32>
    %c233 = arith.constant 233 : index
    %1136 = memref.load %arg1[%c233] : memref<288xf32, #tpu.memory_space<smem>>
    %1137 = vector.broadcast %1136 : f32 to vector<2x256xf32>
    %1138 = arith.mulf %1137, %1007 : vector<2x256xf32>
    %1139 = arith.addf %1123, %1138 : vector<2x256xf32>
    %c234 = arith.constant 234 : index
    %1140 = memref.load %arg1[%c234] : memref<288xf32, #tpu.memory_space<smem>>
    %1141 = vector.broadcast %1140 : f32 to vector<2x256xf32>
    %1142 = arith.mulf %1141, %1007 : vector<2x256xf32>
    %1143 = arith.addf %1127, %1142 : vector<2x256xf32>
    %c235 = arith.constant 235 : index
    %1144 = memref.load %arg1[%c235] : memref<288xf32, #tpu.memory_space<smem>>
    %1145 = vector.broadcast %1144 : f32 to vector<2x256xf32>
    %1146 = arith.mulf %1145, %1007 : vector<2x256xf32>
    %1147 = arith.addf %1131, %1146 : vector<2x256xf32>
    %c280 = arith.constant 280 : index
    %1148 = memref.load %arg1[%c280] : memref<288xf32, #tpu.memory_space<smem>>
    %1149 = vector.broadcast %1148 : f32 to vector<2x256xf32>
    %1150 = arith.mulf %1149, %1115 : vector<2x256xf32>
    %1151 = arith.addf %1135, %1150 : vector<2x256xf32>
    %c281 = arith.constant 281 : index
    %1152 = memref.load %arg1[%c281] : memref<288xf32, #tpu.memory_space<smem>>
    %1153 = vector.broadcast %1152 : f32 to vector<2x256xf32>
    %1154 = arith.mulf %1153, %1115 : vector<2x256xf32>
    %1155 = arith.addf %1139, %1154 : vector<2x256xf32>
    %c282 = arith.constant 282 : index
    %1156 = memref.load %arg1[%c282] : memref<288xf32, #tpu.memory_space<smem>>
    %1157 = vector.broadcast %1156 : f32 to vector<2x256xf32>
    %1158 = arith.mulf %1157, %1115 : vector<2x256xf32>
    %1159 = arith.addf %1143, %1158 : vector<2x256xf32>
    %c283 = arith.constant 283 : index
    %1160 = memref.load %arg1[%c283] : memref<288xf32, #tpu.memory_space<smem>>
    %1161 = vector.broadcast %1160 : f32 to vector<2x256xf32>
    %1162 = arith.mulf %1161, %1115 : vector<2x256xf32>
    %1163 = arith.addf %1147, %1162 : vector<2x256xf32>
    %c6_91 = arith.constant 6 : index
    %c0_92 = arith.constant 0 : index
    %1164 = vector.load %arg4[%c6_91, %c0_92] : memref<8x256xf32, #tpu.memory_space<vmem>>, vector<2x256xf32>
    %c1_i32_93 = arith.constant 1 : i32
    %1165 = tpu.dynamic_rotate %1164 by %c1_i32_93 dim 1 : vector<2x256xf32>, i32 -> vector<2x256xf32>
    %c255_i32_94 = arith.constant 255 : i32
    %1166 = tpu.dynamic_rotate %1164 by %c255_i32_94 dim 1 : vector<2x256xf32>, i32 -> vector<2x256xf32>
    %1167 = arith.select %6, %1166, %1165 : vector<2x256xi1>, vector<2x256xf32>
    %1168 = arith.select %8, %1165, %1166 : vector<2x256xi1>, vector<2x256xf32>
    %c16_i32_95 = arith.constant 16 : i32
    %1169 = tpu.dynamic_rotate %1167 by %c16_i32_95 dim 1 : vector<2x256xf32>, i32 -> vector<2x256xf32>
    %c240_i32_96 = arith.constant 240 : i32
    %1170 = tpu.dynamic_rotate %1167 by %c240_i32_96 dim 1 : vector<2x256xf32>, i32 -> vector<2x256xf32>
    %1171 = arith.select %10, %1170, %1169 : vector<2x256xi1>, vector<2x256xf32>
    %1172 = arith.select %12, %1169, %1170 : vector<2x256xi1>, vector<2x256xf32>
    %c156 = arith.constant 156 : index
    %1173 = memref.load %arg1[%c156] : memref<288xf32, #tpu.memory_space<smem>>
    %1174 = vector.broadcast %1173 : f32 to vector<2x256xf32>
    %1175 = arith.mulf %1174, %1171 : vector<2x256xf32>
    %1176 = arith.addf %1151, %1175 : vector<2x256xf32>
    %c157 = arith.constant 157 : index
    %1177 = memref.load %arg1[%c157] : memref<288xf32, #tpu.memory_space<smem>>
    %1178 = vector.broadcast %1177 : f32 to vector<2x256xf32>
    %1179 = arith.mulf %1178, %1171 : vector<2x256xf32>
    %1180 = arith.addf %1155, %1179 : vector<2x256xf32>
    %c158 = arith.constant 158 : index
    %1181 = memref.load %arg1[%c158] : memref<288xf32, #tpu.memory_space<smem>>
    %1182 = vector.broadcast %1181 : f32 to vector<2x256xf32>
    %1183 = arith.mulf %1182, %1171 : vector<2x256xf32>
    %1184 = arith.addf %1159, %1183 : vector<2x256xf32>
    %c159 = arith.constant 159 : index
    %1185 = memref.load %arg1[%c159] : memref<288xf32, #tpu.memory_space<smem>>
    %1186 = vector.broadcast %1185 : f32 to vector<2x256xf32>
    %1187 = arith.mulf %1186, %1171 : vector<2x256xf32>
    %1188 = arith.addf %1163, %1187 : vector<2x256xf32>
    %c204 = arith.constant 204 : index
    %1189 = memref.load %arg1[%c204] : memref<288xf32, #tpu.memory_space<smem>>
    %1190 = vector.broadcast %1189 : f32 to vector<2x256xf32>
    %1191 = arith.mulf %1190, %1167 : vector<2x256xf32>
    %1192 = arith.addf %1176, %1191 : vector<2x256xf32>
    %c205 = arith.constant 205 : index
    %1193 = memref.load %arg1[%c205] : memref<288xf32, #tpu.memory_space<smem>>
    %1194 = vector.broadcast %1193 : f32 to vector<2x256xf32>
    %1195 = arith.mulf %1194, %1167 : vector<2x256xf32>
    %1196 = arith.addf %1180, %1195 : vector<2x256xf32>
    %c206 = arith.constant 206 : index
    %1197 = memref.load %arg1[%c206] : memref<288xf32, #tpu.memory_space<smem>>
    %1198 = vector.broadcast %1197 : f32 to vector<2x256xf32>
    %1199 = arith.mulf %1198, %1167 : vector<2x256xf32>
    %1200 = arith.addf %1184, %1199 : vector<2x256xf32>
    %c207 = arith.constant 207 : index
    %1201 = memref.load %arg1[%c207] : memref<288xf32, #tpu.memory_space<smem>>
    %1202 = vector.broadcast %1201 : f32 to vector<2x256xf32>
    %1203 = arith.mulf %1202, %1167 : vector<2x256xf32>
    %1204 = arith.addf %1188, %1203 : vector<2x256xf32>
    %c252 = arith.constant 252 : index
    %1205 = memref.load %arg1[%c252] : memref<288xf32, #tpu.memory_space<smem>>
    %1206 = vector.broadcast %1205 : f32 to vector<2x256xf32>
    %1207 = arith.mulf %1206, %1172 : vector<2x256xf32>
    %1208 = arith.addf %1192, %1207 : vector<2x256xf32>
    %c253 = arith.constant 253 : index
    %1209 = memref.load %arg1[%c253] : memref<288xf32, #tpu.memory_space<smem>>
    %1210 = vector.broadcast %1209 : f32 to vector<2x256xf32>
    %1211 = arith.mulf %1210, %1172 : vector<2x256xf32>
    %1212 = arith.addf %1196, %1211 : vector<2x256xf32>
    %c254 = arith.constant 254 : index
    %1213 = memref.load %arg1[%c254] : memref<288xf32, #tpu.memory_space<smem>>
    %1214 = vector.broadcast %1213 : f32 to vector<2x256xf32>
    %1215 = arith.mulf %1214, %1172 : vector<2x256xf32>
    %1216 = arith.addf %1200, %1215 : vector<2x256xf32>
    %c255 = arith.constant 255 : index
    %1217 = memref.load %arg1[%c255] : memref<288xf32, #tpu.memory_space<smem>>
    %1218 = vector.broadcast %1217 : f32 to vector<2x256xf32>
    %1219 = arith.mulf %1218, %1172 : vector<2x256xf32>
    %1220 = arith.addf %1204, %1219 : vector<2x256xf32>
    %c16_i32_97 = arith.constant 16 : i32
    %1221 = tpu.dynamic_rotate %1164 by %c16_i32_97 dim 1 : vector<2x256xf32>, i32 -> vector<2x256xf32>
    %c240_i32_98 = arith.constant 240 : i32
    %1222 = tpu.dynamic_rotate %1164 by %c240_i32_98 dim 1 : vector<2x256xf32>, i32 -> vector<2x256xf32>
    %1223 = arith.select %10, %1222, %1221 : vector<2x256xi1>, vector<2x256xf32>
    %1224 = arith.select %12, %1221, %1222 : vector<2x256xi1>, vector<2x256xf32>
    %c172 = arith.constant 172 : index
    %1225 = memref.load %arg1[%c172] : memref<288xf32, #tpu.memory_space<smem>>
    %1226 = vector.broadcast %1225 : f32 to vector<2x256xf32>
    %1227 = arith.mulf %1226, %1223 : vector<2x256xf32>
    %1228 = arith.addf %1208, %1227 : vector<2x256xf32>
    %c173 = arith.constant 173 : index
    %1229 = memref.load %arg1[%c173] : memref<288xf32, #tpu.memory_space<smem>>
    %1230 = vector.broadcast %1229 : f32 to vector<2x256xf32>
    %1231 = arith.mulf %1230, %1223 : vector<2x256xf32>
    %1232 = arith.addf %1212, %1231 : vector<2x256xf32>
    %c174 = arith.constant 174 : index
    %1233 = memref.load %arg1[%c174] : memref<288xf32, #tpu.memory_space<smem>>
    %1234 = vector.broadcast %1233 : f32 to vector<2x256xf32>
    %1235 = arith.mulf %1234, %1223 : vector<2x256xf32>
    %1236 = arith.addf %1216, %1235 : vector<2x256xf32>
    %c175 = arith.constant 175 : index
    %1237 = memref.load %arg1[%c175] : memref<288xf32, #tpu.memory_space<smem>>
    %1238 = vector.broadcast %1237 : f32 to vector<2x256xf32>
    %1239 = arith.mulf %1238, %1223 : vector<2x256xf32>
    %1240 = arith.addf %1220, %1239 : vector<2x256xf32>
    %c220 = arith.constant 220 : index
    %1241 = memref.load %arg1[%c220] : memref<288xf32, #tpu.memory_space<smem>>
    %1242 = vector.broadcast %1241 : f32 to vector<2x256xf32>
    %1243 = arith.mulf %1242, %1164 : vector<2x256xf32>
    %1244 = arith.addf %1228, %1243 : vector<2x256xf32>
    %c221 = arith.constant 221 : index
    %1245 = memref.load %arg1[%c221] : memref<288xf32, #tpu.memory_space<smem>>
    %1246 = vector.broadcast %1245 : f32 to vector<2x256xf32>
    %1247 = arith.mulf %1246, %1164 : vector<2x256xf32>
    %1248 = arith.addf %1232, %1247 : vector<2x256xf32>
    %c222 = arith.constant 222 : index
    %1249 = memref.load %arg1[%c222] : memref<288xf32, #tpu.memory_space<smem>>
    %1250 = vector.broadcast %1249 : f32 to vector<2x256xf32>
    %1251 = arith.mulf %1250, %1164 : vector<2x256xf32>
    %1252 = arith.addf %1236, %1251 : vector<2x256xf32>
    %c223 = arith.constant 223 : index
    %1253 = memref.load %arg1[%c223] : memref<288xf32, #tpu.memory_space<smem>>
    %1254 = vector.broadcast %1253 : f32 to vector<2x256xf32>
    %1255 = arith.mulf %1254, %1164 : vector<2x256xf32>
    %1256 = arith.addf %1240, %1255 : vector<2x256xf32>
    %c268 = arith.constant 268 : index
    %1257 = memref.load %arg1[%c268] : memref<288xf32, #tpu.memory_space<smem>>
    %1258 = vector.broadcast %1257 : f32 to vector<2x256xf32>
    %1259 = arith.mulf %1258, %1224 : vector<2x256xf32>
    %1260 = arith.addf %1244, %1259 : vector<2x256xf32>
    %c269 = arith.constant 269 : index
    %1261 = memref.load %arg1[%c269] : memref<288xf32, #tpu.memory_space<smem>>
    %1262 = vector.broadcast %1261 : f32 to vector<2x256xf32>
    %1263 = arith.mulf %1262, %1224 : vector<2x256xf32>
    %1264 = arith.addf %1248, %1263 : vector<2x256xf32>
    %c270 = arith.constant 270 : index
    %1265 = memref.load %arg1[%c270] : memref<288xf32, #tpu.memory_space<smem>>
    %1266 = vector.broadcast %1265 : f32 to vector<2x256xf32>
    %1267 = arith.mulf %1266, %1224 : vector<2x256xf32>
    %1268 = arith.addf %1252, %1267 : vector<2x256xf32>
    %c271 = arith.constant 271 : index
    %1269 = memref.load %arg1[%c271] : memref<288xf32, #tpu.memory_space<smem>>
    %1270 = vector.broadcast %1269 : f32 to vector<2x256xf32>
    %1271 = arith.mulf %1270, %1224 : vector<2x256xf32>
    %1272 = arith.addf %1256, %1271 : vector<2x256xf32>
    %c16_i32_99 = arith.constant 16 : i32
    %1273 = tpu.dynamic_rotate %1168 by %c16_i32_99 dim 1 : vector<2x256xf32>, i32 -> vector<2x256xf32>
    %c240_i32_100 = arith.constant 240 : i32
    %1274 = tpu.dynamic_rotate %1168 by %c240_i32_100 dim 1 : vector<2x256xf32>, i32 -> vector<2x256xf32>
    %1275 = arith.select %10, %1274, %1273 : vector<2x256xi1>, vector<2x256xf32>
    %1276 = arith.select %12, %1273, %1274 : vector<2x256xi1>, vector<2x256xf32>
    %c188 = arith.constant 188 : index
    %1277 = memref.load %arg1[%c188] : memref<288xf32, #tpu.memory_space<smem>>
    %1278 = vector.broadcast %1277 : f32 to vector<2x256xf32>
    %1279 = arith.mulf %1278, %1275 : vector<2x256xf32>
    %1280 = arith.addf %1260, %1279 : vector<2x256xf32>
    %c189 = arith.constant 189 : index
    %1281 = memref.load %arg1[%c189] : memref<288xf32, #tpu.memory_space<smem>>
    %1282 = vector.broadcast %1281 : f32 to vector<2x256xf32>
    %1283 = arith.mulf %1282, %1275 : vector<2x256xf32>
    %1284 = arith.addf %1264, %1283 : vector<2x256xf32>
    %c190 = arith.constant 190 : index
    %1285 = memref.load %arg1[%c190] : memref<288xf32, #tpu.memory_space<smem>>
    %1286 = vector.broadcast %1285 : f32 to vector<2x256xf32>
    %1287 = arith.mulf %1286, %1275 : vector<2x256xf32>
    %1288 = arith.addf %1268, %1287 : vector<2x256xf32>
    %c191 = arith.constant 191 : index
    %1289 = memref.load %arg1[%c191] : memref<288xf32, #tpu.memory_space<smem>>
    %1290 = vector.broadcast %1289 : f32 to vector<2x256xf32>
    %1291 = arith.mulf %1290, %1275 : vector<2x256xf32>
    %1292 = arith.addf %1272, %1291 : vector<2x256xf32>
    %c236 = arith.constant 236 : index
    %1293 = memref.load %arg1[%c236] : memref<288xf32, #tpu.memory_space<smem>>
    %1294 = vector.broadcast %1293 : f32 to vector<2x256xf32>
    %1295 = arith.mulf %1294, %1168 : vector<2x256xf32>
    %1296 = arith.addf %1280, %1295 : vector<2x256xf32>
    %c237 = arith.constant 237 : index
    %1297 = memref.load %arg1[%c237] : memref<288xf32, #tpu.memory_space<smem>>
    %1298 = vector.broadcast %1297 : f32 to vector<2x256xf32>
    %1299 = arith.mulf %1298, %1168 : vector<2x256xf32>
    %1300 = arith.addf %1284, %1299 : vector<2x256xf32>
    %c238 = arith.constant 238 : index
    %1301 = memref.load %arg1[%c238] : memref<288xf32, #tpu.memory_space<smem>>
    %1302 = vector.broadcast %1301 : f32 to vector<2x256xf32>
    %1303 = arith.mulf %1302, %1168 : vector<2x256xf32>
    %1304 = arith.addf %1288, %1303 : vector<2x256xf32>
    %c239 = arith.constant 239 : index
    %1305 = memref.load %arg1[%c239] : memref<288xf32, #tpu.memory_space<smem>>
    %1306 = vector.broadcast %1305 : f32 to vector<2x256xf32>
    %1307 = arith.mulf %1306, %1168 : vector<2x256xf32>
    %1308 = arith.addf %1292, %1307 : vector<2x256xf32>
    %c284 = arith.constant 284 : index
    %1309 = memref.load %arg1[%c284] : memref<288xf32, #tpu.memory_space<smem>>
    %1310 = vector.broadcast %1309 : f32 to vector<2x256xf32>
    %1311 = arith.mulf %1310, %1276 : vector<2x256xf32>
    %1312 = arith.addf %1296, %1311 : vector<2x256xf32>
    %c285 = arith.constant 285 : index
    %1313 = memref.load %arg1[%c285] : memref<288xf32, #tpu.memory_space<smem>>
    %1314 = vector.broadcast %1313 : f32 to vector<2x256xf32>
    %1315 = arith.mulf %1314, %1276 : vector<2x256xf32>
    %1316 = arith.addf %1300, %1315 : vector<2x256xf32>
    %c286 = arith.constant 286 : index
    %1317 = memref.load %arg1[%c286] : memref<288xf32, #tpu.memory_space<smem>>
    %1318 = vector.broadcast %1317 : f32 to vector<2x256xf32>
    %1319 = arith.mulf %1318, %1276 : vector<2x256xf32>
    %1320 = arith.addf %1304, %1319 : vector<2x256xf32>
    %c287 = arith.constant 287 : index
    %1321 = memref.load %arg1[%c287] : memref<288xf32, #tpu.memory_space<smem>>
    %1322 = vector.broadcast %1321 : f32 to vector<2x256xf32>
    %1323 = arith.mulf %1322, %1276 : vector<2x256xf32>
    %1324 = arith.addf %1308, %1323 : vector<2x256xf32>
    %c0_101 = arith.constant 0 : index
    %c0_102 = arith.constant 0 : index
    %1325 = vector.load %arg4[%c0_101, %c0_102] : memref<8x256xf32, #tpu.memory_space<vmem>>, vector<2x256xf32>
    tpu.vector_store %arg4[%c0_101, %c0_102], %1312 {strides = array<i32>} : memref<8x256xf32, #tpu.memory_space<vmem>>, vector<2x256xf32>,
    %c2_103 = arith.constant 2 : index
    %c0_104 = arith.constant 0 : index
    %1326 = vector.load %arg4[%c2_103, %c0_104] : memref<8x256xf32, #tpu.memory_space<vmem>>, vector<2x256xf32>
    tpu.vector_store %arg4[%c2_103, %c0_104], %1316 {strides = array<i32>} : memref<8x256xf32, #tpu.memory_space<vmem>>, vector<2x256xf32>,
    %c4_105 = arith.constant 4 : index
    %c0_106 = arith.constant 0 : index
    %1327 = vector.load %arg4[%c4_105, %c0_106] : memref<8x256xf32, #tpu.memory_space<vmem>>, vector<2x256xf32>
    tpu.vector_store %arg4[%c4_105, %c0_106], %1320 {strides = array<i32>} : memref<8x256xf32, #tpu.memory_space<vmem>>, vector<2x256xf32>,
    %c6_107 = arith.constant 6 : index
    %c0_108 = arith.constant 0 : index
    %1328 = vector.load %arg4[%c6_107, %c0_108] : memref<8x256xf32, #tpu.memory_space<vmem>>, vector<2x256xf32>
    tpu.vector_store %arg4[%c6_107, %c0_108], %1324 {strides = array<i32>} : memref<8x256xf32, #tpu.memory_space<vmem>>, vector<2x256xf32>,
    %c0_109 = arith.constant 0 : index
    %c0_110 = arith.constant 0 : index
    %1329 = vector.load %arg4[%c0_109, %c0_110] : memref<8x256xf32, #tpu.memory_space<vmem>>, vector<8x256xf32>
    %cst_111 = arith.constant dense<0.000000e+00> : vector<8xf32>
    %1330 = vector.multi_reduction <add>, %1329, %cst_111 [1] : vector<8x256xf32> to vector<8xf32>
    %1331 = vector.shape_cast %1330 : vector<8xf32> to vector<8x1xf32>
    %1332 = arith.mulf %1329, %1329 : vector<8x256xf32>
    %cst_112 = arith.constant dense<0.000000e+00> : vector<8xf32>
    %1333 = vector.multi_reduction <add>, %1332, %cst_112 [1] : vector<8x256xf32> to vector<8xf32>
    %1334 = vector.shape_cast %1333 : vector<8xf32> to vector<8x1xf32>
    %cst_113 = arith.constant 3.906250e-03 : f32
    %1335 = vector.broadcast %cst_113 : f32 to vector<8x1xf32>
    %1336 = arith.mulf %1331, %1335 : vector<8x1xf32>
    %cst_114 = arith.constant 3.906250e-03 : f32
    %1337 = vector.broadcast %cst_114 : f32 to vector<8x1xf32>
    %1338 = arith.mulf %1334, %1337 : vector<8x1xf32>
    %1339 = arith.mulf %1336, %1336 : vector<8x1xf32>
    %1340 = arith.subf %1338, %1339 : vector<8x1xf32>
    %cst_115 = arith.constant 0.000000e+00 : f32
    %1341 = vector.broadcast %cst_115 : f32 to vector<8x1xf32>
    %1342 = arith.maximumf %1340, %1341 : vector<8x1xf32>
    %1343 = vector.broadcast %1336 : vector<8x1xf32> to vector<8x256xf32>
    %1344 = arith.subf %1329, %1343 : vector<8x256xf32>
    %cst_116 = arith.constant 9.99999974E-6 : f32
    %1345 = vector.broadcast %cst_116 : f32 to vector<8x1xf32>
    %1346 = arith.addf %1342, %1345 : vector<8x1xf32>
    %1347 = math.rsqrt %1346 : vector<8x1xf32>
    %1348 = vector.broadcast %1347 : vector<8x1xf32> to vector<8x256xf32>
    %1349 = arith.mulf %1344, %1348 : vector<8x256xf32>
    %c0_117 = arith.constant 0 : index
    %c0_118 = arith.constant 0 : index
    %c0_119 = arith.constant 0 : index
    %1350 = vector.load %arg2[%c0_117, %c0_118, %c0_119] : memref<1x8x256xf32, #tpu.memory_space<vmem>>, vector<1x8x256xf32>
    %1351 = vector.shape_cast %1350 : vector<1x8x256xf32> to vector<8x256xf32>
    %1352 = arith.addf %1351, %1349 : vector<8x256xf32>
    %c0_120 = arith.constant 0 : index
    %c0_121 = arith.constant 0 : index
    %c0_122 = arith.constant 0 : index
    %1353 = vector.load %arg3[%c0_120, %c0_121, %c0_122] : memref<1x8x256xf32, #tpu.memory_space<vmem>>, vector<1x8x256xf32>
    %1354 = vector.shape_cast %1353 : vector<1x8x256xf32> to vector<8x256xf32>
    %1355 = vector.shape_cast %1352 : vector<8x256xf32> to vector<1x8x256xf32>
    tpu.vector_store %arg3[%c0_120, %c0_121, %c0_122], %1355 {strides = array<i32>} : memref<1x8x256xf32, #tpu.memory_space<vmem>>, vector<1x8x256xf32>,
    return
  }
  func.func @transform_0(%arg0: i32) -> i32 {
    %c0_i32 = arith.constant 0 : i32
    %c0_i32_0 = arith.constant 0 : i32
    return %c0_i32 : i32
  }
  func.func @transform_1(%arg0: i32) -> (i32, i32, i32) {
    %c0_i32 = arith.constant 0 : i32
    %c0_i32_0 = arith.constant 0 : i32
    %c0_i32_1 = arith.constant 0 : i32
    return %arg0, %c0_i32, %c0_i32_0 : i32, i32, i32
  }
  func.func @transform_2(%arg0: i32) -> (i32, i32, i32) {
    %c0_i32 = arith.constant 0 : i32
    %c0_i32_0 = arith.constant 0 : i32
    %c0_i32_1 = arith.constant 0 : i32
    return %arg0, %c0_i32, %c0_i32_0 : i32, i32, i32
  }
}

</mosaic_0001>

<bundles_post_ra>
// kernel: tpu_custom_call.1
= control target key start
LH: loop header
LB: loop body
LE: loop exit
PB: predicated region body
PF: predicated region fallthrough
CT: control target
= control target key end

     0   :  { %s7146_s0 = inlined_call_operand.hbm [shape: f32[288], index: 0, kind: input, shape index: {}]   ;;  %s7147_s1 = inlined_call_operand.hbm [shape: f32[1,8,256], index: 1, kind: input, shape index: {}]   ;;  %s7148_s2 = inlined_call_operand.hbm [shape: f32[1,8,256], index: 2, kind: output, shape index: {}]  }
   0x1   :  { %7593 = sst [smem:[#allocation184_spill]] %s7148_s2 }
   0x2   :  { %7 = vsyncpa [#allocation6], 0 }
   0x3   :  { %8 = vsyncpa [#allocation4], 0 }
   0x4   :  { %9 = vsyncpa [#allocation5], 0  ;;  %s2896_s11 = scalar_lea.hbm %s7146_s0, 48  ;;  %s2898_s16 = scalar_lea.hbm %s7146_s0, 64 }
   0x5   :  { %p2897_p0 = scmp.ne.s32.totalorder %s7146_s0, %s2896_s11  ;;  %p2899_p1 = scmp.lt.u32.totalorder %s2898_s16, %s2896_s11 }
   0x6   :  { %p2900_p2 = scmp.lt.u32.totalorder %s2896_s11, %s7146_s0 }
   0x8   :  { %p2901_p3 = por %p2900_p2, %p2899_p1 }
   0xa   :  { %p2902_p4 = pnand %p2901_p3, %p2897_p0 }
   0xc   :  { %2905 = shalt.err (!%p2902_p4)
}
   0xd   :  { %s2956_s19 = smov [#allocation3]   ;;  %s2957_s22 = smov [#allocation7]  }
   0xe   :  { %17 = dma.hbm_to_smem %s7146_s0, 48, %s2956_s19, [#allocation6]  }
   0xf   :  { %s24_s23 = sshll.u32 %s2957_s22, 4  ;;  %s2906_s26 = scalar_lea.hbm %s7147_s1, 256  ;;  %s25_s23 = int_to_ptr.vmem [resolvable:$true] %s24_s23 }
  0x10   :  { %p2907_p5 = scmp.ne.s32.totalorder %s7147_s1, %s2906_s26  ;;  %p2910_p6 = scmp.lt.u32.totalorder %s2906_s26, %s7147_s1 }
  0x12   :  { %p2912_p7 = pnand %p2910_p6, %p2907_p5 }
  0x14   :  { %2915 = shalt.err (!%p2912_p7)
}
  0x15   :  { %s2916_s3 = scalar_lea.vmem %s25_s23, 256  ;;  %p2921_p9 = scmp.lt.s32.totalorder %s25_s23, %s25_s23 }
  0x16   :  { %p2917_p8 = scmp.ne.s32.totalorder %s25_s23, %s2916_s3  ;;  %p2922_p10 = scmp.lt.s32.totalorder %s2916_s3, %s2916_s3 }
  0x18   :  { %p2923_p11 = por %p2922_p10, %p2921_p9 }
  0x1a   :  { %p2924_p12 = pnand %p2923_p11, %p2917_p8 }
  0x1c   :  { %2927 = shalt.err (!%p2924_p12)
}
  0x1d   :  { %27 = dma.hbm_to_vmem [thread:$0]  %s7147_s1, 256, %s25_s23, [#allocation4]  }
  0x1e   :  { %2950 = dma.done.wait [#allocation6], 48  }
  0x1f   :  { %2951 = vsyncadd [#allocation6], 4294967248 }
  0x20   :  { %2952 = dma.done.wait [#allocation4], 256  }
  0x21   :  { %2953 = vsyncadd [#allocation4], 4294967040 }
  0x22   :  { %34 = sfence }
  0x23   :  { %v3005_v0 = vld [vmem:[#allocation7] sm:$0x3]  ;;  %s7149_s5 = smov 127   ;;  %s7151_s6 = smov 1   ;;  %v3011_v1 = vld [vmem:[#allocation7 + $0x8] sm:$0x3]  ;;  %v35_v14 = vlaneseq }
  0x24   :  { %59 = vrot.lane.b32.xlu1 %v3005_v0, %s7149_s5  ;;  %52 = vrot.lane.b32.xlu0 %v3005_v0, %s7151_s6  ;;  %v3013_v2 = vld [vmem:[#allocation7 + $0x8] sm:$0xc]  ;;  %v3015_v3 = vld [vmem:[#allocation7] sm:$0xc]  ;;  %v641_v6 = vld [vmem:[#allocation7 + $0x8] sm:$0x30] }
  0x25   :  { %v333_v4 = vrot.slane %v3013_v2, 2  ;;  %v332_v5 = vrot.slane %v3015_v3, 2  ;;  %v640_v7 = vld [vmem:[#allocation7] sm:$0x30]  ;;  %v645_v8 = vrot.slane %v641_v6, 4  ;;  %s7159_s1 = smov 16  }
  0x26   :  { %v644_v9 = vrot.slane %v640_v7, 4  ;;  %v953_v10 = vld [vmem:[#allocation7 + $0x8] sm:$0xc0]  ;;  %v952_v11 = vld [vmem:[#allocation7] sm:$0xc0]  ;;  %s7153_s7 = smov 112  }
  0x27   :  { %v3031_v12 = vrot.slane %v953_v10, 6  ;;  %v3033_v13 = vrot.slane %v952_v11, 6  ;;  %v3059_v15 = vand.u32 127, %v35_v14  ;;  %v7594_v21 = vmov 0  ;;  %s3120_s8 = sld [smem:[#allocation3 + $0x30]]  ;;  %s3124_s9 = sld [smem:[#allocation3 + $0x31]] }
  0x28   :  { %61 = vrot.lane.b32.xlu1 %v3011_v1, %s7149_s5  ;;  %54 = vrot.lane.b32.xlu0 %v3011_v1, %s7151_s6  ;;  %v7597_v22 = vmov 0  ;;  %v7600_v33 = vmov 0  ;;  %v7603_v34 = vmov 0  ;;  %s3126_s10 = sld [smem:[#allocation3 + $0x32]]  ;;  %s3138_s11 = sld [smem:[#allocation3 + $0x33]] }
  0x29   :  { %v3062_v16 = vadd.s32 128, %v3059_v15  ;;  %v38_v17 = vand.u32 15, %v3059_v15  ;;  %vm63_vm0 = vcmp.lt.s32.totalorder %v3059_v15, 127  ;;  %vm56_vm1 = vcmp.lt.s32.totalorder %v3059_v15, 1  ;;  %s3140_s12 = sld [smem:[#allocation3 + $0x50]]  ;;  %s3142_s13 = sld [smem:[#allocation3 + $0x51]] }
  0x2a   :  { %s3144_s14 = sld [smem:[#allocation3 + $0x52]]  ;;  %s3146_s15 = sld [smem:[#allocation3 + $0x53]]  ;;  %vm74_vm6 = vcmp.lt.s32.totalorder %v3059_v15, 16  ;;  %vm81_vm7 = vcmp.lt.s32.totalorder %v3059_v15, 112 }
  0x2b   :  { %v39_v18 = vand.u32 15, %v3062_v16  ;;  %vm3068_vm2 = vcmp.eq.s32.totalorder %v38_v17, 0  ;;  %vm3096_vm4 = vcmp.eq.s32.totalorder %v38_v17, 15  ;;  %s3148_s16 = sld [smem:[#allocation3 + $0x34]]  ;;  %s3158_s17 = sld [smem:[#allocation3 + $0x35]] }
  0x2c   :  { %338 = vrot.lane.b32.xlu1 %v333_v4, %s7151_s6  ;;  %336 = vrot.lane.b32.xlu0 %v332_v5, %s7151_s6  ;;  %v7595_v21 = vsel %vm3068_vm2, 4294967295, %v7594_v21  ;;  %v7601_v33 = vsel %vm3096_vm4, 4294967295, %v7600_v33  ;;  %s3160_s18 = sld [smem:[#allocation3 + $0x36]]  ;;  %s3166_s19 = sld [smem:[#allocation3 + $0x37]] }
  0x2d   :  { %7596 = vst [vmem:[#allocation12_spill] sm:$0xff] %v7595_v21  ;;  %vm3072_vm3 = vcmp.eq.s32.totalorder %v39_v18, 0  ;;  %7602 = vst [vmem:[#allocation14_spill] sm:$0xff] %v7601_v33  ;;  %vm3100_vm5 = vcmp.eq.s32.totalorder %v39_v18, 15  ;;  %7606 = sst [smem:[#allocation16_spill]] %s3120_s8  ;;  %s3168_s20 = sld [smem:[#allocation3 + $0x54]]  ;;  %v105_v55 = vstv %s3120_s8  ;;  %v111_v56 = vstv %s3124_s9 }
  0x2e   :  { %v7598_v22 = vsel %vm3072_vm3, 4294967295, %v7597_v22  ;;  %v7604_v34 = vsel %vm3100_vm5, 4294967295, %v7603_v34  ;;  %7607 = sst [smem:[#allocation17_spill]] %s3124_s9  ;;  %s3170_s21 = sld [smem:[#allocation3 + $0x55]]  ;;  %v117_v57 = vstv %s3126_s10  ;;  %v123_v58 = vstv %s3138_s11 }
  0x2f   :  { %7599 = vst [vmem:[#allocation13_spill] sm:$0xff] %v7598_v22  ;;  %7605 = vst [vmem:[#allocation15_spill] sm:$0xff] %v7604_v34  ;;  %7608 = sst [smem:[#allocation18_spill]] %s3126_s10  ;;  %s3172_s22 = sld [smem:[#allocation3 + $0x56]]  ;;  %v281_v61 = vstv %s3140_s12  ;;  %v287_v62 = vstv %s3142_s13 }
  0x30   :  { %344 = vrot.lane.b32.xlu1 %v333_v4, %s7149_s5  ;;  %342 = vrot.lane.b32.xlu0 %v332_v5, %s7149_s5  ;;  %7609 = sst [smem:[#allocation19_spill]] %s3138_s11  ;;  %s3174_s23 = sld [smem:[#allocation3 + $0x57]]  ;;  %v293_v63 = vstv %s3144_s14 }
  0x31   :  { %7610 = sst [smem:[#allocation20_spill]] %s3140_s12  ;;  %s3176_s24 = sld [smem:[#allocation3 + $0x38]]  ;;  %v399_v6 = vstv %s3158_s17 }
  0x32   :  { %7611 = sst [smem:[#allocation21_spill]] %s3142_s13  ;;  %s3178_s25 = sld [smem:[#allocation3 + $0x39]] }
  0x33   :  { %7612 = sst [smem:[#allocation22_spill]] %s3144_s14  ;;  %s3180_s26 = sld [smem:[#allocation3 + $0x3a]] }
  0x34   :  { %650 = vrot.lane.b32.xlu1 %v645_v8, %s7151_s6  ;;  %648 = vrot.lane.b32.xlu0 %v644_v9, %s7151_s6  ;;  %7613 = sst [smem:[#allocation23_spill]] %s3146_s15  ;;  %s3186_s27 = sld [smem:[#allocation3 + $0x3b]] }
  0x35   :  { %7614 = sst [smem:[#allocation24_spill]] %s3148_s16  ;;  %s3190_s29 = sld [smem:[#allocation3 + $0x59]] }
  0x36   :  { %7615 = sst [smem:[#allocation25_spill]] %s3158_s17  ;;  %s3188_s28 = sld [smem:[#allocation3 + $0x58]] }
  0x37   :  { %7616 = sst [smem:[#allocation26_spill]] %s3160_s18  ;;  %s3194_s3 = sld [smem:[#allocation3 + $0x10]] }
  0x38   :  { %656 = vrot.lane.b32.xlu1 %v645_v8, %s7149_s5  ;;  %654 = vrot.lane.b32.xlu0 %v644_v9, %s7149_s5  ;;  %7617 = sst [smem:[#allocation27_spill]] %s3166_s19  ;;  %s3192_s30 = sld [smem:[#allocation3 + $0x5a]] }
  0x39   :  { %7618 = sst [smem:[#allocation28_spill]] %s3168_s20  ;;  %s3196_s0 = sld [smem:[#allocation3 + $0x5b]] }
  0x3a   :  { %7619 = sst [smem:[#allocation29_spill]] %s3170_s21  ;;  %s3206_s4 = sld [smem:[#allocation3 + $0x11]] }
  0x3b   :  { %7620 = sst [smem:[#allocation30_spill]] %s3172_s22  ;;  %s3218_s2 = sld [smem:[#allocation3 + $0x71]] }
  0x3c   :  { %962 = vrot.lane.b32.xlu1 %v3031_v12, %s7151_s6  ;;  %960 = vrot.lane.b32.xlu0 %v3033_v13, %s7151_s6  ;;  %7621 = sst [smem:[#allocation31_spill]] %s3174_s23  ;;  %s3214_s6 = sld [smem:[#allocation3 + $0x13]] }
  0x3d   :  { %7622 = sst [smem:[#allocation32_spill]] %s3176_s24  ;;  %s3278_s8 = sld [smem:[#allocation3 + $0x19]] }
  0x3e   :  { %7623 = sst [smem:[#allocation33_spill]] %s3178_s25  ;;  %s3280_s10 = sld [smem:[#allocation3 + $0x1a]] }
  0x3f   :  { %7624 = sst [smem:[#allocation34_spill]] %s3180_s26  ;;  %s7648_s11 = smov 16  }
  0x40   :  { %968 = vrot.lane.b32.xlu1 %v3031_v12, %s7149_s5  ;;  %966 = vrot.lane.b32.xlu0 %v3033_v13, %s7149_s5  ;;  %7625 = sst [smem:[#allocation35_spill]] %s3186_s27  ;;  %s3208_s5 = sld [smem:[#allocation3 + $0x12]] }
  0x41   :  { %7626 = sst [smem:[#allocation36_spill]] %s3188_s28  ;;  %s3288_s9 = sld [smem:[#allocation3 + $0x1b]] }
  0x42   :  { %7627 = sst [smem:[#allocation37_spill]] %s3190_s29  ;;  %s3294_s12 = sld [smem:[#allocation3 + $0x79]] }
  0x43   :  { %7628 = sst [smem:[#allocation38_spill]] %s3192_s30  ;;  %s3222_s30 = sld [smem:[#allocation3 + $0x73]] }
  0x44   :  { %154 = vrot.lane.b32.xlu1 %v3011_v1, %s7159_s1  ;;  %152 = vrot.lane.b32.xlu0 %v3005_v0, %s7159_s1  ;;  %7629 = sst [smem:[#allocation39_spill]] %s3194_s3  ;;  %s3296_s13 = sld [smem:[#allocation3 + $0x7a]] }
  0x45   :  { %7630 = sst [smem:[#allocation40_spill]] %s3196_s0  ;;  %s3220_s0 = sld [smem:[#allocation3 + $0x72]] }
  0x46   :  { %7631 = sst [smem:[#allocation41_spill]] %s3206_s4  ;;  %s3308_s14 = sld [smem:[#allocation3 + $0x3c]] }
  0x47   :  { %7632 = sst [smem:[#allocation42_spill]] %s3208_s5  ;;  %s3224_s5 = sld [smem:[#allocation3 + $0x14]] }
  0x48   :  { %160 = vrot.lane.b32.xlu1 %v3011_v1, %s7153_s7  ;;  %158 = vrot.lane.b32.xlu0 %v3005_v0, %s7153_s7  ;;  %7633 = sst [smem:[#allocation43_spill]] %s3214_s6  ;;  %s3260_s6 = sld [smem:[#allocation3 + $0x18]] }
  0x49   :  { %7635 = sst [smem:[#allocation45_spill]] %s3218_s2  ;;  %s3258_s2 = sld [smem:[#allocation3 + $0x77]] }
  0x4a   :  { %7637 = sst [smem:[#allocation47_spill]] %s3222_s30  ;;  %s3254_s30 = sld [smem:[#allocation3 + $0x75]] }
  0x4b   :  { %7636 = sst [smem:[#allocation46_spill]] %s3220_s0  ;;  %s3314_s19 = sld [smem:[#allocation3 + $0x3d]] }
  0x4c   :  { %442 = vrot.lane.b32.xlu1 %v333_v4, %s7159_s1  ;;  %440 = vrot.lane.b32.xlu0 %v332_v5, %s7159_s1  ;;  %s3256_s0 = sld [smem:[#allocation3 + $0x76]]  ;;  %7646 = sst [smem:[#allocation55_spill]] %s3278_s8 }
  0x4d   :  { %7638 = sst [smem:[#allocation48_spill]] %s3224_s5  ;;  %s7641_s5 = smov 112  }
  0x4e   :  { %7645 = sst [smem:[#allocation54_spill]] %s3260_s6  ;;  %s3290_s6 = sld [smem:[#allocation3 + $0x78]] }
  0x4f   :  { %7644 = sst [smem:[#allocation53_spill]] %s3258_s2  ;;  %s3324_s24 = sld [smem:[#allocation3 + $0x3f]] }
  0x50   :  { %448 = vrot.lane.b32.xlu1 %v333_v4, %s7153_s7  ;;  %446 = vrot.lane.b32.xlu0 %v332_v5, %s7153_s7  ;;  %7642 = sst [smem:[#allocation51_spill]] %s3254_s30  ;;  %v299_v4 = vstv %s3146_s15  ;;  %v393_v5 = vstv %s3148_s16  ;;  %s7654_s15 = sld [smem:[#allocation38_spill]] }
  0x51   :  { %7647 = sst [smem:[#allocation56_spill]] %s3280_s10  ;;  %s3326_s25 = sld [smem:[#allocation3 + $0x5c]] }
  0x52   :  { %7643 = sst [smem:[#allocation52_spill]] %s3256_s0  ;;  %s3332_s20 = sld [smem:[#allocation3 + $0x5d]] }
  0x53   :  { %7649 = sst [smem:[#allocation57_spill]] %s3288_s9  ;;  %s3340_s29 = sld [smem:[#allocation3]] }
  0x54   :  { %754 = vrot.lane.b32.xlu1 %v645_v8, %s7159_s1  ;;  %752 = vrot.lane.b32.xlu0 %v644_v9, %s7159_s1  ;;  %7650 = sst [smem:[#allocation58_spill]] %s3290_s6  ;;  %s3342_s28 = sld [smem:[#allocation3 + $0x5f]] }
  0x55   :  { %7651 = sst [smem:[#allocation59_spill]] %s3294_s12  ;;  %s7655_s12 = sld [smem:[#allocation40_spill]] }
  0x56   :  { %7652 = sst [smem:[#allocation60_spill]] %s3296_s13  ;;  %s3348_s18 = sld [smem:[#allocation3 + $0x1]] }
  0x57   :  { %s3350_s22 = sld [smem:[#allocation3 + $0x2]]  ;;  %s7672_s16 = smov 16  }
  0x58   :  { %760 = vrot.lane.b32.xlu1 %v645_v8, %s7153_s7  ;;  %758 = vrot.lane.b32.xlu0 %v644_v9, %s7153_s7  ;;  %s3358_s23 = sld [smem:[#allocation3 + $0x3]]  ;;  %s3360_s21 = sld [smem:[#allocation3 + $0x60]] }
  0x59   :  { %s3366_s17 = sld [smem:[#allocation3 + $0x61]]  ;;  %s3368_s3 = sld [smem:[#allocation3 + $0x62]] }
  0x5a   :  { %7668 = sst [smem:[#allocation62_spill]] %s3342_s28  ;;  %s3396_s6 = sld [smem:[#allocation3 + $0x40]] }
  0x5b   :  { %s3398_s27 = sld [smem:[#allocation3 + $0x41]]  ;;  %s3400_s9 = sld [smem:[#allocation3 + $0x42]] }
  0x5c   :  { %7670 = sst [smem:[#allocation63_spill]] %s3348_s18  ;;  %s3406_s10 = sld [smem:[#allocation3 + $0x43]] }
  0x5d   :  { %7671 = sst [smem:[#allocation64_spill]] %s3350_s22  ;;  %s3419_s8 = sld [smem:[#allocation3 + $0x63]] }
  0x5e   :  { %7674 = sst [smem:[#allocation65_spill]] %s3358_s23  ;;  %s7684_s18 = smov 112  }
  0x5f   :  { %7675 = sst [smem:[#allocation66_spill]] %s3360_s21  ;;  %s3438_s22 = sld [smem:[#allocation3 + $0x20]] }
  0x60   :  { %7677 = sst [smem:[#allocation67_spill]] %s3366_s17  ;;  %s3476_s17 = sld [smem:[#allocation3 + $0x81]] }
  0x61   :  { %7678 = sst [smem:[#allocation68_spill]] %s3368_s3  ;;  %s3452_s0 = sld [smem:[#allocation3 + $0x23]] }
  0x62   :  { %s3474_s3 = sld [smem:[#allocation3 + $0x80]]  ;;  %s3520_s13 = sld [smem:[#allocation3 + $0x82]] }
  0x63   :  { %s7705_s21 = sld [smem:[#allocation26_spill]]  ;;  %s7706_s23 = sld [smem:[#allocation27_spill]] }
  0x64   :  { %s3604_s28 = sld [smem:[#allocation3 + $0x5]]  ;;  %s7711_s30 = sld [smem:[#allocation28_spill]] }
  0x65   :  { %s7714_s4 = sld [smem:[#allocation29_spill]]  ;;  %s7717_s26 = sld [smem:[#allocation30_spill]] }
  0x66   :  { %7690 = sst [smem:[#allocation19_spill]] %s3476_s17  ;;  %s7721_s17 = sld [smem:[#allocation31_spill]] }
  0x67   :  { %7687 = sst [smem:[#allocation17_spill]] %s3452_s0  ;;  %s3688_s0 = sld [smem:[#allocation3 + $0x67]] }
  0x68   :  { %7689 = sst [smem:[#allocation18_spill]] %s3474_s3  ;;  %s3669_s3 = sld [smem:[#allocation3 + $0x65]] }
  0x69   :  { %7695 = sst [smem:[#allocation20_spill]] %s3520_s13 }
  0x6a   :  { %7708 = sst [smem:[#allocation22_spill]] %s3604_s28  ;;  %s3667_s13 = sld [smem:[#allocation3 + $0x64]] }
  0x6b   :  { %s4231_s28 = sld [smem:[#allocation3 + $0x2b]] }
  0x6d   :  { %7742 = sst [smem:[#allocation28_spill]] %s3688_s0  ;;  %s7901_s0 = sld [smem:[#allocation58_spill]] }
  0x6e   :  { %7733 = sst [smem:[#allocation26_spill]] %s3669_s3  ;;  %s4171_s3 = sld [smem:[#allocation3 + $0x69]] }
  0x70   :  { %7732 = sst [smem:[#allocation25_spill]] %s3667_s13  ;;  %s4173_s13 = sld [smem:[#allocation3 + $0x4b]] }
  0x96   :  { %v60_v19 = vpop.permute.xlu1 %59  ;;  %v53_v20 = vpop.permute.xlu0 %52 }
  0x9a   :  { %v62_v23 = vpop.permute.xlu1 %61  ;;  %v55_v24 = vpop.permute.xlu0 %54 }
  0x9b   :  { %v64_v25 = vsel %vm63_vm0, %v60_v19, %v62_v23  ;;  %v65_v26 = vsel %vm63_vm0, %v62_v23, %v60_v19  ;;  %v57_v27 = vsel %vm56_vm1, %v53_v20, %v55_v24  ;;  %v58_v28 = vsel %vm56_vm1, %v55_v24, %v53_v20 }
  0x9c   :  { %v3086_v29 = vsel %vm3068_vm2, %v64_v25, %v58_v28  ;;  %v3090_v30 = vsel %vm3072_vm3, %v65_v26, %v57_v27  ;;  %v3110_v35 = vsel %vm3096_vm4, %v58_v28, %v64_v25  ;;  %v3114_v36 = vsel %vm3100_vm5, %v57_v27, %v65_v26 }
  0x9d   :  { %70 = vrot.lane.b32.xlu0 %v3086_v29, %s7159_s1  ;;  %72 = vrot.lane.b32.xlu1 %v3090_v30, %s7159_s1  ;;  %v193_v28 = vstv %s3396_s6  ;;  %v199_v27 = vstv %s3398_s27  ;;  %v3526_v24 = vmul.f32 %v281_v61, %v3114_v36  ;;  %v3531_v23 = vmul.f32 %v287_v62, %v3110_v35  ;;  %s3602_s27 = sld [smem:[#allocation3 + $0x4]]  ;;  %s3637_s6 = sld [smem:[#allocation3 + $0x6]] }
  0x9e   :  { %v339_v31 = vpop.permute.xlu1 %338  ;;  %v337_v32 = vpop.permute.xlu0 %336  ;;  %v3542_v20 = vmul.f32 %v293_v63, %v3110_v35  ;;  %v3547_v19 = vmul.f32 %v293_v63, %v3114_v36  ;;  %v3555_v18 = vmul.f32 %v193_v28, %v3005_v0  ;;  %v3558_v17 = vmul.f32 %v193_v28, %v3011_v1 }
  0x9f   :  { %v340_v39 = vsel %vm56_vm1, %v337_v32, %v339_v31  ;;  %v341_v40 = vsel %vm56_vm1, %v339_v31, %v337_v32  ;;  %v7259_v32 = vshra.s32 %v3059_v15, 4  ;;  %7696 = vst [vmem:[#allocation70_spill] sm:$0xff] %v3526_v24  ;;  %7697 = vst [vmem:[#allocation71_spill] sm:$0xff] %v3531_v23  ;;  %v3566_v14 = vmul.f32 %v299_v4, %v3114_v36 }
  0xa0   :  { %7699 = vst [vmem:[#allocation73_spill] sm:$0xff] %v3542_v20  ;;  %7700 = vst [vmem:[#allocation74_spill] sm:$0xff] %v3547_v19  ;;  %v3574_v63 = vmul.f32 %v199_v27, %v3011_v1 }
  0xa1   :  { %77 = vrot.lane.b32.xlu0 %v3086_v29, %s7153_s7  ;;  %79 = vrot.lane.b32.xlu1 %v3090_v30, %s7153_s7  ;;  %7702 = vst [vmem:[#allocation76_spill] sm:$0xff] %v3566_v14  ;;  %vm3628_vm8 = vcmp.eq.s32.totalorder %v7259_v32, 0 }
  0xa2   :  { %v345_v37 = vpop.permute.xlu1 %344  ;;  %v343_v38 = vpop.permute.xlu0 %342 }
  0xa3   :  { %v346_v41 = vsel %vm63_vm0, %v343_v38, %v345_v37  ;;  %v347_v42 = vsel %vm63_vm0, %v345_v37, %v343_v38  ;;  %v3462_v37 = vmul.f32 %v117_v57, %v3086_v29  ;;  %v3511_v38 = vmul.f32 %v123_v58, %v3090_v30  ;;  %7707 = sst [smem:[#allocation21_spill]] %s3602_s27  ;;  %s4250_s27 = sld [smem:[#allocation3 + $0x8b]] }
  0xa4   :  { %v3152_v43 = vsel %vm3068_vm2, %v346_v41, %v341_v40  ;;  %v3156_v44 = vsel %vm3072_vm3, %v347_v42, %v340_v39  ;;  %v3200_v47 = vsel %vm3096_vm4, %v341_v40, %v346_v41  ;;  %v3204_v48 = vsel %vm3100_vm5, %v340_v39, %v347_v42  ;;  %7718 = sst [smem:[#allocation23_spill]] %s3637_s6  ;;  %s4192_s6 = sld [smem:[#allocation3 + $0x6b]] }
  0xa5   :  { %240 = vrot.lane.b32.xlu0 %v3110_v35, %s7159_s1  ;;  %242 = vrot.lane.b32.xlu1 %v3114_v36, %s7159_s1  ;;  %v3457_v42 = vmul.f32 %v111_v56, %v3086_v29  ;;  %v3624_v7 = vmul.f32 %v399_v6, %v3156_v44 }
  0xa6   :  { %v651_v45 = vpop.permute.xlu1 %650  ;;  %v649_v46 = vpop.permute.xlu0 %648 }
  0xa7   :  { %v3228_v51 = vsel %vm56_vm1, %v649_v46, %v651_v45  ;;  %v3236_v52 = vsel %vm56_vm1, %v651_v45, %v649_v46  ;;  %v3502_v45 = vmul.f32 %v117_v57, %v3090_v30  ;;  %v205_v57 = vstv %s3400_s9  ;;  %s3582_s9 = sld [smem:[#allocation3 + $0x83]]  ;;  %7713 = vst [vmem:[#allocation80_spill] sm:$0xff] %v3624_v7 }
  0xa8   :  { %v3577_v28 = vmul.f32 %v205_v57, %v3005_v0 }
  0xa9   :  { %246 = vrot.lane.b32.xlu0 %v3110_v35, %s7153_s7  ;;  %248 = vrot.lane.b32.xlu1 %v3114_v36, %s7153_s7 }
  0xaa   :  { %v657_v49 = vpop.permute.xlu1 %656  ;;  %v655_v50 = vpop.permute.xlu0 %654 }
  0xab   :  { %v3240_v53 = vsel %vm63_vm0, %v655_v50, %v657_v49  ;;  %v3244_v54 = vsel %vm63_vm0, %v657_v49, %v655_v50 }
  0xac   :  { %v3270_v59 = vsel %vm3068_vm2, %v3240_v53, %v3236_v52  ;;  %v3276_v60 = vsel %vm3072_vm3, %v3244_v54, %v3228_v51  ;;  %v3378_v50 = vsel %vm3096_vm4, %v3236_v52, %v3240_v53  ;;  %v3384_v41 = vsel %vm3100_vm5, %v3228_v51, %v3244_v54 }
  0xad   :  { %352 = vrot.lane.b32.xlu0 %v3152_v43, %s7159_s1  ;;  %354 = vrot.lane.b32.xlu1 %v3156_v44, %s7159_s1  ;;  %v3497_v51 = vmul.f32 %v111_v56, %v3090_v30  ;;  %v3518_v56 = vmul.f32 %v281_v61, %v3110_v35  ;;  %v3552_v61 = vmul.f32 %v299_v4, %v3110_v35 }
  0xae   :  { %v963_v39 = vpop.permute.xlu1 %962  ;;  %v961_v40 = vpop.permute.xlu0 %960 }
  0xaf   :  { %v3414_v26 = vsel %vm56_vm1, %v961_v40, %v963_v39  ;;  %v3423_v52 = vsel %vm56_vm1, %v963_v39, %v961_v40  ;;  %v3445_v39 = vmul.f32 %v105_v55, %v3086_v29  ;;  %7694 = vst [vmem:[#allocation69_spill] sm:$0xff] %v3518_v56  ;;  %7701 = vst [vmem:[#allocation75_spill] sm:$0xff] %v3552_v61 }
  0xb1   :  { %358 = vrot.lane.b32.xlu0 %v3152_v43, %s7153_s7  ;;  %360 = vrot.lane.b32.xlu1 %v3156_v44, %s7153_s7  ;;  %s3216_s7 = sld [smem:[#allocation3 + $0x70]] }
  0xb2   :  { %v969_v53 = vpop.permute.xlu1 %968  ;;  %v967_v54 = vpop.permute.xlu0 %966 }
  0xb3   :  { %v3427_v31 = vsel %vm63_vm0, %v967_v54, %v969_v53  ;;  %v3431_v46 = vsel %vm63_vm0, %v969_v53, %v967_v54  ;;  %v3467_v53 = vmul.f32 %v123_v58, %v3086_v29  ;;  %v3472_v54 = vmul.f32 %v105_v55, %v3090_v30 }
  0xb4   :  { %v3482_v40 = vsel %vm3068_vm2, %v3427_v31, %v3423_v52  ;;  %v3488_v29 = vsel %vm3072_vm3, %v3431_v46, %v3414_v26  ;;  %v3536_v30 = vmul.f32 %v287_v62, %v3114_v36  ;;  %v211_v58 = vstv %s3406_s10  ;;  %s3639_s10 = sld [smem:[#allocation3 + $0x7]] }
  0xb5   :  { %552 = vrot.lane.b32.xlu0 %v3200_v47, %s7159_s1  ;;  %554 = vrot.lane.b32.xlu1 %v3204_v48, %s7159_s1  ;;  %s3230_s1 = sld [smem:[#allocation3 + $0x15]]  ;;  %v3561_v62 = vmul.f32 %v199_v27, %v3005_v0  ;;  %v3580_v36 = vmul.f32 %v205_v57, %v3011_v1  ;;  %v3591_v35 = vmul.f32 %v211_v58, %v3005_v0 }
  0xb6   :  { %v3490_v55 = vpop.permute.xlu1 %154  ;;  %v3492_v25 = vpop.permute.xlu0 %152  ;;  %7698 = vst [vmem:[#allocation72_spill] sm:$0xff] %v3536_v30  ;;  %v3594_v57 = vmul.f32 %v211_v58, %v3011_v1  ;;  %v3609_v0 = vmul.f32 %v393_v5, %v3152_v43  ;;  %v3614_v1 = vmul.f32 %v393_v5, %v3156_v44  ;;  %v3619_v58 = vmul.f32 %v399_v6, %v3152_v43 }
  0xb7   :  { %7634 = sst [smem:[#allocation44_spill]] %s3216_s7  ;;  %s3232_s7 = sld [smem:[#allocation3 + $0x16]]  ;;  %v7720_v6 = vstv %s7705_s21  ;;  %v7727_v5 = vshra.s32 %v3062_v16, 4 }
  0xb8   :  { %7709 = vst [vmem:[#allocation77_spill] sm:$0xff] %v3609_v0  ;;  %7710 = vst [vmem:[#allocation78_spill] sm:$0xff] %v3614_v1  ;;  %v3644_v49 = vmul.f32 %v7720_v6, %v3152_v43  ;;  %v7723_v9 = vmov %v7720_v6  ;;  %s7737_s21 = sld [smem:[#allocation32_spill]] }
  0xb9   :  { %558 = vrot.lane.b32.xlu0 %v3200_v47, %s7641_s5  ;;  %560 = vrot.lane.b32.xlu1 %v3204_v48, %s7641_s5  ;;  %7712 = vst [vmem:[#allocation79_spill] sm:$0xff] %v3619_v58  ;;  %v3649_v10 = vmul.f32 %v7723_v9, %v3156_v44  ;;  %vm3658_vm9 = vcmp.eq.s32.totalorder %v7727_v5, 0  ;;  %v7734_v9 = vstv %s7711_s30  ;;  %s7746_s30 = sld [smem:[#allocation33_spill]] }
  0xba   :  { %v3586_v4 = vpop.permute.xlu1 %160  ;;  %v3588_v27 = vpop.permute.xlu0 %158  ;;  %7719 = sst [smem:[#allocation24_spill]] %s3639_s10  ;;  %7722 = vst [vmem:[#allocation81_spill] sm:$0xff] %v3644_v49  ;;  %v3674_v6 = vmul.f32 %v7734_v9, %v3200_v47 }
  0xbb   :  { %7639 = sst [smem:[#allocation49_spill]] %s3230_s1  ;;  %s3252_s1 = sld [smem:[#allocation3 + $0x74]]  ;;  %7724 = vst [vmem:[#allocation82_spill] sm:$0xff] %v3649_v10 }
  0xbc   :  { %7735 = vst [vmem:[#allocation85_spill] sm:$0xff] %v3674_v6 }
  0xbd   :  { %7640 = sst [smem:[#allocation50_spill]] %s3232_s7  ;;  %s3250_s7 = sld [smem:[#allocation3 + $0x17]]  ;;  %664 = vrot.lane.b32.xlu0 %v3270_v59, %s7648_s11  ;;  %666 = vrot.lane.b32.xlu1 %v3276_v60, %s7648_s11 }
  0xbe   :  { %s3302_s11 = sld [smem:[#allocation3 + $0x7b]] }
  0xc1   :  { %670 = vrot.lane.b32.xlu0 %v3270_v59, %s7641_s5  ;;  %672 = vrot.lane.b32.xlu1 %v3276_v60, %s7641_s5  ;;  %s7666_s5 = sld [smem:[#allocation50_spill]] }
  0xc2   :  { %7667 = sst [smem:[#allocation50_spill]] %s3340_s29  ;;  %s3440_s29 = sld [smem:[#allocation3 + $0x21]] }
  0xc4   :  { %7653 = sst [smem:[#allocation61_spill]] %s3302_s11  ;;  %s3316_s11 = sld [smem:[#allocation3 + $0x3e]] }
  0xc5   :  { %1064 = vrot.lane.b32.xlu0 %v3033_v13, %s7672_s16  ;;  %1066 = vrot.lane.b32.xlu1 %v3031_v12, %s7672_s16  ;;  %s7914_s10 = sld [smem:[#allocation61_spill]] }
  0xc9   :  { %864 = vrot.lane.b32.xlu0 %v3378_v50, %s7672_s16  ;;  %866 = vrot.lane.b32.xlu1 %v3384_v41, %s7672_s16 }
  0xca   :  { %7659 = sst [smem:[#allocation38_spill]] %s3316_s11 }
  0xcb   :  { %s3334_s11 = sld [smem:[#allocation3 + $0x5e]] }
  0xcc   :  { %s7679_s2 = sld [smem:[#allocation38_spill]] }
  0xcd   :  { %870 = vrot.lane.b32.xlu0 %v3378_v50, %s7684_s18  ;;  %872 = vrot.lane.b32.xlu1 %v3384_v41, %s7684_s18  ;;  %7685 = sst [smem:[#allocation38_spill]] %s3440_s29  ;;  %s7761_s29 = sld [smem:[#allocation37_spill]] }
  0xd1   :  { %7665 = sst [smem:[#allocation40_spill]] %s3334_s11  ;;  %s3450_s11 = sld [smem:[#allocation3 + $0x22]]  ;;  %976 = vrot.lane.b32.xlu0 %v3482_v40, %s7672_s16  ;;  %978 = vrot.lane.b32.xlu1 %v3488_v29, %s7672_s16 }
  0xd5   :  { %982 = vrot.lane.b32.xlu0 %v3482_v40, %s7684_s18  ;;  %984 = vrot.lane.b32.xlu1 %v3488_v29, %s7684_s18 }
  0xd7   :  { %7686 = sst [smem:[#allocation16_spill]] %s3450_s11  ;;  %s7751_s11 = sld [smem:[#allocation34_spill]] }
  0xd9   :  { %1070 = vrot.lane.b32.xlu0 %v3033_v13, %s7684_s18  ;;  %1072 = vrot.lane.b32.xlu1 %v3031_v12, %s7684_s18  ;;  %v7725_v13 = vstv %s7706_s23  ;;  %s3686_s23 = sld [smem:[#allocation3 + $0x66]] }
  0xda   :  { %v3654_v12 = vmul.f32 %v7725_v13, %v3152_v43  ;;  %v7730_v32 = vmov %v7725_v13  ;;  %v7736_v43 = vmov %v7734_v9  ;;  %v7739_v13 = vstv %s7714_s4  ;;  %s7757_s4 = sld [smem:[#allocation35_spill]] }
  0xdb   :  { %v3665_v22 = vmul.f32 %v7730_v32, %v3156_v44  ;;  %v3679_v5 = vmul.f32 %v7736_v43, %v3204_v48  ;;  %v3684_v21 = vmul.f32 %v7739_v13, %v3200_v47  ;;  %v7743_v44 = vmov %v7739_v13 }
  0xdc   :  { %7726 = vst [vmem:[#allocation83_spill] sm:$0xff] %v3654_v12  ;;  %v3693_v32 = vmul.f32 %v7743_v44, %v3204_v48  ;;  %v7745_v9 = vstv %s7717_s26  ;;  %s7760_s26 = sld [smem:[#allocation36_spill]] }
  0xdd   :  { %7731 = vst [vmem:[#allocation84_spill] sm:$0xff] %v3665_v22  ;;  %7738 = vst [vmem:[#allocation86_spill] sm:$0xff] %v3679_v5  ;;  %v3698_v6 = vmul.f32 %v7745_v9, %v3200_v47  ;;  %v7748_v43 = vmov %v7745_v9  ;;  %v7753_v22 = vshra.s32 %v3059_v15, 4  ;;  %v7756_v9 = vshra.s32 %v3062_v16, 4  ;;  %v3734_v16 = vpop.permute.xlu1 %442 }
  0xde   :  { %7740 = vst [vmem:[#allocation87_spill] sm:$0xff] %v3684_v21  ;;  %7744 = vst [vmem:[#allocation88_spill] sm:$0xff] %v3693_v32  ;;  %v3703_v13 = vmul.f32 %v7748_v43, %v3204_v48  ;;  %v7750_v21 = vstv %s7721_s17  ;;  %v7762_v43 = vstv %s7721_s17  ;;  %s7796_s17 = sld [smem:[#allocation39_spill]] }
  0xdf   :  { %7741 = sst [smem:[#allocation27_spill]] %s3686_s23  ;;  %7747 = vst [vmem:[#allocation89_spill] sm:$0xff] %v3698_v6  ;;  %v3708_v5 = vmul.f32 %v7750_v21, %v3200_v47  ;;  %vm3712_vm10 = vcmp.eq.s32.totalorder %v7753_v22, 15  ;;  %vm3718_vm11 = vcmp.eq.s32.totalorder %v7756_v9, 15  ;;  %v3726_v21 = vsel %vm3096_vm4, %v3423_v52, %v3427_v31  ;;  %v3736_v47 = vpop.permute.xlu0 %440  ;;  %s4156_s23 = sld [smem:[#allocation3 + $0x4a]] }
  0xe0   :  { %7749 = vst [vmem:[#allocation90_spill] sm:$0xff] %v3703_v13  ;;  %v3732_v22 = vsel %vm3100_vm5, %v3414_v26, %v3431_v46  ;;  %v3741_v9 = vmul.f32 %v7762_v43, %v3204_v48  ;;  %v7764_v31 = vstv %s7737_s21  ;;  %1176 = vrot.lane.b32.xlu0 %v3726_v21, %s7672_s16  ;;  %v7768_v48 = vstv %s7746_s30  ;;  %s7829_s21 = sld [smem:[#allocation47_spill]]  ;;  %s7839_s30 = sld [smem:[#allocation48_spill]] }
  0xe1   :  { %7752 = vst [vmem:[#allocation91_spill] sm:$0xff] %v3708_v5  ;;  %v3746_v52 = vmul.f32 %v7764_v31, %v3270_v59  ;;  %1178 = vrot.lane.b32.xlu1 %v3732_v22, %s7672_s16  ;;  %v7766_v46 = vmov %v7764_v31  ;;  %v3761_v43 = vmul.f32 %v7768_v48, %v3270_v59  ;;  %v7770_v31 = vmov %v7768_v48  ;;  %s4140_s16 = sld [smem:[#allocation3 + $0x49]] }
  0xe2   :  { %7763 = vst [vmem:[#allocation92_spill] sm:$0xff] %v3741_v9  ;;  %v3756_v33 = vmul.f32 %v7766_v46, %v3276_v60  ;;  %v3766_v34 = vmul.f32 %v7770_v31, %v3276_v60  ;;  %v7776_v46 = vstv %s7757_s4  ;;  %v7780_v31 = vstv %s7760_s26  ;;  %s7843_s4 = sld [smem:[#allocation49_spill]]  ;;  %s4020_s26 = sld [smem:[#allocation3 + $0x47]] }
  0xe3   :  { %7765 = vst [vmem:[#allocation93_spill] sm:$0xff] %v3746_v52  ;;  %7769 = vst [vmem:[#allocation95_spill] sm:$0xff] %v3761_v43  ;;  %v7772_v52 = vstv %s7751_s11  ;;  %v7778_v48 = vmov %v7776_v46  ;;  %s3834_s11 = sld [smem:[#allocation3 + $0x44]] }
  0xe4   :  { %7767 = vst [vmem:[#allocation94_spill] sm:$0xff] %v3756_v33  ;;  %7771 = vst [vmem:[#allocation96_spill] sm:$0xff] %v3766_v34  ;;  %v3771_v9 = vmul.f32 %v7772_v52, %v3270_v59  ;;  %v7774_v5 = vmov %v7772_v52  ;;  %v3781_v33 = vmul.f32 %v7776_v46, %v3270_v59  ;;  %v3786_v43 = vmul.f32 %v7778_v48, %v3276_v60 }
  0xe5   :  { %v3776_v26 = vmul.f32 %v7774_v5, %v3276_v60  ;;  %v3791_v34 = vmul.f32 %v7780_v31, %v3378_v50  ;;  %v7782_v52 = vmov %v7780_v31  ;;  %v7784_v5 = vstv %s7761_s29  ;;  %1182 = vrot.lane.b32.xlu0 %v3726_v21, %s7684_s18  ;;  %1184 = vrot.lane.b32.xlu1 %v3732_v22, %s7684_s18  ;;  %s7828_s29 = sld [smem:[#allocation46_spill]]  ;;  %s4138_s18 = sld [smem:[#allocation3 + $0xb]] }
  0xe6   :  { %7773 = vst [vmem:[#allocation97_spill] sm:$0xff] %v3771_v9  ;;  %7777 = vst [vmem:[#allocation99_spill] sm:$0xff] %v3781_v33  ;;  %v3796_v9 = vmul.f32 %v7782_v52, %v3384_v41  ;;  %v7786_v13 = vmov %v7784_v5  ;;  %v7788_v48 = vstv %s7654_s15  ;;  %v156_v60 = vsel %vm74_vm6, %v3492_v25, %v3490_v55  ;;  %s3858_s15 = sld [smem:[#allocation3 + $0x45]]  ;;  %7922 = sst [smem:[#allocation46_spill]] %s4192_s6 }
  0xe7   :  { %7775 = vst [vmem:[#allocation98_spill] sm:$0xff] %v3776_v26  ;;  %7779 = vst [vmem:[#allocation100_spill] sm:$0xff] %v3786_v43  ;;  %v3801_v26 = vmul.f32 %v7784_v5, %v3378_v50  ;;  %v3806_v59 = vmul.f32 %v7786_v13, %v3384_v41  ;;  %v3813_v31 = vmul.f32 %v7788_v48, %v3378_v50  ;;  %v7790_v52 = vmov %v7788_v48  ;;  %v447_v48 = vpop.permute.xlu0 %446  ;;  %s4332_s6 = sld [smem:[#allocation3 + $0x1f]] }
  0xe8   :  { %7781 = vst [vmem:[#allocation101_spill] sm:$0xff] %v3791_v34  ;;  %7783 = vst [vmem:[#allocation102_spill] sm:$0xff] %v3796_v9  ;;  %v3818_v9 = vmul.f32 %v7790_v52, %v3384_v41  ;;  %v157_v13 = vsel %vm74_vm6, %v3490_v55, %v3492_v25  ;;  %v162_v5 = vsel %vm81_vm7, %v3588_v27, %v3586_v4  ;;  %v7792_v52 = vstv %s7655_s12  ;;  %s7802_s12 = sld [smem:[#allocation41_spill]] }
  0xe9   :  { %7785 = vst [vmem:[#allocation103_spill] sm:$0xff] %v3801_v26  ;;  %7787 = vst [vmem:[#allocation104_spill] sm:$0xff] %v3806_v59  ;;  %v163_v46 = vsel %vm81_vm7, %v3586_v4, %v3588_v27  ;;  %v7794_v59 = vmov %v7792_v52  ;;  %v164_v27 = vsel %vm3628_vm8, %v162_v5, %v157_v13  ;;  %v7801_v55 = vstv %s3314_s19  ;;  %s7819_s19 = sld [smem:[#allocation43_spill]] }
  0xea   :  { %7789 = vst [vmem:[#allocation105_spill] sm:$0xff] %v3813_v31  ;;  %7791 = vst [vmem:[#allocation106_spill] sm:$0xff] %v3818_v9  ;;  %v449_v9 = vpop.permute.xlu1 %448  ;;  %v3847_v31 = vmul.f32 %v7792_v52, %v3378_v50  ;;  %v3852_v26 = vmul.f32 %v7794_v59, %v3384_v41  ;;  %v7797_v50 = vstv %s3308_s14  ;;  %v3875_v4 = vmul.f32 %v7801_v55, %v3482_v40  ;;  %s3894_s14 = sld [smem:[#allocation3 + $0x46]] }
  0xeb   :  { %v3865_v52 = vmul.f32 %v7797_v50, %v3482_v40  ;;  %v7799_v41 = vmov %v7797_v50  ;;  %v165_v34 = vsel %vm3658_vm9, %v163_v46, %v156_v60  ;;  %v7804_v25 = vmov %v7801_v55 }
  0xec   :  { %7793 = vst [vmem:[#allocation107_spill] sm:$0xff] %v3847_v31  ;;  %7795 = vst [vmem:[#allocation108_spill] sm:$0xff] %v3852_v26  ;;  %v3870_v59 = vmul.f32 %v7799_v41, %v3488_v29  ;;  %v3882_v26 = vmul.f32 %v7804_v25, %v3488_v29  ;;  %v7806_v50 = vstv %s7679_s2  ;;  %v7810_v55 = vstv %s3324_s24  ;;  %s7817_s2 = sld [smem:[#allocation42_spill]]  ;;  %s7822_s24 = sld [smem:[#allocation44_spill]] }
  0xed   :  { %7798 = vst [vmem:[#allocation109_spill] sm:$0xff] %v3865_v52  ;;  %7803 = vst [vmem:[#allocation111_spill] sm:$0xff] %v3875_v4  ;;  %v3887_v52 = vmul.f32 %v7806_v50, %v3482_v40  ;;  %v7808_v41 = vmov %v7806_v50  ;;  %v3899_v4 = vmul.f32 %v7810_v55, %v3482_v40  ;;  %v7812_v31 = vmov %v7810_v55  ;;  %7897 = sst [smem:[#allocation42_spill]] %s4138_s18  ;;  %s4312_s18 = sld [smem:[#allocation3 + $0x6e]] }
  0xee   :  { %7800 = vst [vmem:[#allocation110_spill] sm:$0xff] %v3870_v59  ;;  %7805 = vst [vmem:[#allocation112_spill] sm:$0xff] %v3882_v26  ;;  %v3892_v59 = vmul.f32 %v7808_v41, %v3488_v29  ;;  %v3904_v43 = vmul.f32 %v7812_v31, %v3488_v29  ;;  %v7814_v25 = vstv %s3326_s25  ;;  %v167_v40 = vsel %vm3718_vm11, %v156_v60, %v163_v46  ;;  %s7826_s25 = sld [smem:[#allocation45_spill]]  ;;  %7912 = sst [smem:[#allocation44_spill]] %s4171_s3 }
  0xef   :  { %7807 = vst [vmem:[#allocation113_spill] sm:$0xff] %v3887_v52  ;;  %7811 = vst [vmem:[#allocation115_spill] sm:$0xff] %v3899_v4  ;;  %v3909_v26 = vmul.f32 %v7814_v25, %v3726_v21  ;;  %v7816_v50 = vmov %v7814_v25  ;;  %v7820_v29 = vstv %s7796_s17  ;;  %v7821_v55 = vstv %s3332_s20  ;;  %s4049_s17 = sld [smem:[#allocation3 + $0x25]] }
  0xf0   :  { %7809 = vst [vmem:[#allocation114_spill] sm:$0xff] %v3892_v59  ;;  %7813 = vst [vmem:[#allocation116_spill] sm:$0xff] %v3904_v43  ;;  %v3914_v41 = vmul.f32 %v7816_v50, %v3732_v22  ;;  %v166_v59 = vsel %vm3712_vm10, %v157_v13, %v162_v5  ;;  %v3922_v31 = vmul.f32 %v7820_v29, %v164_v27  ;;  %v7832_v32 = vstv %s7819_s19  ;;  %s7868_s19 = sld [smem:[#allocation53_spill]] }
  0xf1   :  { %7815 = vst [vmem:[#allocation117_spill] sm:$0xff] %v3909_v26  ;;  %v3927_v25 = vmul.f32 %v7821_v55, %v3726_v21  ;;  %v7824_v26 = vmov %v7820_v29  ;;  %v444_v60 = vsel %vm74_vm6, %v3736_v47, %v3734_v16  ;;  %v755_v29 = vpop.permute.xlu1 %754  ;;  %v753_v55 = vpop.permute.xlu0 %752  ;;  %v3964_v12 = vmul.f32 %v7832_v32, %v164_v27  ;;  %s4321_s3 = sld [smem:[#allocation3 + $0x1d]] }
  0xf2   :  { %7818 = vst [vmem:[#allocation118_spill] sm:$0xff] %v3914_v41  ;;  %v3931_v50 = vmul.f32 %v7824_v26, %v165_v34  ;;  %v7825_v41 = vstv %s7802_s12  ;;  %v445_v26 = vsel %vm74_vm6, %v3734_v16, %v3736_v47  ;;  %v7830_v43 = vstv %s7817_s2  ;;  %s7860_s12 = sld [smem:[#allocation52_spill]]  ;;  %s4061_s2 = sld [smem:[#allocation3 + $0x27]] }
  0xf3   :  { %7823 = vst [vmem:[#allocation119_spill] sm:$0xff] %v3927_v25  ;;  %v3935_v13 = vmul.f32 %v7825_v41, %v164_v27  ;;  %v7827_v5 = vmov %v7825_v41  ;;  %v450_v41 = vsel %vm81_vm7, %v447_v48, %v449_v9  ;;  %v481_v25 = vstv %s3834_s11  ;;  %s4022_s11 = sld [smem:[#allocation3 + $0x24]] }
  0xf4   :  { %v3939_v46 = vmul.f32 %v7827_v5, %v165_v34  ;;  %v451_v5 = vsel %vm81_vm7, %v449_v9, %v447_v48  ;;  %v3956_v4 = vmul.f32 %v7830_v43, %v164_v27  ;;  %v7831_v52 = vmov %v7830_v43 }
  0xf5   :  { %v3960_v33 = vmul.f32 %v7831_v52, %v165_v34  ;;  %v7833_v16 = vmov %v7832_v32  ;;  %v7834_v10 = vstv %s7822_s24  ;;  %v7836_v48 = vstv %s7826_s25  ;;  %v761_v19 = vpop.permute.xlu1 %760  ;;  %v759_v20 = vpop.permute.xlu0 %758  ;;  %7859 = sst [smem:[#allocation30_spill]] %s4049_s17  ;;  %s4079_s24 = sld [smem:[#allocation3 + $0x84]] }
  0xf6   :  { %v3968_v47 = vmul.f32 %v7833_v16, %v165_v34  ;;  %v3972_v49 = vmul.f32 %v7834_v10, %v166_v59  ;;  %v7835_v7 = vmov %v7834_v10  ;;  %v3980_v58 = vmul.f32 %v7836_v48, %v166_v59  ;;  %s4081_s25 = sld [smem:[#allocation3 + $0x85]] }
  0xf7   :  { %v3976_v9 = vmul.f32 %v7835_v7, %v167_v40  ;;  %v493_v43 = vstv %s3858_s15  ;;  %v7837_v1 = vmov %v7836_v48  ;;  %v452_v32 = vsel %vm3628_vm8, %v450_v41, %v445_v26  ;;  %s7858_s15 = sld [smem:[#allocation51_spill]]  ;;  %s4258_s17 = sld [smem:[#allocation3 + $0xd]] }
  0xf8   :  { %v3985_v52 = vmul.f32 %v7837_v1, %v167_v40  ;;  %v453_v34 = vsel %vm3658_vm9, %v451_v5, %v444_v60  ;;  %v3992_v10 = vmul.f32 %v481_v25, %v3015_v3  ;;  %v7841_v7 = vstv %s7828_s29  ;;  %7862 = sst [smem:[#allocation32_spill]] %s4061_s2  ;;  %s7886_s29 = sld [smem:[#allocation54_spill]] }
  0xf9   :  { %v3996_v27 = vmul.f32 %v7841_v7, %v166_v59  ;;  %v7842_v16 = vmov %v7841_v7  ;;  %v7845_v1 = vstv %s7829_s21  ;;  %v4011_v30 = vmul.f32 %v481_v25, %v3013_v2  ;;  %7851 = sst [smem:[#allocation29_spill]] %s4022_s11  ;;  %s4116_s21 = sld [smem:[#allocation3 + $0x9]] }
  0xfa   :  { %7838 = vst [vmem:[#allocation120_spill] sm:$0xff] %v3985_v52  ;;  %7840 = vst [vmem:[#allocation121_spill] sm:$0xff] %v3992_v10  ;;  %v4000_v48 = vmul.f32 %v7842_v16, %v167_v40  ;;  %v4004_v0 = vmul.f32 %v7845_v1, %v166_v59  ;;  %v7846_v14 = vmov %v7845_v1  ;;  %v4014_v7 = vmul.f32 %v493_v43, %v3015_v3  ;;  %s7904_s11 = sld [smem:[#allocation59_spill]]  ;;  %s4366_s2 = sld [smem:[#allocation3 + $0x2d]] }
  0xfb   :  { %v4008_v61 = vmul.f32 %v7846_v14, %v167_v40  ;;  %7848 = vst [vmem:[#allocation124_spill] sm:$0xff] %v4011_v30  ;;  %v4017_v23 = vmul.f32 %v493_v43, %v3013_v2  ;;  %v505_v16 = vstv %s3894_s14  ;;  %v454_v14 = vsel %vm3712_vm10, %v445_v26, %v450_v41  ;;  %s4059_s14 = sld [smem:[#allocation3 + $0x26]]  ;;  %7870 = sst [smem:[#allocation33_spill]] %s4079_s24 }
  0xfc   :  { %7844 = vst [vmem:[#allocation122_spill] sm:$0xff] %v4000_v48  ;;  %7849 = vst [vmem:[#allocation125_spill] sm:$0xff] %v4014_v7  ;;  %v455_v59 = vsel %vm3718_vm11, %v444_v60, %v451_v5  ;;  %v7852_v40 = vstv %s7839_s30  ;;  %v7854_v24 = vstv %s7843_s4  ;;  %v7856_v52 = vstv %s7666_s5  ;;  %7871 = sst [smem:[#allocation34_spill]] %s4081_s25  ;;  %s4099_s5 = sld [smem:[#allocation3 + $0x86]] }
  0xfd   :  { %7847 = vst [vmem:[#allocation123_spill] sm:$0xff] %v4008_v61  ;;  %7850 = vst [vmem:[#allocation126_spill] sm:$0xff] %v4017_v23  ;;  %v4030_v25 = vmul.f32 %v7852_v40, %v452_v32  ;;  %v7853_v1 = vmov %v7852_v40  ;;  %v4038_v56 = vmul.f32 %v7854_v24, %v452_v32  ;;  %v7855_v61 = vmov %v7854_v24  ;;  %s7892_s30 = sld [smem:[#allocation55_spill]]  ;;  %s4128_s4 = sld [smem:[#allocation3 + $0xa]] }
  0xfe   :  { %v4034_v43 = vmul.f32 %v7853_v1, %v453_v34  ;;  %v4042_v48 = vmul.f32 %v7855_v61, %v453_v34  ;;  %v4046_v26 = vmul.f32 %v7856_v52, %v452_v32  ;;  %v756_v41 = vsel %vm74_vm6, %v753_v55, %v755_v29  ;;  %7941 = sst [smem:[#allocation51_spill]] %s4231_s28  ;;  %s4266_s24 = sld [smem:[#allocation3 + $0xf]] }
  0xff   :  { %v757_v24 = vsel %vm74_vm6, %v755_v29, %v753_v55  ;;  %v762_v61 = vsel %vm81_vm7, %v759_v20, %v761_v19  ;;  %v763_v5 = vsel %vm81_vm7, %v761_v19, %v759_v20  ;;  %v4065_v40 = vmul.f32 %v7856_v52, %v453_v34  ;;  %7887 = sst [smem:[#allocation39_spill]] %s4116_s21  ;;  %s4276_s21 = sld [smem:[#allocation3 + $0x4c]] }
 0x100   :  { %7857 = vst [vmem:[#allocation127_spill] sm:$0xff] %v4046_v26  ;;  %v7864_v1 = vstv %s3250_s7  ;;  %v7867_v29 = vstv %s3252_s1  ;;  %v7874_v52 = vstv %s7858_s15  ;;  %s4101_s7 = sld [smem:[#allocation3 + $0x87]]  ;;  %s4114_s1 = sld [smem:[#allocation3 + $0x8]] }
 0x101   :  { %7861 = sst [smem:[#allocation31_spill]] %s4059_s14  ;;  %7863 = vst [vmem:[#allocation128_spill] sm:$0xff] %v4065_v40  ;;  %v4069_v60 = vmul.f32 %v7864_v1, %v452_v32  ;;  %v7865_v10 = vmov %v7864_v1  ;;  %v4077_v55 = vmul.f32 %v7867_v29, %v454_v14  ;;  %v7872_v19 = vmov %v7867_v29  ;;  %s7894_s15 = sld [smem:[#allocation56_spill]] }
 0x102   :  { %v4073_v26 = vmul.f32 %v7865_v10, %v453_v34  ;;  %v4085_v20 = vmul.f32 %v7872_v19, %v455_v59  ;;  %v4089_v40 = vmul.f32 %v7874_v52, %v454_v14  ;;  %v7876_v32 = vmov %v7874_v52  ;;  %7880 = sst [smem:[#allocation35_spill]] %s4099_s5  ;;  %s4256_s14 = sld [smem:[#allocation3 + $0xc]] }
 0x103   :  { %7869 = vst [vmem:[#allocation130_spill] sm:$0xff] %v4077_v55  ;;  %v4093_v1 = vmul.f32 %v7876_v32, %v455_v59  ;;  %v7878_v34 = vstv %s7860_s12  ;;  %v764_v19 = vsel %vm3628_vm8, %v762_v61, %v757_v24  ;;  %v765_v52 = vsel %vm3658_vm9, %v763_v5, %v756_v41  ;;  %7893 = sst [smem:[#allocation41_spill]] %s4128_s4  ;;  %s4130_s12 = sld [smem:[#allocation3 + $0x48]] }
 0x104   :  { %7866 = vst [vmem:[#allocation129_spill] sm:$0xff] %v4073_v26  ;;  %7873 = vst [vmem:[#allocation131_spill] sm:$0xff] %v4085_v20  ;;  %v4097_v10 = vmul.f32 %v7878_v34, %v454_v14  ;;  %v7882_v29 = vmov %v7878_v34  ;;  %v4112_v32 = vmul.f32 %v505_v16, %v3015_v3  ;;  %v7888_v34 = vstv %s7868_s19  ;;  %s7896_s19 = sld [smem:[#allocation57_spill]]  ;;  %s4286_s4 = sld [smem:[#allocation3 + $0x4d]] }
 0x105   :  { %7875 = vst [vmem:[#allocation132_spill] sm:$0xff] %v4089_v40  ;;  %7877 = vst [vmem:[#allocation133_spill] sm:$0xff] %v4093_v1  ;;  %v4105_v55 = vmul.f32 %v7882_v29, %v455_v59  ;;  %v4120_v1 = vmul.f32 %v7888_v34, %v454_v14  ;;  %v7890_v29 = vmov %v7888_v34  ;;  %v4134_v26 = vmul.f32 %v505_v16, %v3013_v2  ;;  %s4314_s5 = sld [smem:[#allocation3 + $0x6f]]  ;;  %s4350_s25 = sld [smem:[#allocation3 + $0x7d]] }
 0x106   :  { %7879 = vst [vmem:[#allocation134_spill] sm:$0xff] %v4097_v10  ;;  %7881 = sst [smem:[#allocation36_spill]] %s4101_s7  ;;  %7884 = vst [vmem:[#allocation136_spill] sm:$0xff] %v4112_v32  ;;  %v517_v14 = vstv %s4020_s26  ;;  %v766_v34 = vsel %vm3712_vm10, %v757_v24, %v762_v61  ;;  %v7898_v20 = vstv %s7886_s29  ;;  %s4154_s26 = sld [smem:[#allocation3 + $0x68]] }
 0x107   :  { %7883 = vst [vmem:[#allocation135_spill] sm:$0xff] %v4105_v55  ;;  %7885 = sst [smem:[#allocation37_spill]] %s4114_s1  ;;  %7889 = vst [vmem:[#allocation137_spill] sm:$0xff] %v4120_v1  ;;  %v4124_v55 = vmul.f32 %v7890_v29, %v455_v59  ;;  %v767_v29 = vsel %vm3718_vm11, %v756_v41, %v763_v5  ;;  %v4148_v40 = vmul.f32 %v7898_v20, %v764_v19  ;;  %v7900_v16 = vmov %v7898_v20  ;;  %s7911_s29 = sld [smem:[#allocation60_spill]] }
 0x108   :  { %7895 = vst [vmem:[#allocation139_spill] sm:$0xff] %v4134_v26  ;;  %v4152_v10 = vmul.f32 %v7900_v16, %v765_v52  ;;  %v7905_v59 = vstv %s7892_s30  ;;  %v7909_v41 = vstv %s7894_s15  ;;  %s4190_s30 = sld [smem:[#allocation3 + $0x6a]]  ;;  %v7923_v20 = vstv %s7901_s0  ;;  %s4209_s15 = sld [smem:[#allocation3 + $0x28]] }
 0x109   :  { %7891 = vst [vmem:[#allocation138_spill] sm:$0xff] %v4124_v55  ;;  %7899 = vst [vmem:[#allocation140_spill] sm:$0xff] %v4148_v40  ;;  %v4160_v55 = vmul.f32 %v7905_v59, %v764_v19  ;;  %v7907_v24 = vmov %v7905_v59  ;;  %v4168_v5 = vmul.f32 %v7909_v41, %v764_v19  ;;  %v7913_v16 = vmov %v7909_v41  ;;  %s4229_s0 = sld [smem:[#allocation3 + $0x2a]]  ;;  %s4274_s7 = sld [smem:[#allocation3 + $0x6c]] }
 0x10a   :  { %7902 = vst [vmem:[#allocation141_spill] sm:$0xff] %v4152_v10  ;;  %v4164_v61 = vmul.f32 %v7907_v24, %v765_v52  ;;  %v4177_v10 = vmul.f32 %v7913_v16, %v765_v52  ;;  %v7916_v59 = vstv %s7896_s19  ;;  %v4188_v41 = vmul.f32 %v517_v14, %v3015_v3  ;;  %s4211_s19 = sld [smem:[#allocation3 + $0x29]]  ;;  %s4294_s1 = sld [smem:[#allocation3 + $0x4f]] }
 0x10b   :  { %7906 = vst [vmem:[#allocation142_spill] sm:$0xff] %v4160_v55  ;;  %7910 = vst [vmem:[#allocation144_spill] sm:$0xff] %v4168_v5  ;;  %v4181_v55 = vmul.f32 %v7916_v59, %v764_v19  ;;  %v7918_v24 = vmov %v7916_v59  ;;  %v4196_v5 = vmul.f32 %v7923_v20, %v766_v34  ;;  %v7925_v16 = vmov %v7923_v20  ;;  %7965 = sst [smem:[#allocation53_spill]] %s4350_s25  ;;  %s4372_s28 = sld [smem:[#allocation3 + $0x2e]] }
 0x10c   :  { %7903 = sst [smem:[#allocation43_spill]] %s4154_s26  ;;  %7908 = vst [vmem:[#allocation143_spill] sm:$0xff] %v4164_v61  ;;  %7915 = vst [vmem:[#allocation145_spill] sm:$0xff] %v4177_v10  ;;  %v4185_v61 = vmul.f32 %v7918_v24, %v765_v52  ;;  %v4200_v10 = vmul.f32 %v7925_v16, %v767_v29  ;;  %v7927_v19 = vstv %s7904_s11  ;;  %v4207_v52 = vmul.f32 %v517_v14, %v3013_v2  ;;  %s4240_s11 = sld [smem:[#allocation3 + $0x88]] }
 0x10d   :  { %7917 = vst [vmem:[#allocation146_spill] sm:$0xff] %v4181_v55  ;;  %7920 = vst [vmem:[#allocation148_spill] sm:$0xff] %v4188_v41  ;;  %v4204_v59 = vmul.f32 %v7927_v19, %v766_v34  ;;  %v7932_v3 = vmov %v7927_v19  ;;  %v7934_v20 = vstv %s7911_s29  ;;  %v7938_v19 = vstv %s7914_s10  ;;  %s4242_s29 = sld [smem:[#allocation3 + $0x89]]  ;;  %s4248_s10 = sld [smem:[#allocation3 + $0x8a]] }
 0x10e   :  { %7919 = vst [vmem:[#allocation147_spill] sm:$0xff] %v4185_v61  ;;  %7921 = sst [smem:[#allocation45_spill]] %s4190_s30  ;;  %7924 = vst [vmem:[#allocation149_spill] sm:$0xff] %v4196_v5  ;;  %v4215_v24 = vmul.f32 %v7932_v3, %v767_v29  ;;  %v4219_v5 = vmul.f32 %v7934_v20, %v766_v34  ;;  %v7936_v16 = vmov %v7934_v20  ;;  %v7942_v2 = vmov %v7938_v19  ;;  %s7956_s26 = sld [smem:[#allocation62_spill]] }
 0x10f   :  { %7926 = vst [vmem:[#allocation150_spill] sm:$0xff] %v4200_v10  ;;  %7928 = vst [vmem:[#allocation151_spill] sm:$0xff] %v4204_v59  ;;  %7930 = sst [smem:[#allocation47_spill]] %s4209_s15  ;;  %v4223_v10 = vmul.f32 %v7936_v16, %v767_v29  ;;  %v4227_v59 = vmul.f32 %v7938_v19, %v766_v34  ;;  %v4235_v14 = vmul.f32 %v7942_v2, %v767_v29  ;;  %v805_v20 = vstv %s4140_s16  ;;  %v2892_v29 = vld [vmem:[#allocation7] sm:$0x30]  ;;  %s7946_s16 = sld [smem:[#allocation40_spill]] }
 0x110   :  { %7929 = vst [vmem:[#allocation152_spill] sm:$0xff] %v4207_v52  ;;  %7931 = sst [smem:[#allocation48_spill]] %s4211_s19  ;;  %7933 = vst [vmem:[#allocation153_spill] sm:$0xff] %v4215_v24  ;;  %v817_v34 = vstv %s4156_s23  ;;  %v2893_v24 = vld [vmem:[#allocation7 + $0x8] sm:$0x30]  ;;  %v4280_v16 = vmul.f32 %v2892_v29, %v805_v20  ;;  %s4284_s23 = sld [smem:[#allocation3 + $0x6d]]  ;;  %v7952_v19 = vstv %s3332_s20 }
 0x111   :  { %7935 = vst [vmem:[#allocation154_spill] sm:$0xff] %v4219_v5  ;;  %7937 = vst [vmem:[#allocation155_spill] sm:$0xff] %v4223_v10  ;;  %7940 = sst [smem:[#allocation49_spill]] %s4229_s0  ;;  %v793_v10 = vstv %s4130_s12  ;;  %s4264_s12 = sld [smem:[#allocation3 + $0xe]]  ;;  %v829_v5 = vstv %s4173_s13  ;;  %v4290_v61 = vmul.f32 %v2893_v24, %v817_v34  ;;  %v4299_v3 = vmul.f32 %v7952_v19, %v3732_v22 }
 0x112   :  { %7939 = vst [vmem:[#allocation156_spill] sm:$0xff] %v4227_v59  ;;  %7943 = vst [vmem:[#allocation157_spill] sm:$0xff] %v4235_v14  ;;  %v4269_v2 = vmul.f32 %v2892_v29, %v793_v10  ;;  %v4271_v59 = vmul.f32 %v2893_v24, %v793_v10  ;;  %v4282_v14 = vmul.f32 %v2893_v24, %v805_v20  ;;  %s4292_s13 = sld [smem:[#allocation3 + $0x4e]]  ;;  %s4319_s20 = sld [smem:[#allocation3 + $0x1c]] }
 0x113   :  { %7944 = sst [smem:[#allocation52_spill]] %s4248_s10  ;;  %7948 = vst [vmem:[#allocation160_spill] sm:$0xff] %v4280_v16  ;;  %v4288_v10 = vmul.f32 %v2892_v29, %v817_v34  ;;  %7951 = vst [vmem:[#allocation163_spill] sm:$0xff] %v4290_v61  ;;  %v4308_v52 = vmul.f32 %v2892_v29, %v829_v5  ;;  %v4310_v34 = vmul.f32 %v2893_v24, %v829_v5  ;;  %s4330_s30 = sld [smem:[#allocation3 + $0x1e]]  ;;  %v1105_v24 = vstv %s4276_s21  ;;  %v71_v16 = vpop.permute.xlu0 %70 }
 0x114   :  { %7945 = vst [vmem:[#allocation158_spill] sm:$0xff] %v4269_v2  ;;  %7947 = vst [vmem:[#allocation159_spill] sm:$0xff] %v4271_v59  ;;  %s4358_s15 = sld [smem:[#allocation3 + $0x7f]]  ;;  %s4364_s19 = sld [smem:[#allocation3 + $0x2c]] }
 0x115   :  { %7949 = vst [vmem:[#allocation161_spill] sm:$0xff] %v4282_v14  ;;  %7950 = vst [vmem:[#allocation162_spill] sm:$0xff] %v4288_v10  ;;  %v7954_v20 = vstv %s7946_s16  ;;  %s4348_s16 = sld [smem:[#allocation3 + $0x7c]]  ;;  %s4374_s0 = sld [smem:[#allocation3 + $0x2f]] }
 0x116   :  { %7953 = vst [vmem:[#allocation164_spill] sm:$0xff] %v4299_v3  ;;  %v4304_v55 = vmul.f32 %v7954_v20, %v3726_v21  ;;  %7957 = vst [vmem:[#allocation166_spill] sm:$0xff] %v4308_v52  ;;  %v7959_v29 = vmov %v7954_v20  ;;  %v7961_v20 = vstv %s7956_s26  ;;  %s4356_s26 = sld [smem:[#allocation3 + $0x7e]]  ;;  %s4380_s21 = sld [smem:[#allocation3 + $0x8c]] }
 0x117   :  { %7958 = vst [vmem:[#allocation167_spill] sm:$0xff] %v4310_v34  ;;  %v4326_v5 = vmul.f32 %v7959_v29, %v3732_v22  ;;  %v4337_v3 = vmul.f32 %v7961_v20, %v3726_v21  ;;  %v7963_v19 = vmov %v7961_v20  ;;  %v1117_v21 = vstv %s4286_s4  ;;  %s4382_s10 = sld [smem:[#allocation3 + $0x8d]]  ;;  %v2894_v20 = vld [vmem:[#allocation7] sm:$0xc0]  ;;  %s4390_s4 = sld [smem:[#allocation3 + $0x8e]] }
 0x118   :  { %7955 = vst [vmem:[#allocation165_spill] sm:$0xff] %v4304_v55  ;;  %v4342_v29 = vmul.f32 %v7963_v19, %v3732_v22  ;;  %v1129_v1 = vstv %s4292_s13  ;;  %v4386_v22 = vmul.f32 %v2894_v20, %v1105_v24  ;;  %v2895_v55 = vld [vmem:[#allocation7 + $0x8] sm:$0xc0]  ;;  %s4392_s13 = sld [smem:[#allocation3 + $0x8f]] }
 0x119   :  { %7960 = vst [vmem:[#allocation168_spill] sm:$0xff] %v4326_v5  ;;  %7962 = vst [vmem:[#allocation169_spill] sm:$0xff] %v4337_v3  ;;  %v4388_v34 = vmul.f32 %v2895_v55, %v1105_v24  ;;  %v4396_v3 = vmul.f32 %v2894_v20, %v1117_v21  ;;  %v4398_v19 = vmul.f32 %v2895_v55, %v1117_v21  ;;  %v73_v21 = vpop.permute.xlu1 %72  ;;  %s7980_s25 = sld [smem:[#allocation63_spill]] }
 0x11a   :  { %7964 = vst [vmem:[#allocation170_spill] sm:$0xff] %v4342_v29  ;;  %7967 = sst [smem:[#allocation55_spill]] %s4358_s15  ;;  %v1141_v29 = vstv %s4294_s1  ;;  %7969 = vst [vmem:[#allocation171_spill] sm:$0xff] %v4386_v22  ;;  %v4400_v61 = vmul.f32 %v2894_v20, %v1129_v1  ;;  %v4402_v14 = vmul.f32 %v2895_v55, %v1129_v1  ;;  %s7979_s1 = sld [smem:[#allocation50_spill]]  ;;  %v75_v26 = vsel %vm74_vm6, %v71_v16, %v73_v21 }
 0x11b   :  { %7970 = vst [vmem:[#allocation172_spill] sm:$0xff] %v4388_v34  ;;  %7973 = vst [vmem:[#allocation173_spill] sm:$0xff] %v4396_v3  ;;  %v4404_v24 = vmul.f32 %v2894_v20, %v1141_v29  ;;  %v4406_v59 = vmul.f32 %v2895_v55, %v1141_v29  ;;  %v78_v55 = vpop.permute.xlu0 %77  ;;  %s7981_s15 = sld [smem:[#allocation64_spill]]  ;;  %v76_v20 = vsel %vm74_vm6, %v73_v21, %v71_v16 }
 0x11c   :  { %7966 = sst [smem:[#allocation54_spill]] %s4356_s26  ;;  %7974 = vst [vmem:[#allocation174_spill] sm:$0xff] %v4398_v19  ;;  %7975 = vst [vmem:[#allocation175_spill] sm:$0xff] %v4400_v61  ;;  %s7982_s26 = sld [smem:[#allocation65_spill]] }
 0x11d   :  { %7968 = sst [smem:[#allocation56_spill]] %s4382_s10  ;;  %7976 = vst [vmem:[#allocation176_spill] sm:$0xff] %v4402_v14  ;;  %7977 = vst [vmem:[#allocation177_spill] sm:$0xff] %v4404_v24  ;;  %v80_v29 = vpop.permute.xlu1 %79  ;;  %s7991_s10 = sld [smem:[#allocation68_spill]] }
 0x11e   :  { %7971 = sst [smem:[#allocation57_spill]] %s4390_s4  ;;  %7978 = vst [vmem:[#allocation178_spill] sm:$0xff] %v4406_v59  ;;  %v82_v22 = vsel %vm81_vm7, %v78_v55, %v80_v29  ;;  %v83_v34 = vsel %vm81_vm7, %v80_v29, %v78_v55  ;;  %s7988_s4 = sld [smem:[#allocation67_spill]] }
 0x11f   :  { %7972 = sst [smem:[#allocation58_spill]] %s4392_s13  ;;  %v84_v40 = vsel %vm3628_vm8, %v82_v22, %v76_v20  ;;  %v85_v10 = vsel %vm3658_vm9, %v83_v34, %v75_v26  ;;  %v86_v52 = vsel %vm3712_vm10, %v76_v20, %v82_v22  ;;  %v87_v5 = vsel %vm3718_vm11, %v75_v26, %v83_v34 }
 0x120   :  { %v7983_v1 = vstv %s7979_s1  ;;  %s7985_s13 = sld [smem:[#allocation66_spill]]  ;;  %v7986_v59 = vstv %s7980_s25  ;;  %s8003_s25 = sld [smem:[#allocation16_spill]] }
 0x121   :  { %v90_v16 = vmul.f32 %v7983_v1, %v84_v40  ;;  %v7984_v21 = vmov %v7983_v1  ;;  %v94_v55 = vmul.f32 %v7986_v59, %v84_v40  ;;  %v7987_v29 = vmov %v7986_v59  ;;  %s8037_s1 = sld [smem:[#allocation23_spill]] }
 0x122   :  { %v91_v2 = vmul.f32 %v7984_v21, %v85_v10  ;;  %v95_v24 = vmul.f32 %v7987_v29, %v85_v10  ;;  %v7989_v14 = vstv %s7981_s15  ;;  %v7992_v20 = vstv %s7982_s26  ;;  %s8005_s15 = sld [smem:[#allocation17_spill]]  ;;  %s8018_s26 = sld [smem:[#allocation20_spill]] }
 0x123   :  { %v98_v61 = vmul.f32 %v7989_v14, %v84_v40  ;;  %v7990_v19 = vmov %v7989_v14  ;;  %v102_v26 = vmul.f32 %v7992_v20, %v84_v40  ;;  %v7993_v34 = vmov %v7992_v20 }
 0x124   :  { %v99_v22 = vmul.f32 %v7990_v19, %v85_v10  ;;  %v103_v1 = vmul.f32 %v7993_v34, %v85_v10  ;;  %v108_v21 = vadd.f32 %v3445_v39, %v90_v16  ;;  %v109_v59 = vadd.f32 %v3472_v54, %v91_v2 }
 0x125   :  { %v114_v3 = vadd.f32 %v3457_v42, %v94_v55  ;;  %v115_v29 = vadd.f32 %v3497_v51, %v95_v24  ;;  %v120_v14 = vadd.f32 %v3462_v37, %v98_v61  ;;  %v126_v19 = vadd.f32 %v3467_v53, %v102_v26  ;;  %v243_v53 = vpop.permute.xlu1 %242 }
 0x126   :  { %v121_v23 = vadd.f32 %v3502_v45, %v99_v22  ;;  %v127_v40 = vadd.f32 %v3511_v38, %v103_v1  ;;  %v7994_v20 = vstv %s7985_s13  ;;  %v7996_v41 = vstv %s7988_s4  ;;  %v241_v22 = vpop.permute.xlu0 %240  ;;  %s8035_s4 = sld [smem:[#allocation21_spill]]  ;;  %s8036_s13 = sld [smem:[#allocation22_spill]] }
 0x127   :  { %v130_v30 = vmul.f32 %v7994_v20, %v86_v52  ;;  %v7995_v10 = vmov %v7994_v20  ;;  %v136_v39 = vmul.f32 %v7996_v41, %v86_v52  ;;  %v7997_v16 = vmov %v7996_v41 }
 0x128   :  { %v131_v34 = vmul.f32 %v7995_v10, %v87_v5  ;;  %v137_v54 = vmul.f32 %v7997_v16, %v87_v5  ;;  %v7998_v2 = vstv %s7991_s10  ;;  %v8000_v24 = vstv %s3419_s8  ;;  %s8002_s8 = sld [smem:[#allocation38_spill]]  ;;  %s8016_s10 = sld [smem:[#allocation18_spill]] }
 0x129   :  { %v142_v42 = vmul.f32 %v7998_v2, %v86_v52  ;;  %v7999_v55 = vmov %v7998_v2  ;;  %v148_v37 = vmul.f32 %v8000_v24, %v86_v52  ;;  %v8001_v61 = vmov %v8000_v24 }
 0x12a   :  { %v143_v51 = vmul.f32 %v7999_v55, %v87_v5  ;;  %v149_v45 = vmul.f32 %v8001_v61, %v87_v5  ;;  %v132_v26 = vadd.f32 %v130_v30, %v108_v21  ;;  %v133_v38 = vadd.f32 %v131_v34, %v109_v59  ;;  %v247_v21 = vpop.permute.xlu0 %246  ;;  %v8006_v59 = vld [vmem:[#allocation122_spill] sm:$0xff] }
 0x12b   :  { %v138_v1 = vadd.f32 %v136_v39, %v114_v3  ;;  %v139_v20 = vadd.f32 %v137_v54, %v115_v29  ;;  %v144_v32 = vadd.f32 %v142_v42, %v120_v14  ;;  %v150_v7 = vadd.f32 %v148_v37, %v126_v19  ;;  %v8007_v29 = vld [vmem:[#allocation123_spill] sm:$0xff] }
 0x12c   :  { %v145_v10 = vadd.f32 %v143_v51, %v121_v23  ;;  %v151_v41 = vadd.f32 %v149_v45, %v127_v40  ;;  %v172_v16 = vadd.f32 %v3922_v31, %v132_v26  ;;  %v173_v2 = vadd.f32 %v3931_v50, %v133_v38 }
 0x12d   :  { %v178_v55 = vadd.f32 %v3935_v13, %v138_v1  ;;  %v179_v52 = vadd.f32 %v3939_v46, %v139_v20  ;;  %v184_v5 = vadd.f32 %v3956_v4, %v144_v32  ;;  %v190_v30 = vadd.f32 %v3964_v12, %v150_v7 }
 0x12e   :  { %v185_v24 = vadd.f32 %v3960_v33, %v145_v10  ;;  %v191_v3 = vadd.f32 %v3968_v47, %v151_v41  ;;  %v244_v23 = vsel %vm74_vm6, %v241_v22, %v243_v53  ;;  %v245_v31 = vsel %vm74_vm6, %v243_v53, %v241_v22  ;;  %v249_v33 = vpop.permute.xlu1 %248  ;;  %v353_v41 = vpop.permute.xlu0 %352 }
 0x12f   :  { %v196_v50 = vadd.f32 %v3555_v18, %v172_v16  ;;  %v202_v13 = vadd.f32 %v3561_v62, %v178_v55  ;;  %v208_v46 = vadd.f32 %v3577_v28, %v184_v5  ;;  %v214_v4 = vadd.f32 %v3591_v35, %v190_v30 }
 0x130   :  { %v197_v12 = vadd.f32 %v3558_v17, %v173_v2  ;;  %v203_v47 = vadd.f32 %v3574_v63, %v179_v52  ;;  %v209_v18 = vadd.f32 %v3580_v36, %v185_v24  ;;  %v215_v62 = vadd.f32 %v3594_v57, %v191_v3  ;;  %v8004_v63 = vld [vmem:[#allocation120_spill] sm:$0xff] }
 0x131   :  { %v220_v7 = vadd.f32 %v3972_v49, %v196_v50  ;;  %v226_v32 = vadd.f32 %v3980_v58, %v202_v13  ;;  %v232_v28 = vadd.f32 %v3996_v27, %v208_v46  ;;  %v238_v35 = vadd.f32 %v4004_v0, %v214_v4  ;;  %v8020_v13 = vld [vmem:[#allocation70_spill] sm:$0xff]  ;;  %v8021_v46 = vld [vmem:[#allocation71_spill] sm:$0xff] }
 0x132   :  { %v221_v17 = vadd.f32 %v3976_v9, %v197_v12  ;;  %v227_v49 = vadd.f32 %v8004_v63, %v203_v47  ;;  %v233_v58 = vadd.f32 %v8006_v59, %v209_v18  ;;  %v239_v36 = vadd.f32 %v8007_v29, %v215_v62  ;;  %v355_v16 = vpop.permute.xlu1 %354  ;;  %v8023_v47 = vld [vmem:[#allocation73_spill] sm:$0xff]  ;;  %v8025_v62 = vld [vmem:[#allocation75_spill] sm:$0xff] }
 0x133   :  { %v250_v57 = vsel %vm81_vm7, %v247_v21, %v249_v33  ;;  %v251_v27 = vsel %vm81_vm7, %v249_v33, %v247_v21  ;;  %v8008_v40 = vstv %s3438_s22  ;;  %v8010_v42 = vstv %s8002_s8  ;;  %s8017_s22 = sld [smem:[#allocation19_spill]]  ;;  %v8022_v33 = vld [vmem:[#allocation72_spill] sm:$0xff]  ;;  %s8038_s8 = sld [smem:[#allocation24_spill]] }
 0x134   :  { %v252_v0 = vsel %vm3628_vm8, %v250_v57, %v245_v31  ;;  %v253_v9 = vsel %vm3658_vm9, %v251_v27, %v244_v23  ;;  %v254_v14 = vsel %vm3712_vm10, %v245_v31, %v250_v57  ;;  %v255_v19 = vsel %vm3718_vm11, %v244_v23, %v251_v27  ;;  %v8019_v31 = vld [vmem:[#allocation69_spill] sm:$0xff] }
 0x135   :  { %v258_v34 = vmul.f32 %v8008_v40, %v252_v0  ;;  %v8009_v39 = vmov %v8008_v40  ;;  %v264_v51 = vmul.f32 %v8010_v42, %v252_v0  ;;  %v8011_v37 = vmov %v8010_v42 }
 0x136   :  { %v259_v54 = vmul.f32 %v8009_v39, %v253_v9  ;;  %v265_v61 = vmul.f32 %v8011_v37, %v253_v9  ;;  %v8012_v45 = vstv %s8003_s25  ;;  %v8014_v38 = vstv %s8005_s15  ;;  %v359_v37 = vpop.permute.xlu0 %358  ;;  %s8048_s25 = sld [smem:[#allocation26_spill]]  ;;  %s8049_s15 = sld [smem:[#allocation27_spill]] }
 0x137   :  { %v270_v22 = vmul.f32 %v8012_v45, %v252_v0  ;;  %v8013_v53 = vmov %v8012_v45  ;;  %v276_v1 = vmul.f32 %v8014_v38, %v252_v0  ;;  %v8015_v20 = vmov %v8014_v38 }
 0x138   :  { %v271_v26 = vmul.f32 %v8013_v53, %v253_v9  ;;  %v277_v10 = vmul.f32 %v8015_v20, %v253_v9  ;;  %v260_v2 = vadd.f32 %v258_v34, %v220_v7  ;;  %v261_v55 = vadd.f32 %v259_v54, %v221_v17  ;;  %v8026_v17 = vld [vmem:[#allocation76_spill] sm:$0xff] }
 0x139   :  { %v266_v52 = vadd.f32 %v264_v51, %v226_v32  ;;  %v267_v5 = vadd.f32 %v265_v61, %v227_v49  ;;  %v272_v24 = vadd.f32 %v270_v22, %v232_v28  ;;  %v278_v3 = vadd.f32 %v276_v1, %v238_v35  ;;  %v8024_v32 = vld [vmem:[#allocation74_spill] sm:$0xff]  ;;  %v361_v61 = vpop.permute.xlu1 %360 }
 0x13a   :  { %v273_v30 = vadd.f32 %v271_v26, %v233_v58  ;;  %v279_v23 = vadd.f32 %v277_v10, %v239_v36  ;;  %v284_v50 = vadd.f32 %v8019_v31, %v260_v2  ;;  %v285_v21 = vadd.f32 %v8020_v13, %v261_v55 }
 0x13b   :  { %v290_v4 = vadd.f32 %v8021_v46, %v266_v52  ;;  %v291_v12 = vadd.f32 %v8022_v33, %v267_v5  ;;  %v296_v7 = vadd.f32 %v8023_v47, %v272_v24  ;;  %v302_v28 = vadd.f32 %v8025_v62, %v278_v3 }
 0x13c   :  { %v297_v18 = vadd.f32 %v8024_v32, %v273_v30  ;;  %v303_v63 = vadd.f32 %v8026_v17, %v279_v23  ;;  %v8027_v35 = vstv %s8016_s10  ;;  %v8029_v29 = vstv %s8017_s22  ;;  %s8050_s10 = sld [smem:[#allocation28_spill]]  ;;  %s8088_s22 = sld [smem:[#allocation29_spill]] }
 0x13d   :  { %v306_v49 = vmul.f32 %v8027_v35, %v254_v14  ;;  %v8028_v59 = vmov %v8027_v35  ;;  %v312_v36 = vmul.f32 %v8029_v29, %v254_v14  ;;  %v8030_v57 = vmov %v8029_v29  ;;  %v553_v35 = vpop.permute.xlu0 %552 }
 0x13e   :  { %v307_v58 = vmul.f32 %v8028_v59, %v255_v19  ;;  %v313_v27 = vmul.f32 %v8030_v57, %v255_v19  ;;  %v8031_v0 = vstv %s8018_s26  ;;  %v8033_v39 = vstv %s3582_s9  ;;  %s8047_s9 = sld [smem:[#allocation25_spill]]  ;;  %v8051_v57 = vld [vmem:[#allocation77_spill] sm:$0xff]  ;;  %s8089_s26 = sld [smem:[#allocation30_spill]] }
 0x13f   :  { %v318_v9 = vmul.f32 %v8031_v0, %v254_v14  ;;  %v8032_v40 = vmov %v8031_v0  ;;  %v324_v54 = vmul.f32 %v8033_v39, %v254_v14  ;;  %v8034_v42 = vmov %v8033_v39  ;;  %v8052_v0 = vld [vmem:[#allocation78_spill] sm:$0xff]  ;;  %v8054_v39 = vld [vmem:[#allocation80_spill] sm:$0xff] }
 0x140   :  { %v319_v34 = vmul.f32 %v8032_v40, %v255_v19  ;;  %v325_v51 = vmul.f32 %v8034_v42, %v255_v19  ;;  %v308_v45 = vadd.f32 %v306_v49, %v284_v50  ;;  %v309_v22 = vadd.f32 %v307_v58, %v285_v21  ;;  %v555_v49 = vpop.permute.xlu1 %554  ;;  %v8053_v40 = vld [vmem:[#allocation79_spill] sm:$0xff]  ;;  %v8055_v42 = vld [vmem:[#allocation81_spill] sm:$0xff] }
 0x141   :  { %v314_v53 = vadd.f32 %v312_v36, %v290_v4  ;;  %v315_v26 = vadd.f32 %v313_v27, %v291_v12  ;;  %v320_v38 = vadd.f32 %v318_v9, %v296_v7  ;;  %v326_v20 = vadd.f32 %v324_v54, %v302_v28 }
 0x142   :  { %v321_v1 = vadd.f32 %v319_v34, %v297_v18  ;;  %v327_v10 = vadd.f32 %v325_v51, %v303_v63  ;;  %v356_v14 = vsel %vm74_vm6, %v353_v41, %v355_v16  ;;  %v357_v19 = vsel %vm74_vm6, %v355_v16, %v353_v41 }
 0x143   :  { %v362_v2 = vsel %vm81_vm7, %v359_v37, %v361_v61  ;;  %v363_v55 = vsel %vm81_vm7, %v361_v61, %v359_v37  ;;  %v8039_v3 = vstv %s8035_s4  ;;  %v8041_v31 = vstv %s8036_s13  ;;  %v8056_v37 = vld [vmem:[#allocation82_spill] sm:$0xff]  ;;  %s8092_s4 = sld [smem:[#allocation31_spill]]  ;;  %s8095_s13 = sld [smem:[#allocation32_spill]] }
 0x144   :  { %v364_v52 = vsel %vm3628_vm8, %v362_v2, %v357_v19  ;;  %v365_v5 = vsel %vm3658_vm9, %v363_v55, %v356_v14  ;;  %v366_v24 = vsel %vm3712_vm10, %v357_v19, %v362_v2  ;;  %v367_v30 = vsel %vm3718_vm11, %v356_v14, %v363_v55 }
 0x145   :  { %v370_v41 = vmul.f32 %v8039_v3, %v364_v52  ;;  %v8040_v16 = vmov %v8039_v3  ;;  %v376_v50 = vmul.f32 %v8041_v31, %v364_v52  ;;  %v8042_v13 = vmov %v8041_v31 }
 0x146   :  { %v371_v23 = vmul.f32 %v8040_v16, %v365_v5  ;;  %v377_v21 = vmul.f32 %v8042_v13, %v365_v5  ;;  %v8043_v46 = vstv %s8037_s1  ;;  %v8045_v47 = vstv %s8038_s8  ;;  %s8106_s1 = sld [smem:[#allocation33_spill]]  ;;  %s8107_s8 = sld [smem:[#allocation34_spill]] }
 0x147   :  { %v382_v4 = vmul.f32 %v8043_v46, %v364_v52  ;;  %v8044_v33 = vmov %v8043_v46  ;;  %v388_v7 = vmul.f32 %v8045_v47, %v364_v52  ;;  %v8046_v32 = vmov %v8045_v47 }
 0x148   :  { %v383_v12 = vmul.f32 %v8044_v33, %v365_v5  ;;  %v389_v18 = vmul.f32 %v8046_v32, %v365_v5  ;;  %v372_v62 = vadd.f32 %v370_v41, %v308_v45  ;;  %v373_v28 = vadd.f32 %v371_v23, %v309_v22  ;;  %v8057_v45 = vld [vmem:[#allocation83_spill] sm:$0xff]  ;;  %v559_v33 = vpop.permute.xlu0 %558 }
 0x149   :  { %v378_v17 = vadd.f32 %v376_v50, %v314_v53  ;;  %v379_v63 = vadd.f32 %v377_v21, %v315_v26  ;;  %v384_v59 = vadd.f32 %v382_v4, %v320_v38  ;;  %v390_v29 = vadd.f32 %v388_v7, %v326_v20  ;;  %v8058_v53 = vld [vmem:[#allocation84_spill] sm:$0xff] }
 0x14a   :  { %v385_v58 = vadd.f32 %v383_v12, %v321_v1  ;;  %v391_v36 = vadd.f32 %v389_v18, %v327_v10  ;;  %v396_v27 = vadd.f32 %v8051_v57, %v372_v62  ;;  %v397_v9 = vadd.f32 %v8052_v0, %v373_v28  ;;  %v561_v12 = vpop.permute.xlu1 %560  ;;  %v8070_v0 = vld [vmem:[#allocation121_spill] sm:$0xff] }
 0x14b   :  { %v402_v34 = vadd.f32 %v8053_v40, %v378_v17  ;;  %v403_v54 = vadd.f32 %v8054_v39, %v379_v63  ;;  %v408_v51 = vadd.f32 %v8055_v42, %v384_v59  ;;  %v414_v22 = vadd.f32 %v8057_v45, %v390_v29  ;;  %v8067_v63 = vld [vmem:[#allocation127_spill] sm:$0xff]  ;;  %v8068_v59 = vld [vmem:[#allocation128_spill] sm:$0xff] }
 0x14c   :  { %v409_v61 = vadd.f32 %v8056_v37, %v385_v58  ;;  %v415_v26 = vadd.f32 %v8058_v53, %v391_v36  ;;  %v8059_v38 = vstv %s8047_s9  ;;  %v8061_v14 = vstv %s8048_s25  ;;  %v8069_v36 = vld [vmem:[#allocation129_spill] sm:$0xff]  ;;  %v8076_v42 = vld [vmem:[#allocation148_spill] sm:$0xff]  ;;  %s8108_s9 = sld [smem:[#allocation35_spill]]  ;;  %s8109_s25 = sld [smem:[#allocation36_spill]] }
 0x14d   :  { %v418_v1 = vmul.f32 %v8059_v38, %v366_v24  ;;  %v8060_v20 = vmov %v8059_v38  ;;  %v424_v19 = vmul.f32 %v8061_v14, %v366_v24  ;;  %v8062_v2 = vmov %v8061_v14  ;;  %v8078_v37 = vld [vmem:[#allocation124_spill] sm:$0xff]  ;;  %v8082_v38 = vld [vmem:[#allocation130_spill] sm:$0xff] }
 0x14e   :  { %v419_v10 = vmul.f32 %v8060_v20, %v367_v30  ;;  %v425_v55 = vmul.f32 %v8062_v2, %v367_v30  ;;  %v8063_v52 = vstv %s8049_s15  ;;  %v8065_v16 = vstv %s8050_s10  ;;  %v8084_v20 = vld [vmem:[#allocation139_spill] sm:$0xff]  ;;  %s8126_s15 = sld [smem:[#allocation37_spill]]  ;;  %s8127_s10 = sld [smem:[#allocation39_spill]] }
 0x14f   :  { %v430_v5 = vmul.f32 %v8063_v52, %v366_v24  ;;  %v8064_v3 = vmov %v8063_v52  ;;  %v436_v23 = vmul.f32 %v8065_v16, %v366_v24  ;;  %v8066_v31 = vmov %v8065_v16  ;;  %v665_v52 = vpop.permute.xlu0 %664  ;;  %v8091_v16 = vld [vmem:[#allocation137_spill] sm:$0xff] }
 0x150   :  { %v431_v41 = vmul.f32 %v8064_v3, %v367_v30  ;;  %v437_v50 = vmul.f32 %v8066_v31, %v367_v30  ;;  %v420_v13 = vadd.f32 %v418_v1, %v396_v27  ;;  %v421_v21 = vadd.f32 %v419_v10, %v397_v9  ;;  %v8090_v3 = vld [vmem:[#allocation134_spill] sm:$0xff]  ;;  %v8093_v31 = vld [vmem:[#allocation131_spill] sm:$0xff] }
 0x151   :  { %v426_v46 = vadd.f32 %v424_v19, %v402_v34  ;;  %v427_v4 = vadd.f32 %v425_v55, %v403_v54  ;;  %v432_v47 = vadd.f32 %v430_v5, %v408_v51  ;;  %v438_v32 = vadd.f32 %v436_v23, %v414_v22  ;;  %v8074_v34 = vld [vmem:[#allocation136_spill] sm:$0xff]  ;;  %v8080_v22 = vld [vmem:[#allocation126_spill] sm:$0xff]  ;;  %v667_v5 = vpop.permute.xlu1 %666 }
 0x152   :  { %v433_v7 = vadd.f32 %v431_v41, %v409_v61  ;;  %v439_v18 = vadd.f32 %v437_v50, %v415_v26  ;;  %v460_v62 = vadd.f32 %v4030_v25, %v420_v13  ;;  %v461_v28 = vadd.f32 %v4034_v43, %v421_v21  ;;  %v8086_v19 = vld [vmem:[#allocation152_spill] sm:$0xff]  ;;  %v8094_v13 = vld [vmem:[#allocation133_spill] sm:$0xff] }
 0x153   :  { %v466_v17 = vadd.f32 %v4038_v56, %v426_v46  ;;  %v467_v24 = vadd.f32 %v4042_v48, %v427_v4  ;;  %v472_v30 = vadd.f32 %v8067_v63, %v432_v47  ;;  %v478_v29 = vadd.f32 %v4069_v60, %v438_v32  ;;  %v8072_v56 = vld [vmem:[#allocation125_spill] sm:$0xff]  ;;  %v8096_v46 = vld [vmem:[#allocation135_spill] sm:$0xff]  ;;  %v8097_v47 = vld [vmem:[#allocation138_spill] sm:$0xff] }
 0x154   :  { %v473_v58 = vadd.f32 %v8068_v59, %v433_v7  ;;  %v479_v57 = vadd.f32 %v8069_v36, %v439_v18  ;;  %v556_v27 = vsel %vm74_vm6, %v553_v35, %v555_v49  ;;  %v557_v25 = vsel %vm74_vm6, %v555_v49, %v553_v35  ;;  %v8083_v49 = vld [vmem:[#allocation132_spill] sm:$0xff] }
 0x155   :  { %v8071_v43 = vrot.slane %v8070_v0, 2  ;;  %v8073_v40 = vrot.slane %v8072_v56, 2  ;;  %v8075_v39 = vrot.slane %v8074_v34, 2  ;;  %v8077_v51 = vrot.slane %v8076_v42, 2  ;;  %v671_v42 = vpop.permute.xlu0 %670 }
 0x156   :  { %v8079_v61 = vrot.slane %v8078_v37, 2  ;;  %v8081_v53 = vrot.slane %v8080_v22, 2  ;;  %v8085_v10 = vrot.slane %v8084_v20, 2  ;;  %v8087_v2 = vrot.slane %v8086_v19, 2  ;;  %v8110_v22 = vld [vmem:[#allocation85_spill] sm:$0xff]  ;;  %v8115_v19 = vld [vmem:[#allocation90_spill] sm:$0xff] }
 0x157   :  { %v490_v9 = vadd.f32 %v8071_v43, %v460_v62  ;;  %v502_v48 = vadd.f32 %v8073_v40, %v466_v17  ;;  %v514_v54 = vadd.f32 %v8075_v39, %v472_v30  ;;  %v526_v60 = vadd.f32 %v8077_v51, %v478_v29  ;;  %v673_v51 = vpop.permute.xlu1 %672 }
 0x158   :  { %v491_v45 = vadd.f32 %v8079_v61, %v461_v28  ;;  %v503_v26 = vadd.f32 %v8081_v53, %v467_v24  ;;  %v515_v14 = vadd.f32 %v8085_v10, %v473_v58  ;;  %v527_v55 = vadd.f32 %v8087_v2, %v479_v57  ;;  %v8114_v10 = vld [vmem:[#allocation89_spill] sm:$0xff] }
 0x159   :  { %v532_v35 = vadd.f32 %v8082_v38, %v490_v9  ;;  %v538_v1 = vadd.f32 %v8083_v49, %v502_v48  ;;  %v544_v41 = vadd.f32 %v8090_v3, %v514_v54  ;;  %v550_v23 = vadd.f32 %v8091_v16, %v526_v60 }
 0x15a   :  { %v533_v50 = vadd.f32 %v8093_v31, %v491_v45  ;;  %v539_v21 = vadd.f32 %v8094_v13, %v503_v26  ;;  %v545_v4 = vadd.f32 %v8096_v46, %v515_v14  ;;  %v551_v7 = vadd.f32 %v8097_v47, %v527_v55  ;;  %v8111_v26 = vld [vmem:[#allocation86_spill] sm:$0xff]  ;;  %v8116_v55 = vld [vmem:[#allocation91_spill] sm:$0xff] }
 0x15b   :  { %v562_v32 = vsel %vm81_vm7, %v559_v33, %v561_v12  ;;  %v563_v18 = vsel %vm81_vm7, %v561_v12, %v559_v33  ;;  %v8098_v63 = vstv %s8088_s22  ;;  %v8100_v29 = vstv %s8089_s26  ;;  %s8128_s22 = sld [smem:[#allocation41_spill]]  ;;  %s8129_s26 = sld [smem:[#allocation42_spill]] }
 0x15c   :  { %v564_v62 = vsel %vm3628_vm8, %v562_v32, %v557_v25  ;;  %v565_v28 = vsel %vm3658_vm9, %v563_v18, %v556_v27  ;;  %v566_v17 = vsel %vm3712_vm10, %v557_v25, %v562_v32  ;;  %v567_v24 = vsel %vm3718_vm11, %v556_v27, %v563_v18 }
 0x15d   :  { %v570_v30 = vmul.f32 %v8098_v63, %v564_v62  ;;  %v8099_v59 = vmov %v8098_v63  ;;  %v576_v36 = vmul.f32 %v8100_v29, %v564_v62  ;;  %v8101_v57 = vmov %v8100_v29 }
 0x15e   :  { %v571_v58 = vmul.f32 %v8099_v59, %v565_v28  ;;  %v577_v33 = vmul.f32 %v8101_v57, %v565_v28  ;;  %v8102_v12 = vstv %s8092_s4  ;;  %v8104_v56 = vstv %s8095_s13  ;;  %s8138_s4 = sld [smem:[#allocation43_spill]]  ;;  %s8139_s13 = sld [smem:[#allocation44_spill]] }
 0x15f   :  { %v582_v0 = vmul.f32 %v8102_v12, %v564_v62  ;;  %v8103_v43 = vmov %v8102_v12  ;;  %v588_v40 = vmul.f32 %v8104_v56, %v564_v62  ;;  %v8105_v48 = vmov %v8104_v56  ;;  %v4714_v12 = vpop.permute.xlu1 %1066 }
 0x160   :  { %v583_v9 = vmul.f32 %v8103_v43, %v565_v28  ;;  %v589_v34 = vmul.f32 %v8105_v48, %v565_v28  ;;  %v572_v25 = vadd.f32 %v570_v30, %v532_v35  ;;  %v573_v39 = vadd.f32 %v571_v58, %v533_v50  ;;  %v8112_v35 = vld [vmem:[#allocation87_spill] sm:$0xff] }
 0x161   :  { %v578_v54 = vadd.f32 %v576_v36, %v538_v1  ;;  %v579_v27 = vadd.f32 %v577_v33, %v539_v21  ;;  %v584_v60 = vadd.f32 %v582_v0, %v544_v41  ;;  %v590_v61 = vadd.f32 %v588_v40, %v550_v23  ;;  %v8113_v1 = vld [vmem:[#allocation88_spill] sm:$0xff]  ;;  %v4712_v33 = vpop.permute.xlu0 %1064 }
 0x162   :  { %v585_v37 = vadd.f32 %v583_v9, %v545_v4  ;;  %v591_v45 = vadd.f32 %v589_v34, %v551_v7  ;;  %v596_v53 = vadd.f32 %v8110_v22, %v572_v25  ;;  %v597_v38 = vadd.f32 %v8111_v26, %v573_v39  ;;  %v8117_v41 = vld [vmem:[#allocation92_spill] sm:$0xff] }
 0x163   :  { %v602_v49 = vadd.f32 %v8112_v35, %v578_v54  ;;  %v603_v20 = vadd.f32 %v8113_v1, %v579_v27  ;;  %v608_v14 = vadd.f32 %v8114_v10, %v584_v60  ;;  %v614_v3 = vadd.f32 %v8116_v55, %v590_v61  ;;  %v867_v55 = vpop.permute.xlu1 %866 }
 0x164   :  { %v609_v2 = vadd.f32 %v8115_v19, %v585_v37  ;;  %v615_v16 = vadd.f32 %v8117_v41, %v591_v45  ;;  %v8118_v23 = vstv %s8106_s1  ;;  %v8120_v21 = vstv %s8107_s8  ;;  %s8140_s1 = sld [smem:[#allocation45_spill]]  ;;  %s8141_s8 = sld [smem:[#allocation46_spill]] }
 0x165   :  { %v618_v31 = vmul.f32 %v8118_v23, %v566_v17  ;;  %v8119_v50 = vmov %v8118_v23  ;;  %v624_v46 = vmul.f32 %v8120_v21, %v566_v17  ;;  %v8121_v4 = vmov %v8120_v21 }
 0x166   :  { %v619_v13 = vmul.f32 %v8119_v50, %v567_v24  ;;  %v625_v47 = vmul.f32 %v8121_v4, %v567_v24  ;;  %v8122_v7 = vstv %s8108_s9  ;;  %v8124_v28 = vstv %s8109_s25  ;;  %s8184_s9 = sld [smem:[#allocation47_spill]]  ;;  %s8187_s25 = sld [smem:[#allocation48_spill]] }
 0x167   :  { %v630_v32 = vmul.f32 %v8122_v7, %v566_v17  ;;  %v8123_v18 = vmov %v8122_v7  ;;  %v636_v63 = vmul.f32 %v8124_v28, %v566_v17  ;;  %v8125_v30 = vmov %v8124_v28 }
 0x168   :  { %v631_v62 = vmul.f32 %v8123_v18, %v567_v24  ;;  %v637_v59 = vmul.f32 %v8125_v30, %v567_v24  ;;  %v620_v58 = vadd.f32 %v618_v31, %v596_v53  ;;  %v621_v29 = vadd.f32 %v619_v13, %v597_v38  ;;  %v8142_v31 = vld [vmem:[#allocation93_spill] sm:$0xff]  ;;  %v8143_v13 = vld [vmem:[#allocation94_spill] sm:$0xff] }
 0x169   :  { %v626_v36 = vadd.f32 %v624_v46, %v602_v49  ;;  %v627_v57 = vadd.f32 %v625_v47, %v603_v20  ;;  %v632_v0 = vadd.f32 %v630_v32, %v608_v14  ;;  %v638_v9 = vadd.f32 %v636_v63, %v614_v3  ;;  %v8144_v46 = vld [vmem:[#allocation95_spill] sm:$0xff]  ;;  %v8145_v47 = vld [vmem:[#allocation96_spill] sm:$0xff]  ;;  %v8146_v32 = vld [vmem:[#allocation97_spill] sm:$0xff] }
 0x16a   :  { %v633_v43 = vadd.f32 %v631_v62, %v609_v2  ;;  %v639_v17 = vadd.f32 %v637_v59, %v615_v16  ;;  %v668_v24 = vsel %vm74_vm6, %v665_v52, %v667_v5  ;;  %v669_v56 = vsel %vm74_vm6, %v667_v5, %v665_v52  ;;  %v865_v2 = vpop.permute.xlu0 %864  ;;  %v8147_v62 = vld [vmem:[#allocation98_spill] sm:$0xff]  ;;  %v8148_v63 = vld [vmem:[#allocation99_spill] sm:$0xff]  ;;  %v8149_v59 = vld [vmem:[#allocation100_spill] sm:$0xff] }
 0x16b   :  { %v674_v40 = vsel %vm81_vm7, %v671_v42, %v673_v51  ;;  %v675_v48 = vsel %vm81_vm7, %v673_v51, %v671_v42  ;;  %v8130_v27 = vstv %s8126_s15  ;;  %v8132_v37 = vstv %s8127_s10  ;;  %s8190_s15 = sld [smem:[#allocation49_spill]]  ;;  %s8193_s10 = sld [smem:[#allocation51_spill]] }
 0x16c   :  { %v676_v34 = vsel %vm3628_vm8, %v674_v40, %v669_v56  ;;  %v677_v25 = vsel %vm3658_vm9, %v675_v48, %v668_v24  ;;  %v678_v39 = vsel %vm3712_vm10, %v669_v56, %v674_v40  ;;  %v679_v54 = vsel %vm3718_vm11, %v668_v24, %v675_v48 }
 0x16d   :  { %v682_v52 = vmul.f32 %v8130_v27, %v676_v34  ;;  %v8131_v5 = vmov %v8130_v27  ;;  %v688_v61 = vmul.f32 %v8132_v37, %v676_v34  ;;  %v8133_v45 = vmov %v8132_v37 }
 0x16e   :  { %v683_v60 = vmul.f32 %v8131_v5, %v677_v25  ;;  %v689_v42 = vmul.f32 %v8133_v45, %v677_v25  ;;  %v8134_v51 = vstv %s8128_s22  ;;  %v8136_v38 = vstv %s8129_s26  ;;  %s8202_s22 = sld [smem:[#allocation52_spill]]  ;;  %s5236_s26 = sld [smem:[#allocation3 + $0xdb]] }
 0x16f   :  { %v694_v22 = vmul.f32 %v8134_v51, %v676_v34  ;;  %v8135_v53 = vmov %v8134_v51  ;;  %v700_v35 = vmul.f32 %v8136_v38, %v676_v34  ;;  %v8137_v49 = vmov %v8136_v38  ;;  %v873_v51 = vpop.permute.xlu1 %872 }
 0x170   :  { %v695_v26 = vmul.f32 %v8135_v53, %v677_v25  ;;  %v701_v1 = vmul.f32 %v8137_v49, %v677_v25  ;;  %v684_v20 = vadd.f32 %v682_v52, %v620_v58  ;;  %v685_v10 = vadd.f32 %v683_v60, %v621_v29 }
 0x171   :  { %v690_v14 = vadd.f32 %v688_v61, %v626_v36  ;;  %v691_v19 = vadd.f32 %v689_v42, %v627_v57  ;;  %v696_v3 = vadd.f32 %v694_v22, %v632_v0  ;;  %v702_v16 = vadd.f32 %v700_v35, %v638_v9  ;;  %v871_v42 = vpop.permute.xlu0 %870  ;;  %v8158_v35 = vld [vmem:[#allocation140_spill] sm:$0xff] }
 0x172   :  { %v697_v41 = vadd.f32 %v695_v26, %v633_v43  ;;  %v703_v23 = vadd.f32 %v701_v1, %v639_v17  ;;  %v708_v50 = vadd.f32 %v8142_v31, %v684_v20  ;;  %v709_v21 = vadd.f32 %v8143_v13, %v685_v10  ;;  %v8159_v1 = vld [vmem:[#allocation141_spill] sm:$0xff]  ;;  %v8160_v10 = vld [vmem:[#allocation142_spill] sm:$0xff] }
 0x173   :  { %v714_v4 = vadd.f32 %v8144_v46, %v690_v14  ;;  %v715_v7 = vadd.f32 %v8145_v47, %v691_v19  ;;  %v720_v18 = vadd.f32 %v8146_v32, %v696_v3  ;;  %v726_v30 = vadd.f32 %v8148_v63, %v702_v16  ;;  %v8161_v19 = vld [vmem:[#allocation143_spill] sm:$0xff]  ;;  %v8162_v3 = vld [vmem:[#allocation144_spill] sm:$0xff] }
 0x174   :  { %v721_v28 = vadd.f32 %v8147_v62, %v697_v41  ;;  %v727_v58 = vadd.f32 %v8149_v59, %v703_v23  ;;  %v8150_v29 = vstv %s8138_s4  ;;  %v8152_v43 = vstv %s8139_s13  ;;  %v8163_v41 = vld [vmem:[#allocation145_spill] sm:$0xff]  ;;  %v8164_v23 = vld [vmem:[#allocation146_spill] sm:$0xff]  ;;  %v8168_v62 = vld [vmem:[#allocation160_spill] sm:$0xff]  ;;  %s5244_s4 = sld [smem:[#allocation3 + $0xdc]]  ;;  %s5246_s13 = sld [smem:[#allocation3 + $0xdd]] }
 0x175   :  { %v730_v36 = vmul.f32 %v8150_v29, %v678_v39  ;;  %v8151_v57 = vmov %v8150_v29  ;;  %v736_v9 = vmul.f32 %v8152_v43, %v678_v39  ;;  %v8153_v17 = vmov %v8152_v43  ;;  %v8172_v29 = vld [vmem:[#allocation166_spill] sm:$0xff]  ;;  %v8176_v43 = vld [vmem:[#allocation161_spill] sm:$0xff] }
 0x176   :  { %v731_v0 = vmul.f32 %v8151_v57, %v679_v54  ;;  %v737_v24 = vmul.f32 %v8153_v17, %v679_v54  ;;  %v8154_v56 = vstv %s8140_s1  ;;  %v8156_v25 = vstv %s8141_s8  ;;  %s5254_s1 = sld [smem:[#allocation3 + $0xde]]  ;;  %s5256_s8 = sld [smem:[#allocation3 + $0xdf]] }
 0x177   :  { %v742_v40 = vmul.f32 %v8154_v56, %v678_v39  ;;  %v8155_v48 = vmov %v8154_v56  ;;  %v748_v27 = vmul.f32 %v8156_v25, %v678_v39  ;;  %v8157_v52 = vmov %v8156_v25  ;;  %v8180_v56 = vld [vmem:[#allocation167_spill] sm:$0xff]  ;;  %v979_v25 = vpop.permute.xlu1 %978 }
 0x178   :  { %v743_v34 = vmul.f32 %v8155_v48, %v679_v54  ;;  %v749_v5 = vmul.f32 %v8157_v52, %v679_v54  ;;  %v732_v60 = vadd.f32 %v730_v36, %v708_v50  ;;  %v733_v37 = vadd.f32 %v731_v0, %v709_v21  ;;  %v8165_v50 = vld [vmem:[#allocation147_spill] sm:$0xff] }
 0x179   :  { %v738_v61 = vadd.f32 %v736_v9, %v714_v4  ;;  %v739_v45 = vadd.f32 %v737_v24, %v715_v7  ;;  %v744_v22 = vadd.f32 %v742_v40, %v720_v18  ;;  %v750_v26 = vadd.f32 %v748_v27, %v726_v30  ;;  %v8166_v7 = vld [vmem:[#allocation158_spill] sm:$0xff]  ;;  %v8178_v24 = vld [vmem:[#allocation163_spill] sm:$0xff]  ;;  %v8182_v27 = vld [vmem:[#allocation149_spill] sm:$0xff] }
 0x17a   :  { %v745_v53 = vadd.f32 %v743_v34, %v721_v28  ;;  %v751_v38 = vadd.f32 %v749_v5, %v727_v58  ;;  %v772_v49 = vadd.f32 %v8158_v35, %v732_v60  ;;  %v773_v20 = vadd.f32 %v8159_v1, %v733_v37  ;;  %v8170_v30 = vld [vmem:[#allocation162_spill] sm:$0xff]  ;;  %v977_v34 = vpop.permute.xlu0 %976  ;;  %v8183_v5 = vld [vmem:[#allocation151_spill] sm:$0xff] }
 0x17b   :  { %v778_v14 = vadd.f32 %v8160_v10, %v738_v61  ;;  %v779_v39 = vadd.f32 %v8161_v19, %v739_v45  ;;  %v784_v54 = vadd.f32 %v8162_v3, %v744_v22  ;;  %v790_v31 = vadd.f32 %v8164_v23, %v750_v26  ;;  %v8185_v37 = vld [vmem:[#allocation154_spill] sm:$0xff]  ;;  %v8186_v45 = vld [vmem:[#allocation156_spill] sm:$0xff] }
 0x17c   :  { %v785_v16 = vadd.f32 %v8163_v41, %v745_v53  ;;  %v791_v13 = vadd.f32 %v8165_v50, %v751_v38  ;;  %v4784_v21 = vsel %vm74_vm6, %v4712_v33, %v4714_v12  ;;  %v4790_v46 = vsel %vm74_vm6, %v4714_v12, %v4712_v33  ;;  %v8174_v33 = vld [vmem:[#allocation159_spill] sm:$0xff]  ;;  %v8188_v53 = vld [vmem:[#allocation150_spill] sm:$0xff]  ;;  %v8189_v38 = vld [vmem:[#allocation153_spill] sm:$0xff]  ;;  %8313 = sst [smem:[#allocation59_spill]] %s5256_s8  ;;  %s5456_s8 = sld [smem:[#allocation3 + $0xe9]] }
 0x17d   :  { %v868_v4 = vsel %vm74_vm6, %v865_v2, %v867_v55  ;;  %v869_v47 = vsel %vm74_vm6, %v867_v55, %v865_v2  ;;  %v8167_v32 = vrot.slane %v8166_v7, 4  ;;  %v8169_v28 = vrot.slane %v8168_v62, 4 }
 0x17e   :  { %v8171_v59 = vrot.slane %v8170_v30, 4  ;;  %v8173_v36 = vrot.slane %v8172_v29, 4  ;;  %v8175_v12 = vrot.slane %v8174_v33, 4  ;;  %v8177_v9 = vrot.slane %v8176_v43, 4 }
 0x17f   :  { %v802_v18 = vadd.f32 %v8167_v32, %v772_v49  ;;  %v814_v63 = vadd.f32 %v8169_v28, %v778_v14  ;;  %v8179_v2 = vrot.slane %v8178_v24, 4  ;;  %v8181_v40 = vrot.slane %v8180_v56, 4  ;;  %v8191_v49 = vld [vmem:[#allocation155_spill] sm:$0xff]  ;;  %v8204_v56 = vld [vmem:[#allocation102_spill] sm:$0xff] }
 0x180   :  { %v826_v58 = vadd.f32 %v8171_v59, %v784_v54  ;;  %v838_v57 = vadd.f32 %v8173_v36, %v790_v31  ;;  %v803_v0 = vadd.f32 %v8175_v12, %v773_v20  ;;  %v815_v17 = vadd.f32 %v8177_v9, %v779_v39  ;;  %v8192_v20 = vld [vmem:[#allocation157_spill] sm:$0xff] }
 0x181   :  { %v827_v55 = vadd.f32 %v8179_v2, %v785_v16  ;;  %v839_v48 = vadd.f32 %v8181_v40, %v791_v13  ;;  %v844_v52 = vadd.f32 %v8182_v27, %v802_v18  ;;  %v850_v60 = vadd.f32 %v8183_v5, %v814_v63  ;;  %v8203_v2 = vld [vmem:[#allocation101_spill] sm:$0xff] }
 0x182   :  { %v856_v61 = vadd.f32 %v8185_v37, %v826_v58  ;;  %v862_v22 = vadd.f32 %v8186_v45, %v838_v57  ;;  %v845_v26 = vadd.f32 %v8188_v53, %v803_v0  ;;  %v851_v35 = vadd.f32 %v8189_v38, %v815_v17  ;;  %v985_v57 = vpop.permute.xlu1 %984  ;;  %v8210_v53 = vld [vmem:[#allocation108_spill] sm:$0xff] }
 0x183   :  { %v857_v1 = vadd.f32 %v8191_v49, %v827_v55  ;;  %v863_v10 = vadd.f32 %v8192_v20, %v839_v48  ;;  %v874_v14 = vsel %vm81_vm7, %v871_v42, %v873_v51  ;;  %v875_v19 = vsel %vm81_vm7, %v873_v51, %v871_v42  ;;  %v8205_v48 = vld [vmem:[#allocation103_spill] sm:$0xff] }
 0x184   :  { %v980_v39 = vsel %vm74_vm6, %v977_v34, %v979_v25  ;;  %v981_v3 = vsel %vm74_vm6, %v979_v25, %v977_v34  ;;  %v876_v54 = vsel %vm3628_vm8, %v874_v14, %v869_v47  ;;  %v877_v41 = vsel %vm3658_vm9, %v875_v19, %v868_v4  ;;  %v8206_v25 = vld [vmem:[#allocation104_spill] sm:$0xff] }
 0x185   :  { %v878_v16 = vsel %vm3712_vm10, %v869_v47, %v874_v14  ;;  %v879_v23 = vsel %vm3718_vm11, %v868_v4, %v875_v19  ;;  %v8194_v31 = vstv %s8184_s9  ;;  %v8196_v13 = vstv %s8187_s25  ;;  %v983_v47 = vpop.permute.xlu0 %982  ;;  %s5258_s9 = sld [smem:[#allocation3 + $0xe0]]  ;;  %s5260_s25 = sld [smem:[#allocation3 + $0xe1]] }
 0x186   :  { %v882_v42 = vmul.f32 %v8194_v31, %v876_v54  ;;  %v8195_v51 = vmov %v8194_v31  ;;  %v888_v7 = vmul.f32 %v8196_v13, %v876_v54  ;;  %v8197_v32 = vmov %v8196_v13 }
 0x187   :  { %v883_v50 = vmul.f32 %v8195_v51, %v877_v41  ;;  %v889_v18 = vmul.f32 %v8197_v32, %v877_v41  ;;  %v8198_v62 = vstv %s8190_s15  ;;  %v8200_v59 = vstv %s8193_s10  ;;  %v1073_v32 = vpop.permute.xlu1 %1072  ;;  %s5266_s15 = sld [smem:[#allocation3 + $0xe2]]  ;;  %s5268_s10 = sld [smem:[#allocation3 + $0xe3]] }
 0x188   :  { %v894_v28 = vmul.f32 %v8198_v62, %v876_v54  ;;  %v8199_v63 = vmov %v8198_v62  ;;  %v900_v58 = vmul.f32 %v8200_v59, %v876_v54  ;;  %v8201_v29 = vmov %v8200_v59 }
 0x189   :  { %v895_v30 = vmul.f32 %v8199_v63, %v877_v41  ;;  %v901_v36 = vmul.f32 %v8201_v29, %v877_v41  ;;  %v884_v33 = vadd.f32 %v882_v42, %v844_v52  ;;  %v885_v4 = vadd.f32 %v883_v50, %v845_v26  ;;  %v8207_v52 = vld [vmem:[#allocation105_spill] sm:$0xff] }
 0x18a   :  { %v890_v12 = vadd.f32 %v888_v7, %v850_v60  ;;  %v891_v0 = vadd.f32 %v889_v18, %v851_v35  ;;  %v896_v43 = vadd.f32 %v894_v28, %v856_v61  ;;  %v902_v17 = vadd.f32 %v900_v58, %v862_v22  ;;  %v8208_v60 = vld [vmem:[#allocation106_spill] sm:$0xff]  ;;  %v8209_v61 = vld [vmem:[#allocation107_spill] sm:$0xff]  ;;  %v1071_v7 = vpop.permute.xlu0 %1070 }
 0x18b   :  { %v897_v9 = vadd.f32 %v895_v30, %v857_v1  ;;  %v903_v24 = vadd.f32 %v901_v36, %v863_v10  ;;  %v908_v55 = vadd.f32 %v8203_v2, %v884_v33  ;;  %v909_v40 = vadd.f32 %v8204_v56, %v885_v4  ;;  %8314 = sst [smem:[#allocation60_spill]] %s5258_s9  ;;  %s5424_s9 = sld [smem:[#allocation3 + $0xc9]] }
 0x18c   :  { %v914_v34 = vadd.f32 %v8205_v48, %v890_v12  ;;  %v915_v27 = vadd.f32 %v8206_v25, %v891_v0  ;;  %v920_v5 = vadd.f32 %v8207_v52, %v896_v43  ;;  %v926_v45 = vadd.f32 %v8209_v61, %v902_v17  ;;  %8315 = sst [smem:[#allocation61_spill]] %s5260_s25  ;;  %s5422_s25 = sld [smem:[#allocation3 + $0xc8]] }
 0x18d   :  { %v921_v37 = vadd.f32 %v8208_v60, %v897_v9  ;;  %v927_v26 = vadd.f32 %v8210_v53, %v903_v24  ;;  %v8211_v22 = vstv %s4240_s11  ;;  %v8213_v1 = vstv %s4242_s29  ;;  %s5220_s11 = sld [smem:[#allocation3 + $0xd4]]  ;;  %s5222_s29 = sld [smem:[#allocation3 + $0xd5]] }
 0x18e   :  { %v930_v38 = vmul.f32 %v8211_v22, %v878_v16  ;;  %v8212_v35 = vmov %v8211_v22  ;;  %v936_v20 = vmul.f32 %v8213_v1, %v878_v16  ;;  %v8214_v10 = vmov %v8213_v1  ;;  %8316 = sst [smem:[#allocation40_spill]] %s5266_s15  ;;  %s5401_s15 = sld [smem:[#allocation3 + $0x103]] }
 0x18f   :  { %v931_v49 = vmul.f32 %v8212_v35, %v879_v23  ;;  %v937_v14 = vmul.f32 %v8214_v10, %v879_v23  ;;  %v8215_v19 = vstv %s8202_s22  ;;  %v8217_v42 = vstv %s4250_s27  ;;  %s8253_s27 = sld [smem:[#allocation55_spill]]  ;;  %8317 = sst [smem:[#allocation62_spill]] %s5268_s10 }
 0x190   :  { %v942_v54 = vmul.f32 %v8215_v19, %v878_v16  ;;  %v8216_v41 = vmov %v8215_v19  ;;  %v948_v51 = vmul.f32 %v8217_v42, %v878_v16  ;;  %v8218_v50 = vmov %v8217_v42  ;;  %s5288_s22 = sld [smem:[#allocation3 + $0xc0]]  ;;  %s5360_s10 = sld [smem:[#allocation3 + $0xa2]] }
 0x191   :  { %v943_v31 = vmul.f32 %v8216_v41, %v879_v23  ;;  %v949_v13 = vmul.f32 %v8218_v50, %v879_v23  ;;  %v932_v18 = vadd.f32 %v930_v38, %v908_v55  ;;  %v933_v62 = vadd.f32 %v931_v49, %v909_v40  ;;  %v8227_v38 = vld [vmem:[#allocation109_spill] sm:$0xff]  ;;  %v8228_v49 = vld [vmem:[#allocation110_spill] sm:$0xff]  ;;  %8345 = sst [smem:[#allocation28_spill]] %s5424_s9  ;;  %s5438_s9 = sld [smem:[#allocation3 + $0xca]] }
 0x192   :  { %v938_v28 = vadd.f32 %v936_v20, %v914_v34  ;;  %v939_v63 = vadd.f32 %v937_v14, %v915_v27  ;;  %v944_v30 = vadd.f32 %v942_v54, %v920_v5  ;;  %v950_v58 = vadd.f32 %v948_v51, %v926_v45  ;;  %v8229_v20 = vld [vmem:[#allocation111_spill] sm:$0xff]  ;;  %v8230_v14 = vld [vmem:[#allocation112_spill] sm:$0xff]  ;;  %v8231_v54 = vld [vmem:[#allocation113_spill] sm:$0xff]  ;;  %8344 = sst [smem:[#allocation27_spill]] %s5422_s25 }
 0x193   :  { %v945_v59 = vadd.f32 %v943_v31, %v921_v37  ;;  %v951_v29 = vadd.f32 %v949_v13, %v927_v26  ;;  %v986_v16 = vsel %vm81_vm7, %v983_v47, %v985_v57  ;;  %v987_v23 = vsel %vm81_vm7, %v985_v57, %v983_v47  ;;  %v8232_v31 = vld [vmem:[#allocation114_spill] sm:$0xff]  ;;  %v8233_v51 = vld [vmem:[#allocation115_spill] sm:$0xff]  ;;  %v8234_v13 = vld [vmem:[#allocation116_spill] sm:$0xff]  ;;  %s5440_s25 = sld [smem:[#allocation3 + $0xcb]] }
 0x194   :  { %v1074_v36 = vsel %vm81_vm7, %v1071_v7, %v1073_v32  ;;  %v1075_v33 = vsel %vm81_vm7, %v1073_v32, %v1071_v7  ;;  %v988_v4 = vsel %vm3628_vm8, %v986_v16, %v981_v3  ;;  %v989_v12 = vsel %vm3658_vm9, %v987_v23, %v980_v39  ;;  %8342 = sst [smem:[#allocation26_spill]] %s5401_s15 }
 0x195   :  { %v990_v0 = vsel %vm3712_vm10, %v981_v3, %v986_v16  ;;  %v991_v43 = vsel %vm3718_vm11, %v980_v39, %v987_v23  ;;  %v8219_v9 = vstv %s4256_s14  ;;  %v8221_v24 = vstv %s4258_s17  ;;  %s8287_s17 = sld [smem:[#allocation57_spill]]  ;;  %s8288_s14 = sld [smem:[#allocation58_spill]] }
 0x196   :  { %v994_v47 = vmul.f32 %v8219_v9, %v988_v4  ;;  %v8220_v57 = vmov %v8219_v9  ;;  %v1000_v2 = vmul.f32 %v8221_v24, %v988_v4  ;;  %v8222_v55 = vmov %v8221_v24  ;;  %8318 = sst [smem:[#allocation50_spill]] %s5288_s22 }
 0x197   :  { %v995_v17 = vmul.f32 %v8220_v57, %v989_v12  ;;  %v1001_v56 = vmul.f32 %v8222_v55, %v989_v12  ;;  %v8223_v40 = vstv %s4264_s12  ;;  %v8225_v27 = vstv %s4266_s24  ;;  %s8307_s24 = smov 16   ;;  %s5226_s12 = sld [smem:[#allocation3 + $0xd6]] }
 0x198   :  { %v1006_v48 = vmul.f32 %v8223_v40, %v988_v4  ;;  %v8224_v34 = vmov %v8223_v40  ;;  %v1012_v52 = vmul.f32 %v8225_v27, %v988_v4  ;;  %v8226_v5 = vmov %v8225_v27  ;;  %8334 = sst [smem:[#allocation22_spill]] %s5360_s10  ;;  %s5399_s22 = sld [smem:[#allocation3 + $0x102]] }
 0x199   :  { %v1007_v25 = vmul.f32 %v8224_v34, %v989_v12  ;;  %v1013_v60 = vmul.f32 %v8226_v5, %v989_v12  ;;  %v996_v3 = vadd.f32 %v994_v47, %v932_v18  ;;  %v997_v37 = vadd.f32 %v995_v17, %v933_v62  ;;  %8347 = sst [smem:[#allocation29_spill]] %s5440_s25  ;;  %s5607_s10 = sld [smem:[#allocation3 + $0x107]] }
 0x19a   :  { %v1002_v39 = vadd.f32 %v1000_v2, %v938_v28  ;;  %v1003_v61 = vadd.f32 %v1001_v56, %v939_v63  ;;  %v1008_v45 = vadd.f32 %v1006_v48, %v944_v30  ;;  %v1014_v26 = vadd.f32 %v1012_v52, %v950_v58  ;;  %s5658_s15 = sld [smem:[#allocation3 + $0x10a]]  ;;  %s5686_s25 = sld [smem:[#allocation3 + $0x93]] }
 0x19b   :  { %v1009_v53 = vadd.f32 %v1007_v25, %v945_v59  ;;  %v1015_v22 = vadd.f32 %v1013_v60, %v951_v29  ;;  %v1020_v35 = vadd.f32 %v8227_v38, %v996_v3  ;;  %v1021_v1 = vadd.f32 %v8228_v49, %v997_v37 }
 0x19c   :  { %v1026_v10 = vadd.f32 %v8229_v20, %v1002_v39  ;;  %v1027_v19 = vadd.f32 %v8230_v14, %v1003_v61  ;;  %v1032_v41 = vadd.f32 %v8231_v54, %v1008_v45  ;;  %v1038_v50 = vadd.f32 %v8233_v51, %v1014_v26  ;;  %v1179_v20 = vpop.permute.xlu1 %1178 }
 0x19d   :  { %v1033_v42 = vadd.f32 %v8232_v31, %v1009_v53  ;;  %v1039_v7 = vadd.f32 %v8234_v13, %v1015_v22  ;;  %v8235_v32 = vstv %s4274_s7  ;;  %v8237_v63 = vstv %s4284_s23  ;;  %v8256_v13 = vld [vmem:[#allocation172_spill] sm:$0xff]  ;;  %s5202_s7 = sld [smem:[#allocation3 + $0xd0]]  ;;  %s5228_s23 = sld [smem:[#allocation3 + $0xd7]] }
 0x19e   :  { %v1042_v18 = vmul.f32 %v8235_v32, %v990_v0  ;;  %v8236_v62 = vmov %v8235_v32  ;;  %v1048_v30 = vmul.f32 %v8237_v63, %v990_v0  ;;  %v8238_v59 = vmov %v8237_v63  ;;  %v8260_v63 = vld [vmem:[#allocation174_spill] sm:$0xff]  ;;  %8341 = sst [smem:[#allocation25_spill]] %s5399_s22  ;;  %s5660_s22 = sld [smem:[#allocation3 + $0x10b]] }
 0x19f   :  { %v1043_v28 = vmul.f32 %v8236_v62, %v991_v43  ;;  %v1049_v58 = vmul.f32 %v8238_v59, %v991_v43  ;;  %v8239_v29 = vstv %s4312_s18  ;;  %v8241_v12 = vstv %s4314_s5  ;;  %s8251_s18 = sld [smem:[#allocation53_spill]]  ;;  %s8308_s5 = smov 112  }
 0x1a0   :  { %v1054_v16 = vmul.f32 %v8239_v29, %v990_v0  ;;  %v8240_v23 = vmov %v8239_v29  ;;  %v1060_v9 = vmul.f32 %v8241_v12, %v990_v0  ;;  %v8242_v47 = vmov %v8241_v12  ;;  %8375 = sst [smem:[#allocation45_spill]] %s5607_s10  ;;  %s5642_s10 = sld [smem:[#allocation3 + $0x109]] }
 0x1a1   :  { %v1055_v4 = vmul.f32 %v8240_v23, %v991_v43  ;;  %v1061_v57 = vmul.f32 %v8242_v47, %v991_v43  ;;  %v1044_v17 = vadd.f32 %v1042_v18, %v1020_v35  ;;  %v1045_v24 = vadd.f32 %v1043_v28, %v1021_v1  ;;  %v8258_v18 = vld [vmem:[#allocation173_spill] sm:$0xff]  ;;  %v8264_v23 = vld [vmem:[#allocation176_spill] sm:$0xff] }
 0x1a2   :  { %v1050_v2 = vadd.f32 %v1048_v30, %v1026_v10  ;;  %v1051_v55 = vadd.f32 %v1049_v58, %v1027_v19  ;;  %v1056_v56 = vadd.f32 %v1054_v16, %v1032_v41  ;;  %v1062_v48 = vadd.f32 %v1060_v9, %v1038_v50  ;;  %v8262_v58 = vld [vmem:[#allocation175_spill] sm:$0xff]  ;;  %v8266_v9 = vld [vmem:[#allocation177_spill] sm:$0xff] }
 0x1a3   :  { %v1057_v40 = vadd.f32 %v1055_v4, %v1033_v42  ;;  %v1063_v34 = vadd.f32 %v1061_v57, %v1039_v7  ;;  %v1076_v0 = vsel %vm3628_vm8, %v1074_v36, %v4790_v46  ;;  %v1077_v43 = vsel %vm3658_vm9, %v1075_v33, %v4784_v21  ;;  %v8254_v42 = vld [vmem:[#allocation171_spill] sm:$0xff] }
 0x1a4   :  { %v1078_v25 = vsel %vm3712_vm10, %v4790_v46, %v1074_v36  ;;  %v1079_v27 = vsel %vm3718_vm11, %v4784_v21, %v1075_v33  ;;  %v8243_v52 = vstv %s4319_s20  ;;  %v8245_v37 = vstv %s4321_s3  ;;  %v1177_v36 = vpop.permute.xlu0 %1176  ;;  %s8252_s3 = sld [smem:[#allocation54_spill]]  ;;  %s5230_s20 = sld [smem:[#allocation3 + $0xd8]] }
 0x1a5   :  { %v1082_v5 = vmul.f32 %v8243_v52, %v1076_v0  ;;  %v8244_v60 = vmov %v8243_v52  ;;  %v1088_v39 = vmul.f32 %v8245_v37, %v1076_v0  ;;  %v8246_v61 = vmov %v8245_v37  ;;  %8393 = sst [smem:[#allocation52_spill]] %s5660_s22 }
 0x1a6   :  { %v1083_v3 = vmul.f32 %v8244_v60, %v1077_v43  ;;  %v1089_v45 = vmul.f32 %v8246_v61, %v1077_v43  ;;  %v8247_v53 = vstv %s4330_s30  ;;  %v8249_v35 = vstv %s4332_s6  ;;  %s8286_s6 = sld [smem:[#allocation56_spill]]  ;;  %s5204_s30 = sld [smem:[#allocation3 + $0xd1]] }
 0x1a7   :  { %v1094_v26 = vmul.f32 %v8247_v53, %v1076_v0  ;;  %v8248_v22 = vmov %v8247_v53  ;;  %v1100_v49 = vmul.f32 %v8249_v35, %v1076_v0  ;;  %v8250_v1 = vmov %v8249_v35  ;;  %8401 = sst [smem:[#allocation56_spill]] %s5686_s25  ;;  %s6234_s25 = sld [smem:[#allocation3 + $0xfb]] }
 0x1a8   :  { %v1095_v38 = vmul.f32 %v8248_v22, %v1077_v43  ;;  %v1101_v46 = vmul.f32 %v8250_v1, %v1077_v43  ;;  %v1084_v10 = vadd.f32 %v1082_v5, %v1044_v17  ;;  %v1085_v21 = vadd.f32 %v1083_v3, %v1045_v24  ;;  %v8268_v17 = vld [vmem:[#allocation178_spill] sm:$0xff]  ;;  %v1185_v22 = vpop.permute.xlu1 %1184 }
 0x1a9   :  { %v1090_v33 = vadd.f32 %v1088_v39, %v1050_v2  ;;  %v1091_v14 = vadd.f32 %v1089_v45, %v1051_v55  ;;  %v1096_v19 = vadd.f32 %v1094_v26, %v1056_v56  ;;  %v1102_v41 = vadd.f32 %v1100_v49, %v1062_v48  ;;  %v1183_v26 = vpop.permute.xlu0 %1182 }
 0x1aa   :  { %v1097_v54 = vadd.f32 %v1095_v38, %v1057_v40  ;;  %v1103_v31 = vadd.f32 %v1101_v46, %v1063_v34  ;;  %v8255_v51 = vrot.slane %v8254_v42, 6  ;;  %v8257_v7 = vrot.slane %v8256_v13, 6 }
 0x1ab   :  { %v8259_v62 = vrot.slane %v8258_v18, 6  ;;  %v8261_v30 = vrot.slane %v8260_v63, 6  ;;  %v8263_v29 = vrot.slane %v8262_v58, 6  ;;  %v8265_v4 = vrot.slane %v8264_v23, 6 }
 0x1ac   :  { %v1114_v50 = vadd.f32 %v8255_v51, %v1084_v10  ;;  %v1115_v32 = vadd.f32 %v8257_v7, %v1085_v21  ;;  %v8267_v47 = vrot.slane %v8266_v9, 6  ;;  %v8269_v24 = vrot.slane %v8268_v17, 6 }
 0x1ad   :  { %v1126_v28 = vadd.f32 %v8259_v62, %v1090_v33  ;;  %v1127_v59 = vadd.f32 %v8261_v30, %v1091_v14  ;;  %v1138_v16 = vadd.f32 %v8263_v29, %v1096_v19  ;;  %v1139_v12 = vadd.f32 %v8265_v4, %v1097_v54 }
 0x1ae   :  { %v1150_v57 = vadd.f32 %v8267_v47, %v1102_v41  ;;  %v1151_v2 = vadd.f32 %v8269_v24, %v1103_v31  ;;  %v8270_v55 = vstv %s4348_s16  ;;  %v8272_v34 = vstv %s8251_s18  ;;  %s5232_s16 = sld [smem:[#allocation3 + $0xd9]] }
 0x1af   :  { %v1154_v56 = vmul.f32 %v8270_v55, %v1078_v25  ;;  %v8271_v40 = vmov %v8270_v55  ;;  %v1160_v0 = vmul.f32 %v8272_v34, %v1078_v25  ;;  %v8273_v43 = vmov %v8272_v34  ;;  %s5290_s18 = sld [smem:[#allocation3 + $0xc1]] }
 0x1b0   :  { %v1155_v48 = vmul.f32 %v8271_v40, %v1079_v27  ;;  %v1161_v52 = vmul.f32 %v8273_v43, %v1079_v27  ;;  %v8274_v5 = vstv %s8252_s3  ;;  %v8276_v39 = vstv %s8253_s27  ;;  %s5294_s3 = sld [smem:[#allocation3 + $0xc2]]  ;;  %s5296_s27 = sld [smem:[#allocation3 + $0xc3]] }
 0x1b1   :  { %v1166_v60 = vmul.f32 %v8274_v5, %v1078_v25  ;;  %v8275_v3 = vmov %v8274_v5  ;;  %v1172_v61 = vmul.f32 %v8276_v39, %v1078_v25  ;;  %v8277_v45 = vmov %v8276_v39 }
 0x1b2   :  { %v1167_v37 = vmul.f32 %v8275_v3, %v1079_v27  ;;  %v1173_v53 = vmul.f32 %v8277_v45, %v1079_v27  ;;  %v1156_v38 = vadd.f32 %v1154_v56, %v1114_v50  ;;  %v1157_v35 = vadd.f32 %v1155_v48, %v1115_v32  ;;  %v8290_v56 = vld [vmem:[#allocation118_spill] sm:$0xff]  ;;  %v8291_v48 = vld [vmem:[#allocation119_spill] sm:$0xff] }
 0x1b3   :  { %v1162_v49 = vadd.f32 %v1160_v0, %v1126_v28  ;;  %v1163_v1 = vadd.f32 %v1161_v52, %v1127_v59  ;;  %v1168_v46 = vadd.f32 %v1166_v60, %v1138_v16  ;;  %v1174_v21 = vadd.f32 %v1172_v61, %v1150_v57  ;;  %v8292_v0 = vld [vmem:[#allocation164_spill] sm:$0xff]  ;;  %v8293_v52 = vld [vmem:[#allocation165_spill] sm:$0xff]  ;;  %v8296_v61 = vld [vmem:[#allocation170_spill] sm:$0xff] }
 0x1b4   :  { %v1169_v10 = vadd.f32 %v1167_v37, %v1139_v12  ;;  %v1175_v33 = vadd.f32 %v1173_v53, %v1151_v2  ;;  %v1180_v25 = vsel %vm74_vm6, %v1177_v36, %v1179_v20  ;;  %v1181_v27 = vsel %vm74_vm6, %v1179_v20, %v1177_v36  ;;  %v8289_v2 = vld [vmem:[#allocation117_spill] sm:$0xff]  ;;  %v8294_v60 = vld [vmem:[#allocation168_spill] sm:$0xff] }
 0x1b5   :  { %v1186_v14 = vsel %vm81_vm7, %v1183_v26, %v1185_v22  ;;  %v1187_v19 = vsel %vm81_vm7, %v1185_v22, %v1183_v26  ;;  %v8278_v51 = vstv %s4364_s19  ;;  %v8280_v13 = vstv %s4366_s2  ;;  %v8295_v37 = vld [vmem:[#allocation169_spill] sm:$0xff]  ;;  %s8306_s2 = smov 127   ;;  %s5210_s19 = sld [smem:[#allocation3 + $0xd2]] }
 0x1b6   :  { %v1188_v54 = vsel %vm3628_vm8, %v1186_v14, %v1181_v27  ;;  %v1189_v41 = vsel %vm3658_vm9, %v1187_v19, %v1180_v25  ;;  %v1190_v31 = vsel %vm3712_vm10, %v1181_v27, %v1186_v14  ;;  %v1191_v42 = vsel %vm3718_vm11, %v1180_v25, %v1187_v19  ;;  %8319 = sst [smem:[#allocation63_spill]] %s5290_s18  ;;  %s5362_s18 = sld [smem:[#allocation3 + $0xa3]] }
 0x1b7   :  { %v1194_v36 = vmul.f32 %v8278_v51, %v1188_v54  ;;  %v8279_v20 = vmov %v8278_v51  ;;  %v1200_v7 = vmul.f32 %v8280_v13, %v1188_v54  ;;  %v8281_v32 = vmov %v8280_v13  ;;  %8320 = sst [smem:[#allocation64_spill]] %s5294_s3  ;;  %s5380_s3 = sld [smem:[#allocation3 + $0x101]] }
 0x1b8   :  { %v1195_v50 = vmul.f32 %v8279_v20, %v1189_v41  ;;  %v1201_v18 = vmul.f32 %v8281_v32, %v1189_v41  ;;  %v8282_v62 = vstv %s4372_s28  ;;  %v8284_v59 = vstv %s4374_s0  ;;  %s8305_s28 = smov 1   ;;  %s5212_s0 = sld [smem:[#allocation3 + $0xd3]] }
 0x1b9   :  { %v1206_v28 = vmul.f32 %v8282_v62, %v1188_v54  ;;  %v8283_v63 = vmov %v8282_v62  ;;  %v1212_v58 = vmul.f32 %v8284_v59, %v1188_v54  ;;  %v8285_v29 = vmov %v8284_v59  ;;  %8321 = sst [smem:[#allocation65_spill]] %s5296_s27  ;;  %s5378_s27 = sld [smem:[#allocation3 + $0x100]] }
 0x1ba   :  { %v1207_v30 = vmul.f32 %v8283_v63, %v1189_v41  ;;  %v1213_v16 = vmul.f32 %v8285_v29, %v1189_v41  ;;  %v1196_v23 = vadd.f32 %v1194_v36, %v1156_v38  ;;  %v1197_v4 = vadd.f32 %v1195_v50, %v1157_v35  ;;  %s8422_s22 = sld [smem:[#allocation64_spill]] }
 0x1bb   :  { %v1202_v12 = vadd.f32 %v1200_v7, %v1162_v49  ;;  %v1203_v9 = vadd.f32 %v1201_v18, %v1163_v1  ;;  %v1208_v47 = vadd.f32 %v1206_v28, %v1168_v46  ;;  %v1214_v17 = vadd.f32 %v1212_v58, %v1174_v21 }
 0x1bc   :  { %v1209_v57 = vadd.f32 %v1207_v30, %v1169_v10  ;;  %v1215_v24 = vadd.f32 %v1213_v16, %v1175_v33  ;;  %v1220_v55 = vadd.f32 %v8289_v2, %v1196_v23  ;;  %v1221_v40 = vadd.f32 %v8290_v56, %v1197_v4  ;;  %8335 = sst [smem:[#allocation23_spill]] %s5362_s18  ;;  %s5621_s18 = sld [smem:[#allocation3 + $0xa9]] }
 0x1bd   :  { %v1226_v34 = vadd.f32 %v8291_v48, %v1202_v12  ;;  %v1227_v43 = vadd.f32 %v8292_v0, %v1203_v9  ;;  %v1232_v5 = vadd.f32 %v8293_v52, %v1208_v47  ;;  %v1238_v39 = vadd.f32 %v8295_v37, %v1214_v17 }
 0x1be   :  { %v1233_v3 = vadd.f32 %v8294_v60, %v1209_v57  ;;  %v1239_v45 = vadd.f32 %v8296_v61, %v1215_v24  ;;  %v8297_v53 = vstv %s4380_s21  ;;  %v8299_v35 = vstv %s8286_s6  ;;  %s5234_s21 = sld [smem:[#allocation3 + $0xda]]  ;;  %s5308_s6 = sld [smem:[#allocation3 + $0xc4]] }
 0x1bf   :  { %v1242_v26 = vmul.f32 %v8297_v53, %v1190_v31  ;;  %v8298_v22 = vmov %v8297_v53  ;;  %v1248_v49 = vmul.f32 %v8299_v35, %v1190_v31  ;;  %v8300_v1 = vmov %v8299_v35  ;;  %8338 = sst [smem:[#allocation24_spill]] %s5378_s27  ;;  %s5637_s27 = sld [smem:[#allocation3 + $0xab]] }
 0x1c0   :  { %v1243_v38 = vmul.f32 %v8298_v22, %v1191_v42  ;;  %v1249_v46 = vmul.f32 %v8300_v1, %v1191_v42  ;;  %v8301_v10 = vstv %s8287_s17  ;;  %v8303_v27 = vstv %s8288_s14  ;;  %s5310_s17 = sld [smem:[#allocation3 + $0xc5]]  ;;  %s5317_s14 = sld [smem:[#allocation3 + $0xc6]] }
 0x1c1   :  { %v1254_v21 = vmul.f32 %v8301_v10, %v1190_v31  ;;  %v8302_v33 = vmov %v8301_v10  ;;  %v1260_v14 = vmul.f32 %v8303_v27, %v1190_v31  ;;  %v8304_v19 = vmov %v8303_v27 }
 0x1c2   :  { %v1255_v25 = vmul.f32 %v8302_v33, %v1191_v42  ;;  %v1261_v54 = vmul.f32 %v8304_v19, %v1191_v42  ;;  %v1244_v41 = vadd.f32 %v1242_v26, %v1220_v55  ;;  %v1245_v51 = vadd.f32 %v1243_v38, %v1221_v40  ;;  %8379 = sst [smem:[#allocation47_spill]] %s5621_s18  ;;  %s5684_s18 = sld [smem:[#allocation3 + $0x92]] }
 0x1c3   :  { %v1250_v36 = vadd.f32 %v1248_v49, %v1226_v34  ;;  %v1251_v20 = vadd.f32 %v1249_v46, %v1227_v43  ;;  %v1256_v50 = vadd.f32 %v1254_v21, %v1232_v5  ;;  %v1262_v7 = vadd.f32 %v1260_v14, %v1238_v39 }
 0x1c4   :  { %v1257_v13 = vadd.f32 %v1255_v25, %v1233_v3  ;;  %v1263_v32 = vadd.f32 %v1261_v54, %v1239_v45  ;;  %1264 = vst [vmem:[#allocation2] sm:$0x3] %v1244_v41  ;;  %1265 = vst [vmem:[#allocation2 + $0x8] sm:$0x3] %v1245_v51  ;;  %8322 = sst [smem:[#allocation66_spill]] %s5308_s6  ;;  %s5513_s6 = sld [smem:[#allocation3 + $0xcf]] }
 0x1c5   :  { %v1268_v18 = vrot.slane %v1250_v36, 6  ;;  %v1269_v62 = vrot.slane %v1251_v20, 6  ;;  %v1276_v28 = vrot.slane %v1256_v50, 4  ;;  %v1284_v30 = vrot.slane %v1262_v7, 2  ;;  %8386 = sst [smem:[#allocation49_spill]] %s5637_s27  ;;  %s8417_s27 = sld [smem:[#allocation62_spill]] }
 0x1c6   :  { %v1277_v63 = vrot.slane %v1257_v13, 4  ;;  %v1285_v59 = vrot.slane %v1263_v32, 2  ;;  %8323 = sst [smem:[#allocation67_spill]] %s5310_s17  ;;  %s5511_s17 = sld [smem:[#allocation3 + $0xce]] }
 0x1c7   :  { %1272 = vst [vmem:[#allocation2] sm:$0xc] %v1268_v18  ;;  %1273 = vst [vmem:[#allocation2 + $0x8] sm:$0xc] %v1269_v62  ;;  %8324 = sst [smem:[#allocation68_spill]] %s5317_s14  ;;  %s5527_s14 = sld [smem:[#allocation3 + $0xed]] }
 0x1c8   :  { %1280 = vst [vmem:[#allocation2] sm:$0x30] %v1276_v28  ;;  %1281 = vst [vmem:[#allocation2 + $0x8] sm:$0x30] %v1277_v63  ;;  %8400 = sst [smem:[#allocation55_spill]] %s5684_s18  ;;  %s6252_s18 = sld [smem:[#allocation3 + $0xb8]] }
 0x1c9   :  { %1288 = vst [vmem:[#allocation2] sm:$0xc0] %v1284_v30  ;;  %1289 = vst [vmem:[#allocation2 + $0x8] sm:$0xc0] %v1285_v59 }
 0x1ca   :  { %8358 = sst [smem:[#allocation36_spill]] %s5513_s6  ;;  %s5739_s6 = sld [smem:[#allocation3 + $0xb2]] }
 0x1cc   :  { %8357 = sst [smem:[#allocation35_spill]] %s5511_s17  ;;  %s8406_s17 = smov 16  }
 0x1cd   :  { %8359 = sst [smem:[#allocation37_spill]] %s5527_s14  ;;  %s5724_s14 = sld [smem:[#allocation3 + $0xf3]] }
 0x1d0   :  { %v1290_v31 = vld [vmem:[#allocation2] sm:$0xff]  ;;  %v1291_v42 = vld [vmem:[#allocation2 + $0x8] sm:$0xff] }
 0x1d1   :  { %v1292_v58 = vadd.f32 %v1291_v42, %v1290_v31  ;;  %v1295_v29 = vmul.f32 %v1290_v31, %v1290_v31  ;;  %v1296_v16 = vmul.f32 %v1291_v42, %v1291_v42 }
 0x1d3   :  { %1293 = vadd.xlane.f32.xlu0 %v1292_v58  ;;  %v1297_v23 = vadd.f32 %v1296_v16, %v1295_v29 }
 0x1d5   :  { %1298 = vadd.xlane.f32.xlu1 %v1297_v23 }
 0x260   :  { %v1294_v4 = vpop.xlane.xlu0 %1293 }
 0x261   :  { %v1300_v12 = vmul.f32 0.00390625, %v1294_v4 }
 0x262   :  { %v1299_v9 = vpop.xlane.xlu1 %1298 }
 0x263   :  { %v1301_v47 = vmul.f32 0.00390625, %v1299_v9  ;;  %v1302_v57 = vmul.f32 %v1300_v12, %v1300_v12  ;;  %v1305_v55 = vsub.f32 %v1290_v31, %v1300_v12  ;;  %v1306_v56 = vsub.f32 %v1291_v42, %v1300_v12 }
 0x265   :  { %v1303_v17 = vsub.f32 %v1301_v47, %v1302_v57 }
 0x267   :  { %v1304_v24 = vmax.f32 %v1303_v17, 0.0 }
 0x269   :  { %v1307_v2 = vadd.f32 1e-05, %v1304_v24 }
 0x26b   :  { %2888 = vrsqrt.f32 %v1307_v2 }
 0x275   :  { %v2889_v40 = vpop.eup %2888 }
 0x276   :  { %v1309_v48 = vmul.f32 %v2889_v40, %v1305_v55  ;;  %v1310_v34 = vmul.f32 %v2889_v40, %v1306_v56 }
 0x278   :  { %v1311_v0 = vmax.f32 %v1309_v48, 0.0  ;;  %v1312_v43 = vmax.f32 %v1310_v34, 0.0 }
 0x27a   :  { %1313 = vst [vmem:[#allocation2] sm:$0xff] %v1311_v0  ;;  %1314 = vst [vmem:[#allocation2 + $0x8] sm:$0xff] %v1312_v43 }
 0x281   :  { %v5048_v52 = vld [vmem:[#allocation2 + $0x8] sm:$0x3]  ;;  %v5050_v5 = vld [vmem:[#allocation2] sm:$0x3]  ;;  %v5060_v60 = vld [vmem:[#allocation2 + $0x8] sm:$0xc] }
 0x282   :  { %1319 = vrot.lane.b32.xlu1 %v5048_v52, %s8305_s28  ;;  %1317 = vrot.lane.b32.xlu0 %v5050_v5, %s8305_s28  ;;  %v5062_v3 = vld [vmem:[#allocation2] sm:$0xc]  ;;  %v1594_v37 = vrot.slane %v5060_v60, 2  ;;  %v5074_v61 = vld [vmem:[#allocation2 + $0x8] sm:$0x30] }
 0x283   :  { %v1593_v39 = vrot.slane %v5062_v3, 2  ;;  %v5076_v45 = vld [vmem:[#allocation2] sm:$0x30]  ;;  %v1906_v53 = vrot.slane %v5074_v61, 4  ;;  %v5086_v22 = vld [vmem:[#allocation2 + $0x8] sm:$0xc0] }
 0x284   :  { %v1905_v26 = vrot.slane %v5076_v45, 4  ;;  %v5088_v38 = vld [vmem:[#allocation2] sm:$0xc0]  ;;  %v5093_v35 = vrot.slane %v5086_v22, 6 }
 0x285   :  { %v5096_v49 = vrot.slane %v5088_v38, 6 }
 0x286   :  { %1325 = vrot.lane.b32.xlu1 %v5048_v52, %s8306_s2  ;;  %1323 = vrot.lane.b32.xlu0 %v5050_v5, %s8306_s2 }
 0x28a   :  { %1415 = vrot.lane.b32.xlu1 %v5048_v52, %s8307_s24  ;;  %1413 = vrot.lane.b32.xlu0 %v5050_v5, %s8307_s24 }
 0x28e   :  { %1599 = vrot.lane.b32.xlu1 %v1594_v37, %s8305_s28  ;;  %1597 = vrot.lane.b32.xlu0 %v1593_v39, %s8305_s28 }
 0x292   :  { %1605 = vrot.lane.b32.xlu1 %v1594_v37, %s8306_s2  ;;  %1603 = vrot.lane.b32.xlu0 %v1593_v39, %s8306_s2 }
 0x296   :  { %1421 = vrot.lane.b32.xlu1 %v5048_v52, %s8308_s5  ;;  %1419 = vrot.lane.b32.xlu0 %v5050_v5, %s8308_s5 }
 0x29a   :  { %1911 = vrot.lane.b32.xlu1 %v1906_v53, %s8305_s28  ;;  %1909 = vrot.lane.b32.xlu0 %v1905_v26, %s8305_s28 }
 0x29e   :  { %1917 = vrot.lane.b32.xlu1 %v1906_v53, %s8306_s2  ;;  %1915 = vrot.lane.b32.xlu0 %v1905_v26, %s8306_s2 }
 0x2a2   :  { %2223 = vrot.lane.b32.xlu1 %v5093_v35, %s8305_s28  ;;  %2221 = vrot.lane.b32.xlu0 %v5096_v49, %s8305_s28  ;;  %s5319_s28 = sld [smem:[#allocation3 + $0xc7]] }
 0x2a6   :  { %2229 = vrot.lane.b32.xlu1 %v5093_v35, %s8306_s2  ;;  %2227 = vrot.lane.b32.xlu0 %v5096_v49, %s8306_s2  ;;  %s5328_s2 = sld [smem:[#allocation3 + $0xe4]] }
 0x2a8   :  { %8325 = sst [smem:[#allocation38_spill]] %s5319_s28  ;;  %s5537_s28 = sld [smem:[#allocation3 + $0xef]] }
 0x2aa   :  { %1703 = vrot.lane.b32.xlu1 %v1594_v37, %s8307_s24  ;;  %1701 = vrot.lane.b32.xlu0 %v1593_v39, %s8307_s24 }
 0x2ac   :  { %8326 = sst [smem:[#allocation16_spill]] %s5328_s2  ;;  %s5535_s2 = sld [smem:[#allocation3 + $0xee]] }
 0x2ae   :  { %1709 = vrot.lane.b32.xlu1 %v1594_v37, %s8308_s5  ;;  %1707 = vrot.lane.b32.xlu0 %v1593_v39, %s8308_s5  ;;  %8361 = sst [smem:[#allocation41_spill]] %s5537_s28  ;;  %s5559_s28 = sld [smem:[#allocation3 + $0xa4]] }
 0x2b2   :  { %2015 = vrot.lane.b32.xlu1 %v1906_v53, %s8307_s24  ;;  %2013 = vrot.lane.b32.xlu0 %v1905_v26, %s8307_s24  ;;  %8360 = sst [smem:[#allocation39_spill]] %s5535_s2  ;;  %s5561_s2 = sld [smem:[#allocation3 + $0xa5]] }
 0x2b6   :  { %2021 = vrot.lane.b32.xlu1 %v1906_v53, %s8308_s5  ;;  %2019 = vrot.lane.b32.xlu0 %v1905_v26, %s8308_s5 }
 0x2f4   :  { %v1320_v1 = vpop.permute.xlu1 %1319  ;;  %v1318_v46 = vpop.permute.xlu0 %1317 }
 0x2f5   :  { %v1321_v33 = vsel %vm56_vm1, %v1318_v46, %v1320_v1  ;;  %v1322_v25 = vsel %vm56_vm1, %v1320_v1, %v1318_v46  ;;  %v1454_v46 = vstv %s5202_s7  ;;  %s5330_s7 = sld [smem:[#allocation3 + $0xe5]] }
 0x2f8   :  { %v1326_v10 = vpop.permute.xlu1 %1325  ;;  %v1324_v21 = vpop.permute.xlu0 %1323 }
 0x2f9   :  { %v1327_v27 = vsel %vm63_vm0, %v1324_v21, %v1326_v10  ;;  %v1328_v14 = vsel %vm63_vm0, %v1326_v10, %v1324_v21  ;;  %v1460_v10 = vstv %s5204_s30  ;;  %v1466_v21 = vstv %s5210_s19  ;;  %s5454_s30 = sld [smem:[#allocation3 + $0xe8]]  ;;  %s5488_s19 = sld [smem:[#allocation3 + $0xcc]] }
 0x2fa   :  { %v5124_v54 = vsel %vm3068_vm2, %v1327_v27, %v1322_v25  ;;  %v5128_v51 = vsel %vm3072_vm3, %v1328_v14, %v1321_v33  ;;  %v5144_v62 = vsel %vm3100_vm5, %v1321_v33, %v1328_v14  ;;  %v5148_v63 = vsel %vm3096_vm4, %v1322_v25, %v1327_v27 }
 0x2fb   :  { %1335 = vrot.lane.b32.xlu1 %v5128_v51, %s8307_s24  ;;  %1333 = vrot.lane.b32.xlu0 %v5124_v54, %s8307_s24  ;;  %v1472_v33 = vstv %s5212_s0  ;;  %v1742_v25 = vstv %s5220_s11  ;;  %8327 = sst [smem:[#allocation17_spill]] %s5330_s7  ;;  %s5338_s11 = sld [smem:[#allocation3 + $0xe6]] }
 0x2fc   :  { %v1416_v36 = vpop.permute.xlu1 %1415  ;;  %v1414_v20 = vpop.permute.xlu0 %1413  ;;  %v1754_v27 = vstv %s5222_s29  ;;  %v1766_v14 = vstv %s5226_s12  ;;  %s5340_s29 = sld [smem:[#allocation3 + $0xe7]]  ;;  %s5346_s12 = sld [smem:[#allocation3 + $0xa0]] }
 0x2fd   :  { %v1417_v50 = vsel %vm74_vm6, %v1414_v20, %v1416_v36  ;;  %v1418_v13 = vsel %vm74_vm6, %v1416_v36, %v1414_v20  ;;  %v1778_v36 = vstv %s5228_s23  ;;  %v2054_v20 = vstv %s5230_s20  ;;  %s5348_s23 = sld [smem:[#allocation3 + $0xa1]]  ;;  %s5471_s20 = sld [smem:[#allocation3 + $0xea]] }
 0x2fe   :  { %s5490_s0 = sld [smem:[#allocation3 + $0xcd]]  ;;  %s5581_s7 = sld [smem:[#allocation3 + $0xa7]] }
 0x2ff   :  { %1341 = vrot.lane.b32.xlu1 %v5128_v51, %s8308_s5  ;;  %1339 = vrot.lane.b32.xlu0 %v5124_v54, %s8308_s5  ;;  %8350 = sst [smem:[#allocation30_spill]] %s5454_s30  ;;  %s5473_s30 = sld [smem:[#allocation3 + $0xeb]] }
 0x300   :  { %v1600_v7 = vpop.permute.xlu1 %1599  ;;  %v1598_v32 = vpop.permute.xlu0 %1597  ;;  %8354 = sst [smem:[#allocation33_spill]] %s5488_s19 }
 0x301   :  { %v1601_v16 = vsel %vm56_vm1, %v1598_v32, %v1600_v7  ;;  %v1602_v23 = vsel %vm56_vm1, %v1600_v7, %v1598_v32  ;;  %v2090_v7 = vstv %s5236_s26  ;;  %8328 = sst [smem:[#allocation18_spill]] %s5338_s11  ;;  %s5592_s26 = sld [smem:[#allocation3 + $0x105]]  ;;  %v8372_v32 = vstv %s5246_s13 }
 0x302   :  { %8329 = sst [smem:[#allocation19_spill]] %s5340_s29  ;;  %v5569_v41 = vmul.f32 %v2090_v7, %v5076_v45  ;;  %s5635_s13 = sld [smem:[#allocation3 + $0xaa]] }
 0x303   :  { %1503 = vrot.lane.b32.xlu1 %v5144_v62, %s8307_s24  ;;  %1501 = vrot.lane.b32.xlu0 %v5148_v63, %s8307_s24  ;;  %8330 = sst [smem:[#allocation20_spill]] %s5346_s12  ;;  %s5605_s12 = sld [smem:[#allocation3 + $0x106]] }
 0x304   :  { %v1606_v30 = vpop.permute.xlu1 %1605  ;;  %v1604_v59 = vpop.permute.xlu0 %1603  ;;  %8331 = sst [smem:[#allocation21_spill]] %s5348_s23  ;;  %8364 = vst [vmem:[#allocation80_spill] sm:$0xff] %v5569_v41  ;;  %s8380_s23 = sld [smem:[#allocation59_spill]] }
 0x305   :  { %v1608_v31 = vsel %vm63_vm0, %v1606_v30, %v1604_v59  ;;  %v1607_v42 = vsel %vm63_vm0, %v1604_v59, %v1606_v30  ;;  %8351 = sst [smem:[#allocation31_spill]] %s5471_s20  ;;  %s5677_s11 = sld [smem:[#allocation3 + $0x91]] }
 0x306   :  { %v5168_v4 = vsel %vm3072_vm3, %v1608_v31, %v1601_v16  ;;  %v5172_v12 = vsel %vm3068_vm2, %v1607_v42, %v1602_v23  ;;  %v5208_v40 = vsel %vm3100_vm5, %v1601_v16, %v1608_v31  ;;  %v5216_v48 = vsel %vm3096_vm4, %v1602_v23, %v1607_v42  ;;  %8352 = sst [smem:[#allocation32_spill]] %s5473_s30  ;;  %s5699_s19 = sld [smem:[#allocation3 + $0xf1]] }
 0x307   :  { %1509 = vrot.lane.b32.xlu1 %v5144_v62, %s8308_s5  ;;  %1507 = vrot.lane.b32.xlu0 %v5148_v63, %s8308_s5  ;;  %v5394_v42 = vmul.f32 %v1766_v14, %v5062_v3  ;;  %v5420_v31 = vmul.f32 %v1778_v36, %v5062_v3  ;;  %v5436_v23 = vmul.f32 %v1778_v36, %v5060_v60  ;;  %8355 = sst [smem:[#allocation34_spill]] %s5490_s0  ;;  %s5697_s30 = sld [smem:[#allocation3 + $0xf0]] }
 0x308   :  { %v1422_v58 = vpop.permute.xlu1 %1421  ;;  %v1420_v29 = vpop.permute.xlu0 %1419  ;;  %v5466_v36 = vmul.f32 %v1472_v33, %v5050_v5  ;;  %8369 = sst [smem:[#allocation43_spill]] %s5592_s26  ;;  %s5722_s29 = sld [smem:[#allocation3 + $0xf2]] }
 0x309   :  { %v1423_v9 = vsel %vm81_vm7, %v1420_v29, %v1422_v58  ;;  %v1424_v47 = vsel %vm81_vm7, %v1422_v58, %v1420_v29  ;;  %v5391_v58 = vmul.f32 %v1466_v21, %v5048_v52  ;;  %8339 = vst [vmem:[#allocation70_spill] sm:$0xff] %v5394_v42  ;;  %8343 = vst [vmem:[#allocation72_spill] sm:$0xff] %v5420_v31  ;;  %8374 = sst [smem:[#allocation44_spill]] %s5605_s12  ;;  %s8414_s20 = sld [smem:[#allocation61_spill]] }
 0x30a   :  { %v5182_v57 = vsel %vm3628_vm8, %v1423_v9, %v1418_v13  ;;  %v5186_v17 = vsel %vm3658_vm9, %v1424_v47, %v1417_v50  ;;  %v5190_v24 = vsel %vm3712_vm10, %v1418_v13, %v1423_v9  ;;  %v5194_v2 = vsel %vm3718_vm11, %v1417_v50, %v1424_v47  ;;  %8346 = vst [vmem:[#allocation73_spill] sm:$0xff] %v5436_v23  ;;  %8385 = sst [smem:[#allocation48_spill]] %s5635_s13  ;;  %s8412_s26 = sld [smem:[#allocation60_spill]] }
 0x30b   :  { %1615 = vrot.lane.b32.xlu1 %v5168_v4, %s8307_s24  ;;  %1613 = vrot.lane.b32.xlu0 %v5172_v12, %s8307_s24  ;;  %v2066_v50 = vstv %s5232_s16  ;;  %v2078_v13 = vstv %s5234_s21  ;;  %v5358_v9 = vmul.f32 %v1742_v25, %v5060_v60  ;;  %v5370_v47 = vmul.f32 %v1460_v10, %v5048_v52  ;;  %s5525_s16 = sld [smem:[#allocation3 + $0xec]]  ;;  %s5579_s21 = sld [smem:[#allocation3 + $0xa6]] }
 0x30c   :  { %v1912_v55 = vpop.permute.xlu1 %1911  ;;  %v1910_v56 = vpop.permute.xlu0 %1909  ;;  %8397 = sst [smem:[#allocation54_spill]] %s5677_s11  ;;  %s5741_s0 = sld [smem:[#allocation3 + $0xb3]] }
 0x30d   :  { %v5264_v39 = vsel %vm56_vm1, %v1910_v56, %v1912_v55  ;;  %v5272_v53 = vsel %vm56_vm1, %v1912_v55, %v1910_v56  ;;  %8333 = vst [vmem:[#allocation122_spill] sm:$0xff] %v5358_v9  ;;  %v5365_v55 = vmul.f32 %v1454_v46, %v5048_v52  ;;  %v5376_v56 = vmul.f32 %v1754_v27, %v5060_v60  ;;  %8402 = sst [smem:[#allocation57_spill]] %s5697_s30  ;;  %s8416_s12 = sld [smem:[#allocation40_spill]] }
 0x30e   :  { %8403 = sst [smem:[#allocation58_spill]] %s5699_s19  ;;  %s8419_s13 = sld [smem:[#allocation63_spill]] }
 0x30f   :  { %1621 = vrot.lane.b32.xlu1 %v5168_v4, %s8308_s5  ;;  %1619 = vrot.lane.b32.xlu0 %v5172_v12, %s8308_s5  ;;  %8337 = vst [vmem:[#allocation69_spill] sm:$0xff] %v5376_v56  ;;  %8408 = sst [smem:[#allocation59_spill]] %s5722_s29  ;;  %s5808_s19 = sld [smem:[#allocation3 + $0x111]] }
 0x310   :  { %v1918_v34 = vpop.permute.xlu1 %1917  ;;  %v1916_v0 = vpop.permute.xlu0 %1915  ;;  %8413 = sst [smem:[#allocation60_spill]] %s5739_s6  ;;  %v8420_v18 = vstv %s8412_s26  ;;  %s8440_s26 = sld [smem:[#allocation67_spill]] }
 0x311   :  { %v5240_v43 = vsel %vm63_vm0, %v1918_v34, %v1916_v0  ;;  %v5250_v37 = vsel %vm63_vm0, %v1916_v0, %v1918_v34  ;;  %v5355_v0 = vmul.f32 %v1742_v25, %v5062_v3  ;;  %v5373_v34 = vmul.f32 %v1754_v27, %v5062_v3  ;;  %8366 = sst [smem:[#allocation42_spill]] %s5579_s21  ;;  %s5732_s21 = sld [smem:[#allocation3 + $0xb1]] }
 0x312   :  { %v5278_v26 = vsel %vm3072_vm3, %v5240_v43, %v5264_v39  ;;  %v5284_v1 = vsel %vm3068_vm2, %v5250_v37, %v5272_v53  ;;  %v5386_v25 = vsel %vm3100_vm5, %v5264_v39, %v5240_v43  ;;  %v5397_v27 = vmul.f32 %v1766_v14, %v5060_v60  ;;  %8415 = sst [smem:[#allocation61_spill]] %s5741_s0  ;;  %s8451_s30 = sld [smem:[#allocation17_spill]] }
 0x313   :  { %1815 = vrot.lane.b32.xlu1 %v5208_v40, %s8307_s24  ;;  %1813 = vrot.lane.b32.xlu0 %v5216_v48, %s8307_s24  ;;  %8332 = vst [vmem:[#allocation120_spill] sm:$0xff] %v5355_v0  ;;  %8336 = vst [vmem:[#allocation123_spill] sm:$0xff] %v5373_v34  ;;  %v5407_v43 = vsel %vm3096_vm4, %v5272_v53, %v5250_v37  ;;  %v5414_v39 = vmul.f32 %v1472_v33, %v5048_v52  ;;  %s8465_s0 = sld [smem:[#allocation20_spill]]  ;;  %s5948_s6 = sld [smem:[#allocation3 + $0x95]] }
 0x314   :  { %v5332_v29 = vpop.permute.xlu1 %2223  ;;  %v5334_v16 = vpop.permute.xlu0 %2221  ;;  %8340 = vst [vmem:[#allocation71_spill] sm:$0xff] %v5397_v27  ;;  %v5417_v14 = vmul.f32 %v1454_v46, %v5050_v5  ;;  %v5431_v52 = vmul.f32 %v1460_v10, %v5050_v5  ;;  %v5447_v10 = vmul.f32 %v2054_v20, %v5076_v45  ;;  %v5452_v46 = vmul.f32 %v2054_v20, %v5074_v61  ;;  %s6130_s29 = sld [smem:[#allocation3 + $0x114]]  ;;  %s8619_s11 = sld [smem:[#allocation43_spill]] }
 0x315   :  { %v5461_v60 = vmul.f32 %v1466_v21, %v5050_v5  ;;  %v5485_v21 = vmul.f32 %v2066_v50, %v5076_v45  ;;  %v5502_v5 = vmul.f32 %v2066_v50, %v5074_v61  ;;  %v5509_v33 = vsel %vm56_vm1, %v5334_v16, %v5332_v29  ;;  %8441 = sst [smem:[#allocation62_spill]] %s5808_s19  ;;  %s8503_s19 = sld [smem:[#allocation27_spill]] }
 0x316   :  { %8348 = vst [vmem:[#allocation74_spill] sm:$0xff] %v5447_v10  ;;  %8349 = vst [vmem:[#allocation75_spill] sm:$0xff] %v5452_v46  ;;  %v5523_v20 = vsel %vm56_vm1, %v5332_v29, %v5334_v16  ;;  %v5551_v16 = vmul.f32 %v2078_v13, %v5076_v45  ;;  %v5602_v50 = vmul.f32 %v8372_v32, %v5088_v38  ;;  %v8376_v45 = vmov %v8372_v32 }
 0x317   :  { %1821 = vrot.lane.b32.xlu1 %v5208_v40, %s8308_s5  ;;  %1819 = vrot.lane.b32.xlu0 %v5216_v48, %s8308_s5  ;;  %8353 = vst [vmem:[#allocation76_spill] sm:$0xff] %v5485_v21  ;;  %8356 = vst [vmem:[#allocation77_spill] sm:$0xff] %v5502_v5  ;;  %v8367_v21 = vstv %s5244_s4  ;;  %v5616_v10 = vmul.f32 %v8376_v45, %v5086_v22  ;;  %s5619_s4 = sld [smem:[#allocation3 + $0xa8]]  ;;  %8411 = sst [smem:[#allocation180_spill]] %s5732_s21 }
 0x318   :  { %v2230_v37 = vpop.permute.xlu1 %2229  ;;  %v2228_v53 = vpop.permute.xlu0 %2227  ;;  %8362 = vst [vmem:[#allocation78_spill] sm:$0xff] %v5551_v16  ;;  %v5586_v19 = vmul.f32 %v8367_v21, %v5088_v38  ;;  %8373 = vst [vmem:[#allocation84_spill] sm:$0xff] %v5602_v50  ;;  %v8391_v16 = vstv %s8380_s23  ;;  %s8399_s23 = sld [smem:[#allocation41_spill]]  ;;  %s5972_s21 = sld [smem:[#allocation3 + $0x97]] }
 0x319   :  { %v5477_v3 = vsel %vm63_vm0, %v2230_v37, %v2228_v53  ;;  %v5494_v59 = vsel %vm63_vm0, %v2228_v53, %v2230_v37  ;;  %v5556_v53 = vmul.f32 %v2078_v13, %v5074_v61  ;;  %v5574_v13 = vmul.f32 %v2090_v7, %v5074_v61  ;;  %8377 = vst [vmem:[#allocation127_spill] sm:$0xff] %v5616_v10  ;;  %8409 = sst [smem:[#allocation41_spill]] %s5724_s14  ;;  %s8563_s14 = sld [smem:[#allocation35_spill]] }
 0x31a   :  { %v5533_v37 = vsel %vm3072_vm3, %v5477_v3, %v5509_v33  ;;  %v5543_v29 = vsel %vm3068_vm2, %v5494_v59, %v5523_v20  ;;  %8368 = vst [vmem:[#allocation82_spill] sm:$0xff] %v5586_v19  ;;  %v8370_v61 = vmov %v8367_v21  ;;  %v5654_v32 = vmul.f32 %v8391_v16, %v5088_v38 }
 0x31b   :  { %1927 = vrot.lane.b32.xlu1 %v5278_v26, %s8307_s24  ;;  %1925 = vrot.lane.b32.xlu0 %v5284_v1, %s8307_s24  ;;  %8363 = vst [vmem:[#allocation79_spill] sm:$0xff] %v5556_v53  ;;  %8365 = vst [vmem:[#allocation81_spill] sm:$0xff] %v5574_v13  ;;  %v5597_v7 = vmul.f32 %v8370_v61, %v5086_v22  ;;  %v8383_v61 = vstv %s5254_s1  ;;  %v8394_v30 = vmov %v8391_v16  ;;  %s5675_s1 = sld [smem:[#allocation3 + $0x90]] }
 0x31c   :  { %v5630_v45 = vmul.f32 %v8383_v61, %v5088_v38  ;;  %v8389_v21 = vmov %v8383_v61  ;;  %8392 = vst [vmem:[#allocation121_spill] sm:$0xff] %v5654_v32  ;;  %v5668_v38 = vmul.f32 %v8394_v30, %v5086_v22  ;;  %v5708_v61 = vsel %vm3096_vm4, %v5523_v20, %v5494_v59 }
 0x31d   :  { %8371 = vst [vmem:[#allocation83_spill] sm:$0xff] %v5597_v7  ;;  %8378 = sst [smem:[#allocation46_spill]] %s5619_s4  ;;  %s5640_s4 = sld [smem:[#allocation3 + $0x108]]  ;;  %v5649_v53 = vmul.f32 %v8389_v21, %v5086_v22  ;;  %v8421_v59 = vmov %v8420_v18  ;;  %v8432_v30 = vstv %s8417_s27 }
 0x31e   :  { %8384 = vst [vmem:[#allocation128_spill] sm:$0xff] %v5630_v45  ;;  %8395 = vst [vmem:[#allocation125_spill] sm:$0xff] %v5668_v38  ;;  %v8434_v21 = vmov %v8432_v30  ;;  %s8444_s27 = sld [smem:[#allocation68_spill]]  ;;  %8505 = sst [smem:[#allocation67_spill]] %s5972_s21 }
 0x31f   :  { %1933 = vrot.lane.b32.xlu1 %v5278_v26, %s8308_s5  ;;  %1931 = vrot.lane.b32.xlu0 %v5284_v1, %s8308_s5  ;;  %8390 = vst [vmem:[#allocation129_spill] sm:$0xff] %v5649_v53  ;;  %s8573_s21 = sld [smem:[#allocation37_spill]] }
 0x321   :  { %8396 = sst [smem:[#allocation53_spill]] %s5675_s1  ;;  %s6284_s1 = sld [smem:[#allocation3 + $0x119]] }
 0x323   :  { %2327 = vrot.lane.b32.xlu1 %v5093_v35, %s8307_s24  ;;  %2325 = vrot.lane.b32.xlu0 %v5096_v49, %s8307_s24  ;;  %8388 = sst [smem:[#allocation51_spill]] %s5640_s4  ;;  %s8418_s4 = sld [smem:[#allocation50_spill]] }
 0x327   :  { %2127 = vrot.lane.b32.xlu1 %v5386_v25, %s8307_s24  ;;  %2125 = vrot.lane.b32.xlu0 %v5407_v43, %s8307_s24  ;;  %8623 = sst [smem:[#allocation35_spill]] %s6284_s1  ;;  %s6320_s1 = sld [smem:[#allocation3 + $0x9d]] }
 0x329   :  { %v8436_v16 = vstv %s8418_s4  ;;  %s8447_s4 = sld [smem:[#allocation38_spill]] }
 0x32a   :  { %v8437_v38 = vmov %v8436_v16 }
 0x32b   :  { %2133 = vrot.lane.b32.xlu1 %v5386_v25, %s8308_s5  ;;  %2131 = vrot.lane.b32.xlu0 %v5407_v43, %s8308_s5 }
 0x32d   :  { %8638 = sst [smem:[#allocation37_spill]] %s6320_s1  ;;  %s6368_s1 = sld [smem:[#allocation3 + $0xfe]] }
 0x32f   :  { %2239 = vrot.lane.b32.xlu1 %v5533_v37, %s8307_s24  ;;  %2237 = vrot.lane.b32.xlu0 %v5543_v29, %s8307_s24  ;;  %s5590_s24 = sld [smem:[#allocation3 + $0x104]] }
 0x333   :  { %2245 = vrot.lane.b32.xlu1 %v5533_v37, %s8308_s5  ;;  %2243 = vrot.lane.b32.xlu0 %v5543_v29, %s8308_s5 }
 0x337   :  { %2333 = vrot.lane.b32.xlu1 %v5093_v35, %s8308_s5  ;;  %2331 = vrot.lane.b32.xlu0 %v5096_v49, %s8308_s5  ;;  %v5695_v35 = vsel %vm3100_vm5, %v5509_v33, %v5477_v3  ;;  %v5757_v3 = vmul.f32 %v8420_v18, %v5148_v63  ;;  %v5762_v49 = vmul.f32 %v8421_v59, %v5144_v62  ;;  %v8424_v33 = vstv %s8414_s20  ;;  %s5806_s20 = sld [smem:[#allocation3 + $0x110]] }
 0x338   :  { %v5769_v28 = vmul.f32 %v8424_v33, %v5148_v63  ;;  %v8426_v22 = vmov %v8424_v33  ;;  %v8428_v18 = vstv %s8416_s12  ;;  %v5789_v33 = vmul.f32 %v8432_v30, %v5148_v63  ;;  %s8438_s12 = sld [smem:[#allocation66_spill]] }
 0x339   :  { %v5774_v20 = vmul.f32 %v8426_v22, %v5144_v62  ;;  %v5779_v5 = vmul.f32 %v8428_v18, %v5148_v63  ;;  %v8430_v59 = vmov %v8428_v18  ;;  %v5794_v22 = vmul.f32 %v8434_v21, %v5144_v62 }
 0x33a   :  { %8425 = vst [vmem:[#allocation136_spill] sm:$0xff] %v5769_v28  ;;  %v5784_v19 = vmul.f32 %v8430_v59, %v5144_v62  ;;  %8433 = vst [vmem:[#allocation130_spill] sm:$0xff] %v5789_v33  ;;  %v5799_v18 = vmul.f32 %v8436_v16, %v5124_v54  ;;  %v5804_v59 = vmul.f32 %v8437_v38, %v5128_v51  ;;  %v8442_v63 = vstv %s8419_s13  ;;  %s8450_s13 = sld [smem:[#allocation16_spill]] }
 0x33b   :  { %2439 = vrot.lane.b32.xlu1 %v5695_v35, %s8406_s17  ;;  %2437 = vrot.lane.b32.xlu0 %v5708_v61, %s8406_s17  ;;  %s5730_s17 = sld [smem:[#allocation3 + $0xb0]]  ;;  %8427 = vst [vmem:[#allocation148_spill] sm:$0xff] %v5774_v20  ;;  %8429 = vst [vmem:[#allocation124_spill] sm:$0xff] %v5779_v5  ;;  %v5813_v62 = vmul.f32 %v8442_v63, %v5124_v54  ;;  %v8443_v21 = vmov %v8442_v63  ;;  %v8445_v30 = vstv %s8422_s22  ;;  %s8452_s22 = sld [smem:[#allocation18_spill]] }
 0x33c   :  { %8431 = vst [vmem:[#allocation126_spill] sm:$0xff] %v5784_v19  ;;  %8435 = vst [vmem:[#allocation132_spill] sm:$0xff] %v5794_v22  ;;  %v5818_v16 = vmul.f32 %v8443_v21, %v5128_v51  ;;  %v5823_v38 = vmul.f32 %v8445_v30, %v5124_v54  ;;  %v8446_v32 = vmov %v8445_v30 }
 0x33d   :  { %8439 = sst [smem:[#allocation40_spill]] %s5806_s20  ;;  %v5828_v53 = vmul.f32 %v8446_v32, %v5128_v51  ;;  %v8462_v32 = vstv %s8444_s27  ;;  %s8488_s27 = sld [smem:[#allocation23_spill]] }
 0x33e   :  { %v8453_v46 = vstv %s8438_s12  ;;  %v5869_v7 = vmul.f32 %v8462_v32, %v5172_v12  ;;  %s8474_s12 = sld [smem:[#allocation21_spill]]  ;;  %s5970_s20 = sld [smem:[#allocation3 + $0x96]] }
 0x33f   :  { %2445 = vrot.lane.b32.xlu1 %v5695_v35, %s8308_s5  ;;  %2443 = vrot.lane.b32.xlu0 %v5708_v61, %s8308_s5  ;;  %s8423_s5 = sld [smem:[#allocation65_spill]] }
 0x340   :  { %8463 = vst [vmem:[#allocation131_spill] sm:$0xff] %v5869_v7  ;;  %v8471_v34 = vstv %s8450_s13  ;;  %s5932_s13 = sld [smem:[#allocation3 + $0x113]]  ;;  %8497 = sst [smem:[#allocation65_spill]] %s5948_s6 }
 0x341   :  { %8410 = sst [smem:[#allocation179_spill]] %s5730_s17  ;;  %v5893_v0 = vmul.f32 %v8471_v34, %v5216_v48  ;;  %v8481_v27 = vstv %s8452_s22  ;;  %s8495_s22 = sld [smem:[#allocation25_spill]] }
 0x342   :  { %s8513_s17 = sld [smem:[#allocation29_spill]]  ;;  %s6152_s6 = sld [smem:[#allocation3 + $0x117]] }
 0x343   :  { %8472 = vst [vmem:[#allocation85_spill] sm:$0xff] %v5893_v0  ;;  %v8483_v0 = vmov %v8481_v27 }
 0x344   :  { %v5918_v56 = vmul.f32 %v8483_v0, %v5208_v40  ;;  %8504 = sst [smem:[#allocation66_spill]] %s5970_s20  ;;  %s6150_s20 = sld [smem:[#allocation3 + $0x116]] }
 0x345   :  { %v8448_v45 = vstv %s8423_s5  ;;  %s8456_s5 = sld [smem:[#allocation19_spill]] }
 0x346   :  { %v5833_v63 = vmul.f32 %v8448_v45, %v5124_v54  ;;  %v8449_v10 = vmov %v8448_v45  ;;  %v5849_v54 = vmul.f32 %v8453_v46, %v5172_v12  ;;  %v8455_v45 = vmov %v8453_v46  ;;  %8484 = vst [vmem:[#allocation90_spill] sm:$0xff] %v5918_v56  ;;  %8492 = sst [smem:[#allocation63_spill]] %s5932_s13  ;;  %s6132_s13 = sld [smem:[#allocation3 + $0x115]] }
 0x347   :  { %v5838_v50 = vmul.f32 %v8449_v10, %v5128_v51  ;;  %v5854_v51 = vmul.f32 %v8455_v45, %v5168_v4  ;;  %v8458_v10 = vstv %s8440_s26  ;;  %v8464_v46 = vmov %v8462_v32  ;;  %v5888_v32 = vpop.permute.xlu0 %1701  ;;  %s8479_s26 = sld [smem:[#allocation22_spill]] }
 0x348   :  { %8454 = vst [vmem:[#allocation139_spill] sm:$0xff] %v5849_v54  ;;  %v5859_v30 = vmul.f32 %v8458_v10, %v5172_v12  ;;  %v8460_v41 = vmov %v8458_v10  ;;  %v5874_v21 = vmul.f32 %v8464_v46, %v5168_v4  ;;  %v8467_v45 = vstv %s8447_s4  ;;  %s8491_s4 = sld [smem:[#allocation24_spill]]  ;;  %8565 = sst [smem:[#allocation22_spill]] %s6130_s29 }
 0x349   :  { %8457 = vst [vmem:[#allocation152_spill] sm:$0xff] %v5854_v51  ;;  %v5864_v13 = vmul.f32 %v8460_v41, %v5168_v4  ;;  %v5879_v31 = vmul.f32 %v8467_v45, %v5172_v12  ;;  %v8469_v10 = vmov %v8467_v45  ;;  %v5886_v41 = vpop.permute.xlu1 %1703  ;;  %v8473_v46 = vmov %v8471_v34  ;;  %8575 = sst [smem:[#allocation25_spill]] %s6152_s6  ;;  %s6391_s29 = sld [smem:[#allocation3 + $0xaf]] }
 0x34a   :  { %8459 = vst [vmem:[#allocation134_spill] sm:$0xff] %v5859_v30  ;;  %8466 = vst [vmem:[#allocation133_spill] sm:$0xff] %v5874_v21  ;;  %v5884_v42 = vmul.f32 %v8469_v10, %v5168_v4  ;;  %v5898_v23 = vmul.f32 %v8473_v46, %v5208_v40  ;;  %v8476_v12 = vstv %s8451_s30  ;;  %v5913_v34 = vmul.f32 %v8481_v27, %v5216_v48  ;;  %s5930_s30 = sld [smem:[#allocation3 + $0x112]]  ;;  %8574 = sst [smem:[#allocation24_spill]] %s6150_s20 }
 0x34b   :  { %8461 = vst [vmem:[#allocation137_spill] sm:$0xff] %v5864_v13  ;;  %8468 = vst [vmem:[#allocation135_spill] sm:$0xff] %v5879_v31  ;;  %v5903_v45 = vmul.f32 %v8476_v12, %v5216_v48  ;;  %v8478_v4 = vmov %v8476_v12  ;;  %v8485_v46 = vstv %s8456_s5  ;;  %v8493_v27 = vstv %s8465_s0  ;;  %s5946_s5 = sld [smem:[#allocation3 + $0x94]]  ;;  %s8501_s0 = sld [smem:[#allocation26_spill]]  ;;  %v1708_v13 = vpop.permute.xlu0 %1707 }
 0x34c   :  { %8470 = vst [vmem:[#allocation138_spill] sm:$0xff] %v5884_v42  ;;  %8475 = vst [vmem:[#allocation86_spill] sm:$0xff] %v5898_v23  ;;  %v5908_v10 = vmul.f32 %v8478_v4, %v5208_v40  ;;  %v5923_v23 = vmul.f32 %v8485_v46, %v5216_v48  ;;  %v8487_v12 = vmov %v8485_v46  ;;  %v5937_v0 = vmul.f32 %v8493_v27, %v5182_v57  ;;  %8566 = sst [smem:[#allocation23_spill]] %s6132_s13  ;;  %s8673_s20 = sld [smem:[#allocation52_spill]] }
 0x34d   :  { %8477 = vst [vmem:[#allocation87_spill] sm:$0xff] %v5903_v45  ;;  %8482 = vst [vmem:[#allocation89_spill] sm:$0xff] %v5913_v34  ;;  %v5928_v45 = vmul.f32 %v8487_v12, %v5208_v40  ;;  %v8494_v4 = vmov %v8493_v27  ;;  %v8498_v12 = vstv %s8474_s12  ;;  %s8507_s12 = sld [smem:[#allocation28_spill]]  ;;  %v1710_v7 = vpop.permute.xlu1 %1709 }
 0x34e   :  { %8480 = vst [vmem:[#allocation88_spill] sm:$0xff] %v5908_v10  ;;  %8486 = vst [vmem:[#allocation91_spill] sm:$0xff] %v5923_v23  ;;  %v5942_v48 = vmul.f32 %v8494_v4, %v5186_v17  ;;  %v8499_v27 = vmov %v8498_v12  ;;  %v8500_v4 = vstv %s8479_s26  ;;  %v8509_v10 = vstv %s8491_s4  ;;  %s5994_s26 = sld [smem:[#allocation3 + $0xf4]]  ;;  %s8530_s4 = sld [smem:[#allocation32_spill]] }
 0x34f   :  { %8489 = vst [vmem:[#allocation92_spill] sm:$0xff] %v5928_v45  ;;  %v5953_v45 = vmul.f32 %v8498_v12, %v5182_v57  ;;  %v5958_v23 = vmul.f32 %v8499_v27, %v5186_v17  ;;  %v5963_v46 = vmul.f32 %v8500_v4, %v5182_v57  ;;  %v8502_v40 = vmov %v8500_v4  ;;  %s6409_s13 = sld [smem:[#allocation3 + $0x10c]] }
 0x350   :  { %8490 = sst [smem:[#allocation50_spill]] %s5930_s30  ;;  %v5968_v56 = vmul.f32 %v8502_v40, %v5186_v17  ;;  %v8506_v12 = vstv %s8488_s27  ;;  %v5987_v40 = vmul.f32 %v8509_v10, %v5190_v24  ;;  %v8510_v9 = vmov %v8509_v10  ;;  %s8516_s27 = sld [smem:[#allocation30_spill]] }
 0x351   :  { %8496 = sst [smem:[#allocation64_spill]] %s5946_s5  ;;  %v5977_v27 = vmul.f32 %v8506_v12, %v5182_v57  ;;  %v8508_v34 = vmov %v8506_v12  ;;  %v5992_v42 = vmul.f32 %v8510_v9, %v5194_v2  ;;  %v8512_v57 = vstv %s5380_s3  ;;  %s8521_s3 = sld [smem:[#allocation31_spill]] }
 0x352   :  { %v5982_v4 = vmul.f32 %v8508_v34, %v5186_v17  ;;  %v5999_v12 = vmul.f32 %v8512_v57, %v5190_v24  ;;  %v8514_v17 = vmov %v8512_v57  ;;  %v8515_v10 = vstv %s8495_s22  ;;  %s6080_s22 = sld [smem:[#allocation3 + $0xf7]]  ;;  %s6170_s5 = sld [smem:[#allocation3 + $0x99]] }
 0x353   :  { %v6004_v34 = vmul.f32 %v8514_v17, %v5194_v2  ;;  %v6009_v31 = vmul.f32 %v8515_v10, %v5190_v24  ;;  %v8517_v9 = vmov %v8515_v10  ;;  %v8518_v57 = vstv %s8501_s0  ;;  %s8554_s0 = sld [smem:[#allocation33_spill]]  ;;  %s6232_s30 = sld [smem:[#allocation3 + $0xfa]] }
 0x354   :  { %8511 = sst [smem:[#allocation68_spill]] %s5994_s26  ;;  %v6014_v21 = vmul.f32 %v8517_v9, %v5194_v2  ;;  %v6019_v30 = vmul.f32 %v8518_v57, %v5190_v24  ;;  %v8519_v17 = vmov %v8518_v57  ;;  %v8520_v10 = vstv %s8503_s19  ;;  %s6056_s19 = sld [smem:[#allocation3 + $0xf5]] }
 0x355   :  { %v6024_v51 = vmul.f32 %v8519_v17, %v5194_v2  ;;  %v6029_v54 = vmul.f32 %v8520_v10, %v5284_v1  ;;  %v8523_v9 = vmov %v8520_v10  ;;  %v8525_v33 = vstv %s8507_s12  ;;  %s6104_s12 = sld [smem:[#allocation3 + $0xb5]]  ;;  %s6168_s26 = sld [smem:[#allocation3 + $0x98]] }
 0x356   :  { %v6034_v22 = vmul.f32 %v8523_v9, %v5278_v26  ;;  %v6039_v19 = vmul.f32 %v8525_v33, %v5284_v1  ;;  %v8527_v24 = vmov %v8525_v33  ;;  %v8529_v2 = vstv %s5438_s9  ;;  %s6078_s9 = sld [smem:[#allocation3 + $0xf6]] }
 0x357   :  { %8522 = vst [vmem:[#allocation93_spill] sm:$0xff] %v6029_v54  ;;  %v6044_v57 = vmul.f32 %v8527_v24, %v5278_v26  ;;  %v6049_v17 = vmul.f32 %v8529_v2, %v5284_v1  ;;  %v8532_v10 = vmov %v8529_v2  ;;  %v8535_v33 = vstv %s8513_s17  ;;  %s6102_s17 = sld [smem:[#allocation3 + $0xb4]]  ;;  %8601 = sst [smem:[#allocation30_spill]] %s6234_s25 }
 0x358   :  { %8524 = vst [vmem:[#allocation94_spill] sm:$0xff] %v6034_v22  ;;  %8526 = vst [vmem:[#allocation95_spill] sm:$0xff] %v6039_v19  ;;  %v6054_v54 = vmul.f32 %v8532_v10, %v5278_v26  ;;  %v6061_v9 = vmul.f32 %v8535_v33, %v5284_v1  ;;  %v8537_v24 = vmov %v8535_v33  ;;  %v8539_v2 = vstv %s8516_s27  ;;  %8544 = sst [smem:[#allocation17_spill]] %s6080_s22  ;;  %s6118_s27 = sld [smem:[#allocation3 + $0xb6]] }
 0x359   :  { %8528 = vst [vmem:[#allocation96_spill] sm:$0xff] %v6044_v57  ;;  %8531 = vst [vmem:[#allocation97_spill] sm:$0xff] %v6049_v17  ;;  %v6066_v57 = vmul.f32 %v8537_v24, %v5278_v26  ;;  %v6071_v17 = vmul.f32 %v8539_v2, %v5407_v43  ;;  %v8541_v19 = vmov %v8539_v2  ;;  %v8545_v1 = vstv %s5456_s8  ;;  %s8559_s8 = sld [smem:[#allocation34_spill]]  ;;  %8582 = sst [smem:[#allocation27_spill]] %s6170_s5 }
 0x35a   :  { %8533 = vst [vmem:[#allocation98_spill] sm:$0xff] %v6054_v54  ;;  %8534 = sst [smem:[#allocation38_spill]] %s6056_s19  ;;  %8536 = vst [vmem:[#allocation99_spill] sm:$0xff] %v6061_v9  ;;  %v6076_v10 = vmul.f32 %v8541_v19, %v5386_v25  ;;  %v6085_v33 = vmul.f32 %v8545_v1, %v5407_v43  ;;  %v8547_v26 = vmov %v8545_v1  ;;  %v8549_v2 = vstv %s8521_s3  ;;  %s6120_s3 = sld [smem:[#allocation3 + $0xb7]] }
 0x35b   :  { %8538 = vst [vmem:[#allocation100_spill] sm:$0xff] %v6066_v57  ;;  %8540 = vst [vmem:[#allocation140_spill] sm:$0xff] %v6071_v17  ;;  %v6090_v24 = vmul.f32 %v8547_v26, %v5386_v25  ;;  %v6095_v19 = vmul.f32 %v8549_v2, %v5407_v43  ;;  %8555 = sst [smem:[#allocation19_spill]] %s6104_s12  ;;  %v8556_v1 = vstv %s8530_s4  ;;  %s8564_s4 = sld [smem:[#allocation36_spill]] }
 0x35c   :  { %8542 = vst [vmem:[#allocation141_spill] sm:$0xff] %v6076_v10  ;;  %8543 = sst [smem:[#allocation16_spill]] %s6078_s9  ;;  %8546 = vst [vmem:[#allocation142_spill] sm:$0xff] %v6085_v33  ;;  %v8551_v10 = vmov %v8549_v2  ;;  %v6109_v33 = vmul.f32 %v8556_v1, %v5407_v43  ;;  %v8558_v26 = vmov %v8556_v1  ;;  %s6264_s19 = sld [smem:[#allocation3 + $0xbb]] }
 0x35d   :  { %8548 = vst [vmem:[#allocation143_spill] sm:$0xff] %v6090_v24  ;;  %8550 = vst [vmem:[#allocation144_spill] sm:$0xff] %v6095_v19  ;;  %v6100_v17 = vmul.f32 %v8551_v10, %v5386_v25  ;;  %8553 = sst [smem:[#allocation18_spill]] %s6102_s17  ;;  %v6114_v24 = vmul.f32 %v8558_v26, %v5386_v25  ;;  %v6122_v10 = vpop.permute.xlu1 %2015  ;;  %v8567_v25 = vstv %s8554_s0  ;;  %s8580_s0 = sld [smem:[#allocation39_spill]] }
 0x35e   :  { %8557 = vst [vmem:[#allocation146_spill] sm:$0xff] %v6109_v33  ;;  %8561 = sst [smem:[#allocation20_spill]] %s6118_s27  ;;  %v6137_v26 = vmul.f32 %v8567_v25, %v5543_v29  ;;  %v8569_v19 = vmov %v8567_v25  ;;  %v8578_v25 = vstv %s8563_s14  ;;  %s6194_s14 = sld [smem:[#allocation3 + $0x9b]] }
 0x35f   :  { %8552 = vst [vmem:[#allocation145_spill] sm:$0xff] %v6100_v17  ;;  %8560 = vst [vmem:[#allocation147_spill] sm:$0xff] %v6114_v24  ;;  %v6124_v17 = vpop.permute.xlu0 %2013  ;;  %v6142_v2 = vmul.f32 %v8569_v19, %v5533_v37  ;;  %v8571_v1 = vstv %s8559_s8  ;;  %v1711_v19 = vsel %vm81_vm7, %v1708_v13, %v1710_v7  ;;  %8581 = sst [smem:[#allocation26_spill]] %s6168_s26  ;;  %v8583_v57 = vmov %v8578_v25  ;;  %s6282_s22 = sld [smem:[#allocation3 + $0x118]] }
 0x360   :  { %8562 = sst [smem:[#allocation21_spill]] %s6120_s3  ;;  %8568 = vst [vmem:[#allocation158_spill] sm:$0xff] %v6137_v26  ;;  %v6147_v33 = vmul.f32 %v8571_v1, %v5543_v29  ;;  %v8576_v43 = vmov %v8571_v1  ;;  %v6162_v26 = vmul.f32 %v8578_v25, %v5543_v29  ;;  %v1712_v1 = vsel %vm81_vm7, %v1710_v7, %v1708_v13  ;;  %s6192_s8 = sld [smem:[#allocation3 + $0x9a]] }
 0x361   :  { %8570 = vst [vmem:[#allocation160_spill] sm:$0xff] %v6142_v2  ;;  %v6157_v24 = vmul.f32 %v8576_v43, %v5533_v37  ;;  %v6175_v43 = vmul.f32 %v8583_v57, %v5533_v37  ;;  %v8589_v2 = vstv %s5525_s16  ;;  %s6216_s16 = sld [smem:[#allocation3 + $0xf9]]  ;;  %8600 = sst [smem:[#allocation29_spill]] %s6232_s30 }
 0x362   :  { %8572 = vst [vmem:[#allocation162_spill] sm:$0xff] %v6147_v33  ;;  %8579 = vst [vmem:[#allocation159_spill] sm:$0xff] %v6162_v26  ;;  %v6190_v13 = vmul.f32 %v8589_v2, %v5708_v61  ;;  %v8592_v7 = vmov %v8589_v2  ;;  %v1706_v2 = vsel %vm74_vm6, %v5886_v41, %v5888_v32  ;;  %8611 = sst [smem:[#allocation33_spill]] %s6264_s19  ;;  %s8622_s9 = sld [smem:[#allocation44_spill]] }
 0x363   :  { %8577 = vst [vmem:[#allocation166_spill] sm:$0xff] %v6157_v24  ;;  %8584 = vst [vmem:[#allocation161_spill] sm:$0xff] %v6175_v43  ;;  %v8585_v24 = vstv %s8564_s4  ;;  %v6199_v57 = vmul.f32 %v8592_v7, %v5695_v35  ;;  %s6214_s4 = sld [smem:[#allocation3 + $0xf8]]  ;;  %s6379_s17 = sld [smem:[#allocation3 + $0xad]] }
 0x364   :  { %v6180_v25 = vmul.f32 %v8585_v24, %v5543_v29  ;;  %v8587_v26 = vmov %v8585_v24  ;;  %8590 = vst [vmem:[#allocation149_spill] sm:$0xff] %v6190_v13  ;;  %v8594_v29 = vstv %s8573_s21  ;;  %s8608_s21 = sld [smem:[#allocation42_spill]]  ;;  %s8661_s12 = sld [smem:[#allocation51_spill]] }
 0x365   :  { %v6185_v33 = vmul.f32 %v8587_v26, %v5533_v37  ;;  %8593 = vst [vmem:[#allocation151_spill] sm:$0xff] %v6199_v57  ;;  %v6204_v24 = vmul.f32 %v8594_v29, %v5708_v61  ;;  %v1705_v37 = vsel %vm74_vm6, %v5888_v32, %v5886_v41  ;;  %v8596_v26 = vmov %v8594_v29  ;;  %8621 = sst [smem:[#allocation34_spill]] %s6282_s22  ;;  %s6302_s22 = sld [smem:[#allocation3 + $0x11b]] }
 0x366   :  { %8586 = vst [vmem:[#allocation163_spill] sm:$0xff] %v6180_v25  ;;  %8591 = sst [smem:[#allocation28_spill]] %s6192_s8  ;;  %v6221_v7 = vmul.f32 %v8596_v26, %v5695_v35  ;;  %v8598_v29 = vstv %s8580_s0  ;;  %v1713_v57 = vsel %vm3628_vm8, %v1711_v19, %v1706_v2  ;;  %v1714_v41 = vsel %vm3658_vm9, %v1712_v1, %v1705_v37  ;;  %v2020_v25 = vpop.permute.xlu0 %2019  ;;  %s6254_s0 = sld [smem:[#allocation3 + $0xb9]] }
 0x367   :  { %8588 = vst [vmem:[#allocation167_spill] sm:$0xff] %v6185_v33  ;;  %8595 = vst [vmem:[#allocation154_spill] sm:$0xff] %v6204_v24  ;;  %v6226_v24 = vmul.f32 %v8598_v29, %v5708_v61  ;;  %v8602_v32 = vmov %v8598_v29  ;;  %v8604_v29 = vstv %s8399_s23  ;;  %v2022_v33 = vpop.permute.xlu1 %2021  ;;  %s6262_s23 = sld [smem:[#allocation3 + $0xba]]  ;;  %s6389_s3 = sld [smem:[#allocation3 + $0xae]] }
 0x368   :  { %8597 = vst [vmem:[#allocation156_spill] sm:$0xff] %v6221_v7  ;;  %v6239_v26 = vmul.f32 %v8602_v32, %v5695_v35  ;;  %v8606_v7 = vmov %v8604_v29  ;;  %v1715_v32 = vsel %vm3712_vm10, %v1706_v2, %v1711_v19  ;;  %s6411_s27 = sld [smem:[#allocation3 + $0x10d]]  ;;  %s6482_s26 = sld [smem:[#allocation3 + $0x11e]] }
 0x369   :  { %8599 = vst [vmem:[#allocation150_spill] sm:$0xff] %v6226_v24  ;;  %v6244_v24 = vmul.f32 %v8604_v29, %v5708_v61  ;;  %v6249_v13 = vmul.f32 %v8606_v7, %v5695_v35  ;;  %v1716_v61 = vsel %vm3718_vm11, %v1705_v37, %v1712_v1  ;;  %v8612_v7 = vstv %s5559_s28  ;;  %s8630_s28 = sld [smem:[#allocation45_spill]] }
 0x36a   :  { %8603 = vst [vmem:[#allocation153_spill] sm:$0xff] %v6239_v26  ;;  %v6268_v43 = vmul.f32 %v8612_v7, %v1713_v57  ;;  %v8616_v26 = vstv %s5561_s2  ;;  %v8624_v37 = vstv %s8608_s21  ;;  %s6300_s2 = sld [smem:[#allocation3 + $0x11a]]  ;;  %s6318_s21 = sld [smem:[#allocation3 + $0x9c]] }
 0x36b   :  { %8605 = vst [vmem:[#allocation155_spill] sm:$0xff] %v6244_v24  ;;  %8607 = vst [vmem:[#allocation157_spill] sm:$0xff] %v6249_v13  ;;  %v8614_v13 = vmov %v8612_v7  ;;  %v6276_v19 = vmul.f32 %v8616_v26, %v1713_v57  ;;  %v8618_v2 = vmov %v8616_v26  ;;  %v6288_v35 = vmul.f32 %v8624_v37, %v1713_v57  ;;  %8657 = sst [smem:[#allocation45_spill]] %s6368_s1  ;;  %s8721_s1 = sld [smem:[#allocation54_spill]] }
 0x36c   :  { %8609 = sst [smem:[#allocation31_spill]] %s6254_s0  ;;  %8613 = vst [vmem:[#allocation101_spill] sm:$0xff] %v6268_v43  ;;  %v6272_v24 = vmul.f32 %v8614_v13, %v1714_v41  ;;  %v6280_v1 = vmul.f32 %v8618_v2, %v1714_v41  ;;  %v8626_v7 = vmov %v8624_v37  ;;  %v8628_v13 = vstv %s5581_s7  ;;  %s8720_s5 = sld [smem:[#allocation53_spill]] }
 0x36d   :  { %8610 = sst [smem:[#allocation32_spill]] %s6262_s23  ;;  %8617 = vst [vmem:[#allocation103_spill] sm:$0xff] %v6276_v19  ;;  %8625 = vst [vmem:[#allocation105_spill] sm:$0xff] %v6288_v35  ;;  %v6292_v29 = vmul.f32 %v8626_v7, %v1714_v41  ;;  %v6296_v9 = vmul.f32 %v8628_v13, %v1713_v57  ;;  %v2023_v26 = vsel %vm81_vm7, %v2020_v25, %v2022_v33  ;;  %v8631_v2 = vmov %v8628_v13  ;;  %s6340_s7 = sld [smem:[#allocation3 + $0x9f]] }
 0x36e   :  { %8615 = vst [vmem:[#allocation102_spill] sm:$0xff] %v6272_v24  ;;  %8620 = vst [vmem:[#allocation104_spill] sm:$0xff] %v6280_v1  ;;  %v6306_v54 = vmul.f32 %v8631_v2, %v1714_v41  ;;  %v8633_v37 = vstv %s5590_s24  ;;  %v2024_v57 = vsel %vm81_vm7, %v2022_v33, %v2020_v25  ;;  %v8639_v13 = vstv %s8619_s11  ;;  %s6338_s24 = sld [smem:[#allocation3 + $0x9e]] }
 0x36f   :  { %8627 = vst [vmem:[#allocation106_spill] sm:$0xff] %v6292_v29  ;;  %8629 = vst [vmem:[#allocation107_spill] sm:$0xff] %v6296_v9  ;;  %v6310_v22 = vmul.f32 %v8633_v37, %v1715_v32  ;;  %v8635_v7 = vmov %v8633_v37  ;;  %v6324_v9 = vmul.f32 %v8639_v13, %v1715_v32  ;;  %v8641_v41 = vmov %v8639_v13  ;;  %s8651_s11 = sld [smem:[#allocation46_spill]] }
 0x370   :  { %8632 = vst [vmem:[#allocation108_spill] sm:$0xff] %v6306_v54  ;;  %v6314_v29 = vmul.f32 %v8635_v7, %v1716_v61  ;;  %8637 = sst [smem:[#allocation36_spill]] %s6318_s21  ;;  %v6328_v2 = vmul.f32 %v8641_v41, %v1716_v61  ;;  %v8643_v37 = vstv %s8622_s9  ;;  %v2018_v33 = vsel %vm74_vm6, %v6122_v10, %v6124_v17  ;;  %s8656_s9 = sld [smem:[#allocation47_spill]] }
 0x371   :  { %8634 = vst [vmem:[#allocation109_spill] sm:$0xff] %v6310_v22  ;;  %8640 = vst [vmem:[#allocation111_spill] sm:$0xff] %v6324_v9  ;;  %v6332_v22 = vmul.f32 %v8643_v37, %v1715_v32  ;;  %v8647_v25 = vmov %v8643_v37  ;;  %v8649_v13 = vstv %s8630_s28  ;;  %v2017_v37 = vsel %vm74_vm6, %v6124_v17, %v6122_v10  ;;  %s6370_s21 = sld [smem:[#allocation3 + $0xff]]  ;;  %s8659_s28 = sld [smem:[#allocation49_spill]] }
 0x372   :  { %8636 = vst [vmem:[#allocation110_spill] sm:$0xff] %v6314_v29  ;;  %8642 = vst [vmem:[#allocation112_spill] sm:$0xff] %v6328_v2  ;;  %v6344_v7 = vmul.f32 %v8647_v25, %v1716_v61  ;;  %v6348_v41 = vmul.f32 %v8649_v13, %v1715_v32  ;;  %v8654_v9 = vmov %v8649_v13  ;;  %v2026_v32 = vsel %vm3658_vm9, %v2024_v57, %v2017_v37  ;;  %8664 = sst [smem:[#allocation47_spill]] %s6391_s29  ;;  %s8706_s6 = sld [smem:[#allocation36_spill]] }
 0x373   :  { %8644 = vst [vmem:[#allocation113_spill] sm:$0xff] %v6332_v22  ;;  %8646 = sst [smem:[#allocation42_spill]] %s6340_s7  ;;  %v2025_v22 = vsel %vm3628_vm8, %v2023_v26, %v2018_v33  ;;  %s6358_s7 = sld [smem:[#allocation3 + $0xfd]]  ;;  %v6362_v25 = vmul.f32 %v8654_v9, %v1716_v61  ;;  %v2027_v17 = vsel %vm3712_vm10, %v2018_v33, %v2023_v26  ;;  %v2028_v61 = vsel %vm3718_vm11, %v2017_v37, %v2024_v57 }
 0x374   :  { %8645 = sst [smem:[#allocation39_spill]] %s6338_s24  ;;  %8648 = vst [vmem:[#allocation114_spill] sm:$0xff] %v6344_v7  ;;  %8650 = vst [vmem:[#allocation115_spill] sm:$0xff] %v6348_v41  ;;  %s6356_s24 = sld [smem:[#allocation3 + $0xfc]]  ;;  %v8724_v29 = vstv %s8720_s5 }
 0x375   :  { %8655 = vst [vmem:[#allocation116_spill] sm:$0xff] %v6362_v25  ;;  %v8662_v41 = vstv %s8651_s11  ;;  %s6429_s11 = sld [smem:[#allocation3 + $0x10e]]  ;;  %8710 = sst [smem:[#allocation36_spill]] %s6482_s26 }
 0x376   :  { %v6385_v13 = vmul.f32 %v8662_v41, %v2025_v22  ;;  %v8665_v33 = vmov %v8662_v41  ;;  %v8667_v7 = vstv %s8656_s9  ;;  %s6431_s9 = sld [smem:[#allocation3 + $0x10f]]  ;;  %s8723_s29 = sld [smem:[#allocation56_spill]] }
 0x377   :  { %v6395_v9 = vmul.f32 %v8665_v33, %v2026_v32  ;;  %v6399_v10 = vmul.f32 %v8667_v7, %v2025_v22  ;;  %v8669_v57 = vmov %v8667_v7  ;;  %s8729_s26 = sld [smem:[#allocation58_spill]]  ;;  %s8746_s5 = sld [smem:[#allocation60_spill]] }
 0x378   :  { %8663 = vst [vmem:[#allocation171_spill] sm:$0xff] %v6385_v13  ;;  %v6403_v37 = vmul.f32 %v8669_v57, %v2026_v32 }
 0x379   :  { %8653 = sst [smem:[#allocation44_spill]] %s6358_s7  ;;  %8666 = vst [vmem:[#allocation172_spill] sm:$0xff] %v6395_v9  ;;  %8668 = vst [vmem:[#allocation173_spill] sm:$0xff] %v6399_v10  ;;  %v8676_v9 = vstv %s8659_s28  ;;  %s6451_s28 = sld [smem:[#allocation3 + $0xbd]] }
 0x37a   :  { %8652 = sst [smem:[#allocation43_spill]] %s6356_s24  ;;  %s8658_s24 = sld [smem:[#allocation48_spill]]  ;;  %8670 = vst [vmem:[#allocation174_spill] sm:$0xff] %v6403_v37  ;;  %v6419_v7 = vmul.f32 %v8676_v9, %v2025_v22  ;;  %v8678_v10 = vmov %v8676_v9  ;;  %v8680_v37 = vstv %s8661_s12 }
 0x37b   :  { %s6377_s7 = sld [smem:[#allocation3 + $0xac]]  ;;  %v6423_v57 = vmul.f32 %v8678_v10, %v2026_v32  ;;  %8682 = sst [smem:[#allocation48_spill]] %s6429_s11  ;;  %v8690_v10 = vstv %s5658_s15 }
 0x37c   :  { %8677 = vst [vmem:[#allocation177_spill] sm:$0xff] %v6419_v7  ;;  %8683 = sst [smem:[#allocation49_spill]] %s6431_s9  ;;  %s6468_s12 = sld [smem:[#allocation3 + $0xbf]] }
 0x37d   :  { %8679 = vst [vmem:[#allocation178_spill] sm:$0xff] %v6423_v57  ;;  %s8707_s9 = sld [smem:[#allocation37_spill]]  ;;  %s6484_s11 = sld [smem:[#allocation3 + $0x11f]]  ;;  %v8738_v5 = vstv %s8729_s26 }
 0x37e   :  { %s8713_s8 = sld [smem:[#allocation44_spill]]  ;;  %s8714_s25 = sld [smem:[#allocation48_spill]] }
 0x37f   :  { %8693 = sst [smem:[#allocation52_spill]] %s6451_s28  ;;  %s8703_s28 = sld [smem:[#allocation35_spill]] }
 0x380   :  { %v8671_v41 = vstv %s8658_s24  ;;  %s6449_s24 = sld [smem:[#allocation3 + $0xbc]]  ;;  %s8715_s30 = sld [smem:[#allocation49_spill]] }
 0x381   :  { %8660 = sst [smem:[#allocation46_spill]] %s6377_s7  ;;  %v6407_v25 = vmul.f32 %v8671_v41, %v2025_v22  ;;  %v8674_v26 = vmov %v8671_v41  ;;  %v6427_v41 = vmul.f32 %v8680_v37, %v2027_v17  ;;  %s8717_s23 = sld [smem:[#allocation52_spill]] }
 0x382   :  { %v6415_v33 = vmul.f32 %v8674_v26, %v2026_v32  ;;  %8701 = sst [smem:[#allocation182_spill]] %s6468_s12  ;;  %s8709_s12 = sld [smem:[#allocation42_spill]] }
 0x383   :  { %8672 = vst [vmem:[#allocation175_spill] sm:$0xff] %v6407_v25  ;;  %8681 = vst [vmem:[#allocation117_spill] sm:$0xff] %v6427_v41  ;;  %v8684_v25 = vmov %v8680_v37  ;;  %v6447_v37 = vmul.f32 %v8690_v10, %v2027_v17  ;;  %v8694_v41 = vmov %v8690_v10  ;;  %8712 = sst [smem:[#allocation37_spill]] %s6484_s11  ;;  %s8719_s15 = sld [smem:[#allocation182_spill]] }
 0x384   :  { %8675 = vst [vmem:[#allocation176_spill] sm:$0xff] %v6415_v33  ;;  %v6435_v26 = vmul.f32 %v8684_v25, %v2028_v61  ;;  %v8686_v33 = vstv %s5642_s10  ;;  %v6455_v25 = vmul.f32 %v8694_v41, %v2028_v61  ;;  %s6466_s10 = sld [smem:[#allocation3 + $0xbe]]  ;;  %s8722_s7 = sld [smem:[#allocation55_spill]] }
 0x385   :  { %v6439_v22 = vmul.f32 %v8686_v33, %v2027_v17  ;;  %v8688_v9 = vmov %v8686_v33  ;;  %8691 = vst [vmem:[#allocation165_spill] sm:$0xff] %v6447_v37  ;;  %v1334_v37 = vpop.permute.xlu0 %1333  ;;  %s8726_s11 = sld [smem:[#allocation57_spill]]  ;;  %s8747_s26 = sld [smem:[#allocation61_spill]] }
 0x386   :  { %8685 = vst [vmem:[#allocation118_spill] sm:$0xff] %v6435_v26  ;;  %v6443_v32 = vmul.f32 %v8688_v9, %v2028_v61  ;;  %8692 = sst [smem:[#allocation51_spill]] %s6449_s24  ;;  %8695 = vst [vmem:[#allocation168_spill] sm:$0xff] %v6455_v25  ;;  %v8696_v26 = vstv %s8673_s20  ;;  %s6474_s20 = sld [smem:[#allocation3 + $0x11c]]  ;;  %v8727_v25 = vstv %s8721_s1 }
 0x387   :  { %8687 = vst [vmem:[#allocation119_spill] sm:$0xff] %v6439_v22  ;;  %v6459_v33 = vmul.f32 %v8696_v26, %v2027_v17  ;;  %v8698_v22 = vmov %v8696_v26  ;;  %s6476_s24 = sld [smem:[#allocation3 + $0x11d]]  ;;  %s8716_s0 = sld [smem:[#allocation51_spill]] }
 0x388   :  { %8689 = vst [vmem:[#allocation164_spill] sm:$0xff] %v6443_v32  ;;  %v6463_v9 = vmul.f32 %v8698_v22, %v2028_v61  ;;  %s8745_s1 = sld [smem:[#allocation180_spill]] }
 0x389   :  { %8697 = vst [vmem:[#allocation169_spill] sm:$0xff] %v6459_v33  ;;  %v1336_v33 = vpop.permute.xlu1 %1335  ;;  %v1340_v22 = vpop.permute.xlu0 %1339  ;;  %v9025_v11 = vstv %s8719_s15 }
 0x38a   :  { %8699 = vst [vmem:[#allocation170_spill] sm:$0xff] %v6463_v9  ;;  %8700 = sst [smem:[#allocation181_spill]] %s6466_s10  ;;  %v1337_v41 = vsel %vm74_vm6, %v1334_v37, %v1336_v33  ;;  %v1338_v54 = vsel %vm74_vm6, %v1336_v33, %v1334_v37  ;;  %v8725_v33 = vmov %v8724_v29  ;;  %v8730_v61 = vstv %s8722_s7  ;;  %s8756_s7 = sld [smem:[#allocation40_spill]] }
 0x38b   :  { %s8708_s10 = sld [smem:[#allocation39_spill]]  ;;  %v8731_v1 = vmov %v8730_v61 }
 0x38c   :  { %8704 = sst [smem:[#allocation35_spill]] %s6474_s20  ;;  %s8718_s19 = sld [smem:[#allocation181_spill]] }
 0x38d   :  { %8705 = sst [smem:[#allocation183_spill]] %s6476_s24  ;;  %v1342_v2 = vpop.permute.xlu1 %1341  ;;  %s8732_s24 = sld [smem:[#allocation59_spill]] }
 0x38e   :  { %v1343_v26 = vsel %vm81_vm7, %v1340_v22, %v1342_v2  ;;  %v1344_v10 = vsel %vm81_vm7, %v1342_v2, %v1340_v22  ;;  %v8728_v22 = vmov %v8727_v25  ;;  %s8735_s20 = sld [smem:[#allocation41_spill]] }
 0x38f   :  { %v1345_v57 = vsel %vm3628_vm8, %v1343_v26, %v1338_v54  ;;  %v1346_v9 = vsel %vm3658_vm9, %v1344_v10, %v1337_v41  ;;  %v1347_v17 = vsel %vm3712_vm10, %v1338_v54, %v1343_v26  ;;  %v1348_v32 = vsel %vm3718_vm11, %v1337_v41, %v1344_v10 }
 0x390   :  { %v1351_v37 = vmul.f32 %v8724_v29, %v1345_v57  ;;  %v1352_v13 = vmul.f32 %v8725_v33, %v1346_v9  ;;  %v1355_v2 = vmul.f32 %v8727_v25, %v1345_v57  ;;  %v1356_v7 = vmul.f32 %v8728_v22, %v1346_v9 }
 0x391   :  { %v1359_v35 = vmul.f32 %v8730_v61, %v1345_v57  ;;  %v1360_v54 = vmul.f32 %v8731_v1, %v1346_v9  ;;  %v8733_v26 = vstv %s8723_s29  ;;  %s8744_s29 = sld [smem:[#allocation179_spill]] }
 0x392   :  { %v1363_v10 = vmul.f32 %v8733_v26, %v1345_v57  ;;  %v8734_v41 = vmov %v8733_v26  ;;  %v1369_v33 = vadd.f32 %v5799_v18, %v1351_v37  ;;  %v1370_v25 = vadd.f32 %v5804_v59, %v1352_v13 }
 0x393   :  { %v1364_v29 = vmul.f32 %v8734_v41, %v1346_v9  ;;  %v1375_v19 = vadd.f32 %v5813_v62, %v1355_v2  ;;  %v1376_v22 = vadd.f32 %v5818_v16, %v1356_v7  ;;  %v1381_v61 = vadd.f32 %v5823_v38, %v1359_v35 }
 0x394   :  { %v1382_v24 = vadd.f32 %v5828_v53, %v1360_v54  ;;  %v1387_v1 = vadd.f32 %v5833_v63, %v1363_v10  ;;  %v8736_v26 = vstv %s8726_s11  ;;  %v1397_v18 = vmul.f32 %v8738_v5, %v1347_v17  ;;  %v1504_v54 = vpop.permute.xlu1 %1503  ;;  %v1502_v63 = vpop.permute.xlu0 %1501  ;;  %s8757_s11 = sld [smem:[#allocation62_spill]] }
 0x395   :  { %v1388_v57 = vadd.f32 %v5838_v50, %v1364_v29  ;;  %v1391_v43 = vmul.f32 %v8736_v26, %v1347_v17  ;;  %v8737_v9 = vmov %v8736_v26  ;;  %v8739_v37 = vmov %v8738_v5 }
 0x396   :  { %v1392_v41 = vmul.f32 %v8737_v9, %v1348_v32  ;;  %v1398_v59 = vmul.f32 %v8739_v37, %v1348_v32  ;;  %v8740_v13 = vstv %s8732_s24  ;;  %v8742_v7 = vstv %s8735_s20  ;;  %s8758_s24 = sld [smem:[#allocation50_spill]]  ;;  %s8759_s20 = sld [smem:[#allocation63_spill]] }
 0x397   :  { %v1403_v62 = vmul.f32 %v8740_v13, %v1347_v17  ;;  %v8741_v2 = vmov %v8740_v13  ;;  %v1409_v38 = vmul.f32 %v8742_v7, %v1347_v17  ;;  %v8743_v35 = vmov %v8742_v7 }
 0x398   :  { %v1404_v16 = vmul.f32 %v8741_v2, %v1348_v32  ;;  %v1410_v53 = vmul.f32 %v8743_v35, %v1348_v32  ;;  %v1393_v10 = vadd.f32 %v1391_v43, %v1369_v33  ;;  %v1394_v50 = vadd.f32 %v1392_v41, %v1370_v25  ;;  %v1510_v33 = vpop.permute.xlu1 %1509 }
 0x399   :  { %v1399_v29 = vadd.f32 %v1397_v18, %v1375_v19  ;;  %v1400_v26 = vadd.f32 %v1398_v59, %v1376_v22  ;;  %v1405_v20 = vadd.f32 %v1403_v62, %v1381_v61  ;;  %v1411_v28 = vadd.f32 %v1409_v38, %v1387_v1 }
 0x39a   :  { %v1406_v9 = vadd.f32 %v1404_v16, %v1382_v24  ;;  %v1412_v5 = vadd.f32 %v1410_v53, %v1388_v57  ;;  %v1433_v37 = vadd.f32 %v5937_v0, %v1393_v10  ;;  %v1434_v13 = vadd.f32 %v5942_v48, %v1394_v50 }
 0x39b   :  { %v1439_v2 = vadd.f32 %v5953_v45, %v1399_v29  ;;  %v1440_v17 = vadd.f32 %v5958_v23, %v1400_v26  ;;  %v1445_v32 = vadd.f32 %v5963_v46, %v1405_v20  ;;  %v1451_v43 = vadd.f32 %v5977_v27, %v1411_v28 }
 0x39c   :  { %v1446_v7 = vadd.f32 %v5968_v56, %v1406_v9  ;;  %v1452_v19 = vadd.f32 %v5982_v4, %v1412_v5  ;;  %v1505_v24 = vsel %vm74_vm6, %v1502_v63, %v1504_v54  ;;  %v1506_v0 = vsel %vm74_vm6, %v1504_v54, %v1502_v63  ;;  %v1508_v56 = vpop.permute.xlu0 %1507  ;;  %v1616_v63 = vpop.permute.xlu1 %1615 }
 0x39d   :  { %v1458_v48 = vadd.f32 %v5365_v55, %v1434_v13  ;;  %v1464_v45 = vadd.f32 %v5370_v47, %v1440_v17  ;;  %v1457_v28 = vadd.f32 %v5417_v14, %v1433_v37  ;;  %v1463_v46 = vadd.f32 %v5431_v52, %v1439_v2 }
 0x39e   :  { %v1470_v23 = vadd.f32 %v5391_v58, %v1446_v7  ;;  %v1476_v20 = vadd.f32 %v5414_v39, %v1452_v19  ;;  %v1469_v55 = vadd.f32 %v5461_v60, %v1445_v32  ;;  %v1475_v47 = vadd.f32 %v5466_v36, %v1451_v43  ;;  %v8760_v7 = vld [vmem:[#allocation136_spill] sm:$0xff] }
 0x39f   :  { %v1482_v27 = vadd.f32 %v5992_v42, %v1458_v48  ;;  %v1488_v4 = vadd.f32 %v6004_v34, %v1464_v45  ;;  %v1481_v14 = vadd.f32 %v5987_v40, %v1457_v28  ;;  %v1487_v42 = vadd.f32 %v5999_v12, %v1463_v46  ;;  %v8761_v19 = vld [vmem:[#allocation148_spill] sm:$0xff]  ;;  %v8763_v45 = vld [vmem:[#allocation126_spill] sm:$0xff] }
 0x3a0   :  { %v1494_v58 = vadd.f32 %v6014_v21, %v1470_v23  ;;  %v1500_v39 = vadd.f32 %v6024_v51, %v1476_v20  ;;  %v1493_v52 = vadd.f32 %v6009_v31, %v1469_v55  ;;  %v1499_v60 = vadd.f32 %v6019_v30, %v1475_v47  ;;  %v1614_v10 = vpop.permute.xlu0 %1613  ;;  %v8764_v23 = vld [vmem:[#allocation130_spill] sm:$0xff] }
 0x3a1   :  { %v1511_v36 = vsel %vm81_vm7, %v1508_v56, %v1510_v33  ;;  %v1512_v21 = vsel %vm81_vm7, %v1510_v33, %v1508_v56  ;;  %v8748_v34 = vstv %s8744_s29  ;;  %v8750_v61 = vstv %s8745_s1  ;;  %v8765_v56 = vld [vmem:[#allocation132_spill] sm:$0xff]  ;;  %s8774_s29 = sld [smem:[#allocation64_spill]]  ;;  %s8775_s1 = sld [smem:[#allocation65_spill]] }
 0x3a2   :  { %v1513_v51 = vsel %vm3628_vm8, %v1511_v36, %v1506_v0  ;;  %v1514_v40 = vsel %vm3658_vm9, %v1512_v21, %v1505_v24  ;;  %v1515_v12 = vsel %vm3712_vm10, %v1506_v0, %v1511_v36  ;;  %v1516_v31 = vsel %vm3718_vm11, %v1505_v24, %v1512_v21  ;;  %v8762_v0 = vld [vmem:[#allocation124_spill] sm:$0xff] }
 0x3a3   :  { %v1519_v30 = vmul.f32 %v8748_v34, %v1513_v51  ;;  %v8749_v25 = vmov %v8748_v34  ;;  %v1525_v1 = vmul.f32 %v8750_v61, %v1513_v51  ;;  %v8751_v57 = vmov %v8750_v61 }
 0x3a4   :  { %v1520_v22 = vmul.f32 %v8749_v25, %v1514_v40  ;;  %v1526_v41 = vmul.f32 %v8751_v57, %v1514_v40  ;;  %v8752_v18 = vstv %s8746_s5  ;;  %v8754_v38 = vstv %s8747_s26  ;;  %v1620_v34 = vpop.permute.xlu0 %1619  ;;  %s8776_s5 = sld [smem:[#allocation66_spill]]  ;;  %s8777_s26 = sld [smem:[#allocation67_spill]] }
 0x3a5   :  { %v1531_v59 = vmul.f32 %v8752_v18, %v1513_v51  ;;  %v8753_v62 = vmov %v8752_v18  ;;  %v1537_v35 = vmul.f32 %v8754_v38, %v1513_v51  ;;  %v8755_v53 = vmov %v8754_v38 }
 0x3a6   :  { %v1532_v16 = vmul.f32 %v8753_v62, %v1514_v40  ;;  %v1538_v54 = vmul.f32 %v8755_v53, %v1514_v40  ;;  %v1521_v50 = vadd.f32 %v1519_v30, %v1481_v14  ;;  %v1522_v29 = vadd.f32 %v1520_v22, %v1482_v27  ;;  %v1622_v40 = vpop.permute.xlu1 %1621 }
 0x3a7   :  { %v1527_v26 = vadd.f32 %v1525_v1, %v1487_v42  ;;  %v1528_v9 = vadd.f32 %v1526_v41, %v1488_v4  ;;  %v1533_v5 = vadd.f32 %v1531_v59, %v1493_v52  ;;  %v1539_v13 = vadd.f32 %v1537_v35, %v1499_v60 }
 0x3a8   :  { %v1534_v37 = vadd.f32 %v1532_v16, %v1494_v58  ;;  %v1540_v2 = vadd.f32 %v1538_v54, %v1500_v39  ;;  %v1545_v17 = vadd.f32 %v5757_v3, %v1521_v50  ;;  %v1546_v32 = vadd.f32 %v5762_v49, %v1522_v29 }
 0x3a9   :  { %v1551_v43 = vadd.f32 %v8760_v7, %v1527_v26  ;;  %v1552_v24 = vadd.f32 %v8761_v19, %v1528_v9  ;;  %v1557_v48 = vadd.f32 %v8762_v0, %v1533_v5  ;;  %v1563_v20 = vadd.f32 %v8764_v23, %v1539_v13  ;;  %v1814_v23 = vpop.permute.xlu0 %1813 }
 0x3aa   :  { %v1558_v33 = vadd.f32 %v8763_v45, %v1534_v37  ;;  %v1564_v28 = vadd.f32 %v8765_v56, %v1540_v2  ;;  %v8766_v46 = vstv %s8756_s7  ;;  %v8768_v47 = vstv %s8757_s11  ;;  %s8786_s7 = sld [smem:[#allocation68_spill]]  ;;  %s8787_s11 = sld [smem:[#allocation38_spill]] }
 0x3ab   :  { %v1567_v27 = vmul.f32 %v8766_v46, %v1515_v12  ;;  %v8767_v4 = vmov %v8766_v46  ;;  %v1573_v3 = vmul.f32 %v8768_v47, %v1515_v12  ;;  %v8769_v58 = vmov %v8768_v47 }
 0x3ac   :  { %v1568_v55 = vmul.f32 %v8767_v4, %v1516_v31  ;;  %v1574_v49 = vmul.f32 %v8769_v58, %v1516_v31  ;;  %v8770_v39 = vstv %s8758_s24  ;;  %v8772_v60 = vstv %s8759_s20  ;;  %s8788_s24 = sld [smem:[#allocation16_spill]]  ;;  %s8789_s20 = sld [smem:[#allocation17_spill]] }
 0x3ad   :  { %v1579_v14 = vmul.f32 %v8770_v39, %v1515_v12  ;;  %v8771_v42 = vmov %v8770_v39  ;;  %v1585_v36 = vmul.f32 %v8772_v60, %v1515_v12  ;;  %v8773_v21 = vmov %v8772_v60 }
 0x3ae   :  { %v1580_v52 = vmul.f32 %v8771_v42, %v1516_v31  ;;  %v1586_v51 = vmul.f32 %v8773_v21, %v1516_v31  ;;  %v1569_v30 = vadd.f32 %v1567_v27, %v1545_v17  ;;  %v1570_v25 = vadd.f32 %v1568_v55, %v1546_v32  ;;  %v8790_v27 = vld [vmem:[#allocation139_spill] sm:$0xff]  ;;  %v8791_v55 = vld [vmem:[#allocation152_spill] sm:$0xff] }
 0x3af   :  { %v1575_v22 = vadd.f32 %v1573_v3, %v1551_v43  ;;  %v1576_v61 = vadd.f32 %v1574_v49, %v1552_v24  ;;  %v1581_v1 = vadd.f32 %v1579_v14, %v1557_v48  ;;  %v1587_v41 = vadd.f32 %v1585_v36, %v1563_v20  ;;  %v8792_v3 = vld [vmem:[#allocation134_spill] sm:$0xff]  ;;  %v8793_v49 = vld [vmem:[#allocation137_spill] sm:$0xff]  ;;  %v8794_v14 = vld [vmem:[#allocation131_spill] sm:$0xff] }
 0x3b0   :  { %v1582_v57 = vadd.f32 %v1580_v52, %v1558_v33  ;;  %v1588_v18 = vadd.f32 %v1586_v51, %v1564_v28  ;;  %v1617_v12 = vsel %vm74_vm6, %v1614_v10, %v1616_v63  ;;  %v1618_v31 = vsel %vm74_vm6, %v1616_v63, %v1614_v10  ;;  %v1816_v33 = vpop.permute.xlu1 %1815  ;;  %v8795_v52 = vld [vmem:[#allocation133_spill] sm:$0xff]  ;;  %v8796_v36 = vld [vmem:[#allocation135_spill] sm:$0xff]  ;;  %v8797_v51 = vld [vmem:[#allocation138_spill] sm:$0xff] }
 0x3b1   :  { %v1623_v59 = vsel %vm81_vm7, %v1620_v34, %v1622_v40  ;;  %v1624_v62 = vsel %vm81_vm7, %v1622_v40, %v1620_v34  ;;  %v8778_v54 = vstv %s8774_s29  ;;  %v8780_v29 = vstv %s8775_s1  ;;  %s8832_s29 = sld [smem:[#allocation18_spill]]  ;;  %s8833_s1 = sld [smem:[#allocation19_spill]] }
 0x3b2   :  { %v1625_v16 = vsel %vm3628_vm8, %v1623_v59, %v1618_v31  ;;  %v1626_v38 = vsel %vm3658_vm9, %v1624_v62, %v1617_v12  ;;  %v1627_v35 = vsel %vm3712_vm10, %v1618_v31, %v1623_v59  ;;  %v1628_v53 = vsel %vm3718_vm11, %v1617_v12, %v1624_v62 }
 0x3b3   :  { %v1631_v63 = vmul.f32 %v8778_v54, %v1625_v16  ;;  %v8779_v10 = vmov %v8778_v54  ;;  %v1637_v26 = vmul.f32 %v8780_v29, %v1625_v16  ;;  %v8781_v9 = vmov %v8780_v29 }
 0x3b4   :  { %v1632_v50 = vmul.f32 %v8779_v10, %v1626_v38  ;;  %v1638_v5 = vmul.f32 %v8781_v9, %v1626_v38  ;;  %v8782_v37 = vstv %s8776_s5  ;;  %v8784_v32 = vstv %s8777_s26  ;;  %v1820_v9 = vpop.permute.xlu0 %1819  ;;  %s8836_s5 = sld [smem:[#allocation20_spill]]  ;;  %s8839_s26 = sld [smem:[#allocation21_spill]] }
 0x3b5   :  { %v1643_v13 = vmul.f32 %v8782_v37, %v1625_v16  ;;  %v8783_v2 = vmov %v8782_v37  ;;  %v1649_v7 = vmul.f32 %v8784_v32, %v1625_v16  ;;  %v8785_v43 = vmov %v8784_v32 }
 0x3b6   :  { %v1644_v17 = vmul.f32 %v8783_v2, %v1626_v38  ;;  %v1650_v19 = vmul.f32 %v8785_v43, %v1626_v38  ;;  %v1633_v24 = vadd.f32 %v1631_v63, %v1569_v30  ;;  %v1634_v0 = vadd.f32 %v1632_v50, %v1570_v25 }
 0x3b7   :  { %v1639_v48 = vadd.f32 %v1637_v26, %v1575_v22  ;;  %v1640_v45 = vadd.f32 %v1638_v5, %v1576_v61  ;;  %v1645_v20 = vadd.f32 %v1643_v13, %v1581_v1  ;;  %v1651_v28 = vadd.f32 %v1649_v7, %v1587_v41  ;;  %v1822_v26 = vpop.permute.xlu1 %1821  ;;  %v8807_v7 = vld [vmem:[#allocation102_spill] sm:$0xff] }
 0x3b8   :  { %v1646_v56 = vadd.f32 %v1644_v17, %v1582_v57  ;;  %v1652_v46 = vadd.f32 %v1650_v19, %v1588_v18  ;;  %v1657_v4 = vadd.f32 %v8790_v27, %v1633_v24  ;;  %v1658_v47 = vadd.f32 %v8791_v55, %v1634_v0  ;;  %v8806_v17 = vld [vmem:[#allocation101_spill] sm:$0xff]  ;;  %v8808_v19 = vld [vmem:[#allocation103_spill] sm:$0xff]  ;;  %v8809_v0 = vld [vmem:[#allocation104_spill] sm:$0xff] }
 0x3b9   :  { %v1663_v58 = vadd.f32 %v8792_v3, %v1639_v48  ;;  %v1664_v39 = vadd.f32 %v8793_v49, %v1640_v45  ;;  %v1669_v42 = vadd.f32 %v8794_v14, %v1645_v20  ;;  %v1675_v21 = vadd.f32 %v8796_v36, %v1651_v28  ;;  %v8810_v48 = vld [vmem:[#allocation105_spill] sm:$0xff]  ;;  %v8811_v45 = vld [vmem:[#allocation106_spill] sm:$0xff] }
 0x3ba   :  { %v1670_v60 = vadd.f32 %v8795_v52, %v1646_v56  ;;  %v1676_v40 = vadd.f32 %v8797_v51, %v1652_v46  ;;  %v8798_v34 = vstv %s8786_s7  ;;  %v8800_v61 = vstv %s8787_s11  ;;  %v8812_v56 = vld [vmem:[#allocation107_spill] sm:$0xff]  ;;  %v8813_v46 = vld [vmem:[#allocation108_spill] sm:$0xff]  ;;  %v8816_v49 = vld [vmem:[#allocation69_spill] sm:$0xff]  ;;  %s8850_s7 = sld [smem:[#allocation22_spill]]  ;;  %s8851_s11 = sld [smem:[#allocation23_spill]] }
 0x3bb   :  { %v1679_v30 = vmul.f32 %v8798_v34, %v1627_v35  ;;  %v8799_v25 = vmov %v8798_v34  ;;  %v1685_v1 = vmul.f32 %v8800_v61, %v1627_v35  ;;  %v8801_v57 = vmov %v8800_v61  ;;  %v8820_v36 = vld [vmem:[#allocation73_spill] sm:$0xff] }
 0x3bc   :  { %v1680_v22 = vmul.f32 %v8799_v25, %v1628_v53  ;;  %v1686_v41 = vmul.f32 %v8801_v57, %v1628_v53  ;;  %v8802_v18 = vstv %s8788_s24  ;;  %v8804_v62 = vstv %s8789_s20  ;;  %v8824_v25 = vld [vmem:[#allocation123_spill] sm:$0xff]  ;;  %s8852_s24 = sld [smem:[#allocation24_spill]]  ;;  %s8853_s20 = sld [smem:[#allocation25_spill]] }
 0x3bd   :  { %v1691_v12 = vmul.f32 %v8802_v18, %v1627_v35  ;;  %v8803_v31 = vmov %v8802_v18  ;;  %v1697_v16 = vmul.f32 %v8804_v62, %v1627_v35  ;;  %v8805_v38 = vmov %v8804_v62 }
 0x3be   :  { %v1692_v59 = vmul.f32 %v8803_v31, %v1628_v53  ;;  %v1698_v54 = vmul.f32 %v8805_v38, %v1628_v53  ;;  %v1681_v63 = vadd.f32 %v1679_v30, %v1657_v4  ;;  %v1682_v10 = vadd.f32 %v1680_v22, %v1658_v47  ;;  %v8814_v47 = vld [vmem:[#allocation122_spill] sm:$0xff]  ;;  %v8830_v31 = vld [vmem:[#allocation72_spill] sm:$0xff]  ;;  %v1926_v38 = vpop.permute.xlu0 %1925 }
 0x3bf   :  { %v1687_v50 = vadd.f32 %v1685_v1, %v1663_v58  ;;  %v1688_v29 = vadd.f32 %v1686_v41, %v1664_v39  ;;  %v1693_v5 = vadd.f32 %v1691_v12, %v1669_v42  ;;  %v1699_v13 = vadd.f32 %v1697_v16, %v1675_v21  ;;  %v8818_v42 = vld [vmem:[#allocation71_spill] sm:$0xff]  ;;  %v8826_v1 = vld [vmem:[#allocation110_spill] sm:$0xff]  ;;  %v1928_v16 = vpop.permute.xlu1 %1927 }
 0x3c0   :  { %v1694_v37 = vadd.f32 %v1692_v59, %v1670_v60  ;;  %v1700_v2 = vadd.f32 %v1698_v54, %v1676_v40  ;;  %v1721_v32 = vadd.f32 %v8806_v17, %v1681_v63  ;;  %v1722_v43 = vadd.f32 %v8807_v7, %v1682_v10  ;;  %v8822_v40 = vld [vmem:[#allocation120_spill] sm:$0xff]  ;;  %v8828_v41 = vld [vmem:[#allocation70_spill] sm:$0xff] }
 0x3c1   :  { %v1727_v24 = vadd.f32 %v8808_v19, %v1687_v50  ;;  %v1728_v35 = vadd.f32 %v8809_v0, %v1688_v29  ;;  %v1733_v53 = vadd.f32 %v8810_v48, %v1693_v5  ;;  %v1739_v28 = vadd.f32 %v8812_v56, %v1699_v13  ;;  %v8834_v54 = vld [vmem:[#allocation114_spill] sm:$0xff]  ;;  %v8835_v10 = vld [vmem:[#allocation116_spill] sm:$0xff]  ;;  %v8837_v29 = vld [vmem:[#allocation109_spill] sm:$0xff] }
 0x3c2   :  { %v1734_v20 = vadd.f32 %v8811_v45, %v1694_v37  ;;  %v1740_v27 = vadd.f32 %v8813_v46, %v1700_v2  ;;  %v1817_v4 = vsel %vm74_vm6, %v1814_v23, %v1816_v33  ;;  %v1818_v55 = vsel %vm74_vm6, %v1816_v33, %v1814_v23  ;;  %v8827_v23 = vld [vmem:[#allocation112_spill] sm:$0xff]  ;;  %v8838_v37 = vld [vmem:[#allocation111_spill] sm:$0xff]  ;;  %v8840_v2 = vld [vmem:[#allocation113_spill] sm:$0xff] }
 0x3c3   :  { %v8815_v3 = vrot.slane %v8814_v47, 2  ;;  %v8817_v39 = vrot.slane %v8816_v49, 2  ;;  %v8819_v52 = vrot.slane %v8818_v42, 2  ;;  %v8821_v21 = vrot.slane %v8820_v36, 2  ;;  %v1934_v36 = vpop.permute.xlu1 %1933 }
 0x3c4   :  { %v8823_v34 = vrot.slane %v8822_v40, 2  ;;  %v8825_v22 = vrot.slane %v8824_v25, 2  ;;  %v8829_v18 = vrot.slane %v8828_v41, 2  ;;  %v8831_v59 = vrot.slane %v8830_v31, 2  ;;  %v8854_v25 = vld [vmem:[#allocation85_spill] sm:$0xff]  ;;  %v8859_v31 = vld [vmem:[#allocation90_spill] sm:$0xff] }
 0x3c5   :  { %v1752_v58 = vadd.f32 %v8815_v3, %v1722_v43  ;;  %v1764_v14 = vadd.f32 %v8817_v39, %v1728_v35  ;;  %v1776_v60 = vadd.f32 %v8819_v52, %v1734_v20  ;;  %v1788_v51 = vadd.f32 %v8821_v21, %v1740_v27  ;;  %v1932_v21 = vpop.permute.xlu0 %1931 }
 0x3c6   :  { %v1751_v30 = vadd.f32 %v8823_v34, %v1721_v32  ;;  %v1763_v61 = vadd.f32 %v8825_v22, %v1727_v24  ;;  %v1775_v12 = vadd.f32 %v8829_v18, %v1733_v53  ;;  %v1787_v62 = vadd.f32 %v8831_v59, %v1739_v28  ;;  %v8841_v32 = vld [vmem:[#allocation115_spill] sm:$0xff]  ;;  %v8858_v18 = vld [vmem:[#allocation89_spill] sm:$0xff] }
 0x3c7   :  { %v1794_v33 = vadd.f32 %v8826_v1, %v1752_v58  ;;  %v1800_v57 = vadd.f32 %v8827_v23, %v1764_v14  ;;  %v1806_v63 = vadd.f32 %v8834_v54, %v1776_v60  ;;  %v1812_v50 = vadd.f32 %v8835_v10, %v1788_v51 }
 0x3c8   :  { %v1793_v5 = vadd.f32 %v8837_v29, %v1751_v30  ;;  %v1799_v13 = vadd.f32 %v8838_v37, %v1763_v61  ;;  %v1805_v17 = vadd.f32 %v8840_v2, %v1775_v12  ;;  %v1811_v7 = vadd.f32 %v8841_v32, %v1787_v62  ;;  %v8855_v61 = vld [vmem:[#allocation86_spill] sm:$0xff]  ;;  %v8860_v62 = vld [vmem:[#allocation91_spill] sm:$0xff] }
 0x3c9   :  { %v1823_v43 = vsel %vm81_vm7, %v1820_v9, %v1822_v26  ;;  %v1824_v19 = vsel %vm81_vm7, %v1822_v26, %v1820_v9  ;;  %v8842_v53 = vstv %s8832_s29  ;;  %v8844_v28 = vstv %s8833_s1  ;;  %s8870_s29 = sld [smem:[#allocation26_spill]]  ;;  %s8871_s1 = sld [smem:[#allocation27_spill]] }
 0x3ca   :  { %v1825_v24 = vsel %vm3628_vm8, %v1823_v43, %v1818_v55  ;;  %v1826_v0 = vsel %vm3658_vm9, %v1824_v19, %v1817_v4  ;;  %v1827_v35 = vsel %vm3712_vm10, %v1818_v55, %v1823_v43  ;;  %v1828_v48 = vsel %vm3718_vm11, %v1817_v4, %v1824_v19 }
 0x3cb   :  { %v1831_v45 = vmul.f32 %v8842_v53, %v1825_v24  ;;  %v8843_v20 = vmov %v8842_v53  ;;  %v1837_v46 = vmul.f32 %v8844_v28, %v1825_v24  ;;  %v8845_v27 = vmov %v8844_v28 }
 0x3cc   :  { %v1832_v56 = vmul.f32 %v8843_v20, %v1826_v0  ;;  %v1838_v26 = vmul.f32 %v8845_v27, %v1826_v0  ;;  %v8846_v9 = vstv %s8836_s5  ;;  %v8848_v49 = vstv %s8839_s26  ;;  %s8872_s5 = sld [smem:[#allocation28_spill]]  ;;  %s8881_s26 = sld [smem:[#allocation29_spill]] }
 0x3cd   :  { %v1843_v47 = vmul.f32 %v8846_v9, %v1825_v24  ;;  %v8847_v3 = vmov %v8846_v9  ;;  %v1849_v39 = vmul.f32 %v8848_v49, %v1825_v24  ;;  %v8849_v14 = vmov %v8848_v49  ;;  %v6800_v9 = vpop.permute.xlu0 %2325 }
 0x3ce   :  { %v1844_v58 = vmul.f32 %v8847_v3, %v1826_v0  ;;  %v1850_v42 = vmul.f32 %v8849_v14, %v1826_v0  ;;  %v1833_v55 = vadd.f32 %v1831_v45, %v1793_v5  ;;  %v1834_v52 = vadd.f32 %v1832_v56, %v1794_v33  ;;  %v8856_v33 = vld [vmem:[#allocation87_spill] sm:$0xff] }
 0x3cf   :  { %v1839_v60 = vadd.f32 %v1837_v46, %v1799_v13  ;;  %v1840_v4 = vadd.f32 %v1838_v26, %v1800_v57  ;;  %v1845_v51 = vadd.f32 %v1843_v47, %v1805_v17  ;;  %v1851_v34 = vadd.f32 %v1849_v39, %v1811_v7  ;;  %v8857_v57 = vld [vmem:[#allocation88_spill] sm:$0xff]  ;;  %v6798_v26 = vpop.permute.xlu1 %2327 }
 0x3d0   :  { %v1846_v40 = vadd.f32 %v1844_v58, %v1806_v63  ;;  %v1852_v30 = vadd.f32 %v1850_v42, %v1812_v50  ;;  %v1857_v22 = vadd.f32 %v8854_v25, %v1833_v55  ;;  %v1858_v1 = vadd.f32 %v8855_v61, %v1834_v52  ;;  %v8861_v63 = vld [vmem:[#allocation92_spill] sm:$0xff] }
 0x3d1   :  { %v1863_v23 = vadd.f32 %v8856_v33, %v1839_v60  ;;  %v1864_v41 = vadd.f32 %v8857_v57, %v1840_v4  ;;  %v1869_v12 = vadd.f32 %v8858_v18, %v1845_v51  ;;  %v1875_v54 = vadd.f32 %v8860_v62, %v1851_v34  ;;  %v2126_v62 = vpop.permute.xlu0 %2125 }
 0x3d2   :  { %v1870_v59 = vadd.f32 %v8859_v31, %v1846_v40  ;;  %v1876_v10 = vadd.f32 %v8861_v63, %v1852_v30  ;;  %v8862_v29 = vstv %s8850_s7  ;;  %v8864_v13 = vstv %s8851_s11  ;;  %s8882_s7 = sld [smem:[#allocation30_spill]]  ;;  %s8942_s11 = sld [smem:[#allocation34_spill]] }
 0x3d3   :  { %v1879_v5 = vmul.f32 %v8862_v29, %v1827_v35  ;;  %v8863_v50 = vmov %v8862_v29  ;;  %v1885_v2 = vmul.f32 %v8864_v13, %v1827_v35  ;;  %v8865_v17 = vmov %v8864_v13 }
 0x3d4   :  { %v1880_v37 = vmul.f32 %v8863_v50, %v1828_v48  ;;  %v1886_v32 = vmul.f32 %v8865_v17, %v1828_v48  ;;  %v8866_v7 = vstv %s8852_s24  ;;  %v8868_v0 = vstv %s8853_s20 }
 0x3d5   :  { %v1891_v43 = vmul.f32 %v8866_v7, %v1827_v35  ;;  %v8867_v19 = vmov %v8866_v7  ;;  %v1897_v53 = vmul.f32 %v8868_v0, %v1827_v35  ;;  %v8869_v45 = vmov %v8868_v0 }
 0x3d6   :  { %v1892_v24 = vmul.f32 %v8867_v19, %v1828_v48  ;;  %v1898_v20 = vmul.f32 %v8869_v45, %v1828_v48  ;;  %v1881_v56 = vadd.f32 %v1879_v5, %v1857_v22  ;;  %v1882_v28 = vadd.f32 %v1880_v37, %v1858_v1  ;;  %v8883_v5 = vld [vmem:[#allocation93_spill] sm:$0xff]  ;;  %v8884_v37 = vld [vmem:[#allocation94_spill] sm:$0xff] }
 0x3d7   :  { %v1887_v46 = vadd.f32 %v1885_v2, %v1863_v23  ;;  %v1888_v27 = vadd.f32 %v1886_v32, %v1864_v41  ;;  %v1893_v47 = vadd.f32 %v1891_v43, %v1869_v12  ;;  %v1899_v58 = vadd.f32 %v1897_v53, %v1875_v54  ;;  %v8885_v2 = vld [vmem:[#allocation95_spill] sm:$0xff]  ;;  %v8886_v32 = vld [vmem:[#allocation96_spill] sm:$0xff]  ;;  %v8887_v43 = vld [vmem:[#allocation97_spill] sm:$0xff] }
 0x3d8   :  { %v1894_v3 = vadd.f32 %v1892_v24, %v1870_v59  ;;  %v1900_v35 = vadd.f32 %v1898_v20, %v1876_v10  ;;  %v1929_v48 = vsel %vm74_vm6, %v1926_v38, %v1928_v16  ;;  %v1930_v49 = vsel %vm74_vm6, %v1928_v16, %v1926_v38  ;;  %v2128_v59 = vpop.permute.xlu1 %2127  ;;  %v8888_v24 = vld [vmem:[#allocation98_spill] sm:$0xff]  ;;  %v8889_v53 = vld [vmem:[#allocation99_spill] sm:$0xff]  ;;  %v8890_v20 = vld [vmem:[#allocation100_spill] sm:$0xff] }
 0x3d9   :  { %v1935_v39 = vsel %vm81_vm7, %v1932_v21, %v1934_v36  ;;  %v1936_v14 = vsel %vm81_vm7, %v1934_v36, %v1932_v21  ;;  %v8873_v4 = vstv %s8870_s29  ;;  %v8875_v40 = vstv %s8871_s1 }
 0x3da   :  { %v1937_v42 = vsel %vm3628_vm8, %v1935_v39, %v1930_v49  ;;  %v1938_v55 = vsel %vm3658_vm9, %v1936_v14, %v1929_v48  ;;  %v1939_v52 = vsel %vm3712_vm10, %v1930_v49, %v1935_v39  ;;  %v1940_v60 = vsel %vm3718_vm11, %v1929_v48, %v1936_v14 }
 0x3db   :  { %v1943_v16 = vmul.f32 %v8873_v4, %v1937_v42  ;;  %v8874_v38 = vmov %v8873_v4  ;;  %v1949_v34 = vmul.f32 %v8875_v40, %v1937_v42  ;;  %v8876_v30 = vmov %v8875_v40 }
 0x3dc   :  { %v1944_v51 = vmul.f32 %v8874_v38, %v1938_v55  ;;  %v1950_v36 = vmul.f32 %v8876_v30, %v1938_v55  ;;  %v8877_v21 = vstv %s8872_s5  ;;  %v8879_v1 = vstv %s6194_s14  ;;  %s8927_s14 = sld [smem:[#allocation31_spill]] }
 0x3dd   :  { %v1955_v25 = vmul.f32 %v8877_v21, %v1937_v42  ;;  %v8878_v22 = vmov %v8877_v21  ;;  %v1961_v33 = vmul.f32 %v8879_v1, %v1937_v42  ;;  %v8880_v23 = vmov %v8879_v1  ;;  %v2132_v21 = vpop.permute.xlu0 %2131 }
 0x3de   :  { %v1956_v61 = vmul.f32 %v8878_v22, %v1938_v55  ;;  %v1962_v57 = vmul.f32 %v8880_v23, %v1938_v55  ;;  %v1945_v41 = vadd.f32 %v1943_v16, %v1881_v56  ;;  %v1946_v18 = vadd.f32 %v1944_v51, %v1882_v28 }
 0x3df   :  { %v1951_v12 = vadd.f32 %v1949_v34, %v1887_v46  ;;  %v1952_v31 = vadd.f32 %v1950_v36, %v1888_v27  ;;  %v1957_v54 = vadd.f32 %v1955_v25, %v1893_v47  ;;  %v1963_v10 = vadd.f32 %v1961_v33, %v1899_v58  ;;  %v2134_v36 = vpop.permute.xlu1 %2133  ;;  %v8899_v33 = vld [vmem:[#allocation171_spill] sm:$0xff] }
 0x3e0   :  { %v1958_v63 = vadd.f32 %v1956_v61, %v1894_v3  ;;  %v1964_v29 = vadd.f32 %v1962_v57, %v1900_v35  ;;  %v1969_v50 = vadd.f32 %v8883_v5, %v1945_v41  ;;  %v1970_v13 = vadd.f32 %v8884_v37, %v1946_v18  ;;  %v8900_v57 = vld [vmem:[#allocation172_spill] sm:$0xff]  ;;  %v8901_v18 = vld [vmem:[#allocation173_spill] sm:$0xff] }
 0x3e1   :  { %v1975_v17 = vadd.f32 %v8885_v2, %v1951_v12  ;;  %v1976_v7 = vadd.f32 %v8886_v32, %v1952_v31  ;;  %v1981_v19 = vadd.f32 %v8887_v43, %v1957_v54  ;;  %v1987_v45 = vadd.f32 %v8889_v53, %v1963_v10  ;;  %v8902_v31 = vld [vmem:[#allocation174_spill] sm:$0xff]  ;;  %v8903_v54 = vld [vmem:[#allocation175_spill] sm:$0xff] }
 0x3e2   :  { %v1982_v0 = vadd.f32 %v8888_v24, %v1958_v63  ;;  %v1988_v56 = vadd.f32 %v8890_v20, %v1964_v29  ;;  %v8891_v28 = vstv %s6214_s4  ;;  %v8893_v3 = vstv %s6216_s16  ;;  %v8904_v63 = vld [vmem:[#allocation176_spill] sm:$0xff]  ;;  %v8905_v29 = vld [vmem:[#allocation177_spill] sm:$0xff]  ;;  %s8930_s4 = sld [smem:[#allocation32_spill]]  ;;  %s8933_s16 = sld [smem:[#allocation33_spill]] }
 0x3e3   :  { %v1991_v46 = vmul.f32 %v8891_v28, %v1939_v52  ;;  %v8892_v27 = vmov %v8891_v28  ;;  %v1997_v58 = vmul.f32 %v8893_v3, %v1939_v52  ;;  %v8894_v35 = vmov %v8893_v3  ;;  %v8909_v24 = vld [vmem:[#allocation77_spill] sm:$0xff]  ;;  %v8917_v3 = vld [vmem:[#allocation76_spill] sm:$0xff] }
 0x3e4   :  { %v1992_v47 = vmul.f32 %v8892_v27, %v1940_v60  ;;  %v1998_v48 = vmul.f32 %v8894_v35, %v1940_v60  ;;  %v8895_v49 = vstv %s8881_s26  ;;  %v8897_v55 = vstv %s8882_s7  ;;  %v8913_v28 = vld [vmem:[#allocation81_spill] sm:$0xff] }
 0x3e5   :  { %v2003_v39 = vmul.f32 %v8895_v49, %v1939_v52  ;;  %v8896_v14 = vmov %v8895_v49  ;;  %v2009_v4 = vmul.f32 %v8897_v55, %v1939_v52  ;;  %v8898_v16 = vmov %v8897_v55  ;;  %v8921_v49 = vld [vmem:[#allocation80_spill] sm:$0xff]  ;;  %v2238_v55 = vpop.permute.xlu0 %2237 }
 0x3e6   :  { %v2004_v42 = vmul.f32 %v8896_v14, %v1940_v60  ;;  %v2010_v38 = vmul.f32 %v8898_v16, %v1940_v60  ;;  %v1993_v51 = vadd.f32 %v1991_v46, %v1969_v50  ;;  %v1994_v40 = vadd.f32 %v1992_v47, %v1970_v13  ;;  %v8906_v50 = vld [vmem:[#allocation178_spill] sm:$0xff] }
 0x3e7   :  { %v1999_v34 = vadd.f32 %v1997_v58, %v1975_v17  ;;  %v2000_v30 = vadd.f32 %v1998_v48, %v1976_v7  ;;  %v2005_v25 = vadd.f32 %v2003_v39, %v1981_v19  ;;  %v2011_v61 = vadd.f32 %v2009_v4, %v1987_v45  ;;  %v8907_v7 = vld [vmem:[#allocation75_spill] sm:$0xff]  ;;  %v8919_v48 = vld [vmem:[#allocation78_spill] sm:$0xff] }
 0x3e8   :  { %v2006_v22 = vadd.f32 %v2004_v42, %v1982_v0  ;;  %v2012_v1 = vadd.f32 %v2010_v38, %v1988_v56  ;;  %v2033_v23 = vadd.f32 %v8899_v33, %v1993_v51  ;;  %v2034_v41 = vadd.f32 %v8900_v57, %v1994_v40  ;;  %v8911_v45 = vld [vmem:[#allocation79_spill] sm:$0xff]  ;;  %v2240_v42 = vpop.permute.xlu1 %2239  ;;  %v8923_v4 = vld [vmem:[#allocation118_spill] sm:$0xff]  ;;  %v8924_v38 = vld [vmem:[#allocation164_spill] sm:$0xff] }
 0x3e9   :  { %v2039_v12 = vadd.f32 %v8901_v18, %v1999_v34  ;;  %v2040_v52 = vadd.f32 %v8902_v31, %v2000_v30  ;;  %v2045_v60 = vadd.f32 %v8903_v54, %v2005_v25  ;;  %v2051_v5 = vadd.f32 %v8905_v29, %v2011_v61  ;;  %v8925_v40 = vld [vmem:[#allocation168_spill] sm:$0xff]  ;;  %v8926_v30 = vld [vmem:[#allocation170_spill] sm:$0xff] }
 0x3ea   :  { %v2046_v10 = vadd.f32 %v8904_v63, %v2006_v22  ;;  %v2052_v37 = vadd.f32 %v8906_v50, %v2012_v1  ;;  %v6870_v13 = vsel %vm74_vm6, %v6800_v9, %v6798_v26  ;;  %v6876_v2 = vsel %vm74_vm6, %v6798_v26, %v6800_v9  ;;  %v8915_v26 = vld [vmem:[#allocation74_spill] sm:$0xff]  ;;  %v8928_v22 = vld [vmem:[#allocation117_spill] sm:$0xff]  ;;  %v8929_v1 = vld [vmem:[#allocation119_spill] sm:$0xff] }
 0x3eb   :  { %v2129_v17 = vsel %vm74_vm6, %v2126_v62, %v2128_v59  ;;  %v2130_v32 = vsel %vm74_vm6, %v2128_v59, %v2126_v62  ;;  %v8908_v43 = vrot.slane %v8907_v7, 4  ;;  %v8910_v0 = vrot.slane %v8909_v24, 4 }
 0x3ec   :  { %v8912_v20 = vrot.slane %v8911_v45, 4  ;;  %v8914_v46 = vrot.slane %v8913_v28, 4  ;;  %v8916_v9 = vrot.slane %v8915_v26, 4  ;;  %v8918_v58 = vrot.slane %v8917_v3, 4 }
 0x3ed   :  { %v2064_v19 = vadd.f32 %v8908_v43, %v2034_v41  ;;  %v2076_v53 = vadd.f32 %v8910_v0, %v2040_v52  ;;  %v8920_v59 = vrot.slane %v8919_v48, 4  ;;  %v8922_v39 = vrot.slane %v8921_v49, 4  ;;  %v8932_v41 = vld [vmem:[#allocation169_spill] sm:$0xff] }
 0x3ee   :  { %v2088_v56 = vadd.f32 %v8912_v20, %v2046_v10  ;;  %v2100_v27 = vadd.f32 %v8914_v46, %v2052_v37  ;;  %v2063_v47 = vadd.f32 %v8916_v9, %v2033_v23  ;;  %v2075_v35 = vadd.f32 %v8918_v58, %v2039_v12  ;;  %v8931_v23 = vld [vmem:[#allocation165_spill] sm:$0xff] }
 0x3ef   :  { %v2087_v62 = vadd.f32 %v8920_v59, %v2045_v60  ;;  %v2099_v14 = vadd.f32 %v8922_v39, %v2051_v5  ;;  %v2106_v16 = vadd.f32 %v8923_v4, %v2064_v19  ;;  %v2112_v51 = vadd.f32 %v8924_v38, %v2076_v53  ;;  %v8943_v59 = vld [vmem:[#allocation140_spill] sm:$0xff]  ;;  %v8944_v49 = vld [vmem:[#allocation141_spill] sm:$0xff] }
 0x3f0   :  { %v2118_v34 = vadd.f32 %v8925_v40, %v2088_v56  ;;  %v2124_v25 = vadd.f32 %v8926_v30, %v2100_v27  ;;  %v2105_v61 = vadd.f32 %v8928_v22, %v2063_v47  ;;  %v2111_v33 = vadd.f32 %v8929_v1, %v2075_v35  ;;  %v2244_v27 = vpop.permute.xlu0 %2243  ;;  %v8949_v30 = vld [vmem:[#allocation146_spill] sm:$0xff] }
 0x3f1   :  { %v2117_v57 = vadd.f32 %v8931_v23, %v2087_v62  ;;  %v2123_v18 = vadd.f32 %v8932_v41, %v2099_v14  ;;  %v2135_v12 = vsel %vm81_vm7, %v2132_v21, %v2134_v36  ;;  %v2136_v31 = vsel %vm81_vm7, %v2134_v36, %v2132_v21  ;;  %v8945_v14 = vld [vmem:[#allocation142_spill] sm:$0xff] }
 0x3f2   :  { %v2241_v52 = vsel %vm74_vm6, %v2238_v55, %v2240_v42  ;;  %v2242_v54 = vsel %vm74_vm6, %v2240_v42, %v2238_v55  ;;  %v2137_v60 = vsel %vm3628_vm8, %v2135_v12, %v2130_v32  ;;  %v2138_v63 = vsel %vm3658_vm9, %v2136_v31, %v2129_v17  ;;  %v8946_v55 = vld [vmem:[#allocation143_spill] sm:$0xff] }
 0x3f3   :  { %v2139_v10 = vsel %vm3712_vm10, %v2130_v32, %v2135_v12  ;;  %v2140_v29 = vsel %vm3718_vm11, %v2129_v17, %v2136_v31  ;;  %v8934_v5 = vstv %s6252_s18  ;;  %v8936_v37 = vstv %s8927_s14  ;;  %v2246_v32 = vpop.permute.xlu1 %2245  ;;  %s8967_s18 = sld [smem:[#allocation43_spill]] }
 0x3f4   :  { %v2143_v36 = vmul.f32 %v8934_v5, %v2137_v60  ;;  %v8935_v21 = vmov %v8934_v5  ;;  %v2149_v7 = vmul.f32 %v8936_v37, %v2137_v60  ;;  %v8937_v43 = vmov %v8936_v37 }
 0x3f5   :  { %v2144_v50 = vmul.f32 %v8935_v21, %v2138_v63  ;;  %v2150_v19 = vmul.f32 %v8937_v43, %v2138_v63  ;;  %v8938_v24 = vstv %s8930_s4  ;;  %v8940_v20 = vstv %s8933_s16  ;;  %v2332_v43 = vpop.permute.xlu0 %2331 }
 0x3f6   :  { %v2155_v0 = vmul.f32 %v8938_v24, %v2137_v60  ;;  %v8939_v53 = vmov %v8938_v24  ;;  %v2161_v56 = vmul.f32 %v8940_v20, %v2137_v60  ;;  %v8941_v28 = vmov %v8940_v20 }
 0x3f7   :  { %v2156_v45 = vmul.f32 %v8939_v53, %v2138_v63  ;;  %v2162_v46 = vmul.f32 %v8941_v28, %v2138_v63  ;;  %v2145_v26 = vadd.f32 %v2143_v36, %v2105_v61  ;;  %v2146_v17 = vadd.f32 %v2144_v50, %v2106_v16  ;;  %v8947_v16 = vld [vmem:[#allocation144_spill] sm:$0xff] }
 0x3f8   :  { %v2151_v9 = vadd.f32 %v2149_v7, %v2111_v33  ;;  %v2152_v47 = vadd.f32 %v2150_v19, %v2112_v51  ;;  %v2157_v3 = vadd.f32 %v2155_v0, %v2117_v57  ;;  %v2163_v35 = vadd.f32 %v2161_v56, %v2123_v18  ;;  %v8948_v51 = vld [vmem:[#allocation145_spill] sm:$0xff]  ;;  %v2334_v7 = vpop.permute.xlu1 %2333 }
 0x3f9   :  { %v2158_v58 = vadd.f32 %v2156_v45, %v2118_v34  ;;  %v2164_v48 = vadd.f32 %v2162_v46, %v2124_v25  ;;  %v2169_v62 = vadd.f32 %v8943_v59, %v2145_v26  ;;  %v2170_v39 = vadd.f32 %v8944_v49, %v2146_v17  ;;  %v8950_v34 = vld [vmem:[#allocation147_spill] sm:$0xff] }
 0x3fa   :  { %v2175_v42 = vadd.f32 %v8945_v14, %v2151_v9  ;;  %v2176_v4 = vadd.f32 %v8946_v55, %v2152_v47  ;;  %v2181_v38 = vadd.f32 %v8947_v16, %v2157_v3  ;;  %v2187_v22 = vadd.f32 %v8949_v30, %v2163_v35 }
 0x3fb   :  { %v2182_v40 = vadd.f32 %v8948_v51, %v2158_v58  ;;  %v2188_v61 = vadd.f32 %v8950_v34, %v2164_v48  ;;  %v8951_v1 = vstv %s8942_s11  ;;  %v8953_v57 = vstv %s8703_s28 }
 0x3fc   :  { %v2191_v33 = vmul.f32 %v8951_v1, %v2139_v10  ;;  %v8952_v25 = vmov %v8951_v1  ;;  %v2197_v41 = vmul.f32 %v8953_v57, %v2139_v10  ;;  %v8954_v18 = vmov %v8953_v57 }
 0x3fd   :  { %v2192_v23 = vmul.f32 %v8952_v25, %v2140_v29  ;;  %v2198_v12 = vmul.f32 %v8954_v18, %v2140_v29  ;;  %v8955_v31 = vstv %s6300_s2  ;;  %v8957_v36 = vstv %s6302_s22  ;;  %s8983_s22 = sld [smem:[#allocation46_spill]]  ;;  %s8986_s2 = sld [smem:[#allocation47_spill]] }
 0x3fe   :  { %v2203_v60 = vmul.f32 %v8955_v31, %v2139_v10  ;;  %v8956_v63 = vmov %v8955_v31  ;;  %v2209_v21 = vmul.f32 %v8957_v36, %v2139_v10  ;;  %v8958_v50 = vmov %v8957_v36 }
 0x3ff   :  { %v2204_v5 = vmul.f32 %v8956_v63, %v2140_v29  ;;  %v2210_v37 = vmul.f32 %v8958_v50, %v2140_v29  ;;  %v2193_v19 = vadd.f32 %v2191_v33, %v2169_v62  ;;  %v2194_v24 = vadd.f32 %v2192_v23, %v2170_v39  ;;  %v8969_v33 = vld [vmem:[#allocation158_spill] sm:$0xff]  ;;  %v8970_v23 = vld [vmem:[#allocation160_spill] sm:$0xff] }
 0x400   :  { %v2199_v0 = vadd.f32 %v2197_v41, %v2175_v42  ;;  %v2200_v53 = vadd.f32 %v2198_v12, %v2176_v4  ;;  %v2205_v45 = vadd.f32 %v2203_v60, %v2181_v38  ;;  %v2211_v56 = vadd.f32 %v2209_v21, %v2187_v22  ;;  %v8971_v41 = vld [vmem:[#allocation162_spill] sm:$0xff]  ;;  %v8973_v60 = vld [vmem:[#allocation159_spill] sm:$0xff] }
 0x401   :  { %v2206_v20 = vadd.f32 %v2204_v5, %v2182_v40  ;;  %v2212_v28 = vadd.f32 %v2210_v37, %v2188_v61  ;;  %v2247_v10 = vsel %vm81_vm7, %v2244_v27, %v2246_v32  ;;  %v2248_v29 = vsel %vm81_vm7, %v2246_v32, %v2244_v27  ;;  %v8972_v12 = vld [vmem:[#allocation166_spill] sm:$0xff]  ;;  %v8974_v5 = vld [vmem:[#allocation161_spill] sm:$0xff]  ;;  %v8975_v21 = vld [vmem:[#allocation163_spill] sm:$0xff] }
 0x402   :  { %v2335_v46 = vsel %vm81_vm7, %v2332_v43, %v2334_v7  ;;  %v2336_v26 = vsel %vm81_vm7, %v2334_v7, %v2332_v43  ;;  %v2249_v17 = vsel %vm3628_vm8, %v2247_v10, %v2242_v54  ;;  %v2250_v9 = vsel %vm3658_vm9, %v2248_v29, %v2241_v52  ;;  %v8976_v37 = vld [vmem:[#allocation167_spill] sm:$0xff] }
 0x403   :  { %v2251_v47 = vsel %vm3712_vm10, %v2242_v54, %v2247_v10  ;;  %v2252_v3 = vsel %vm3718_vm11, %v2241_v52, %v2248_v29  ;;  %v8959_v58 = vstv %s8706_s6  ;;  %v8961_v48 = vstv %s8707_s9  ;;  %s8968_s6 = sld [smem:[#allocation45_spill]] }
 0x404   :  { %v2255_v32 = vmul.f32 %v8959_v58, %v2249_v17  ;;  %v8960_v27 = vmov %v8959_v58  ;;  %v2261_v59 = vmul.f32 %v8961_v48, %v2249_v17  ;;  %v8962_v62 = vmov %v8961_v48 }
 0x405   :  { %v2256_v35 = vmul.f32 %v8960_v27, %v2250_v9  ;;  %v2262_v49 = vmul.f32 %v8962_v62, %v2250_v9  ;;  %v8963_v39 = vstv %s8708_s10  ;;  %v8965_v4 = vstv %s8709_s12 }
 0x406   :  { %v2267_v14 = vmul.f32 %v8963_v39, %v2249_v17  ;;  %v8964_v42 = vmov %v8963_v39  ;;  %v2273_v16 = vmul.f32 %v8965_v4, %v2249_v17  ;;  %v8966_v38 = vmov %v8965_v4 }
 0x407   :  { %v2268_v55 = vmul.f32 %v8964_v42, %v2250_v9  ;;  %v2274_v51 = vmul.f32 %v8966_v38, %v2250_v9  ;;  %v2257_v54 = vadd.f32 %v2255_v32, %v2193_v19  ;;  %v2258_v40 = vadd.f32 %v2256_v35, %v2194_v24 }
 0x408   :  { %v2263_v52 = vadd.f32 %v2261_v59, %v2199_v0  ;;  %v2264_v30 = vadd.f32 %v2262_v49, %v2200_v53  ;;  %v2269_v22 = vadd.f32 %v2267_v14, %v2205_v45  ;;  %v2275_v61 = vadd.f32 %v2273_v16, %v2211_v56 }
 0x409   :  { %v2270_v34 = vadd.f32 %v2268_v55, %v2206_v20  ;;  %v2276_v1 = vadd.f32 %v2274_v51, %v2212_v28  ;;  %v2281_v25 = vadd.f32 %v8969_v33, %v2257_v54  ;;  %v2282_v57 = vadd.f32 %v8970_v23, %v2258_v40 }
 0x40a   :  { %v2287_v18 = vadd.f32 %v8971_v41, %v2263_v52  ;;  %v2288_v31 = vadd.f32 %v8972_v12, %v2264_v30  ;;  %v2293_v63 = vadd.f32 %v8973_v60, %v2269_v22  ;;  %v2299_v50 = vadd.f32 %v8975_v21, %v2275_v61  ;;  %v2438_v41 = vpop.permute.xlu0 %2437 }
 0x40b   :  { %v2294_v36 = vadd.f32 %v8974_v5, %v2270_v34  ;;  %v2300_v7 = vadd.f32 %v8976_v37, %v2276_v1  ;;  %v8977_v43 = vstv %s8967_s18  ;;  %v8979_v53 = vstv %s8713_s8  ;;  %v8997_v37 = vld [vmem:[#allocation83_spill] sm:$0xff] }
 0x40c   :  { %v2303_v19 = vmul.f32 %v8977_v43, %v2251_v47  ;;  %v8978_v24 = vmov %v8977_v43  ;;  %v2309_v45 = vmul.f32 %v8979_v53, %v2251_v47  ;;  %v8980_v20 = vmov %v8979_v53  ;;  %v9001_v53 = vld [vmem:[#allocation127_spill] sm:$0xff] }
 0x40d   :  { %v2304_v0 = vmul.f32 %v8978_v24, %v2252_v3  ;;  %v2310_v56 = vmul.f32 %v8980_v20, %v2252_v3  ;;  %v8981_v28 = vstv %s8968_s6  ;;  %v8984_v9 = vstv %s6370_s21 }
 0x40e   :  { %v2315_v10 = vmul.f32 %v8981_v28, %v2251_v47  ;;  %v8982_v29 = vmov %v8981_v28  ;;  %v2321_v58 = vmul.f32 %v8984_v9, %v2251_v47  ;;  %v8985_v32 = vmov %v8984_v9 }
 0x40f   :  { %v2316_v17 = vmul.f32 %v8982_v29, %v2252_v3  ;;  %v2322_v27 = vmul.f32 %v8985_v32, %v2252_v3  ;;  %v2305_v35 = vadd.f32 %v2303_v19, %v2281_v25  ;;  %v2306_v48 = vadd.f32 %v2304_v0, %v2282_v57  ;;  %v8999_v19 = vld [vmem:[#allocation84_spill] sm:$0xff]  ;;  %v9005_v29 = vld [vmem:[#allocation129_spill] sm:$0xff] }
 0x410   :  { %v2311_v59 = vadd.f32 %v2309_v45, %v2287_v18  ;;  %v2312_v62 = vadd.f32 %v2310_v56, %v2288_v31  ;;  %v2317_v49 = vadd.f32 %v2315_v10, %v2293_v63  ;;  %v2323_v14 = vadd.f32 %v2321_v58, %v2299_v50  ;;  %v9003_v56 = vld [vmem:[#allocation128_spill] sm:$0xff]  ;;  %v9007_v58 = vld [vmem:[#allocation121_spill] sm:$0xff] }
 0x411   :  { %v2318_v39 = vadd.f32 %v2316_v17, %v2294_v36  ;;  %v2324_v42 = vadd.f32 %v2322_v27, %v2300_v7  ;;  %v2337_v47 = vsel %vm3628_vm8, %v2335_v46, %v6876_v2  ;;  %v2338_v3 = vsel %vm3658_vm9, %v2336_v26, %v6870_v13  ;;  %v8995_v36 = vld [vmem:[#allocation82_spill] sm:$0xff] }
 0x412   :  { %v2339_v55 = vsel %vm3712_vm10, %v6876_v2, %v2335_v46  ;;  %v2340_v4 = vsel %vm3718_vm11, %v6870_v13, %v2336_v26  ;;  %v8987_v16 = vstv %s8983_s22  ;;  %v8989_v40 = vstv %s6379_s17  ;;  %v2440_v46 = vpop.permute.xlu1 %2439  ;;  %s9030_s17 = sld [smem:[#allocation37_spill]] }
 0x413   :  { %v2343_v38 = vmul.f32 %v8987_v16, %v2337_v47  ;;  %v8988_v51 = vmov %v8987_v16  ;;  %v2349_v52 = vmul.f32 %v8989_v40, %v2337_v47  ;;  %v8990_v30 = vmov %v8989_v40 }
 0x414   :  { %v2344_v54 = vmul.f32 %v8988_v51, %v2338_v3  ;;  %v2350_v22 = vmul.f32 %v8990_v30, %v2338_v3  ;;  %v8991_v34 = vstv %s6389_s3  ;;  %v8993_v25 = vstv %s8986_s2 }
 0x415   :  { %v2355_v61 = vmul.f32 %v8991_v34, %v2337_v47  ;;  %v8992_v1 = vmov %v8991_v34  ;;  %v2361_v23 = vmul.f32 %v8993_v25, %v2337_v47  ;;  %v8994_v57 = vmov %v8993_v25 }
 0x416   :  { %v2356_v33 = vmul.f32 %v8992_v1, %v2338_v3  ;;  %v2362_v2 = vmul.f32 %v8994_v57, %v2338_v3  ;;  %v2345_v18 = vadd.f32 %v2343_v38, %v2305_v35  ;;  %v2346_v13 = vadd.f32 %v2344_v54, %v2306_v48  ;;  %v9009_v35 = vld [vmem:[#allocation125_spill] sm:$0xff]  ;;  %v2444_v1 = vpop.permute.xlu0 %2443 }
 0x417   :  { %v2351_v26 = vadd.f32 %v2349_v52, %v2311_v59  ;;  %v2352_v12 = vadd.f32 %v2350_v22, %v2312_v62  ;;  %v2357_v31 = vadd.f32 %v2355_v61, %v2317_v49  ;;  %v2363_v63 = vadd.f32 %v2361_v23, %v2323_v14  ;;  %v2446_v61 = vpop.permute.xlu1 %2445 }
 0x418   :  { %v2358_v60 = vadd.f32 %v2356_v33, %v2318_v39  ;;  %v2364_v5 = vadd.f32 %v2362_v2, %v2324_v42  ;;  %v8996_v21 = vrot.slane %v8995_v36, 6  ;;  %v8998_v7 = vrot.slane %v8997_v37, 6 }
 0x419   :  { %v9000_v24 = vrot.slane %v8999_v19, 6  ;;  %v9002_v45 = vrot.slane %v9001_v53, 6  ;;  %v9004_v28 = vrot.slane %v9003_v56, 6  ;;  %v9006_v17 = vrot.slane %v9005_v29, 6 }
 0x41a   :  { %v2375_v50 = vadd.f32 %v8996_v21, %v2345_v18  ;;  %v2376_v43 = vadd.f32 %v8998_v7, %v2346_v13  ;;  %v9008_v32 = vrot.slane %v9007_v58, 6  ;;  %v9010_v48 = vrot.slane %v9009_v35, 6  ;;  %v9031_v58 = vld [vmem:[#allocation149_spill] sm:$0xff] }
 0x41b   :  { %v2387_v0 = vadd.f32 %v9000_v24, %v2351_v26  ;;  %v2388_v20 = vadd.f32 %v9002_v45, %v2352_v12  ;;  %v2399_v10 = vadd.f32 %v9004_v28, %v2357_v31  ;;  %v2400_v9 = vadd.f32 %v9006_v17, %v2358_v60 }
 0x41c   :  { %v2411_v27 = vadd.f32 %v9008_v32, %v2363_v63  ;;  %v2412_v59 = vadd.f32 %v9010_v48, %v2364_v5  ;;  %v9011_v62 = vstv %s6409_s13  ;;  %v9013_v42 = vstv %s6411_s27  ;;  %s9029_s13 = sld [smem:[#allocation36_spill]]  ;;  %v9033_v48 = vld [vmem:[#allocation154_spill] sm:$0xff] }
 0x41d   :  { %v2415_v49 = vmul.f32 %v9011_v62, %v2339_v55  ;;  %v9012_v39 = vmov %v9011_v62  ;;  %v2421_v47 = vmul.f32 %v9013_v42, %v2339_v55  ;;  %v9014_v3 = vmov %v9013_v42  ;;  %v9034_v62 = vld [vmem:[#allocation156_spill] sm:$0xff]  ;;  %v9036_v42 = vld [vmem:[#allocation153_spill] sm:$0xff] }
 0x41e   :  { %v2416_v14 = vmul.f32 %v9012_v39, %v2340_v4  ;;  %v2422_v16 = vmul.f32 %v9014_v3, %v2340_v4  ;;  %v9015_v38 = vstv %s8714_s25  ;;  %v9017_v52 = vstv %s8715_s30  ;;  %s9027_s25 = sld [smem:[#allocation35_spill]]  ;;  %s9028_s30 = sld [smem:[#allocation183_spill]]  ;;  %v9035_v39 = vld [vmem:[#allocation150_spill] sm:$0xff]  ;;  %v9037_v3 = vld [vmem:[#allocation155_spill] sm:$0xff] }
 0x41f   :  { %v2427_v51 = vmul.f32 %v9015_v38, %v2339_v55  ;;  %v9016_v54 = vmov %v9015_v38  ;;  %v2433_v30 = vmul.f32 %v9017_v52, %v2339_v55  ;;  %v9018_v22 = vmov %v9017_v52  ;;  %v9038_v38 = vld [vmem:[#allocation157_spill] sm:$0xff] }
 0x420   :  { %v2428_v40 = vmul.f32 %v9016_v54, %v2340_v4  ;;  %v2434_v34 = vmul.f32 %v9018_v22, %v2340_v4  ;;  %v2417_v33 = vadd.f32 %v2415_v49, %v2375_v50  ;;  %v2418_v25 = vadd.f32 %v2416_v14, %v2376_v43 }
 0x421   :  { %v2423_v23 = vadd.f32 %v2421_v47, %v2387_v0  ;;  %v2424_v57 = vadd.f32 %v2422_v16, %v2388_v20  ;;  %v2429_v2 = vadd.f32 %v2427_v51, %v2399_v10  ;;  %v2435_v13 = vadd.f32 %v2433_v30, %v2411_v27  ;;  %v9032_v27 = vld [vmem:[#allocation151_spill] sm:$0xff] }
 0x422   :  { %v2430_v18 = vadd.f32 %v2428_v40, %v2400_v9  ;;  %v2436_v26 = vadd.f32 %v2434_v34, %v2412_v59  ;;  %v2441_v55 = vsel %vm74_vm6, %v2438_v41, %v2440_v46  ;;  %v2442_v4 = vsel %vm74_vm6, %v2440_v46, %v2438_v41 }
 0x423   :  { %v2447_v12 = vsel %vm81_vm7, %v2444_v1, %v2446_v61  ;;  %v2448_v31 = vsel %vm81_vm7, %v2446_v61, %v2444_v1  ;;  %v9019_v21 = vstv %s8716_s0  ;;  %v9021_v37 = vstv %s8717_s23 }
 0x424   :  { %v2449_v60 = vsel %vm3628_vm8, %v2447_v12, %v2442_v4  ;;  %v2450_v63 = vsel %vm3658_vm9, %v2448_v31, %v2441_v55  ;;  %v2451_v5 = vsel %vm3712_vm10, %v2442_v4, %v2447_v12  ;;  %v2452_v36 = vsel %vm3718_vm11, %v2441_v55, %v2448_v31 }
 0x425   :  { %v2455_v46 = vmul.f32 %v9019_v21, %v2449_v60  ;;  %v9020_v41 = vmov %v9019_v21  ;;  %v2461_v7 = vmul.f32 %v9021_v37, %v2449_v60  ;;  %v9022_v15 = vmov %v9021_v37 }
 0x426   :  { %v2456_v50 = vmul.f32 %v9020_v41, %v2450_v63  ;;  %v2462_v43 = vmul.f32 %v9022_v15, %v2450_v63  ;;  %v9023_v19 = vstv %s8718_s19  ;;  %v2473_v53 = vmul.f32 %v9025_v11, %v2449_v60  ;;  %s2962_s19 = smov [#allocation8]  }
 0x427   :  { %v2467_v8 = vmul.f32 %v9023_v19, %v2449_v60  ;;  %v9024_v24 = vmov %v9023_v19  ;;  %v9026_v45 = vmov %v9025_v11  ;;  %v2457_v20 = vadd.f32 %v2455_v46, %v2417_v33  ;;  %s2584_s27 = sshll.u32 %s2962_s19, 4  ;;  %s2585_s27 = int_to_ptr.vmem [resolvable:$true] %s2584_s27 }
 0x428   :  { %v2468_v0 = vmul.f32 %v9024_v24, %v2450_v63  ;;  %v2474_v44 = vmul.f32 %v9026_v45, %v2450_v63  ;;  %v2458_v6 = vadd.f32 %v2456_v50, %v2418_v25  ;;  %v2463_v56 = vadd.f32 %v2461_v7, %v2423_v23  ;;  %s2928_s3 = scalar_lea.vmem %s2585_s27, 256  ;;  %p2933_p0 = scmp.lt.s32.totalorder %s2585_s27, %s2585_s27 }
 0x429   :  { %v2464_v28 = vadd.f32 %v2462_v43, %v2424_v57  ;;  %v2469_v10 = vadd.f32 %v2467_v8, %v2429_v2  ;;  %v2475_v17 = vadd.f32 %v2473_v53, %v2435_v13  ;;  %v2481_v32 = vadd.f32 %v9031_v58, %v2457_v20  ;;  %v2573_v58 = vld [vmem:[#allocation7 + $0x8] sm:$0xff]  ;;  %p2929_p13 = scmp.ne.s32.totalorder %s2585_s27, %s2928_s3  ;;  %p2934_p1 = scmp.lt.s32.totalorder %s2928_s3, %s2928_s3 }
 0x42a   :  { %v2470_v29 = vadd.f32 %v2468_v0, %v2430_v18  ;;  %v2476_v9 = vadd.f32 %v2474_v44, %v2436_v26  ;;  %v2482_v35 = vadd.f32 %v9032_v27, %v2458_v6  ;;  %v2487_v59 = vadd.f32 %v9033_v48, %v2463_v56 }
 0x42b   :  { %v2488_v49 = vadd.f32 %v9034_v62, %v2464_v28  ;;  %v2493_v14 = vadd.f32 %v9035_v39, %v2469_v10  ;;  %v2499_v16 = vadd.f32 %v9037_v3, %v2475_v17  ;;  %v9039_v54 = vstv %s9027_s25  ;;  %p2935_p2 = por %p2934_p1, %p2933_p0 }
 0x42c   :  { %v2494_v47 = vadd.f32 %v9036_v42, %v2470_v29  ;;  %v2500_v51 = vadd.f32 %v9038_v38, %v2476_v9  ;;  %v2503_v40 = vmul.f32 %v9039_v54, %v2451_v5  ;;  %v9040_v52 = vmov %v9039_v54  ;;  %v2572_v9 = vld [vmem:[#allocation7] sm:$0xff] }
 0x42d   :  { %v2504_v30 = vmul.f32 %v9040_v52, %v2452_v36  ;;  %v9041_v22 = vstv %s9028_s30  ;;  %v9043_v33 = vstv %s9029_s13  ;;  %v9045_v2 = vstv %s9030_s17  ;;  %p2936_p3 = pnand %p2935_p2, %p2929_p13 }
 0x42e   :  { %v2509_v34 = vmul.f32 %v9041_v22, %v2451_v5  ;;  %v9042_v61 = vmov %v9041_v22  ;;  %v2515_v25 = vmul.f32 %v9043_v33, %v2451_v5  ;;  %v9044_v23 = vmov %v9043_v33 }
 0x42f   :  { %v2510_v1 = vmul.f32 %v9042_v61, %v2452_v36  ;;  %v2516_v57 = vmul.f32 %v9044_v23, %v2452_v36  ;;  %v2521_v18 = vmul.f32 %v9045_v2, %v2451_v5  ;;  %v9046_v13 = vmov %v9045_v2 }
 0x430   :  { %v2522_v26 = vmul.f32 %v9046_v13, %v2452_v36  ;;  %v2505_v55 = vadd.f32 %v2503_v40, %v2481_v32  ;;  %v2506_v4 = vadd.f32 %v2504_v30, %v2482_v35  ;;  %v2511_v12 = vadd.f32 %v2509_v34, %v2487_v59 }
 0x431   :  { %v2512_v31 = vadd.f32 %v2510_v1, %v2488_v49  ;;  %v2517_v60 = vadd.f32 %v2515_v25, %v2493_v14  ;;  %v2518_v63 = vadd.f32 %v2516_v57, %v2494_v47  ;;  %v2523_v21 = vadd.f32 %v2521_v18, %v2499_v16 }
 0x432   :  { %v2524_v46 = vadd.f32 %v2522_v26, %v2500_v51  ;;  %2525 = vst [vmem:[#allocation2] sm:$0x3] %v2505_v55  ;;  %2526 = vst [vmem:[#allocation2 + $0x8] sm:$0x3] %v2506_v4  ;;  %v2529_v41 = vrot.slane %v2511_v12, 6 }
 0x433   :  { %v2530_v50 = vrot.slane %v2512_v31, 6  ;;  %v2537_v37 = vrot.slane %v2517_v60, 4  ;;  %v2538_v7 = vrot.slane %v2518_v63, 4  ;;  %v2545_v15 = vrot.slane %v2523_v21, 2 }
 0x434   :  { %v2546_v43 = vrot.slane %v2524_v46, 2  ;;  %2533 = vst [vmem:[#allocation2] sm:$0xc] %v2529_v41 }
 0x435   :  { %2534 = vst [vmem:[#allocation2 + $0x8] sm:$0xc] %v2530_v50  ;;  %2541 = vst [vmem:[#allocation2] sm:$0x30] %v2537_v37 }
 0x436   :  { %2542 = vst [vmem:[#allocation2 + $0x8] sm:$0x30] %v2538_v7  ;;  %2549 = vst [vmem:[#allocation2] sm:$0xc0] %v2545_v15 }
 0x437   :  { %2550 = vst [vmem:[#allocation2 + $0x8] sm:$0xc0] %v2546_v43 }
 0x43d   :  { %v2551_v5 = vld [vmem:[#allocation2] sm:$0xff] }
 0x43e   :  { %v2552_v36 = vld [vmem:[#allocation2 + $0x8] sm:$0xff]  ;;  %v2556_v8 = vmul.f32 %v2551_v5, %v2551_v5 }
 0x43f   :  { %v2553_v19 = vadd.f32 %v2552_v36, %v2551_v5  ;;  %v2557_v24 = vmul.f32 %v2552_v36, %v2552_v36 }
 0x441   :  { %2554 = vadd.xlane.f32.xlu0 %v2553_v19  ;;  %v2558_v0 = vadd.f32 %v2557_v24, %v2556_v8 }
 0x443   :  { %2559 = vadd.xlane.f32.xlu1 %v2558_v0 }
 0x4ce   :  { %v2555_v11 = vpop.xlane.xlu0 %2554 }
 0x4cf   :  { %v2561_v53 = vmul.f32 0.00390625, %v2555_v11 }
 0x4d0   :  { %v2560_v45 = vpop.xlane.xlu1 %2559 }
 0x4d1   :  { %v2562_v44 = vmul.f32 0.00390625, %v2560_v45  ;;  %v2563_v20 = vmul.f32 %v2561_v53, %v2561_v53  ;;  %v2566_v10 = vsub.f32 %v2551_v5, %v2561_v53  ;;  %v2567_v29 = vsub.f32 %v2552_v36, %v2561_v53 }
 0x4d3   :  { %v2564_v6 = vsub.f32 %v2562_v44, %v2563_v20 }
 0x4d5   :  { %v2565_v56 = vmax.f32 %v2564_v6, 0.0 }
 0x4d7   :  { %v2568_v28 = vadd.f32 1e-05, %v2565_v56 }
 0x4d9   :  { %2890 = vrsqrt.f32 %v2568_v28 }
 0x4e3   :  { %v2891_v17 = vpop.eup %2890 }
 0x4e4   :  { %v2570_v32 = vmul.f32 %v2891_v17, %v2566_v10  ;;  %v2571_v27 = vmul.f32 %v2891_v17, %v2567_v29 }
 0x4e6   :  { %v2574_v35 = vadd.f32 %v2572_v9, %v2570_v32  ;;  %v2575_v48 = vadd.f32 %v2573_v58, %v2571_v27 }
 0x4e8   :  { %2576 = vst [vmem:[#allocation8] sm:$0xff] %v2574_v35  ;;  %2577 = vst [vmem:[#allocation8 + $0x8] sm:$0xff] %v2575_v48 }
 0x4e9   :  { %2939 = shalt.err (!%p2936_p3)
}
 0x4ea   :  { %s9047_s23 = sld [smem:[#allocation184_spill]] }
 0x4f0   :  { %s2940_s21 = scalar_lea.hbm %s9047_s23, 256 }
 0x4f1   :  { %p2941_p4 = scmp.ne.s32.totalorder %s9047_s23, %s2940_s21  ;;  %p2944_p5 = scmp.lt.u32.totalorder %s2940_s21, %s9047_s23 }
 0x4f3   :  { %p2946_p6 = pnand %p2944_p5, %p2941_p4 }
 0x4f5   :  { %2949 = shalt.err (!%p2946_p6)
}
 0x4f6   :  { %2587 = dma.vmem_to_hbm [thread:$0]  %s2585_s27, 256, %s9047_s23, [#allocation5]  }
 0x4f7   :  { %2954 = dma.done.wait [#allocation5], 256  }
 0x4f8   :  { %2955 = vsyncadd [#allocation5], 4294967040 }
 0x4f9   :  { %2591 = vsyncpa [#allocation4], 1 }
 0x4fa   :  { %2592 = vsyncpa [#allocation5], 1 }
 0x4fb   :  { %2593 = vsyncpa [#allocation6], 1 }

</bundles_post_ra>
